<compile_context>
chip_gen: v7x
topology: tpu7x:2x2x1
jax: 0.10.0
libtpu: 0.0.40
codegen_flags: <defaults>
</compile_context>

<pallas_src>
import functools

import numpy as np
import jax
import jax.numpy as jnp
from jax.experimental import pallas as pl
from jax.experimental.pallas import tpu as pltpu

EPS = 1e-5  # PyTorch InstanceNorm3d default (affine=False)


def _round_up(x, m):
    return (x + m - 1) // m * m


def _masked_inorm_relu(v, mask, count):
    """Instance norm over the lane (flat-spatial) axis using only mask==1
    positions (count = number of valid positions), then ReLU.  Stats in f32."""
    inv = 1.0 / float(count)
    m = jnp.sum(v * mask, axis=-1, keepdims=True) * inv
    d = v - m
    var = jnp.sum(d * d * mask, axis=-1, keepdims=True) * inv
    return jnp.maximum(d * jax.lax.rsqrt(var + EPS), 0.0)


def residual_block_pallas(x, w1, w2, w3, wsc, *, kernel_size, stride, padding, dilation):
    """x: (N, C_last, D, H, W) f32.  Weights in PyTorch OIDHW layout."""
    N, C_last, D, H, W = x.shape
    C_mid = w1.shape[0]          # in_planes
    C_out = w3.shape[0]          # out_planes
    k, s, p, dl = kernel_size, stride, padding, dilation

    # ---------------- static geometry (python ints / numpy) ----------------
    Dp, Hp, Wp = D + 2 * p, H + 2 * p, W + 2 * p
    HpWp = Hp * Wp
    Sp = Dp * HpWp               # padded flat spatial size
    S = D * H * W                # valid spatial size (norm count for n0/n1)

    span = dl * (k - 1)
    Do = (D + 2 * p - span - 1) // s + 1
    Ho = (H + 2 * p - span - 1) // s + 1
    Wo = (W + 2 * p - span - 1) // s + 1
    S_out = Do * Ho * Wo
    # shortcut (1x1x1, stride s) output must match the main path for the add
    assert ((D - 1) // s + 1, (H - 1) // s + 1, (W - 1) // s + 1) == (Do, Ho, Wo), \
        "main-path / shortcut shape mismatch for this (k, stride, pad, dil)"

    # conv2 taps as flat offsets inside the padded volume
    tap_offs = [(kd * HpWp + kh * Wp + kw) * dl
                for kd in range(k) for kh in range(k) for kw in range(k)]
    max_off = max(tap_offs)
    off_sc = p * (HpWp + Wp + 1)          # shortcut reads x_pad at q + off_sc

    # selected (strided, in-range) output positions in the padded-flat frame
    sel = (np.arange(Do)[:, None, None] * s * HpWp
           + np.arange(Ho)[None, :, None] * s * Wp
           + np.arange(Wo)[None, None, :] * s).reshape(-1).astype(np.int32)

    Q = _round_up(int(sel.max()) + 1, 128)                       # lane-dense out width
    Sp_ext = _round_up(max(Sp, Q + max(max_off, off_sc)), 128)   # lane-dense in width

    # static validity masks (computed once at trace time with numpy)
    m_in = np.zeros((Dp, Hp, Wp), np.float32)
    m_in[p:p + D, p:p + H, p:p + W] = 1.0
    m_in = np.pad(m_in.reshape(-1), (0, Sp_ext - Sp))[None, :]   # (1, Sp_ext)
    m_out = np.zeros((Q,), np.float32)
    m_out[sel] = 1.0
    m_out = m_out[None, :]                                       # (1, Q)

    # ------------- host-side glue: spatial zero-pad + flatten x -------------
    xp = jnp.pad(x, ((0, 0), (0, 0), (p, p), (p, p), (p, p))).reshape(N, C_last, Sp)
    xp = jnp.pad(xp, ((0, 0), (0, 0), (0, Sp_ext - Sp)))

    # conv2 weights as (k^3, O, I) bf16 for the MXU taps; 1x1x1 weights -> SMEM
    k3 = k * k * k
    w2_t = jnp.transpose(w2.reshape(C_mid, C_mid, k3), (2, 0, 1)).astype(jnp.bfloat16)
    w1_s = w1.reshape(C_mid, C_last).astype(jnp.float32)
    w3_s = w3.reshape(C_out, C_mid).astype(jnp.float32)
    wsc_s = wsc.reshape(C_out, C_last).astype(jnp.float32)

    # ------------------------------ fused kernel -----------------------------
    def kernel(x_ref, min_ref, mout_ref, w2_ref, w1_ref, w3_ref, wsc_ref, out_ref):
        xv = x_ref[0]                       # (C_last, Sp_ext) f32, zero in pad ring
        mask_in = min_ref[...]              # (1, Sp_ext)
        mask_out = mout_ref[...]            # (1, Q)

        # ---- n0 + relu (pad positions are zero, so plain sums are exact) ----
        h0 = _masked_inorm_relu(xv, mask_in, S)

        # ---- conv1 (1x1x1): VPU scalar-FMA over C_last (tiny K, skip MXU) ----
        rows = []
        for o in range(C_mid):
            r = w1_ref[o, 0] * h0[0:1, :]
            for c in range(1, C_last):
                r = r + w1_ref[o, c] * h0[c:c + 1, :]
            rows.append(r)
        y1 = jnp.concatenate(rows, axis=0)                  # (C_mid, Sp_ext)

        # ---- n1 + relu; re-zero the pad ring so conv2 sees true zero padding
        h1 = _masked_inorm_relu(y1, mask_in, S) * mask_in

        # ---- conv2 (k^3 taps): accumulated MXU matmuls on lane-shifted views
        acc = jnp.zeros((C_mid, Q), jnp.float32)
        for t, off in enumerate(tap_offs):
            sl = h1[:, off:off + Q].astype(jnp.bfloat16)    # bf16 operands,
            acc = acc + jnp.dot(w2_ref[t], sl,              # f32 accumulation
                                preferred_element_type=jnp.float32)

        # ---- n2 + relu (stats over the S_out selected output positions only)
        h2 = _masked_inorm_relu(acc, mask_out, S_out)

        # ---- conv3 + shortcut + residual add, one lane-dense output row each
        xsh = xv[:, off_sc:off_sc + Q]                      # shortcut taps of x
        for o in range(C_out):
            r = w3_ref[o, 0] * h2[0:1, :]
            for c in range(1, C_mid):
                r = r + w3_ref[o, c] * h2[c:c + 1, :]
            for c in range(C_last):
                r = r + wsc_ref[o, c] * xsh[c:c + 1, :]
            out_ref[0, o:o + 1, :] = r

    out_flat = pl.pallas_call(
        kernel,
        out_shape=jax.ShapeDtypeStruct((N, C_out, Q), jnp.float32),
        grid=(N,),
        in_specs=[
            pl.BlockSpec((1, C_last, Sp_ext), lambda n: (n, 0, 0)),
            pl.BlockSpec((1, Sp_ext), lambda n: (0, 0)),
            pl.BlockSpec((1, Q), lambda n: (0, 0)),
            pl.BlockSpec((k3, C_mid, C_mid), lambda n: (0, 0, 0)),
            pl.BlockSpec(memory_space=pltpu.MemorySpace.SMEM),
            pl.BlockSpec(memory_space=pltpu.MemorySpace.SMEM),
            pl.BlockSpec(memory_space=pltpu.MemorySpace.SMEM),
        ],
        out_specs=pl.BlockSpec((1, C_out, Q), lambda n: (n, 0, 0)),
        compiler_params=pltpu.CompilerParams(dimension_semantics=("parallel",)),
    )(xp, jnp.asarray(m_in), jnp.asarray(m_out), w2_t, w1_s, w3_s, wsc_s)

    # host-side glue: gather the valid / strided output positions and reshape
    out = jnp.take(out_flat, jnp.asarray(sel), axis=2)
    return out.reshape(N, C_out, Do, Ho, Wo)


# ---------------------------- pure-JAX reference ----------------------------

def residual_block_ref(x, w1, w2, w3, wsc, *, kernel_size, stride, padding, dilation):
    def inorm(y):
        m = y.mean(axis=(2, 3, 4), keepdims=True)
        v = ((y - m) ** 2).mean(axis=(2, 3, 4), keepdims=True)
        return (y - m) / jnp.sqrt(v + EPS)

    def conv(y, w, s=1, p=0, d=1):
        return jax.lax.conv_general_dilated(
            y, w, window_strides=(s,) * 3, padding=[(p, p)] * 3,
            rhs_dilation=(d,) * 3,
            dimension_numbers=("NCDHW", "OIDHW", "NCDHW"))

    out = jax.nn.relu(inorm(x))
    out = jax.nn.relu(inorm(conv(out, w1)))
    out = jax.nn.relu(inorm(conv(out, w2, s=stride, p=padding, d=dilation)))
    out = conv(out, w3)
    sc = conv(x, wsc, s=stride)
    return out + sc


# --------------------------------- main -------------------------------------

if __name__ == "__main__":
    # ResidualBlock(last_planes=4, in_planes=4, out_planes=8,
    #               kernel_size=3, stride=1, padding=1, dilation=1)
    last_planes, in_planes, out_planes = 4, 4, 8
    kernel_size, stride, padding, dilation = 3, 1, 1, 1
    N, D, H, W = 2, 8, 8, 8

    key = jax.random.PRNGKey(0)
    kx, k1, k2, k3_, ksc = jax.random.split(key, 5)
    x = jax.random.normal(kx, (N, last_planes, D, H, W), jnp.float32)
    w1 = 0.1 * jax.random.normal(k1, (in_planes, last_planes, 1, 1, 1), jnp.float32)
    w2 = 0.1 * jax.random.normal(
        k2, (in_planes, in_planes, kernel_size, kernel_size, kernel_size), jnp.float32)
    w3 = 0.1 * jax.random.normal(k3_, (out_planes, in_planes, 1, 1, 1), jnp.float32)
    wsc = 0.1 * jax.random.normal(ksc, (out_planes, last_planes, 1, 1, 1), jnp.float32)

    fwd = jax.jit(functools.partial(
        residual_block_pallas,
        kernel_size=kernel_size, stride=stride, padding=padding, dilation=dilation))

    out = jax.block_until_ready(fwd(x, w1, w2, w3, wsc))
    ref = jax.block_until_ready(residual_block_ref(
        x, w1, w2, w3, wsc,
        kernel_size=kernel_size, stride=stride, padding=padding, dilation=dilation))

    assert out.shape == ref.shape, (out.shape, ref.shape)
    max_err = float(jnp.max(jnp.abs(out - ref)))
    assert max_err < 5e-2, f"max abs error too large: {max_err}"

    print("KERNEL_OK")
</pallas_src>

<mosaic_0001>
module attributes {stable_mosaic.version = 11 : i64} {
  func.func @kernel(%arg0: i32, %arg1: memref<1x4x1152xf32, #tpu.memory_space<vmem>>, %arg2: memref<1x1152xf32, #tpu.memory_space<vmem>>, %arg3: memref<1x896xf32, #tpu.memory_space<vmem>>, %arg4: memref<27x4x4xbf16, #tpu.memory_space<vmem>>, %arg5: memref<4x4xf32, #tpu.memory_space<smem>>, %arg6: memref<8x4xf32, #tpu.memory_space<smem>>, %arg7: memref<8x4xf32, #tpu.memory_space<smem>>, %arg8: memref<1x8x896xf32, #tpu.memory_space<vmem>>) attributes {dimension_semantics = [#tpu.dimension_semantics<parallel>], iteration_bounds = array<i64: 2>, scalar_prefetch = 0 : i64, scratch_operands = 0 : i64, tpu.core_type = #tpu.core_type<tc>, window_params = [{transform_indices = @transform_0, window_bounds = array<i64: 1, 4, 1152>}, {pipeline_mode = #tpu.pipeline_mode<synchronous>, transform_indices = @transform_1, window_bounds = array<i64: 1, 1152>}, {pipeline_mode = #tpu.pipeline_mode<synchronous>, transform_indices = @transform_2, window_bounds = array<i64: 1, 896>}, {pipeline_mode = #tpu.pipeline_mode<synchronous>, transform_indices = @transform_3, window_bounds = array<i64: 27, 4, 4>}, {transform_indices = @transform_4, window_bounds = array<i64: 4, 4>}, {transform_indices = @transform_5, window_bounds = array<i64: 8, 4>}, {transform_indices = @transform_6, window_bounds = array<i64: 8, 4>}, {transform_indices = @transform_7, window_bounds = array<i64: 1, 8, 896>}]} {
    %c0 = arith.constant 0 : index
    %c0_0 = arith.constant 0 : index
    %c0_1 = arith.constant 0 : index
    %0 = vector.load %arg1[%c0, %c0_0, %c0_1] : memref<1x4x1152xf32, #tpu.memory_space<vmem>>, vector<1x4x1152xf32>
    %1 = vector.shape_cast %0 : vector<1x4x1152xf32> to vector<4x1152xf32>
    %c0_2 = arith.constant 0 : index
    %c0_3 = arith.constant 0 : index
    %2 = vector.load %arg2[%c0_2, %c0_3] : memref<1x1152xf32, #tpu.memory_space<vmem>>, vector<1x1152xf32>
    %c0_4 = arith.constant 0 : index
    %c0_5 = arith.constant 0 : index
    %3 = vector.load %arg3[%c0_4, %c0_5] : memref<1x896xf32, #tpu.memory_space<vmem>>, vector<1x896xf32>
    %4 = vector.broadcast %2 : vector<1x1152xf32> to vector<4x1152xf32>
    %5 = arith.mulf %1, %4 : vector<4x1152xf32>
    %cst = arith.constant dense<0.000000e+00> : vector<4xf32>
    %6 = vector.multi_reduction <add>, %5, %cst [1] : vector<4x1152xf32> to vector<4xf32>
    %7 = vector.shape_cast %6 : vector<4xf32> to vector<4x1xf32>
    %cst_6 = arith.constant 0.001953125 : f32
    %8 = vector.broadcast %cst_6 : f32 to vector<4x1xf32>
    %9 = arith.mulf %7, %8 : vector<4x1xf32>
    %10 = vector.broadcast %9 : vector<4x1xf32> to vector<4x1152xf32>
    %11 = arith.subf %1, %10 : vector<4x1152xf32>
    %12 = arith.mulf %11, %11 : vector<4x1152xf32>
    %13 = vector.broadcast %2 : vector<1x1152xf32> to vector<4x1152xf32>
    %14 = arith.mulf %12, %13 : vector<4x1152xf32>
    %cst_7 = arith.constant dense<0.000000e+00> : vector<4xf32>
    %15 = vector.multi_reduction <add>, %14, %cst_7 [1] : vector<4x1152xf32> to vector<4xf32>
    %16 = vector.shape_cast %15 : vector<4xf32> to vector<4x1xf32>
    %cst_8 = arith.constant 0.001953125 : f32
    %17 = vector.broadcast %cst_8 : f32 to vector<4x1xf32>
    %18 = arith.mulf %16, %17 : vector<4x1xf32>
    %cst_9 = arith.constant 9.99999974E-6 : f32
    %19 = vector.broadcast %cst_9 : f32 to vector<4x1xf32>
    %20 = arith.addf %18, %19 : vector<4x1xf32>
    %21 = math.rsqrt %20 : vector<4x1xf32>
    %22 = vector.broadcast %21 : vector<4x1xf32> to vector<4x1152xf32>
    %23 = arith.mulf %11, %22 : vector<4x1152xf32>
    %cst_10 = arith.constant 0.000000e+00 : f32
    %24 = vector.broadcast %cst_10 : f32 to vector<4x1152xf32>
    %25 = arith.maximumf %23, %24 : vector<4x1152xf32>
    %c0_11 = arith.constant 0 : index
    %c0_12 = arith.constant 0 : index
    %26 = memref.load %arg5[%c0_11, %c0_12] : memref<4x4xf32, #tpu.memory_space<smem>>
    %27 = vector.extract_strided_slice %25 {offsets = [0, 0], sizes = [1, 1152], strides = [1, 1]} : vector<4x1152xf32> to vector<1x1152xf32>
    %28 = vector.broadcast %26 : f32 to vector<1x1152xf32>
    %29 = arith.mulf %28, %27 : vector<1x1152xf32>
    %c0_13 = arith.constant 0 : index
    %c1 = arith.constant 1 : index
    %30 = memref.load %arg5[%c0_13, %c1] : memref<4x4xf32, #tpu.memory_space<smem>>
    %31 = vector.extract_strided_slice %25 {offsets = [1, 0], sizes = [1, 1152], strides = [1, 1]} : vector<4x1152xf32> to vector<1x1152xf32>
    %32 = vector.broadcast %30 : f32 to vector<1x1152xf32>
    %33 = arith.mulf %32, %31 : vector<1x1152xf32>
    %34 = arith.addf %29, %33 : vector<1x1152xf32>
    %c0_14 = arith.constant 0 : index
    %c2 = arith.constant 2 : index
    %35 = memref.load %arg5[%c0_14, %c2] : memref<4x4xf32, #tpu.memory_space<smem>>
    %36 = vector.extract_strided_slice %25 {offsets = [2, 0], sizes = [1, 1152], strides = [1, 1]} : vector<4x1152xf32> to vector<1x1152xf32>
    %37 = vector.broadcast %35 : f32 to vector<1x1152xf32>
    %38 = arith.mulf %37, %36 : vector<1x1152xf32>
    %39 = arith.addf %34, %38 : vector<1x1152xf32>
    %c0_15 = arith.constant 0 : index
    %c3 = arith.constant 3 : index
    %40 = memref.load %arg5[%c0_15, %c3] : memref<4x4xf32, #tpu.memory_space<smem>>
    %41 = vector.extract_strided_slice %25 {offsets = [3, 0], sizes = [1, 1152], strides = [1, 1]} : vector<4x1152xf32> to vector<1x1152xf32>
    %42 = vector.broadcast %40 : f32 to vector<1x1152xf32>
    %43 = arith.mulf %42, %41 : vector<1x1152xf32>
    %44 = arith.addf %39, %43 : vector<1x1152xf32>
    %c1_16 = arith.constant 1 : index
    %c0_17 = arith.constant 0 : index
    %45 = memref.load %arg5[%c1_16, %c0_17] : memref<4x4xf32, #tpu.memory_space<smem>>
    %46 = vector.extract_strided_slice %25 {offsets = [0, 0], sizes = [1, 1152], strides = [1, 1]} : vector<4x1152xf32> to vector<1x1152xf32>
    %47 = vector.broadcast %45 : f32 to vector<1x1152xf32>
    %48 = arith.mulf %47, %46 : vector<1x1152xf32>
    %c1_18 = arith.constant 1 : index
    %c1_19 = arith.constant 1 : index
    %49 = memref.load %arg5[%c1_18, %c1_19] : memref<4x4xf32, #tpu.memory_space<smem>>
    %50 = vector.extract_strided_slice %25 {offsets = [1, 0], sizes = [1, 1152], strides = [1, 1]} : vector<4x1152xf32> to vector<1x1152xf32>
    %51 = vector.broadcast %49 : f32 to vector<1x1152xf32>
    %52 = arith.mulf %51, %50 : vector<1x1152xf32>
    %53 = arith.addf %48, %52 : vector<1x1152xf32>
    %c1_20 = arith.constant 1 : index
    %c2_21 = arith.constant 2 : index
    %54 = memref.load %arg5[%c1_20, %c2_21] : memref<4x4xf32, #tpu.memory_space<smem>>
    %55 = vector.extract_strided_slice %25 {offsets = [2, 0], sizes = [1, 1152], strides = [1, 1]} : vector<4x1152xf32> to vector<1x1152xf32>
    %56 = vector.broadcast %54 : f32 to vector<1x1152xf32>
    %57 = arith.mulf %56, %55 : vector<1x1152xf32>
    %58 = arith.addf %53, %57 : vector<1x1152xf32>
    %c1_22 = arith.constant 1 : index
    %c3_23 = arith.constant 3 : index
    %59 = memref.load %arg5[%c1_22, %c3_23] : memref<4x4xf32, #tpu.memory_space<smem>>
    %60 = vector.extract_strided_slice %25 {offsets = [3, 0], sizes = [1, 1152], strides = [1, 1]} : vector<4x1152xf32> to vector<1x1152xf32>
    %61 = vector.broadcast %59 : f32 to vector<1x1152xf32>
    %62 = arith.mulf %61, %60 : vector<1x1152xf32>
    %63 = arith.addf %58, %62 : vector<1x1152xf32>
    %c2_24 = arith.constant 2 : index
    %c0_25 = arith.constant 0 : index
    %64 = memref.load %arg5[%c2_24, %c0_25] : memref<4x4xf32, #tpu.memory_space<smem>>
    %65 = vector.extract_strided_slice %25 {offsets = [0, 0], sizes = [1, 1152], strides = [1, 1]} : vector<4x1152xf32> to vector<1x1152xf32>
    %66 = vector.broadcast %64 : f32 to vector<1x1152xf32>
    %67 = arith.mulf %66, %65 : vector<1x1152xf32>
    %c2_26 = arith.constant 2 : index
    %c1_27 = arith.constant 1 : index
    %68 = memref.load %arg5[%c2_26, %c1_27] : memref<4x4xf32, #tpu.memory_space<smem>>
    %69 = vector.extract_strided_slice %25 {offsets = [1, 0], sizes = [1, 1152], strides = [1, 1]} : vector<4x1152xf32> to vector<1x1152xf32>
    %70 = vector.broadcast %68 : f32 to vector<1x1152xf32>
    %71 = arith.mulf %70, %69 : vector<1x1152xf32>
    %72 = arith.addf %67, %71 : vector<1x1152xf32>
    %c2_28 = arith.constant 2 : index
    %c2_29 = arith.constant 2 : index
    %73 = memref.load %arg5[%c2_28, %c2_29] : memref<4x4xf32, #tpu.memory_space<smem>>
    %74 = vector.extract_strided_slice %25 {offsets = [2, 0], sizes = [1, 1152], strides = [1, 1]} : vector<4x1152xf32> to vector<1x1152xf32>
    %75 = vector.broadcast %73 : f32 to vector<1x1152xf32>
    %76 = arith.mulf %75, %74 : vector<1x1152xf32>
    %77 = arith.addf %72, %76 : vector<1x1152xf32>
    %c2_30 = arith.constant 2 : index
    %c3_31 = arith.constant 3 : index
    %78 = memref.load %arg5[%c2_30, %c3_31] : memref<4x4xf32, #tpu.memory_space<smem>>
    %79 = vector.extract_strided_slice %25 {offsets = [3, 0], sizes = [1, 1152], strides = [1, 1]} : vector<4x1152xf32> to vector<1x1152xf32>
    %80 = vector.broadcast %78 : f32 to vector<1x1152xf32>
    %81 = arith.mulf %80, %79 : vector<1x1152xf32>
    %82 = arith.addf %77, %81 : vector<1x1152xf32>
    %c3_32 = arith.constant 3 : index
    %c0_33 = arith.constant 0 : index
    %83 = memref.load %arg5[%c3_32, %c0_33] : memref<4x4xf32, #tpu.memory_space<smem>>
    %84 = vector.extract_strided_slice %25 {offsets = [0, 0], sizes = [1, 1152], strides = [1, 1]} : vector<4x1152xf32> to vector<1x1152xf32>
    %85 = vector.broadcast %83 : f32 to vector<1x1152xf32>
    %86 = arith.mulf %85, %84 : vector<1x1152xf32>
    %c3_34 = arith.constant 3 : index
    %c1_35 = arith.constant 1 : index
    %87 = memref.load %arg5[%c3_34, %c1_35] : memref<4x4xf32, #tpu.memory_space<smem>>
    %88 = vector.extract_strided_slice %25 {offsets = [1, 0], sizes = [1, 1152], strides = [1, 1]} : vector<4x1152xf32> to vector<1x1152xf32>
    %89 = vector.broadcast %87 : f32 to vector<1x1152xf32>
    %90 = arith.mulf %89, %88 : vector<1x1152xf32>
    %91 = arith.addf %86, %90 : vector<1x1152xf32>
    %c3_36 = arith.constant 3 : index
    %c2_37 = arith.constant 2 : index
    %92 = memref.load %arg5[%c3_36, %c2_37] : memref<4x4xf32, #tpu.memory_space<smem>>
    %93 = vector.extract_strided_slice %25 {offsets = [2, 0], sizes = [1, 1152], strides = [1, 1]} : vector<4x1152xf32> to vector<1x1152xf32>
    %94 = vector.broadcast %92 : f32 to vector<1x1152xf32>
    %95 = arith.mulf %94, %93 : vector<1x1152xf32>
    %96 = arith.addf %91, %95 : vector<1x1152xf32>
    %c3_38 = arith.constant 3 : index
    %c3_39 = arith.constant 3 : index
    %97 = memref.load %arg5[%c3_38, %c3_39] : memref<4x4xf32, #tpu.memory_space<smem>>
    %98 = vector.extract_strided_slice %25 {offsets = [3, 0], sizes = [1, 1152], strides = [1, 1]} : vector<4x1152xf32> to vector<1x1152xf32>
    %99 = vector.broadcast %97 : f32 to vector<1x1152xf32>
    %100 = arith.mulf %99, %98 : vector<1x1152xf32>
    %101 = arith.addf %96, %100 : vector<1x1152xf32>
    %102 = tpu.concatenate %44, %63, %82, %101 in 0 : vector<1x1152xf32>, vector<1x1152xf32>, vector<1x1152xf32>, vector<1x1152xf32> -> vector<4x1152xf32>
    %103 = vector.broadcast %2 : vector<1x1152xf32> to vector<4x1152xf32>
    %104 = arith.mulf %102, %103 : vector<4x1152xf32>
    %cst_40 = arith.constant dense<0.000000e+00> : vector<4xf32>
    %105 = vector.multi_reduction <add>, %104, %cst_40 [1] : vector<4x1152xf32> to vector<4xf32>
    %106 = vector.shape_cast %105 : vector<4xf32> to vector<4x1xf32>
    %cst_41 = arith.constant 0.001953125 : f32
    %107 = vector.broadcast %cst_41 : f32 to vector<4x1xf32>
    %108 = arith.mulf %106, %107 : vector<4x1xf32>
    %109 = vector.broadcast %108 : vector<4x1xf32> to vector<4x1152xf32>
    %110 = arith.subf %102, %109 : vector<4x1152xf32>
    %111 = arith.mulf %110, %110 : vector<4x1152xf32>
    %112 = vector.broadcast %2 : vector<1x1152xf32> to vector<4x1152xf32>
    %113 = arith.mulf %111, %112 : vector<4x1152xf32>
    %cst_42 = arith.constant dense<0.000000e+00> : vector<4xf32>
    %114 = vector.multi_reduction <add>, %113, %cst_42 [1] : vector<4x1152xf32> to vector<4xf32>
    %115 = vector.shape_cast %114 : vector<4xf32> to vector<4x1xf32>
    %cst_43 = arith.constant 0.001953125 : f32
    %116 = vector.broadcast %cst_43 : f32 to vector<4x1xf32>
    %117 = arith.mulf %115, %116 : vector<4x1xf32>
    %cst_44 = arith.constant 9.99999974E-6 : f32
    %118 = vector.broadcast %cst_44 : f32 to vector<4x1xf32>
    %119 = arith.addf %117, %118 : vector<4x1xf32>
    %120 = math.rsqrt %119 : vector<4x1xf32>
    %121 = vector.broadcast %120 : vector<4x1xf32> to vector<4x1152xf32>
    %122 = arith.mulf %110, %121 : vector<4x1152xf32>
    %cst_45 = arith.constant 0.000000e+00 : f32
    %123 = vector.broadcast %cst_45 : f32 to vector<4x1152xf32>
    %124 = arith.maximumf %122, %123 : vector<4x1152xf32>
    %125 = vector.broadcast %2 : vector<1x1152xf32> to vector<4x1152xf32>
    %126 = arith.mulf %124, %125 : vector<4x1152xf32>
    %cst_46 = arith.constant 0.000000e+00 : f32
    %127 = vector.broadcast %cst_46 : f32 to vector<4x896xf32>
    %128 = vector.extract_strided_slice %126 {offsets = [0, 0], sizes = [4, 896], strides = [1, 1]} : vector<4x1152xf32> to vector<4x896xf32>
    %129 = arith.truncf %128 : vector<4x896xf32> to vector<4x896xbf16>
    %c0_47 = arith.constant 0 : index
    %c0_48 = arith.constant 0 : index
    %c0_49 = arith.constant 0 : index
    %130 = vector.load %arg4[%c0_47, %c0_48, %c0_49] : memref<27x4x4xbf16, #tpu.memory_space<vmem>>, vector<1x4x4xbf16>
    %131 = vector.shape_cast %130 : vector<1x4x4xbf16> to vector<4x4xbf16>
    %cst_50 = arith.constant dense<0.000000e+00> : vector<4x896xf32>
    %132 = tpu.matmul %131, %129, %cst_50 {dimension_numbers = #tpu.dot_dimension_numbers<[1], [0], [0], [1], [0, 0, 1, 1], [], []>} : vector<4x4xbf16>, vector<4x896xbf16>, vector<4x896xf32> -> vector<4x896xf32>
    %133 = arith.addf %127, %132 : vector<4x896xf32>
    %134 = vector.extract_strided_slice %126 {offsets = [0, 1], sizes = [4, 896], strides = [1, 1]} : vector<4x1152xf32> to vector<4x896xf32>
    %135 = arith.truncf %134 : vector<4x896xf32> to vector<4x896xbf16>
    %c1_51 = arith.constant 1 : index
    %c0_52 = arith.constant 0 : index
    %c0_53 = arith.constant 0 : index
    %136 = vector.load %arg4[%c1_51, %c0_52, %c0_53] : memref<27x4x4xbf16, #tpu.memory_space<vmem>>, vector<1x4x4xbf16>
    %137 = vector.shape_cast %136 : vector<1x4x4xbf16> to vector<4x4xbf16>
    %cst_54 = arith.constant dense<0.000000e+00> : vector<4x896xf32>
    %138 = tpu.matmul %137, %135, %cst_54 {dimension_numbers = #tpu.dot_dimension_numbers<[1], [0], [0], [1], [0, 0, 1, 1], [], []>} : vector<4x4xbf16>, vector<4x896xbf16>, vector<4x896xf32> -> vector<4x896xf32>
    %139 = arith.addf %133, %138 : vector<4x896xf32>
    %140 = vector.extract_strided_slice %126 {offsets = [0, 2], sizes = [4, 896], strides = [1, 1]} : vector<4x1152xf32> to vector<4x896xf32>
    %141 = arith.truncf %140 : vector<4x896xf32> to vector<4x896xbf16>
    %c2_55 = arith.constant 2 : index
    %c0_56 = arith.constant 0 : index
    %c0_57 = arith.constant 0 : index
    %142 = vector.load %arg4[%c2_55, %c0_56, %c0_57] : memref<27x4x4xbf16, #tpu.memory_space<vmem>>, vector<1x4x4xbf16>
    %143 = vector.shape_cast %142 : vector<1x4x4xbf16> to vector<4x4xbf16>
    %cst_58 = arith.constant dense<0.000000e+00> : vector<4x896xf32>
    %144 = tpu.matmul %143, %141, %cst_58 {dimension_numbers = #tpu.dot_dimension_numbers<[1], [0], [0], [1], [0, 0, 1, 1], [], []>} : vector<4x4xbf16>, vector<4x896xbf16>, vector<4x896xf32> -> vector<4x896xf32>
    %145 = arith.addf %139, %144 : vector<4x896xf32>
    %146 = vector.extract_strided_slice %126 {offsets = [0, 10], sizes = [4, 896], strides = [1, 1]} : vector<4x1152xf32> to vector<4x896xf32>
    %147 = arith.truncf %146 : vector<4x896xf32> to vector<4x896xbf16>
    %c3_59 = arith.constant 3 : index
    %c0_60 = arith.constant 0 : index
    %c0_61 = arith.constant 0 : index
    %148 = vector.load %arg4[%c3_59, %c0_60, %c0_61] : memref<27x4x4xbf16, #tpu.memory_space<vmem>>, vector<1x4x4xbf16>
    %149 = vector.shape_cast %148 : vector<1x4x4xbf16> to vector<4x4xbf16>
    %cst_62 = arith.constant dense<0.000000e+00> : vector<4x896xf32>
    %150 = tpu.matmul %149, %147, %cst_62 {dimension_numbers = #tpu.dot_dimension_numbers<[1], [0], [0], [1], [0, 0, 1, 1], [], []>} : vector<4x4xbf16>, vector<4x896xbf16>, vector<4x896xf32> -> vector<4x896xf32>
    %151 = arith.addf %145, %150 : vector<4x896xf32>
    %152 = vector.extract_strided_slice %126 {offsets = [0, 11], sizes = [4, 896], strides = [1, 1]} : vector<4x1152xf32> to vector<4x896xf32>
    %153 = arith.truncf %152 : vector<4x896xf32> to vector<4x896xbf16>
    %c4 = arith.constant 4 : index
    %c0_63 = arith.constant 0 : index
    %c0_64 = arith.constant 0 : index
    %154 = vector.load %arg4[%c4, %c0_63, %c0_64] : memref<27x4x4xbf16, #tpu.memory_space<vmem>>, vector<1x4x4xbf16>
    %155 = vector.shape_cast %154 : vector<1x4x4xbf16> to vector<4x4xbf16>
    %cst_65 = arith.constant dense<0.000000e+00> : vector<4x896xf32>
    %156 = tpu.matmul %155, %153, %cst_65 {dimension_numbers = #tpu.dot_dimension_numbers<[1], [0], [0], [1], [0, 0, 1, 1], [], []>} : vector<4x4xbf16>, vector<4x896xbf16>, vector<4x896xf32> -> vector<4x896xf32>
    %157 = arith.addf %151, %156 : vector<4x896xf32>
    %158 = vector.extract_strided_slice %126 {offsets = [0, 12], sizes = [4, 896], strides = [1, 1]} : vector<4x1152xf32> to vector<4x896xf32>
    %159 = arith.truncf %158 : vector<4x896xf32> to vector<4x896xbf16>
    %c5 = arith.constant 5 : index
    %c0_66 = arith.constant 0 : index
    %c0_67 = arith.constant 0 : index
    %160 = vector.load %arg4[%c5, %c0_66, %c0_67] : memref<27x4x4xbf16, #tpu.memory_space<vmem>>, vector<1x4x4xbf16>
    %161 = vector.shape_cast %160 : vector<1x4x4xbf16> to vector<4x4xbf16>
    %cst_68 = arith.constant dense<0.000000e+00> : vector<4x896xf32>
    %162 = tpu.matmul %161, %159, %cst_68 {dimension_numbers = #tpu.dot_dimension_numbers<[1], [0], [0], [1], [0, 0, 1, 1], [], []>} : vector<4x4xbf16>, vector<4x896xbf16>, vector<4x896xf32> -> vector<4x896xf32>
    %163 = arith.addf %157, %162 : vector<4x896xf32>
    %164 = vector.extract_strided_slice %126 {offsets = [0, 20], sizes = [4, 896], strides = [1, 1]} : vector<4x1152xf32> to vector<4x896xf32>
    %165 = arith.truncf %164 : vector<4x896xf32> to vector<4x896xbf16>
    %c6 = arith.constant 6 : index
    %c0_69 = arith.constant 0 : index
    %c0_70 = arith.constant 0 : index
    %166 = vector.load %arg4[%c6, %c0_69, %c0_70] : memref<27x4x4xbf16, #tpu.memory_space<vmem>>, vector<1x4x4xbf16>
    %167 = vector.shape_cast %166 : vector<1x4x4xbf16> to vector<4x4xbf16>
    %cst_71 = arith.constant dense<0.000000e+00> : vector<4x896xf32>
    %168 = tpu.matmul %167, %165, %cst_71 {dimension_numbers = #tpu.dot_dimension_numbers<[1], [0], [0], [1], [0, 0, 1, 1], [], []>} : vector<4x4xbf16>, vector<4x896xbf16>, vector<4x896xf32> -> vector<4x896xf32>
    %169 = arith.addf %163, %168 : vector<4x896xf32>
    %170 = vector.extract_strided_slice %126 {offsets = [0, 21], sizes = [4, 896], strides = [1, 1]} : vector<4x1152xf32> to vector<4x896xf32>
    %171 = arith.truncf %170 : vector<4x896xf32> to vector<4x896xbf16>
    %c7 = arith.constant 7 : index
    %c0_72 = arith.constant 0 : index
    %c0_73 = arith.constant 0 : index
    %172 = vector.load %arg4[%c7, %c0_72, %c0_73] : memref<27x4x4xbf16, #tpu.memory_space<vmem>>, vector<1x4x4xbf16>
    %173 = vector.shape_cast %172 : vector<1x4x4xbf16> to vector<4x4xbf16>
    %cst_74 = arith.constant dense<0.000000e+00> : vector<4x896xf32>
    %174 = tpu.matmul %173, %171, %cst_74 {dimension_numbers = #tpu.dot_dimension_numbers<[1], [0], [0], [1], [0, 0, 1, 1], [], []>} : vector<4x4xbf16>, vector<4x896xbf16>, vector<4x896xf32> -> vector<4x896xf32>
    %175 = arith.addf %169, %174 : vector<4x896xf32>
    %176 = vector.extract_strided_slice %126 {offsets = [0, 22], sizes = [4, 896], strides = [1, 1]} : vector<4x1152xf32> to vector<4x896xf32>
    %177 = arith.truncf %176 : vector<4x896xf32> to vector<4x896xbf16>
    %c8 = arith.constant 8 : index
    %c0_75 = arith.constant 0 : index
    %c0_76 = arith.constant 0 : index
    %178 = vector.load %arg4[%c8, %c0_75, %c0_76] : memref<27x4x4xbf16, #tpu.memory_space<vmem>>, vector<1x4x4xbf16>
    %179 = vector.shape_cast %178 : vector<1x4x4xbf16> to vector<4x4xbf16>
    %cst_77 = arith.constant dense<0.000000e+00> : vector<4x896xf32>
    %180 = tpu.matmul %179, %177, %cst_77 {dimension_numbers = #tpu.dot_dimension_numbers<[1], [0], [0], [1], [0, 0, 1, 1], [], []>} : vector<4x4xbf16>, vector<4x896xbf16>, vector<4x896xf32> -> vector<4x896xf32>
    %181 = arith.addf %175, %180 : vector<4x896xf32>
    %182 = vector.extract_strided_slice %126 {offsets = [0, 100], sizes = [4, 896], strides = [1, 1]} : vector<4x1152xf32> to vector<4x896xf32>
    %183 = arith.truncf %182 : vector<4x896xf32> to vector<4x896xbf16>
    %c9 = arith.constant 9 : index
    %c0_78 = arith.constant 0 : index
    %c0_79 = arith.constant 0 : index
    %184 = vector.load %arg4[%c9, %c0_78, %c0_79] : memref<27x4x4xbf16, #tpu.memory_space<vmem>>, vector<1x4x4xbf16>
    %185 = vector.shape_cast %184 : vector<1x4x4xbf16> to vector<4x4xbf16>
    %cst_80 = arith.constant dense<0.000000e+00> : vector<4x896xf32>
    %186 = tpu.matmul %185, %183, %cst_80 {dimension_numbers = #tpu.dot_dimension_numbers<[1], [0], [0], [1], [0, 0, 1, 1], [], []>} : vector<4x4xbf16>, vector<4x896xbf16>, vector<4x896xf32> -> vector<4x896xf32>
    %187 = arith.addf %181, %186 : vector<4x896xf32>
    %188 = vector.extract_strided_slice %126 {offsets = [0, 101], sizes = [4, 896], strides = [1, 1]} : vector<4x1152xf32> to vector<4x896xf32>
    %189 = arith.truncf %188 : vector<4x896xf32> to vector<4x896xbf16>
    %c10 = arith.constant 10 : index
    %c0_81 = arith.constant 0 : index
    %c0_82 = arith.constant 0 : index
    %190 = vector.load %arg4[%c10, %c0_81, %c0_82] : memref<27x4x4xbf16, #tpu.memory_space<vmem>>, vector<1x4x4xbf16>
    %191 = vector.shape_cast %190 : vector<1x4x4xbf16> to vector<4x4xbf16>
    %cst_83 = arith.constant dense<0.000000e+00> : vector<4x896xf32>
    %192 = tpu.matmul %191, %189, %cst_83 {dimension_numbers = #tpu.dot_dimension_numbers<[1], [0], [0], [1], [0, 0, 1, 1], [], []>} : vector<4x4xbf16>, vector<4x896xbf16>, vector<4x896xf32> -> vector<4x896xf32>
    %193 = arith.addf %187, %192 : vector<4x896xf32>
    %194 = vector.extract_strided_slice %126 {offsets = [0, 102], sizes = [4, 896], strides = [1, 1]} : vector<4x1152xf32> to vector<4x896xf32>
    %195 = arith.truncf %194 : vector<4x896xf32> to vector<4x896xbf16>
    %c11 = arith.constant 11 : index
    %c0_84 = arith.constant 0 : index
    %c0_85 = arith.constant 0 : index
    %196 = vector.load %arg4[%c11, %c0_84, %c0_85] : memref<27x4x4xbf16, #tpu.memory_space<vmem>>, vector<1x4x4xbf16>
    %197 = vector.shape_cast %196 : vector<1x4x4xbf16> to vector<4x4xbf16>
    %cst_86 = arith.constant dense<0.000000e+00> : vector<4x896xf32>
    %198 = tpu.matmul %197, %195, %cst_86 {dimension_numbers = #tpu.dot_dimension_numbers<[1], [0], [0], [1], [0, 0, 1, 1], [], []>} : vector<4x4xbf16>, vector<4x896xbf16>, vector<4x896xf32> -> vector<4x896xf32>
    %199 = arith.addf %193, %198 : vector<4x896xf32>
    %200 = vector.extract_strided_slice %126 {offsets = [0, 110], sizes = [4, 896], strides = [1, 1]} : vector<4x1152xf32> to vector<4x896xf32>
    %201 = arith.truncf %200 : vector<4x896xf32> to vector<4x896xbf16>
    %c12 = arith.constant 12 : index
    %c0_87 = arith.constant 0 : index
    %c0_88 = arith.constant 0 : index
    %202 = vector.load %arg4[%c12, %c0_87, %c0_88] : memref<27x4x4xbf16, #tpu.memory_space<vmem>>, vector<1x4x4xbf16>
    %203 = vector.shape_cast %202 : vector<1x4x4xbf16> to vector<4x4xbf16>
    %cst_89 = arith.constant dense<0.000000e+00> : vector<4x896xf32>
    %204 = tpu.matmul %203, %201, %cst_89 {dimension_numbers = #tpu.dot_dimension_numbers<[1], [0], [0], [1], [0, 0, 1, 1], [], []>} : vector<4x4xbf16>, vector<4x896xbf16>, vector<4x896xf32> -> vector<4x896xf32>
    %205 = arith.addf %199, %204 : vector<4x896xf32>
    %206 = vector.extract_strided_slice %126 {offsets = [0, 111], sizes = [4, 896], strides = [1, 1]} : vector<4x1152xf32> to vector<4x896xf32>
    %207 = arith.truncf %206 : vector<4x896xf32> to vector<4x896xbf16>
    %c13 = arith.constant 13 : index
    %c0_90 = arith.constant 0 : index
    %c0_91 = arith.constant 0 : index
    %208 = vector.load %arg4[%c13, %c0_90, %c0_91] : memref<27x4x4xbf16, #tpu.memory_space<vmem>>, vector<1x4x4xbf16>
    %209 = vector.shape_cast %208 : vector<1x4x4xbf16> to vector<4x4xbf16>
    %cst_92 = arith.constant dense<0.000000e+00> : vector<4x896xf32>
    %210 = tpu.matmul %209, %207, %cst_92 {dimension_numbers = #tpu.dot_dimension_numbers<[1], [0], [0], [1], [0, 0, 1, 1], [], []>} : vector<4x4xbf16>, vector<4x896xbf16>, vector<4x896xf32> -> vector<4x896xf32>
    %211 = arith.addf %205, %210 : vector<4x896xf32>
    %212 = vector.extract_strided_slice %126 {offsets = [0, 112], sizes = [4, 896], strides = [1, 1]} : vector<4x1152xf32> to vector<4x896xf32>
    %213 = arith.truncf %212 : vector<4x896xf32> to vector<4x896xbf16>
    %c14 = arith.constant 14 : index
    %c0_93 = arith.constant 0 : index
    %c0_94 = arith.constant 0 : index
    %214 = vector.load %arg4[%c14, %c0_93, %c0_94] : memref<27x4x4xbf16, #tpu.memory_space<vmem>>, vector<1x4x4xbf16>
    %215 = vector.shape_cast %214 : vector<1x4x4xbf16> to vector<4x4xbf16>
    %cst_95 = arith.constant dense<0.000000e+00> : vector<4x896xf32>
    %216 = tpu.matmul %215, %213, %cst_95 {dimension_numbers = #tpu.dot_dimension_numbers<[1], [0], [0], [1], [0, 0, 1, 1], [], []>} : vector<4x4xbf16>, vector<4x896xbf16>, vector<4x896xf32> -> vector<4x896xf32>
    %217 = arith.addf %211, %216 : vector<4x896xf32>
    %218 = vector.extract_strided_slice %126 {offsets = [0, 120], sizes = [4, 896], strides = [1, 1]} : vector<4x1152xf32> to vector<4x896xf32>
    %219 = arith.truncf %218 : vector<4x896xf32> to vector<4x896xbf16>
    %c15 = arith.constant 15 : index
    %c0_96 = arith.constant 0 : index
    %c0_97 = arith.constant 0 : index
    %220 = vector.load %arg4[%c15, %c0_96, %c0_97] : memref<27x4x4xbf16, #tpu.memory_space<vmem>>, vector<1x4x4xbf16>
    %221 = vector.shape_cast %220 : vector<1x4x4xbf16> to vector<4x4xbf16>
    %cst_98 = arith.constant dense<0.000000e+00> : vector<4x896xf32>
    %222 = tpu.matmul %221, %219, %cst_98 {dimension_numbers = #tpu.dot_dimension_numbers<[1], [0], [0], [1], [0, 0, 1, 1], [], []>} : vector<4x4xbf16>, vector<4x896xbf16>, vector<4x896xf32> -> vector<4x896xf32>
    %223 = arith.addf %217, %222 : vector<4x896xf32>
    %224 = vector.extract_strided_slice %126 {offsets = [0, 121], sizes = [4, 896], strides = [1, 1]} : vector<4x1152xf32> to vector<4x896xf32>
    %225 = arith.truncf %224 : vector<4x896xf32> to vector<4x896xbf16>
    %c16 = arith.constant 16 : index
    %c0_99 = arith.constant 0 : index
    %c0_100 = arith.constant 0 : index
    %226 = vector.load %arg4[%c16, %c0_99, %c0_100] : memref<27x4x4xbf16, #tpu.memory_space<vmem>>, vector<1x4x4xbf16>
    %227 = vector.shape_cast %226 : vector<1x4x4xbf16> to vector<4x4xbf16>
    %cst_101 = arith.constant dense<0.000000e+00> : vector<4x896xf32>
    %228 = tpu.matmul %227, %225, %cst_101 {dimension_numbers = #tpu.dot_dimension_numbers<[1], [0], [0], [1], [0, 0, 1, 1], [], []>} : vector<4x4xbf16>, vector<4x896xbf16>, vector<4x896xf32> -> vector<4x896xf32>
    %229 = arith.addf %223, %228 : vector<4x896xf32>
    %230 = vector.extract_strided_slice %126 {offsets = [0, 122], sizes = [4, 896], strides = [1, 1]} : vector<4x1152xf32> to vector<4x896xf32>
    %231 = arith.truncf %230 : vector<4x896xf32> to vector<4x896xbf16>
    %c17 = arith.constant 17 : index
    %c0_102 = arith.constant 0 : index
    %c0_103 = arith.constant 0 : index
    %232 = vector.load %arg4[%c17, %c0_102, %c0_103] : memref<27x4x4xbf16, #tpu.memory_space<vmem>>, vector<1x4x4xbf16>
    %233 = vector.shape_cast %232 : vector<1x4x4xbf16> to vector<4x4xbf16>
    %cst_104 = arith.constant dense<0.000000e+00> : vector<4x896xf32>
    %234 = tpu.matmul %233, %231, %cst_104 {dimension_numbers = #tpu.dot_dimension_numbers<[1], [0], [0], [1], [0, 0, 1, 1], [], []>} : vector<4x4xbf16>, vector<4x896xbf16>, vector<4x896xf32> -> vector<4x896xf32>
    %235 = arith.addf %229, %234 : vector<4x896xf32>
    %236 = vector.extract_strided_slice %126 {offsets = [0, 200], sizes = [4, 896], strides = [1, 1]} : vector<4x1152xf32> to vector<4x896xf32>
    %237 = arith.truncf %236 : vector<4x896xf32> to vector<4x896xbf16>
    %c18 = arith.constant 18 : index
    %c0_105 = arith.constant 0 : index
    %c0_106 = arith.constant 0 : index
    %238 = vector.load %arg4[%c18, %c0_105, %c0_106] : memref<27x4x4xbf16, #tpu.memory_space<vmem>>, vector<1x4x4xbf16>
    %239 = vector.shape_cast %238 : vector<1x4x4xbf16> to vector<4x4xbf16>
    %cst_107 = arith.constant dense<0.000000e+00> : vector<4x896xf32>
    %240 = tpu.matmul %239, %237, %cst_107 {dimension_numbers = #tpu.dot_dimension_numbers<[1], [0], [0], [1], [0, 0, 1, 1], [], []>} : vector<4x4xbf16>, vector<4x896xbf16>, vector<4x896xf32> -> vector<4x896xf32>
    %241 = arith.addf %235, %240 : vector<4x896xf32>
    %242 = vector.extract_strided_slice %126 {offsets = [0, 201], sizes = [4, 896], strides = [1, 1]} : vector<4x1152xf32> to vector<4x896xf32>
    %243 = arith.truncf %242 : vector<4x896xf32> to vector<4x896xbf16>
    %c19 = arith.constant 19 : index
    %c0_108 = arith.constant 0 : index
    %c0_109 = arith.constant 0 : index
    %244 = vector.load %arg4[%c19, %c0_108, %c0_109] : memref<27x4x4xbf16, #tpu.memory_space<vmem>>, vector<1x4x4xbf16>
    %245 = vector.shape_cast %244 : vector<1x4x4xbf16> to vector<4x4xbf16>
    %cst_110 = arith.constant dense<0.000000e+00> : vector<4x896xf32>
    %246 = tpu.matmul %245, %243, %cst_110 {dimension_numbers = #tpu.dot_dimension_numbers<[1], [0], [0], [1], [0, 0, 1, 1], [], []>} : vector<4x4xbf16>, vector<4x896xbf16>, vector<4x896xf32> -> vector<4x896xf32>
    %247 = arith.addf %241, %246 : vector<4x896xf32>
    %248 = vector.extract_strided_slice %126 {offsets = [0, 202], sizes = [4, 896], strides = [1, 1]} : vector<4x1152xf32> to vector<4x896xf32>
    %249 = arith.truncf %248 : vector<4x896xf32> to vector<4x896xbf16>
    %c20 = arith.constant 20 : index
    %c0_111 = arith.constant 0 : index
    %c0_112 = arith.constant 0 : index
    %250 = vector.load %arg4[%c20, %c0_111, %c0_112] : memref<27x4x4xbf16, #tpu.memory_space<vmem>>, vector<1x4x4xbf16>
    %251 = vector.shape_cast %250 : vector<1x4x4xbf16> to vector<4x4xbf16>
    %cst_113 = arith.constant dense<0.000000e+00> : vector<4x896xf32>
    %252 = tpu.matmul %251, %249, %cst_113 {dimension_numbers = #tpu.dot_dimension_numbers<[1], [0], [0], [1], [0, 0, 1, 1], [], []>} : vector<4x4xbf16>, vector<4x896xbf16>, vector<4x896xf32> -> vector<4x896xf32>
    %253 = arith.addf %247, %252 : vector<4x896xf32>
    %254 = vector.extract_strided_slice %126 {offsets = [0, 210], sizes = [4, 896], strides = [1, 1]} : vector<4x1152xf32> to vector<4x896xf32>
    %255 = arith.truncf %254 : vector<4x896xf32> to vector<4x896xbf16>
    %c21 = arith.constant 21 : index
    %c0_114 = arith.constant 0 : index
    %c0_115 = arith.constant 0 : index
    %256 = vector.load %arg4[%c21, %c0_114, %c0_115] : memref<27x4x4xbf16, #tpu.memory_space<vmem>>, vector<1x4x4xbf16>
    %257 = vector.shape_cast %256 : vector<1x4x4xbf16> to vector<4x4xbf16>
    %cst_116 = arith.constant dense<0.000000e+00> : vector<4x896xf32>
    %258 = tpu.matmul %257, %255, %cst_116 {dimension_numbers = #tpu.dot_dimension_numbers<[1], [0], [0], [1], [0, 0, 1, 1], [], []>} : vector<4x4xbf16>, vector<4x896xbf16>, vector<4x896xf32> -> vector<4x896xf32>
    %259 = arith.addf %253, %258 : vector<4x896xf32>
    %260 = vector.extract_strided_slice %126 {offsets = [0, 211], sizes = [4, 896], strides = [1, 1]} : vector<4x1152xf32> to vector<4x896xf32>
    %261 = arith.truncf %260 : vector<4x896xf32> to vector<4x896xbf16>
    %c22 = arith.constant 22 : index
    %c0_117 = arith.constant 0 : index
    %c0_118 = arith.constant 0 : index
    %262 = vector.load %arg4[%c22, %c0_117, %c0_118] : memref<27x4x4xbf16, #tpu.memory_space<vmem>>, vector<1x4x4xbf16>
    %263 = vector.shape_cast %262 : vector<1x4x4xbf16> to vector<4x4xbf16>
    %cst_119 = arith.constant dense<0.000000e+00> : vector<4x896xf32>
    %264 = tpu.matmul %263, %261, %cst_119 {dimension_numbers = #tpu.dot_dimension_numbers<[1], [0], [0], [1], [0, 0, 1, 1], [], []>} : vector<4x4xbf16>, vector<4x896xbf16>, vector<4x896xf32> -> vector<4x896xf32>
    %265 = arith.addf %259, %264 : vector<4x896xf32>
    %266 = vector.extract_strided_slice %126 {offsets = [0, 212], sizes = [4, 896], strides = [1, 1]} : vector<4x1152xf32> to vector<4x896xf32>
    %267 = arith.truncf %266 : vector<4x896xf32> to vector<4x896xbf16>
    %c23 = arith.constant 23 : index
    %c0_120 = arith.constant 0 : index
    %c0_121 = arith.constant 0 : index
    %268 = vector.load %arg4[%c23, %c0_120, %c0_121] : memref<27x4x4xbf16, #tpu.memory_space<vmem>>, vector<1x4x4xbf16>
    %269 = vector.shape_cast %268 : vector<1x4x4xbf16> to vector<4x4xbf16>
    %cst_122 = arith.constant dense<0.000000e+00> : vector<4x896xf32>
    %270 = tpu.matmul %269, %267, %cst_122 {dimension_numbers = #tpu.dot_dimension_numbers<[1], [0], [0], [1], [0, 0, 1, 1], [], []>} : vector<4x4xbf16>, vector<4x896xbf16>, vector<4x896xf32> -> vector<4x896xf32>
    %271 = arith.addf %265, %270 : vector<4x896xf32>
    %272 = vector.extract_strided_slice %126 {offsets = [0, 220], sizes = [4, 896], strides = [1, 1]} : vector<4x1152xf32> to vector<4x896xf32>
    %273 = arith.truncf %272 : vector<4x896xf32> to vector<4x896xbf16>
    %c24 = arith.constant 24 : index
    %c0_123 = arith.constant 0 : index
    %c0_124 = arith.constant 0 : index
    %274 = vector.load %arg4[%c24, %c0_123, %c0_124] : memref<27x4x4xbf16, #tpu.memory_space<vmem>>, vector<1x4x4xbf16>
    %275 = vector.shape_cast %274 : vector<1x4x4xbf16> to vector<4x4xbf16>
    %cst_125 = arith.constant dense<0.000000e+00> : vector<4x896xf32>
    %276 = tpu.matmul %275, %273, %cst_125 {dimension_numbers = #tpu.dot_dimension_numbers<[1], [0], [0], [1], [0, 0, 1, 1], [], []>} : vector<4x4xbf16>, vector<4x896xbf16>, vector<4x896xf32> -> vector<4x896xf32>
    %277 = arith.addf %271, %276 : vector<4x896xf32>
    %278 = vector.extract_strided_slice %126 {offsets = [0, 221], sizes = [4, 896], strides = [1, 1]} : vector<4x1152xf32> to vector<4x896xf32>
    %279 = arith.truncf %278 : vector<4x896xf32> to vector<4x896xbf16>
    %c25 = arith.constant 25 : index
    %c0_126 = arith.constant 0 : index
    %c0_127 = arith.constant 0 : index
    %280 = vector.load %arg4[%c25, %c0_126, %c0_127] : memref<27x4x4xbf16, #tpu.memory_space<vmem>>, vector<1x4x4xbf16>
    %281 = vector.shape_cast %280 : vector<1x4x4xbf16> to vector<4x4xbf16>
    %cst_128 = arith.constant dense<0.000000e+00> : vector<4x896xf32>
    %282 = tpu.matmul %281, %279, %cst_128 {dimension_numbers = #tpu.dot_dimension_numbers<[1], [0], [0], [1], [0, 0, 1, 1], [], []>} : vector<4x4xbf16>, vector<4x896xbf16>, vector<4x896xf32> -> vector<4x896xf32>
    %283 = arith.addf %277, %282 : vector<4x896xf32>
    %284 = vector.extract_strided_slice %126 {offsets = [0, 222], sizes = [4, 896], strides = [1, 1]} : vector<4x1152xf32> to vector<4x896xf32>
    %285 = arith.truncf %284 : vector<4x896xf32> to vector<4x896xbf16>
    %c26 = arith.constant 26 : index
    %c0_129 = arith.constant 0 : index
    %c0_130 = arith.constant 0 : index
    %286 = vector.load %arg4[%c26, %c0_129, %c0_130] : memref<27x4x4xbf16, #tpu.memory_space<vmem>>, vector<1x4x4xbf16>
    %287 = vector.shape_cast %286 : vector<1x4x4xbf16> to vector<4x4xbf16>
    %cst_131 = arith.constant dense<0.000000e+00> : vector<4x896xf32>
    %288 = tpu.matmul %287, %285, %cst_131 {dimension_numbers = #tpu.dot_dimension_numbers<[1], [0], [0], [1], [0, 0, 1, 1], [], []>} : vector<4x4xbf16>, vector<4x896xbf16>, vector<4x896xf32> -> vector<4x896xf32>
    %289 = arith.addf %283, %288 : vector<4x896xf32>
    %290 = vector.broadcast %3 : vector<1x896xf32> to vector<4x896xf32>
    %291 = arith.mulf %289, %290 : vector<4x896xf32>
    %cst_132 = arith.constant dense<0.000000e+00> : vector<4xf32>
    %292 = vector.multi_reduction <add>, %291, %cst_132 [1] : vector<4x896xf32> to vector<4xf32>
    %293 = vector.shape_cast %292 : vector<4xf32> to vector<4x1xf32>
    %cst_133 = arith.constant 0.001953125 : f32
    %294 = vector.broadcast %cst_133 : f32 to vector<4x1xf32>
    %295 = arith.mulf %293, %294 : vector<4x1xf32>
    %296 = vector.broadcast %295 : vector<4x1xf32> to vector<4x896xf32>
    %297 = arith.subf %289, %296 : vector<4x896xf32>
    %298 = arith.mulf %297, %297 : vector<4x896xf32>
    %299 = vector.broadcast %3 : vector<1x896xf32> to vector<4x896xf32>
    %300 = arith.mulf %298, %299 : vector<4x896xf32>
    %cst_134 = arith.constant dense<0.000000e+00> : vector<4xf32>
    %301 = vector.multi_reduction <add>, %300, %cst_134 [1] : vector<4x896xf32> to vector<4xf32>
    %302 = vector.shape_cast %301 : vector<4xf32> to vector<4x1xf32>
    %cst_135 = arith.constant 0.001953125 : f32
    %303 = vector.broadcast %cst_135 : f32 to vector<4x1xf32>
    %304 = arith.mulf %302, %303 : vector<4x1xf32>
    %cst_136 = arith.constant 9.99999974E-6 : f32
    %305 = vector.broadcast %cst_136 : f32 to vector<4x1xf32>
    %306 = arith.addf %304, %305 : vector<4x1xf32>
    %307 = math.rsqrt %306 : vector<4x1xf32>
    %308 = vector.broadcast %307 : vector<4x1xf32> to vector<4x896xf32>
    %309 = arith.mulf %297, %308 : vector<4x896xf32>
    %cst_137 = arith.constant 0.000000e+00 : f32
    %310 = vector.broadcast %cst_137 : f32 to vector<4x896xf32>
    %311 = arith.maximumf %309, %310 : vector<4x896xf32>
    %312 = vector.extract_strided_slice %1 {offsets = [0, 111], sizes = [4, 896], strides = [1, 1]} : vector<4x1152xf32> to vector<4x896xf32>
    %c0_138 = arith.constant 0 : index
    %c0_139 = arith.constant 0 : index
    %313 = memref.load %arg6[%c0_138, %c0_139] : memref<8x4xf32, #tpu.memory_space<smem>>
    %314 = vector.extract_strided_slice %311 {offsets = [0, 0], sizes = [1, 896], strides = [1, 1]} : vector<4x896xf32> to vector<1x896xf32>
    %315 = vector.broadcast %313 : f32 to vector<1x896xf32>
    %316 = arith.mulf %315, %314 : vector<1x896xf32>
    %c0_140 = arith.constant 0 : index
    %c1_141 = arith.constant 1 : index
    %317 = memref.load %arg6[%c0_140, %c1_141] : memref<8x4xf32, #tpu.memory_space<smem>>
    %318 = vector.extract_strided_slice %311 {offsets = [1, 0], sizes = [1, 896], strides = [1, 1]} : vector<4x896xf32> to vector<1x896xf32>
    %319 = vector.broadcast %317 : f32 to vector<1x896xf32>
    %320 = arith.mulf %319, %318 : vector<1x896xf32>
    %321 = arith.addf %316, %320 : vector<1x896xf32>
    %c0_142 = arith.constant 0 : index
    %c2_143 = arith.constant 2 : index
    %322 = memref.load %arg6[%c0_142, %c2_143] : memref<8x4xf32, #tpu.memory_space<smem>>
    %323 = vector.extract_strided_slice %311 {offsets = [2, 0], sizes = [1, 896], strides = [1, 1]} : vector<4x896xf32> to vector<1x896xf32>
    %324 = vector.broadcast %322 : f32 to vector<1x896xf32>
    %325 = arith.mulf %324, %323 : vector<1x896xf32>
    %326 = arith.addf %321, %325 : vector<1x896xf32>
    %c0_144 = arith.constant 0 : index
    %c3_145 = arith.constant 3 : index
    %327 = memref.load %arg6[%c0_144, %c3_145] : memref<8x4xf32, #tpu.memory_space<smem>>
    %328 = vector.extract_strided_slice %311 {offsets = [3, 0], sizes = [1, 896], strides = [1, 1]} : vector<4x896xf32> to vector<1x896xf32>
    %329 = vector.broadcast %327 : f32 to vector<1x896xf32>
    %330 = arith.mulf %329, %328 : vector<1x896xf32>
    %331 = arith.addf %326, %330 : vector<1x896xf32>
    %c0_146 = arith.constant 0 : index
    %c0_147 = arith.constant 0 : index
    %332 = memref.load %arg7[%c0_146, %c0_147] : memref<8x4xf32, #tpu.memory_space<smem>>
    %333 = vector.extract_strided_slice %312 {offsets = [0, 0], sizes = [1, 896], strides = [1, 1]} : vector<4x896xf32> to vector<1x896xf32>
    %334 = vector.broadcast %332 : f32 to vector<1x896xf32>
    %335 = arith.mulf %334, %333 : vector<1x896xf32>
    %336 = arith.addf %331, %335 : vector<1x896xf32>
    %c0_148 = arith.constant 0 : index
    %c1_149 = arith.constant 1 : index
    %337 = memref.load %arg7[%c0_148, %c1_149] : memref<8x4xf32, #tpu.memory_space<smem>>
    %338 = vector.extract_strided_slice %312 {offsets = [1, 0], sizes = [1, 896], strides = [1, 1]} : vector<4x896xf32> to vector<1x896xf32>
    %339 = vector.broadcast %337 : f32 to vector<1x896xf32>
    %340 = arith.mulf %339, %338 : vector<1x896xf32>
    %341 = arith.addf %336, %340 : vector<1x896xf32>
    %c0_150 = arith.constant 0 : index
    %c2_151 = arith.constant 2 : index
    %342 = memref.load %arg7[%c0_150, %c2_151] : memref<8x4xf32, #tpu.memory_space<smem>>
    %343 = vector.extract_strided_slice %312 {offsets = [2, 0], sizes = [1, 896], strides = [1, 1]} : vector<4x896xf32> to vector<1x896xf32>
    %344 = vector.broadcast %342 : f32 to vector<1x896xf32>
    %345 = arith.mulf %344, %343 : vector<1x896xf32>
    %346 = arith.addf %341, %345 : vector<1x896xf32>
    %c0_152 = arith.constant 0 : index
    %c3_153 = arith.constant 3 : index
    %347 = memref.load %arg7[%c0_152, %c3_153] : memref<8x4xf32, #tpu.memory_space<smem>>
    %348 = vector.extract_strided_slice %312 {offsets = [3, 0], sizes = [1, 896], strides = [1, 1]} : vector<4x896xf32> to vector<1x896xf32>
    %349 = vector.broadcast %347 : f32 to vector<1x896xf32>
    %350 = arith.mulf %349, %348 : vector<1x896xf32>
    %351 = arith.addf %346, %350 : vector<1x896xf32>
    %c0_154 = arith.constant 0 : index
    %c0_155 = arith.constant 0 : index
    %c0_156 = arith.constant 0 : index
    %352 = vector.load %arg8[%c0_154, %c0_155, %c0_156] : memref<1x8x896xf32, #tpu.memory_space<vmem>>, vector<1x1x896xf32>
    %353 = vector.shape_cast %352 : vector<1x1x896xf32> to vector<1x896xf32>
    %354 = vector.shape_cast %351 : vector<1x896xf32> to vector<1x1x896xf32>
    tpu.vector_store %arg8[%c0_154, %c0_155, %c0_156], %354 {strides = array<i32>} : memref<1x8x896xf32, #tpu.memory_space<vmem>>, vector<1x1x896xf32>,
    %c1_157 = arith.constant 1 : index
    %c0_158 = arith.constant 0 : index
    %355 = memref.load %arg6[%c1_157, %c0_158] : memref<8x4xf32, #tpu.memory_space<smem>>
    %356 = vector.extract_strided_slice %311 {offsets = [0, 0], sizes = [1, 896], strides = [1, 1]} : vector<4x896xf32> to vector<1x896xf32>
    %357 = vector.broadcast %355 : f32 to vector<1x896xf32>
    %358 = arith.mulf %357, %356 : vector<1x896xf32>
    %c1_159 = arith.constant 1 : index
    %c1_160 = arith.constant 1 : index
    %359 = memref.load %arg6[%c1_159, %c1_160] : memref<8x4xf32, #tpu.memory_space<smem>>
    %360 = vector.extract_strided_slice %311 {offsets = [1, 0], sizes = [1, 896], strides = [1, 1]} : vector<4x896xf32> to vector<1x896xf32>
    %361 = vector.broadcast %359 : f32 to vector<1x896xf32>
    %362 = arith.mulf %361, %360 : vector<1x896xf32>
    %363 = arith.addf %358, %362 : vector<1x896xf32>
    %c1_161 = arith.constant 1 : index
    %c2_162 = arith.constant 2 : index
    %364 = memref.load %arg6[%c1_161, %c2_162] : memref<8x4xf32, #tpu.memory_space<smem>>
    %365 = vector.extract_strided_slice %311 {offsets = [2, 0], sizes = [1, 896], strides = [1, 1]} : vector<4x896xf32> to vector<1x896xf32>
    %366 = vector.broadcast %364 : f32 to vector<1x896xf32>
    %367 = arith.mulf %366, %365 : vector<1x896xf32>
    %368 = arith.addf %363, %367 : vector<1x896xf32>
    %c1_163 = arith.constant 1 : index
    %c3_164 = arith.constant 3 : index
    %369 = memref.load %arg6[%c1_163, %c3_164] : memref<8x4xf32, #tpu.memory_space<smem>>
    %370 = vector.extract_strided_slice %311 {offsets = [3, 0], sizes = [1, 896], strides = [1, 1]} : vector<4x896xf32> to vector<1x896xf32>
    %371 = vector.broadcast %369 : f32 to vector<1x896xf32>
    %372 = arith.mulf %371, %370 : vector<1x896xf32>
    %373 = arith.addf %368, %372 : vector<1x896xf32>
    %c1_165 = arith.constant 1 : index
    %c0_166 = arith.constant 0 : index
    %374 = memref.load %arg7[%c1_165, %c0_166] : memref<8x4xf32, #tpu.memory_space<smem>>
    %375 = vector.extract_strided_slice %312 {offsets = [0, 0], sizes = [1, 896], strides = [1, 1]} : vector<4x896xf32> to vector<1x896xf32>
    %376 = vector.broadcast %374 : f32 to vector<1x896xf32>
    %377 = arith.mulf %376, %375 : vector<1x896xf32>
    %378 = arith.addf %373, %377 : vector<1x896xf32>
    %c1_167 = arith.constant 1 : index
    %c1_168 = arith.constant 1 : index
    %379 = memref.load %arg7[%c1_167, %c1_168] : memref<8x4xf32, #tpu.memory_space<smem>>
    %380 = vector.extract_strided_slice %312 {offsets = [1, 0], sizes = [1, 896], strides = [1, 1]} : vector<4x896xf32> to vector<1x896xf32>
    %381 = vector.broadcast %379 : f32 to vector<1x896xf32>
    %382 = arith.mulf %381, %380 : vector<1x896xf32>
    %383 = arith.addf %378, %382 : vector<1x896xf32>
    %c1_169 = arith.constant 1 : index
    %c2_170 = arith.constant 2 : index
    %384 = memref.load %arg7[%c1_169, %c2_170] : memref<8x4xf32, #tpu.memory_space<smem>>
    %385 = vector.extract_strided_slice %312 {offsets = [2, 0], sizes = [1, 896], strides = [1, 1]} : vector<4x896xf32> to vector<1x896xf32>
    %386 = vector.broadcast %384 : f32 to vector<1x896xf32>
    %387 = arith.mulf %386, %385 : vector<1x896xf32>
    %388 = arith.addf %383, %387 : vector<1x896xf32>
    %c1_171 = arith.constant 1 : index
    %c3_172 = arith.constant 3 : index
    %389 = memref.load %arg7[%c1_171, %c3_172] : memref<8x4xf32, #tpu.memory_space<smem>>
    %390 = vector.extract_strided_slice %312 {offsets = [3, 0], sizes = [1, 896], strides = [1, 1]} : vector<4x896xf32> to vector<1x896xf32>
    %391 = vector.broadcast %389 : f32 to vector<1x896xf32>
    %392 = arith.mulf %391, %390 : vector<1x896xf32>
    %393 = arith.addf %388, %392 : vector<1x896xf32>
    %c0_173 = arith.constant 0 : index
    %c1_174 = arith.constant 1 : index
    %c0_175 = arith.constant 0 : index
    %394 = vector.load %arg8[%c0_173, %c1_174, %c0_175] : memref<1x8x896xf32, #tpu.memory_space<vmem>>, vector<1x1x896xf32>
    %395 = vector.shape_cast %394 : vector<1x1x896xf32> to vector<1x896xf32>
    %396 = vector.shape_cast %393 : vector<1x896xf32> to vector<1x1x896xf32>
    tpu.vector_store %arg8[%c0_173, %c1_174, %c0_175], %396 {strides = array<i32>} : memref<1x8x896xf32, #tpu.memory_space<vmem>>, vector<1x1x896xf32>,
    %c2_176 = arith.constant 2 : index
    %c0_177 = arith.constant 0 : index
    %397 = memref.load %arg6[%c2_176, %c0_177] : memref<8x4xf32, #tpu.memory_space<smem>>
    %398 = vector.extract_strided_slice %311 {offsets = [0, 0], sizes = [1, 896], strides = [1, 1]} : vector<4x896xf32> to vector<1x896xf32>
    %399 = vector.broadcast %397 : f32 to vector<1x896xf32>
    %400 = arith.mulf %399, %398 : vector<1x896xf32>
    %c2_178 = arith.constant 2 : index
    %c1_179 = arith.constant 1 : index
    %401 = memref.load %arg6[%c2_178, %c1_179] : memref<8x4xf32, #tpu.memory_space<smem>>
    %402 = vector.extract_strided_slice %311 {offsets = [1, 0], sizes = [1, 896], strides = [1, 1]} : vector<4x896xf32> to vector<1x896xf32>
    %403 = vector.broadcast %401 : f32 to vector<1x896xf32>
    %404 = arith.mulf %403, %402 : vector<1x896xf32>
    %405 = arith.addf %400, %404 : vector<1x896xf32>
    %c2_180 = arith.constant 2 : index
    %c2_181 = arith.constant 2 : index
    %406 = memref.load %arg6[%c2_180, %c2_181] : memref<8x4xf32, #tpu.memory_space<smem>>
    %407 = vector.extract_strided_slice %311 {offsets = [2, 0], sizes = [1, 896], strides = [1, 1]} : vector<4x896xf32> to vector<1x896xf32>
    %408 = vector.broadcast %406 : f32 to vector<1x896xf32>
    %409 = arith.mulf %408, %407 : vector<1x896xf32>
    %410 = arith.addf %405, %409 : vector<1x896xf32>
    %c2_182 = arith.constant 2 : index
    %c3_183 = arith.constant 3 : index
    %411 = memref.load %arg6[%c2_182, %c3_183] : memref<8x4xf32, #tpu.memory_space<smem>>
    %412 = vector.extract_strided_slice %311 {offsets = [3, 0], sizes = [1, 896], strides = [1, 1]} : vector<4x896xf32> to vector<1x896xf32>
    %413 = vector.broadcast %411 : f32 to vector<1x896xf32>
    %414 = arith.mulf %413, %412 : vector<1x896xf32>
    %415 = arith.addf %410, %414 : vector<1x896xf32>
    %c2_184 = arith.constant 2 : index
    %c0_185 = arith.constant 0 : index
    %416 = memref.load %arg7[%c2_184, %c0_185] : memref<8x4xf32, #tpu.memory_space<smem>>
    %417 = vector.extract_strided_slice %312 {offsets = [0, 0], sizes = [1, 896], strides = [1, 1]} : vector<4x896xf32> to vector<1x896xf32>
    %418 = vector.broadcast %416 : f32 to vector<1x896xf32>
    %419 = arith.mulf %418, %417 : vector<1x896xf32>
    %420 = arith.addf %415, %419 : vector<1x896xf32>
    %c2_186 = arith.constant 2 : index
    %c1_187 = arith.constant 1 : index
    %421 = memref.load %arg7[%c2_186, %c1_187] : memref<8x4xf32, #tpu.memory_space<smem>>
    %422 = vector.extract_strided_slice %312 {offsets = [1, 0], sizes = [1, 896], strides = [1, 1]} : vector<4x896xf32> to vector<1x896xf32>
    %423 = vector.broadcast %421 : f32 to vector<1x896xf32>
    %424 = arith.mulf %423, %422 : vector<1x896xf32>
    %425 = arith.addf %420, %424 : vector<1x896xf32>
    %c2_188 = arith.constant 2 : index
    %c2_189 = arith.constant 2 : index
    %426 = memref.load %arg7[%c2_188, %c2_189] : memref<8x4xf32, #tpu.memory_space<smem>>
    %427 = vector.extract_strided_slice %312 {offsets = [2, 0], sizes = [1, 896], strides = [1, 1]} : vector<4x896xf32> to vector<1x896xf32>
    %428 = vector.broadcast %426 : f32 to vector<1x896xf32>
    %429 = arith.mulf %428, %427 : vector<1x896xf32>
    %430 = arith.addf %425, %429 : vector<1x896xf32>
    %c2_190 = arith.constant 2 : index
    %c3_191 = arith.constant 3 : index
    %431 = memref.load %arg7[%c2_190, %c3_191] : memref<8x4xf32, #tpu.memory_space<smem>>
    %432 = vector.extract_strided_slice %312 {offsets = [3, 0], sizes = [1, 896], strides = [1, 1]} : vector<4x896xf32> to vector<1x896xf32>
    %433 = vector.broadcast %431 : f32 to vector<1x896xf32>
    %434 = arith.mulf %433, %432 : vector<1x896xf32>
    %435 = arith.addf %430, %434 : vector<1x896xf32>
    %c0_192 = arith.constant 0 : index
    %c2_193 = arith.constant 2 : index
    %c0_194 = arith.constant 0 : index
    %436 = vector.load %arg8[%c0_192, %c2_193, %c0_194] : memref<1x8x896xf32, #tpu.memory_space<vmem>>, vector<1x1x896xf32>
    %437 = vector.shape_cast %436 : vector<1x1x896xf32> to vector<1x896xf32>
    %438 = vector.shape_cast %435 : vector<1x896xf32> to vector<1x1x896xf32>
    tpu.vector_store %arg8[%c0_192, %c2_193, %c0_194], %438 {strides = array<i32>} : memref<1x8x896xf32, #tpu.memory_space<vmem>>, vector<1x1x896xf32>,
    %c3_195 = arith.constant 3 : index
    %c0_196 = arith.constant 0 : index
    %439 = memref.load %arg6[%c3_195, %c0_196] : memref<8x4xf32, #tpu.memory_space<smem>>
    %440 = vector.extract_strided_slice %311 {offsets = [0, 0], sizes = [1, 896], strides = [1, 1]} : vector<4x896xf32> to vector<1x896xf32>
    %441 = vector.broadcast %439 : f32 to vector<1x896xf32>
    %442 = arith.mulf %441, %440 : vector<1x896xf32>
    %c3_197 = arith.constant 3 : index
    %c1_198 = arith.constant 1 : index
    %443 = memref.load %arg6[%c3_197, %c1_198] : memref<8x4xf32, #tpu.memory_space<smem>>
    %444 = vector.extract_strided_slice %311 {offsets = [1, 0], sizes = [1, 896], strides = [1, 1]} : vector<4x896xf32> to vector<1x896xf32>
    %445 = vector.broadcast %443 : f32 to vector<1x896xf32>
    %446 = arith.mulf %445, %444 : vector<1x896xf32>
    %447 = arith.addf %442, %446 : vector<1x896xf32>
    %c3_199 = arith.constant 3 : index
    %c2_200 = arith.constant 2 : index
    %448 = memref.load %arg6[%c3_199, %c2_200] : memref<8x4xf32, #tpu.memory_space<smem>>
    %449 = vector.extract_strided_slice %311 {offsets = [2, 0], sizes = [1, 896], strides = [1, 1]} : vector<4x896xf32> to vector<1x896xf32>
    %450 = vector.broadcast %448 : f32 to vector<1x896xf32>
    %451 = arith.mulf %450, %449 : vector<1x896xf32>
    %452 = arith.addf %447, %451 : vector<1x896xf32>
    %c3_201 = arith.constant 3 : index
    %c3_202 = arith.constant 3 : index
    %453 = memref.load %arg6[%c3_201, %c3_202] : memref<8x4xf32, #tpu.memory_space<smem>>
    %454 = vector.extract_strided_slice %311 {offsets = [3, 0], sizes = [1, 896], strides = [1, 1]} : vector<4x896xf32> to vector<1x896xf32>
    %455 = vector.broadcast %453 : f32 to vector<1x896xf32>
    %456 = arith.mulf %455, %454 : vector<1x896xf32>
    %457 = arith.addf %452, %456 : vector<1x896xf32>
    %c3_203 = arith.constant 3 : index
    %c0_204 = arith.constant 0 : index
    %458 = memref.load %arg7[%c3_203, %c0_204] : memref<8x4xf32, #tpu.memory_space<smem>>
    %459 = vector.extract_strided_slice %312 {offsets = [0, 0], sizes = [1, 896], strides = [1, 1]} : vector<4x896xf32> to vector<1x896xf32>
    %460 = vector.broadcast %458 : f32 to vector<1x896xf32>
    %461 = arith.mulf %460, %459 : vector<1x896xf32>
    %462 = arith.addf %457, %461 : vector<1x896xf32>
    %c3_205 = arith.constant 3 : index
    %c1_206 = arith.constant 1 : index
    %463 = memref.load %arg7[%c3_205, %c1_206] : memref<8x4xf32, #tpu.memory_space<smem>>
    %464 = vector.extract_strided_slice %312 {offsets = [1, 0], sizes = [1, 896], strides = [1, 1]} : vector<4x896xf32> to vector<1x896xf32>
    %465 = vector.broadcast %463 : f32 to vector<1x896xf32>
    %466 = arith.mulf %465, %464 : vector<1x896xf32>
    %467 = arith.addf %462, %466 : vector<1x896xf32>
    %c3_207 = arith.constant 3 : index
    %c2_208 = arith.constant 2 : index
    %468 = memref.load %arg7[%c3_207, %c2_208] : memref<8x4xf32, #tpu.memory_space<smem>>
    %469 = vector.extract_strided_slice %312 {offsets = [2, 0], sizes = [1, 896], strides = [1, 1]} : vector<4x896xf32> to vector<1x896xf32>
    %470 = vector.broadcast %468 : f32 to vector<1x896xf32>
    %471 = arith.mulf %470, %469 : vector<1x896xf32>
    %472 = arith.addf %467, %471 : vector<1x896xf32>
    %c3_209 = arith.constant 3 : index
    %c3_210 = arith.constant 3 : index
    %473 = memref.load %arg7[%c3_209, %c3_210] : memref<8x4xf32, #tpu.memory_space<smem>>
    %474 = vector.extract_strided_slice %312 {offsets = [3, 0], sizes = [1, 896], strides = [1, 1]} : vector<4x896xf32> to vector<1x896xf32>
    %475 = vector.broadcast %473 : f32 to vector<1x896xf32>
    %476 = arith.mulf %475, %474 : vector<1x896xf32>
    %477 = arith.addf %472, %476 : vector<1x896xf32>
    %c0_211 = arith.constant 0 : index
    %c3_212 = arith.constant 3 : index
    %c0_213 = arith.constant 0 : index
    %478 = vector.load %arg8[%c0_211, %c3_212, %c0_213] : memref<1x8x896xf32, #tpu.memory_space<vmem>>, vector<1x1x896xf32>
    %479 = vector.shape_cast %478 : vector<1x1x896xf32> to vector<1x896xf32>
    %480 = vector.shape_cast %477 : vector<1x896xf32> to vector<1x1x896xf32>
    tpu.vector_store %arg8[%c0_211, %c3_212, %c0_213], %480 {strides = array<i32>} : memref<1x8x896xf32, #tpu.memory_space<vmem>>, vector<1x1x896xf32>,
    %c4_214 = arith.constant 4 : index
    %c0_215 = arith.constant 0 : index
    %481 = memref.load %arg6[%c4_214, %c0_215] : memref<8x4xf32, #tpu.memory_space<smem>>
    %482 = vector.extract_strided_slice %311 {offsets = [0, 0], sizes = [1, 896], strides = [1, 1]} : vector<4x896xf32> to vector<1x896xf32>
    %483 = vector.broadcast %481 : f32 to vector<1x896xf32>
    %484 = arith.mulf %483, %482 : vector<1x896xf32>
    %c4_216 = arith.constant 4 : index
    %c1_217 = arith.constant 1 : index
    %485 = memref.load %arg6[%c4_216, %c1_217] : memref<8x4xf32, #tpu.memory_space<smem>>
    %486 = vector.extract_strided_slice %311 {offsets = [1, 0], sizes = [1, 896], strides = [1, 1]} : vector<4x896xf32> to vector<1x896xf32>
    %487 = vector.broadcast %485 : f32 to vector<1x896xf32>
    %488 = arith.mulf %487, %486 : vector<1x896xf32>
    %489 = arith.addf %484, %488 : vector<1x896xf32>
    %c4_218 = arith.constant 4 : index
    %c2_219 = arith.constant 2 : index
    %490 = memref.load %arg6[%c4_218, %c2_219] : memref<8x4xf32, #tpu.memory_space<smem>>
    %491 = vector.extract_strided_slice %311 {offsets = [2, 0], sizes = [1, 896], strides = [1, 1]} : vector<4x896xf32> to vector<1x896xf32>
    %492 = vector.broadcast %490 : f32 to vector<1x896xf32>
    %493 = arith.mulf %492, %491 : vector<1x896xf32>
    %494 = arith.addf %489, %493 : vector<1x896xf32>
    %c4_220 = arith.constant 4 : index
    %c3_221 = arith.constant 3 : index
    %495 = memref.load %arg6[%c4_220, %c3_221] : memref<8x4xf32, #tpu.memory_space<smem>>
    %496 = vector.extract_strided_slice %311 {offsets = [3, 0], sizes = [1, 896], strides = [1, 1]} : vector<4x896xf32> to vector<1x896xf32>
    %497 = vector.broadcast %495 : f32 to vector<1x896xf32>
    %498 = arith.mulf %497, %496 : vector<1x896xf32>
    %499 = arith.addf %494, %498 : vector<1x896xf32>
    %c4_222 = arith.constant 4 : index
    %c0_223 = arith.constant 0 : index
    %500 = memref.load %arg7[%c4_222, %c0_223] : memref<8x4xf32, #tpu.memory_space<smem>>
    %501 = vector.extract_strided_slice %312 {offsets = [0, 0], sizes = [1, 896], strides = [1, 1]} : vector<4x896xf32> to vector<1x896xf32>
    %502 = vector.broadcast %500 : f32 to vector<1x896xf32>
    %503 = arith.mulf %502, %501 : vector<1x896xf32>
    %504 = arith.addf %499, %503 : vector<1x896xf32>
    %c4_224 = arith.constant 4 : index
    %c1_225 = arith.constant 1 : index
    %505 = memref.load %arg7[%c4_224, %c1_225] : memref<8x4xf32, #tpu.memory_space<smem>>
    %506 = vector.extract_strided_slice %312 {offsets = [1, 0], sizes = [1, 896], strides = [1, 1]} : vector<4x896xf32> to vector<1x896xf32>
    %507 = vector.broadcast %505 : f32 to vector<1x896xf32>
    %508 = arith.mulf %507, %506 : vector<1x896xf32>
    %509 = arith.addf %504, %508 : vector<1x896xf32>
    %c4_226 = arith.constant 4 : index
    %c2_227 = arith.constant 2 : index
    %510 = memref.load %arg7[%c4_226, %c2_227] : memref<8x4xf32, #tpu.memory_space<smem>>
    %511 = vector.extract_strided_slice %312 {offsets = [2, 0], sizes = [1, 896], strides = [1, 1]} : vector<4x896xf32> to vector<1x896xf32>
    %512 = vector.broadcast %510 : f32 to vector<1x896xf32>
    %513 = arith.mulf %512, %511 : vector<1x896xf32>
    %514 = arith.addf %509, %513 : vector<1x896xf32>
    %c4_228 = arith.constant 4 : index
    %c3_229 = arith.constant 3 : index
    %515 = memref.load %arg7[%c4_228, %c3_229] : memref<8x4xf32, #tpu.memory_space<smem>>
    %516 = vector.extract_strided_slice %312 {offsets = [3, 0], sizes = [1, 896], strides = [1, 1]} : vector<4x896xf32> to vector<1x896xf32>
    %517 = vector.broadcast %515 : f32 to vector<1x896xf32>
    %518 = arith.mulf %517, %516 : vector<1x896xf32>
    %519 = arith.addf %514, %518 : vector<1x896xf32>
    %c0_230 = arith.constant 0 : index
    %c4_231 = arith.constant 4 : index
    %c0_232 = arith.constant 0 : index
    %520 = vector.load %arg8[%c0_230, %c4_231, %c0_232] : memref<1x8x896xf32, #tpu.memory_space<vmem>>, vector<1x1x896xf32>
    %521 = vector.shape_cast %520 : vector<1x1x896xf32> to vector<1x896xf32>
    %522 = vector.shape_cast %519 : vector<1x896xf32> to vector<1x1x896xf32>
    tpu.vector_store %arg8[%c0_230, %c4_231, %c0_232], %522 {strides = array<i32>} : memref<1x8x896xf32, #tpu.memory_space<vmem>>, vector<1x1x896xf32>,
    %c5_233 = arith.constant 5 : index
    %c0_234 = arith.constant 0 : index
    %523 = memref.load %arg6[%c5_233, %c0_234] : memref<8x4xf32, #tpu.memory_space<smem>>
    %524 = vector.extract_strided_slice %311 {offsets = [0, 0], sizes = [1, 896], strides = [1, 1]} : vector<4x896xf32> to vector<1x896xf32>
    %525 = vector.broadcast %523 : f32 to vector<1x896xf32>
    %526 = arith.mulf %525, %524 : vector<1x896xf32>
    %c5_235 = arith.constant 5 : index
    %c1_236 = arith.constant 1 : index
    %527 = memref.load %arg6[%c5_235, %c1_236] : memref<8x4xf32, #tpu.memory_space<smem>>
    %528 = vector.extract_strided_slice %311 {offsets = [1, 0], sizes = [1, 896], strides = [1, 1]} : vector<4x896xf32> to vector<1x896xf32>
    %529 = vector.broadcast %527 : f32 to vector<1x896xf32>
    %530 = arith.mulf %529, %528 : vector<1x896xf32>
    %531 = arith.addf %526, %530 : vector<1x896xf32>
    %c5_237 = arith.constant 5 : index
    %c2_238 = arith.constant 2 : index
    %532 = memref.load %arg6[%c5_237, %c2_238] : memref<8x4xf32, #tpu.memory_space<smem>>
    %533 = vector.extract_strided_slice %311 {offsets = [2, 0], sizes = [1, 896], strides = [1, 1]} : vector<4x896xf32> to vector<1x896xf32>
    %534 = vector.broadcast %532 : f32 to vector<1x896xf32>
    %535 = arith.mulf %534, %533 : vector<1x896xf32>
    %536 = arith.addf %531, %535 : vector<1x896xf32>
    %c5_239 = arith.constant 5 : index
    %c3_240 = arith.constant 3 : index
    %537 = memref.load %arg6[%c5_239, %c3_240] : memref<8x4xf32, #tpu.memory_space<smem>>
    %538 = vector.extract_strided_slice %311 {offsets = [3, 0], sizes = [1, 896], strides = [1, 1]} : vector<4x896xf32> to vector<1x896xf32>
    %539 = vector.broadcast %537 : f32 to vector<1x896xf32>
    %540 = arith.mulf %539, %538 : vector<1x896xf32>
    %541 = arith.addf %536, %540 : vector<1x896xf32>
    %c5_241 = arith.constant 5 : index
    %c0_242 = arith.constant 0 : index
    %542 = memref.load %arg7[%c5_241, %c0_242] : memref<8x4xf32, #tpu.memory_space<smem>>
    %543 = vector.extract_strided_slice %312 {offsets = [0, 0], sizes = [1, 896], strides = [1, 1]} : vector<4x896xf32> to vector<1x896xf32>
    %544 = vector.broadcast %542 : f32 to vector<1x896xf32>
    %545 = arith.mulf %544, %543 : vector<1x896xf32>
    %546 = arith.addf %541, %545 : vector<1x896xf32>
    %c5_243 = arith.constant 5 : index
    %c1_244 = arith.constant 1 : index
    %547 = memref.load %arg7[%c5_243, %c1_244] : memref<8x4xf32, #tpu.memory_space<smem>>
    %548 = vector.extract_strided_slice %312 {offsets = [1, 0], sizes = [1, 896], strides = [1, 1]} : vector<4x896xf32> to vector<1x896xf32>
    %549 = vector.broadcast %547 : f32 to vector<1x896xf32>
    %550 = arith.mulf %549, %548 : vector<1x896xf32>
    %551 = arith.addf %546, %550 : vector<1x896xf32>
    %c5_245 = arith.constant 5 : index
    %c2_246 = arith.constant 2 : index
    %552 = memref.load %arg7[%c5_245, %c2_246] : memref<8x4xf32, #tpu.memory_space<smem>>
    %553 = vector.extract_strided_slice %312 {offsets = [2, 0], sizes = [1, 896], strides = [1, 1]} : vector<4x896xf32> to vector<1x896xf32>
    %554 = vector.broadcast %552 : f32 to vector<1x896xf32>
    %555 = arith.mulf %554, %553 : vector<1x896xf32>
    %556 = arith.addf %551, %555 : vector<1x896xf32>
    %c5_247 = arith.constant 5 : index
    %c3_248 = arith.constant 3 : index
    %557 = memref.load %arg7[%c5_247, %c3_248] : memref<8x4xf32, #tpu.memory_space<smem>>
    %558 = vector.extract_strided_slice %312 {offsets = [3, 0], sizes = [1, 896], strides = [1, 1]} : vector<4x896xf32> to vector<1x896xf32>
    %559 = vector.broadcast %557 : f32 to vector<1x896xf32>
    %560 = arith.mulf %559, %558 : vector<1x896xf32>
    %561 = arith.addf %556, %560 : vector<1x896xf32>
    %c0_249 = arith.constant 0 : index
    %c5_250 = arith.constant 5 : index
    %c0_251 = arith.constant 0 : index
    %562 = vector.load %arg8[%c0_249, %c5_250, %c0_251] : memref<1x8x896xf32, #tpu.memory_space<vmem>>, vector<1x1x896xf32>
    %563 = vector.shape_cast %562 : vector<1x1x896xf32> to vector<1x896xf32>
    %564 = vector.shape_cast %561 : vector<1x896xf32> to vector<1x1x896xf32>
    tpu.vector_store %arg8[%c0_249, %c5_250, %c0_251], %564 {strides = array<i32>} : memref<1x8x896xf32, #tpu.memory_space<vmem>>, vector<1x1x896xf32>,
    %c6_252 = arith.constant 6 : index
    %c0_253 = arith.constant 0 : index
    %565 = memref.load %arg6[%c6_252, %c0_253] : memref<8x4xf32, #tpu.memory_space<smem>>
    %566 = vector.extract_strided_slice %311 {offsets = [0, 0], sizes = [1, 896], strides = [1, 1]} : vector<4x896xf32> to vector<1x896xf32>
    %567 = vector.broadcast %565 : f32 to vector<1x896xf32>
    %568 = arith.mulf %567, %566 : vector<1x896xf32>
    %c6_254 = arith.constant 6 : index
    %c1_255 = arith.constant 1 : index
    %569 = memref.load %arg6[%c6_254, %c1_255] : memref<8x4xf32, #tpu.memory_space<smem>>
    %570 = vector.extract_strided_slice %311 {offsets = [1, 0], sizes = [1, 896], strides = [1, 1]} : vector<4x896xf32> to vector<1x896xf32>
    %571 = vector.broadcast %569 : f32 to vector<1x896xf32>
    %572 = arith.mulf %571, %570 : vector<1x896xf32>
    %573 = arith.addf %568, %572 : vector<1x896xf32>
    %c6_256 = arith.constant 6 : index
    %c2_257 = arith.constant 2 : index
    %574 = memref.load %arg6[%c6_256, %c2_257] : memref<8x4xf32, #tpu.memory_space<smem>>
    %575 = vector.extract_strided_slice %311 {offsets = [2, 0], sizes = [1, 896], strides = [1, 1]} : vector<4x896xf32> to vector<1x896xf32>
    %576 = vector.broadcast %574 : f32 to vector<1x896xf32>
    %577 = arith.mulf %576, %575 : vector<1x896xf32>
    %578 = arith.addf %573, %577 : vector<1x896xf32>
    %c6_258 = arith.constant 6 : index
    %c3_259 = arith.constant 3 : index
    %579 = memref.load %arg6[%c6_258, %c3_259] : memref<8x4xf32, #tpu.memory_space<smem>>
    %580 = vector.extract_strided_slice %311 {offsets = [3, 0], sizes = [1, 896], strides = [1, 1]} : vector<4x896xf32> to vector<1x896xf32>
    %581 = vector.broadcast %579 : f32 to vector<1x896xf32>
    %582 = arith.mulf %581, %580 : vector<1x896xf32>
    %583 = arith.addf %578, %582 : vector<1x896xf32>
    %c6_260 = arith.constant 6 : index
    %c0_261 = arith.constant 0 : index
    %584 = memref.load %arg7[%c6_260, %c0_261] : memref<8x4xf32, #tpu.memory_space<smem>>
    %585 = vector.extract_strided_slice %312 {offsets = [0, 0], sizes = [1, 896], strides = [1, 1]} : vector<4x896xf32> to vector<1x896xf32>
    %586 = vector.broadcast %584 : f32 to vector<1x896xf32>
    %587 = arith.mulf %586, %585 : vector<1x896xf32>
    %588 = arith.addf %583, %587 : vector<1x896xf32>
    %c6_262 = arith.constant 6 : index
    %c1_263 = arith.constant 1 : index
    %589 = memref.load %arg7[%c6_262, %c1_263] : memref<8x4xf32, #tpu.memory_space<smem>>
    %590 = vector.extract_strided_slice %312 {offsets = [1, 0], sizes = [1, 896], strides = [1, 1]} : vector<4x896xf32> to vector<1x896xf32>
    %591 = vector.broadcast %589 : f32 to vector<1x896xf32>
    %592 = arith.mulf %591, %590 : vector<1x896xf32>
    %593 = arith.addf %588, %592 : vector<1x896xf32>
    %c6_264 = arith.constant 6 : index
    %c2_265 = arith.constant 2 : index
    %594 = memref.load %arg7[%c6_264, %c2_265] : memref<8x4xf32, #tpu.memory_space<smem>>
    %595 = vector.extract_strided_slice %312 {offsets = [2, 0], sizes = [1, 896], strides = [1, 1]} : vector<4x896xf32> to vector<1x896xf32>
    %596 = vector.broadcast %594 : f32 to vector<1x896xf32>
    %597 = arith.mulf %596, %595 : vector<1x896xf32>
    %598 = arith.addf %593, %597 : vector<1x896xf32>
    %c6_266 = arith.constant 6 : index
    %c3_267 = arith.constant 3 : index
    %599 = memref.load %arg7[%c6_266, %c3_267] : memref<8x4xf32, #tpu.memory_space<smem>>
    %600 = vector.extract_strided_slice %312 {offsets = [3, 0], sizes = [1, 896], strides = [1, 1]} : vector<4x896xf32> to vector<1x896xf32>
    %601 = vector.broadcast %599 : f32 to vector<1x896xf32>
    %602 = arith.mulf %601, %600 : vector<1x896xf32>
    %603 = arith.addf %598, %602 : vector<1x896xf32>
    %c0_268 = arith.constant 0 : index
    %c6_269 = arith.constant 6 : index
    %c0_270 = arith.constant 0 : index
    %604 = vector.load %arg8[%c0_268, %c6_269, %c0_270] : memref<1x8x896xf32, #tpu.memory_space<vmem>>, vector<1x1x896xf32>
    %605 = vector.shape_cast %604 : vector<1x1x896xf32> to vector<1x896xf32>
    %606 = vector.shape_cast %603 : vector<1x896xf32> to vector<1x1x896xf32>
    tpu.vector_store %arg8[%c0_268, %c6_269, %c0_270], %606 {strides = array<i32>} : memref<1x8x896xf32, #tpu.memory_space<vmem>>, vector<1x1x896xf32>,
    %c7_271 = arith.constant 7 : index
    %c0_272 = arith.constant 0 : index
    %607 = memref.load %arg6[%c7_271, %c0_272] : memref<8x4xf32, #tpu.memory_space<smem>>
    %608 = vector.extract_strided_slice %311 {offsets = [0, 0], sizes = [1, 896], strides = [1, 1]} : vector<4x896xf32> to vector<1x896xf32>
    %609 = vector.broadcast %607 : f32 to vector<1x896xf32>
    %610 = arith.mulf %609, %608 : vector<1x896xf32>
    %c7_273 = arith.constant 7 : index
    %c1_274 = arith.constant 1 : index
    %611 = memref.load %arg6[%c7_273, %c1_274] : memref<8x4xf32, #tpu.memory_space<smem>>
    %612 = vector.extract_strided_slice %311 {offsets = [1, 0], sizes = [1, 896], strides = [1, 1]} : vector<4x896xf32> to vector<1x896xf32>
    %613 = vector.broadcast %611 : f32 to vector<1x896xf32>
    %614 = arith.mulf %613, %612 : vector<1x896xf32>
    %615 = arith.addf %610, %614 : vector<1x896xf32>
    %c7_275 = arith.constant 7 : index
    %c2_276 = arith.constant 2 : index
    %616 = memref.load %arg6[%c7_275, %c2_276] : memref<8x4xf32, #tpu.memory_space<smem>>
    %617 = vector.extract_strided_slice %311 {offsets = [2, 0], sizes = [1, 896], strides = [1, 1]} : vector<4x896xf32> to vector<1x896xf32>
    %618 = vector.broadcast %616 : f32 to vector<1x896xf32>
    %619 = arith.mulf %618, %617 : vector<1x896xf32>
    %620 = arith.addf %615, %619 : vector<1x896xf32>
    %c7_277 = arith.constant 7 : index
    %c3_278 = arith.constant 3 : index
    %621 = memref.load %arg6[%c7_277, %c3_278] : memref<8x4xf32, #tpu.memory_space<smem>>
    %622 = vector.extract_strided_slice %311 {offsets = [3, 0], sizes = [1, 896], strides = [1, 1]} : vector<4x896xf32> to vector<1x896xf32>
    %623 = vector.broadcast %621 : f32 to vector<1x896xf32>
    %624 = arith.mulf %623, %622 : vector<1x896xf32>
    %625 = arith.addf %620, %624 : vector<1x896xf32>
    %c7_279 = arith.constant 7 : index
    %c0_280 = arith.constant 0 : index
    %626 = memref.load %arg7[%c7_279, %c0_280] : memref<8x4xf32, #tpu.memory_space<smem>>
    %627 = vector.extract_strided_slice %312 {offsets = [0, 0], sizes = [1, 896], strides = [1, 1]} : vector<4x896xf32> to vector<1x896xf32>
    %628 = vector.broadcast %626 : f32 to vector<1x896xf32>
    %629 = arith.mulf %628, %627 : vector<1x896xf32>
    %630 = arith.addf %625, %629 : vector<1x896xf32>
    %c7_281 = arith.constant 7 : index
    %c1_282 = arith.constant 1 : index
    %631 = memref.load %arg7[%c7_281, %c1_282] : memref<8x4xf32, #tpu.memory_space<smem>>
    %632 = vector.extract_strided_slice %312 {offsets = [1, 0], sizes = [1, 896], strides = [1, 1]} : vector<4x896xf32> to vector<1x896xf32>
    %633 = vector.broadcast %631 : f32 to vector<1x896xf32>
    %634 = arith.mulf %633, %632 : vector<1x896xf32>
    %635 = arith.addf %630, %634 : vector<1x896xf32>
    %c7_283 = arith.constant 7 : index
    %c2_284 = arith.constant 2 : index
    %636 = memref.load %arg7[%c7_283, %c2_284] : memref<8x4xf32, #tpu.memory_space<smem>>
    %637 = vector.extract_strided_slice %312 {offsets = [2, 0], sizes = [1, 896], strides = [1, 1]} : vector<4x896xf32> to vector<1x896xf32>
    %638 = vector.broadcast %636 : f32 to vector<1x896xf32>
    %639 = arith.mulf %638, %637 : vector<1x896xf32>
    %640 = arith.addf %635, %639 : vector<1x896xf32>
    %c7_285 = arith.constant 7 : index
    %c3_286 = arith.constant 3 : index
    %641 = memref.load %arg7[%c7_285, %c3_286] : memref<8x4xf32, #tpu.memory_space<smem>>
    %642 = vector.extract_strided_slice %312 {offsets = [3, 0], sizes = [1, 896], strides = [1, 1]} : vector<4x896xf32> to vector<1x896xf32>
    %643 = vector.broadcast %641 : f32 to vector<1x896xf32>
    %644 = arith.mulf %643, %642 : vector<1x896xf32>
    %645 = arith.addf %640, %644 : vector<1x896xf32>
    %c0_287 = arith.constant 0 : index
    %c7_288 = arith.constant 7 : index
    %c0_289 = arith.constant 0 : index
    %646 = vector.load %arg8[%c0_287, %c7_288, %c0_289] : memref<1x8x896xf32, #tpu.memory_space<vmem>>, vector<1x1x896xf32>
    %647 = vector.shape_cast %646 : vector<1x1x896xf32> to vector<1x896xf32>
    %648 = vector.shape_cast %645 : vector<1x896xf32> to vector<1x1x896xf32>
    tpu.vector_store %arg8[%c0_287, %c7_288, %c0_289], %648 {strides = array<i32>} : memref<1x8x896xf32, #tpu.memory_space<vmem>>, vector<1x1x896xf32>,
    return
  }
  func.func @transform_0(%arg0: i32) -> (i32, i32, i32) {
    %c0_i32 = arith.constant 0 : i32
    %c0_i32_0 = arith.constant 0 : i32
    %c0_i32_1 = arith.constant 0 : i32
    return %arg0, %c0_i32, %c0_i32_0 : i32, i32, i32
  }
  func.func @transform_1(%arg0: i32) -> (i32, i32) {
    %c0_i32 = arith.constant 0 : i32
    %c0_i32_0 = arith.constant 0 : i32
    %c0_i32_1 = arith.constant 0 : i32
    return %c0_i32, %c0_i32_0 : i32, i32
  }
  func.func @transform_2(%arg0: i32) -> (i32, i32) {
    %c0_i32 = arith.constant 0 : i32
    %c0_i32_0 = arith.constant 0 : i32
    %c0_i32_1 = arith.constant 0 : i32
    return %c0_i32, %c0_i32_0 : i32, i32
  }
  func.func @transform_3(%arg0: i32) -> (i32, i32, i32) {
    %c0_i32 = arith.constant 0 : i32
    %c0_i32_0 = arith.constant 0 : i32
    %c0_i32_1 = arith.constant 0 : i32
    %c0_i32_2 = arith.constant 0 : i32
    return %c0_i32, %c0_i32_0, %c0_i32_1 : i32, i32, i32
  }
  func.func @transform_4(%arg0: i32) -> (i32, i32) {
    %c0_i32 = arith.constant 0 : i32
    %c0_i32_0 = arith.constant 0 : i32
    %c0_i32_1 = arith.constant 0 : i32
    return %c0_i32, %c0_i32_0 : i32, i32
  }
  func.func @transform_5(%arg0: i32) -> (i32, i32) {
    %c0_i32 = arith.constant 0 : i32
    %c0_i32_0 = arith.constant 0 : i32
    %c0_i32_1 = arith.constant 0 : i32
    return %c0_i32, %c0_i32_0 : i32, i32
  }
  func.func @transform_6(%arg0: i32) -> (i32, i32) {
    %c0_i32 = arith.constant 0 : i32
    %c0_i32_0 = arith.constant 0 : i32
    %c0_i32_1 = arith.constant 0 : i32
    return %c0_i32, %c0_i32_0 : i32, i32
  }
  func.func @transform_7(%arg0: i32) -> (i32, i32, i32) {
    %c0_i32 = arith.constant 0 : i32
    %c0_i32_0 = arith.constant 0 : i32
    %c0_i32_1 = arith.constant 0 : i32
    return %arg0, %c0_i32, %c0_i32_0 : i32, i32, i32
  }
}

</mosaic_0001>

<bundles_post_ra>
// kernel: residual_block_pallas.1
= control target key start
LH: loop header
LB: loop body
LE: loop exit
PB: predicated region body
PF: predicated region fallthrough
CT: control target
= control target key end

     0   :  { %12 = vsyncpa [#allocation3], 0  ;;  %s17825_s0 = inlined_call_operand.vmem [shape: f32[2,4,1152], index: 0, kind: input, shape index: {}]   ;;  %s17826_s1 = inlined_call_operand.vmem [shape: f32[1,1152], index: 1, kind: input, shape index: {}]   ;;  %s17827_s2 = inlined_call_operand.vmem [shape: f32[1,896], index: 2, kind: input, shape index: {}]   ;;  %s17828_s3 = inlined_call_operand.vmem [shape: bf16[27,4,4], index: 3, kind: input, shape index: {}]   ;;  %s17829_s4 = inlined_call_operand.vmem [shape: f32[4,4], index: 4, kind: input, shape index: {}]   ;;  %s17830_s5 = inlined_call_operand.vmem [shape: f32[8,4], index: 5, kind: input, shape index: {}]   ;;  %s17831_s6 = inlined_call_operand.vmem [shape: f32[8,4], index: 6, kind: input, shape index: {}]   ;;  %s17832_s7 = inlined_call_operand.vmem [shape: f32[2,8,896], index: 7, kind: output, shape index: {}]  }
   0x1   :  { %13 = vsyncpa [#allocation5], 0  ;;  %s12568_s24 = smov 0  }
   0x2 LB: > { %s12574_s25 = sadd.s32 4294967295, %s12492_s24   ;;  %p11328_p0 = scmp.ge.s32.totalorder %s12492_s24, 1  ;;  %s12492_s24 = sphi %s12568_s24, %s19_s24  }
   0x3   : > { %p202_p1 = scmp.lt.s32.totalorder %s12492_s24, 3  ;;  %s235_s28 = sshll.u32 %s17830_s5, 4  ;;  %s236_s28 = int_to_ptr.vmem [resolvable:$true] %s235_s28 }
   0x4   : > { %p17833_p3 = scmp.eq.s32.totalorder %s12574_s25, 0  ;;  %s224_s9 = sshll.u32 %s17829_s4, 4  ;;  %s225_s9 = int_to_ptr.vmem [resolvable:$true] %s224_s9 }
   0x5   : > { %p12581_p2 = pnand %p11328_p0, %p202_p1  ;;  %s246_s12 = sshll.u32 %s17831_s6, 4  ;;  %s12600_s12 = int_to_ptr.vmem [resolvable:$true] %s246_s12 }
   0x6   : > { %s12433_s14 = scalar_lea.vmem %s236_s28, 128  ;;  %p12441_p10 = scmp.lt.s32.totalorder %s236_s28, %s236_s28 }
   0x7   : > { %s18009_s29 = scalar_select %p12581_p2, 1, 0 }
   0x8   : > { %p12354_p4 = pneg %p12581_p2  ;;  %p12434_p6 = scmp.ne.s32.totalorder %s236_s28, %s12433_s14 }
   0x9   : > { %p12442_p11 = scmp.lt.s32.totalorder %s12433_s14, %s12433_s14 }
   0xa   : > { %p12596_p5 = pnand %p17833_p3, %p12354_p4 }
   0xb   : > { %p12443_p12 = por %p12442_p11, %p12441_p10 }
   0xc   : > { %p12435_p7 = pneg %p12596_p5 }
   0xe   : > { %p12436_p8 = pnand %p12435_p7, %p12434_p6 }
  0x10   : > { %p12437_p9 = pneg %p12436_p8 }
  0x12   : > { %p12444_p13 = pnand %p12443_p12, %p12437_p9 }
  0x14   : > { %12447 = shalt.err (!%p12444_p13)
}
  0x15   : > { %s12494_s15 = smov [#allocation4]   ;;  %s12448_s16 = scalar_lea.vmem %s225_s9, 64 }
  0x16   : > { %12360 = dma.vmem_to_smem (!%p12596_p5), %s236_s28, 128, %s12494_s15, [#allocation5]  }
  0x17   : > { %p12449_p0 = scmp.ne.s32.totalorder %s225_s9, %s12448_s16  ;;  %p12456_p3 = scmp.lt.s32.totalorder %s225_s9, %s225_s9 }
  0x18   : > { %p12457_p2 = scmp.lt.s32.totalorder %s12448_s16, %s12448_s16 }
  0x19   : > { %p12451_p1 = pnand %p12449_p0, %p12435_p7 }
  0x1a   : > { %p12458_p6 = por %p12457_p2, %p12456_p3 }
  0x1b   : > { %p12452_p4 = pneg %p12451_p1 }
  0x1d   : > { %p12459_p8 = pnand %p12458_p6, %p12452_p4 }
  0x1f   : > { %12462 = shalt.err (!%p12459_p8)
}
  0x20   : > { %s12495_s17 = smov [#allocation2]   ;;  %s12463_s18 = scalar_lea.vmem %s12600_s12, 128 }
  0x21   : > { %12357 = dma.vmem_to_smem (!%p12596_p5), %s225_s9, 64, %s12495_s17, [#allocation3]  }
  0x22   : > { %p12464_p9 = scmp.ne.s32.totalorder %s12600_s12, %s12463_s18  ;;  %p12471_p12 = scmp.lt.s32.totalorder %s12600_s12, %s12600_s12 }
  0x23   : > { %p12472_p13 = scmp.lt.s32.totalorder %s12463_s18, %s12463_s18 }
  0x24   : > { %p12466_p10 = pnand %p12464_p9, %p12435_p7 }
  0x25   : > { %p12473_p2 = por %p12472_p13, %p12471_p12 }
  0x26   : > { %p12467_p11 = pneg %p12466_p10 }
  0x28   : > { %p12474_p3 = pnand %p12473_p2, %p12467_p11 }
  0x2a   : > { %12477 = shalt.err (!%p12474_p3)
}
  0x2b   : > { %s12496_s19 = smov [#allocation6]   ;;  %p18011_p0 = scmp.ne.s32.totalorder %s18009_s29, 0 }
  0x2c   : > { %12363 = dma.vmem_to_smem (!%p12596_p5), %s12600_s12, 128, %s12496_s19, [#allocation5]  }
  0x2d   : > { %267 = sbr.rel (%p18011_p0) target bundleno = 2173 (0x87d), region = 48 }
  0x34   : > { %p18012_p1 = scmp.eq.s32.totalorder %s12574_s25, 0 }
  0x36   : > { %12483 = dma.done.wait (%p18012_p1), [#allocation3], 64   ;;  %p18013_p7 = pmov %p18012_p1 }
  0x37   : > { %p18014_p4 = pmov %p18012_p1 }
  0x38   : > { %12485 = vsyncadd (%p18013_p7), [#allocation3], 4294967232 }
  0x39   : > { %12487 = dma.done.wait (%p18014_p4), [#allocation5], 256   ;;  %p18015_p6 = pmov %p18012_p1 }
  0x3b   : > { %12489 = vsyncadd (%p18015_p6), [#allocation5], 4294967040 }
  0x3c   : > { %281 = sfence }
  0x3d   : > { %p308_p8 = scmp.lt.s32.totalorder %s12574_s25, 1  ;;  %v17835_v0 = vlaneseq  ;;  %v324_v2 = vld [vmem:[%s17826_s1] sm:$0xff]  ;;  %vm399_vm0 = vcmask 1043456   ;;  %v12731_v42 = vld [vmem:[%s17826_s1 + $0x8] ss:$0 sm:$0xff]  ;;  %s7396_s30 = sld [smem:[#allocation6]] }
  0x3e   : > { %18027 = vst [vmem:[#allocation20_spill] sm:$0xff] %v12731_v42  ;;  %v12497_v55 = vmov 839922192   ;;  %s12498_s8 = smov 17   ;;  %s11633_s9 = sld [smem:[#allocation6 + $0x1]]  ;;  %vm1109_vm1 = vcmask 1040384  }
  0x3f   : > { %s18818_s25 = smov (!%p308_p8, %s12574_s25), 1  ;;  %v12639_v1 = vshrl.u32 %v17835_v0, 7  ;;  %v422_v56 = vunpack.c.l.s4 %v12497_v55  ;;  %s11634_s10 = sld [smem:[#allocation6 + $0x2]]  ;;  %vm1119_vm2 = vcmask 1041408   ;;  %vm1129_vm3 = vcmask 1042432  }
  0x40   : > { %s12340_s22 = smul.u32 36, %s18818_s25  ;;  %s11340_s11 = sld [smem:[#allocation2 + $0x1]]  ;;  %vm1279_vm4 = vcmask 1039360   ;;  %vm1287_vm5 = vcmask 31744   ;;  %vm12509_vm6 = vmmov 0   ;;  %vm1680_vm7 = vcmask 1031168  }
  0x41   : > { %18016 = vst [vmem:[#allocation9_spill] sm:$0xff] %v12639_v1  ;;  %v12646_v3 = vsub.s32 0, %v12639_v1  ;;  %v12649_v4 = vsub.s32 1, %v12639_v1  ;;  %v12652_v5 = vsub.s32 2, %v12639_v1  ;;  %v12655_v6 = vsub.s32 3, %v12639_v1  ;;  %s12826_s12 = sld [smem:[#allocation2]] }
  0x42   : > { %v12658_v7 = vsub.s32 4, %v12639_v1  ;;  %v12661_v8 = vsub.s32 5, %v12639_v1  ;;  %v12664_v9 = vsub.s32 6, %v12639_v1  ;;  %v12667_v10 = vsub.s32 7, %v12639_v1  ;;  %s12672_s27 = scalar_lea.vmem %s17825_s0, %s12340_s22  ;;  %s12828_s13 = sld [smem:[#allocation2 + $0x2]] }
  0x43   : > { %18017 = vst [vmem:[#allocation10_spill] sm:$0xff] %v12649_v4  ;;  %18018 = vst [vmem:[#allocation11_spill] sm:$0xff] %v12652_v5  ;;  %v12675_v11 = vrot.slane %v324_v2, %v12646_v3  ;;  %v12678_v12 = vrot.slane %v324_v2, %v12649_v4  ;;  %v12681_v13 = vrot.slane %v324_v2, %v12652_v5  ;;  %v12687_v15 = vld [vmem:[%s12672_s27] sm:$0xff]  ;;  %v12690_v16 = vld [vmem:[%s12672_s27 + $0x8] sm:$0xff]  ;;  %v423_v57 = vunpack.c.0.s8 %v422_v56  ;;  %s12830_s14 = sld [smem:[#allocation2 + $0x3]]  ;;  %s12834_s15 = sld [smem:[#allocation2 + $0x80]] }
  0x44   : > { %18019 = vst [vmem:[#allocation12_spill] sm:$0xff] %v12655_v6  ;;  %18020 = vst [vmem:[#allocation13_spill] sm:$0xff] %v12661_v8  ;;  %v12684_v14 = vrot.slane %v324_v2, %v12655_v6  ;;  %v12693_v17 = vrot.slane %v324_v2, %v12658_v7  ;;  %v12696_v18 = vrot.slane %v324_v2, %v12661_v8  ;;  %v12709_v23 = vld [vmem:[%s12672_s27 + $0x10] sm:$0xff]  ;;  %v12720_v32 = vld [vmem:[%s12672_s27 + $0x18] sm:$0xff]  ;;  %s12836_s16 = sld [smem:[#allocation2 + $0x81]]  ;;  %s12838_s17 = sld [smem:[#allocation2 + $0x82]] }
  0x45   : > { %18021 = vst [vmem:[#allocation14_spill] sm:$0xff] %v12664_v9  ;;  %18022 = vst [vmem:[#allocation15_spill] sm:$0xff] %v12667_v10  ;;  %v12699_v19 = vrot.slane %v324_v2, %v12664_v9  ;;  %v12702_v20 = vrot.slane %v324_v2, %v12667_v10  ;;  %v374_v21 = vcombine.low %v12675_v11, %v12678_v12  ;;  %v323_v41 = vld [vmem:[%s12672_s27 + $0x20] sm:$0xf]  ;;  %s12840_s18 = sld [smem:[#allocation2 + $0x83]]  ;;  %s12849_s19 = sld [smem:[#allocation2 + $0x100]] }
  0x46   : > { %v375_v22 = vcombine.low %v12681_v13, %v12684_v14  ;;  %18025 = vst [vmem:[#allocation18_spill] sm:$0xff] %v12709_v23  ;;  %v376_v24 = vcombine.low %v12693_v17, %v12696_v18  ;;  %18026 = vst [vmem:[#allocation19_spill] sm:$0xff] %v12720_v32  ;;  %v386_v47 = vmul.f32 %v12731_v42, %v323_v41  ;;  %s12851_s20 = sld [smem:[#allocation2 + $0x101]]  ;;  %s12853_s21 = sld [smem:[#allocation2 + $0x102]]  ;;  %vm1900_vm8 = vcmask 965632  }
  0x47   : > { %18023 = vst [vmem:[#allocation16_spill] sm:$0xff] %v12699_v19  ;;  %18024 = vst [vmem:[#allocation17_spill] sm:$0xff] %v12702_v20  ;;  %v382_v25 = vmul.f32 %v374_v21, %v12687_v15  ;;  %v377_v27 = vcombine.low %v12699_v19, %v12702_v20  ;;  %v12739_v58 = vsub.s32 %v423_v57, %v12639_v1  ;;  %v7397_v57 = vstv %s7396_s30  ;;  %s12855_s22 = sld [smem:[#allocation2 + $0x103]]  ;;  %s12861_s23 = sld [smem:[#allocation2 + $0x180]] }
  0x48   : > { %v383_v26 = vmul.f32 %v375_v22, %v12690_v16  ;;  %v384_v28 = vmul.f32 %v376_v24, %v12709_v23  ;;  %v415_v52 = vsel %vm399_vm0, %v386_v47, 0.0  ;;  %s12863_s26 = sld [smem:[#allocation2 + $0x181]]  ;;  %s12888_s28 = sld [smem:[#allocation2 + $0x182]]  ;;  %vm2120_vm9 = vcmask 957440  }
  0x49   : > { %v391_v29 = vcombine.high %v382_v25, %v382_v25  ;;  %v400_v31 = vsel %vm399_vm0, %v382_v25, 0.0  ;;  %v385_v36 = vmul.f32 %v377_v27, %v12720_v32  ;;  %s12893_s29 = sld [smem:[#allocation2 + $0x183]]  ;;  %vm2340_vm10 = vcmask 949248  }
  0x4a   : > { %v392_v30 = vcombine.high %v383_v26, %v383_v26  ;;  %v403_v34 = vsel %vm399_vm0, %v383_v26, 0.0  ;;  %v393_v37 = vcombine.high %v384_v28, %v384_v28  ;;  %v407_v40 = vsel %vm399_vm0, %v384_v28, 0.0  ;;  %s13158_s30 = sld [smem:[#allocation6 + $0x3]] }
  0x4b   : > { %v401_v33 = vsel %vm399_vm0, %v391_v29, 0.0  ;;  %v394_v44 = vcombine.high %v385_v36, %v385_v36  ;;  %v411_v48 = vsel %vm399_vm0, %v385_v36, 0.0  ;;  %vm2560_vm11 = vcmask 883712  }
  0x4c   : > { %v402_v35 = vadd.f32 %v401_v33, %v400_v31  ;;  %v405_v38 = vsel %vm399_vm0, %v392_v30, 0.0  ;;  %v409_v45 = vsel %vm399_vm0, %v393_v37, 0.0  ;;  %vm2780_vm12 = vcmask 875520  }
  0x4d   : > { %v413_v50 = vsel %vm399_vm0, %v394_v44, 0.0  ;;  %vm3000_vm13 = vcmask 867328   ;;  %vm3220_vm14 = vcmask 228352   ;;  %vm3440_vm15 = vcmask 220160  }
  0x4e   : > { %v404_v39 = vadd.f32 %v403_v34, %v402_v35 }
  0x50   : > { %v406_v43 = vadd.f32 %v405_v38, %v404_v39 }
  0x52   : > { %v408_v46 = vadd.f32 %v407_v40, %v406_v43 }
  0x54   : > { %v410_v49 = vadd.f32 %v409_v45, %v408_v46 }
  0x56   : > { %v412_v51 = vadd.f32 %v411_v48, %v410_v49 }
  0x58   : > { %v414_v53 = vadd.f32 %v413_v50, %v412_v51 }
  0x5a   : > { %v416_v54 = vadd.f32 %v415_v52, %v414_v53 }
  0x5c   : > { %417 = vadd.xlane.f32.xlu0 %v416_v54 }
  0xe9   : > { %v418_v59 = vpop.xlane.xlu0 %417 }
  0xea   : > { %v419_v60 = vmul.f32 0.001953125, %v418_v59  ;;  %v7398_v59 = vmul.f32 %v7397_v57, %v12687_v15 }
  0xec   : > { %v427_v61 = vrot.slane %v419_v60, %v12739_v58  ;;  %v7409_v60 = vrot.slane %v7398_v59, %v12646_v3 }
  0xee   : > { %v12743_v62 = vsub.f32 %v12687_v15, %v427_v61  ;;  %v12746_v63 = vsub.f32 %v12690_v16, %v427_v61  ;;  %v12749_v2 = vsub.f32 %v12709_v23, %v427_v61  ;;  %v12756_v28 = vsub.f32 %v12720_v32, %v427_v61 }
  0xef   : > { %v12764_v40 = vsub.f32 %v323_v41, %v427_v61  ;;  %v7399_v61 = vmul.f32 %v7397_v57, %v12690_v16 }
  0xf0   : > { %v434_v25 = vmul.f32 %v12743_v62, %v12743_v62  ;;  %v435_v26 = vmul.f32 %v12746_v63, %v12746_v63  ;;  %v436_v29 = vmul.f32 %v12749_v2, %v12749_v2  ;;  %v437_v34 = vmul.f32 %v12756_v28, %v12756_v28 }
  0xf1   : > { %v438_v47 = vmul.f32 %v12764_v40, %v12764_v40 }
  0xf2   : > { %v439_v30 = vmul.f32 %v434_v25, %v374_v21  ;;  %v440_v31 = vmul.f32 %v435_v26, %v375_v22  ;;  %v441_v35 = vmul.f32 %v436_v29, %v376_v24  ;;  %v442_v45 = vmul.f32 %v437_v34, %v377_v27 }
  0xf3   : > { %v443_v41 = vmul.f32 %v12731_v42, %v438_v47  ;;  %v7413_v25 = vrot.slane %v7398_v59, %v12658_v7  ;;  %v7417_v26 = vrot.slane %v7399_v61, %v12646_v3  ;;  %v7400_v29 = vmul.f32 %v7397_v57, %v12709_v23 }
  0xf4   : > { %v448_v33 = vcombine.high %v439_v30, %v439_v30  ;;  %v449_v36 = vcombine.high %v440_v31, %v440_v31  ;;  %v456_v37 = vsel %vm399_vm0, %v439_v30, 0.0  ;;  %v459_v43 = vsel %vm399_vm0, %v440_v31, 0.0 }
  0xf5   : > { %v450_v46 = vcombine.high %v441_v35, %v441_v35  ;;  %v463_v24 = vsel %vm399_vm0, %v441_v35, 0.0  ;;  %v451_v49 = vcombine.high %v442_v45, %v442_v45  ;;  %v467_v52 = vsel %vm399_vm0, %v442_v45, 0.0  ;;  %7440 = vrot.lane.b32.xlu1 %v7413_v25, %s12498_s8 }
  0xf6   : > { %v457_v38 = vsel %vm399_vm0, %v448_v33, 0.0  ;;  %v461_v21 = vsel %vm399_vm0, %v449_v36, 0.0  ;;  %v471_v55 = vsel %vm399_vm0, %v443_v41, 0.0  ;;  %v7421_v30 = vrot.slane %v7399_v61, %v12658_v7 }
  0xf7   : > { %v458_v39 = vadd.f32 %v457_v38, %v456_v37  ;;  %v465_v50 = vsel %vm399_vm0, %v450_v46, 0.0  ;;  %v469_v27 = vsel %vm399_vm0, %v451_v49, 0.0  ;;  %v7425_v31 = vrot.slane %v7400_v29, %v12646_v3 }
  0xf8   : > { %v7401_v33 = vmul.f32 %v7397_v57, %v12720_v32  ;;  %v7429_v34 = vrot.slane %v7400_v29, %v12658_v7  ;;  %v7477_v37 = vstv %s11633_s9  ;;  %v7556_v49 = vstv %s11634_s10  ;;  %s11640_s9 = sld [smem:[#allocation6 + $0x80]]  ;;  %s11641_s10 = sld [smem:[#allocation6 + $0x81]] }
  0xf9   : > { %v460_v44 = vadd.f32 %v459_v43, %v458_v39  ;;  %7444 = vrot.lane.b32.xlu1 %v7421_v30, %s12498_s8  ;;  %v12797_v38 = vmul.f32 %v7477_v37, %v12687_v15  ;;  %v12800_v39 = vmul.f32 %v7477_v37, %v12690_v16  ;;  %v12809_v45 = vmul.f32 %v7477_v37, %v12709_v23 }
  0xfa   : > { %v7433_v35 = vrot.slane %v7401_v33, %v12646_v3  ;;  %v7437_v36 = vrot.slane %v7401_v33, %v12658_v7  ;;  %v537_v29 = vstv %s12828_s13  ;;  %v569_v30 = vstv %s12830_s14  ;;  %s11643_s14 = sld [smem:[#allocation6 + $0x83]]  ;;  %s12517_s13 = smov 6  }
  0xfb   : > { %v462_v22 = vadd.f32 %v461_v21, %v460_v44  ;;  %18028 = vst [vmem:[#allocation21_spill] sm:$0xff] %v12797_v38  ;;  %18029 = vst [vmem:[#allocation22_spill] sm:$0xff] %v12800_v39  ;;  %v7489_v43 = vrot.slane %v12797_v38, %v12649_v4  ;;  %v7497_v44 = vrot.slane %v12800_v39, %v12649_v4 }
  0xfc   : > { %18030 = vst [vmem:[#allocation23_spill] sm:$0xff] %v12809_v45  ;;  %v7505_v46 = vrot.slane %v12809_v45, %v12649_v4 }
  0xfd   : > { %v464_v48 = vadd.f32 %v463_v24, %v462_v22  ;;  %7448 = vrot.lane.b32.xlu1 %v7429_v34, %s12498_s8  ;;  %v12815_v22 = vmul.f32 %v7477_v37, %v12720_v32 }
  0xff   : > { %v466_v51 = vadd.f32 %v465_v50, %v464_v48  ;;  %18031 = vst [vmem:[#allocation24_spill] sm:$0xff] %v12815_v22  ;;  %v7513_v24 = vrot.slane %v12815_v22, %v12649_v4  ;;  %v12821_v50 = vmul.f32 %v7556_v49, %v12687_v15 }
 0x101   : > { %v468_v53 = vadd.f32 %v467_v52, %v466_v51  ;;  %7452 = vrot.lane.b32.xlu1 %v7437_v36, %s12498_s8  ;;  %18032 = vst [vmem:[#allocation25_spill] sm:$0xff] %v12821_v50  ;;  %v12824_v51 = vmul.f32 %v7556_v49, %v12690_v16  ;;  %v7568_v41 = vrot.slane %v12821_v50, %v12652_v5 }
 0x103   : > { %v470_v54 = vadd.f32 %v469_v27, %v468_v53  ;;  %18033 = vst [vmem:[#allocation26_spill] sm:$0xff] %v12824_v51  ;;  %v7576_v53 = vrot.slane %v12824_v51, %v12652_v5  ;;  %v12846_v27 = vmul.f32 %v7556_v49, %v12709_v23 }
 0x105   : > { %v472_v56 = vadd.f32 %v471_v55, %v470_v54  ;;  %18034 = vst [vmem:[#allocation27_spill] sm:$0xff] %v12846_v27 }
 0x107   : > { %473 = vadd.xlane.f32.xlu0 %v472_v56 }
 0x11d   : > { %7438 = vrot.lane.b32.xlu0 %v7409_v60, %s12498_s8  ;;  %v505_v60 = vstv %s11340_s11  ;;  %s11642_s11 = sld [smem:[#allocation6 + $0x82]] }
 0x121   : > { %7442 = vrot.lane.b32.xlu0 %v7417_v26, %s12498_s8  ;;  %v498_v26 = vstv %s12826_s12  ;;  %s12511_s12 = smov 27  }
 0x125   : > { %7446 = vrot.lane.b32.xlu0 %v7425_v31, %s12498_s8  ;;  %v12886_v31 = vstv %s12834_s15  ;;  %s12499_s15 = smov 127  }
 0x129   : > { %7450 = vrot.lane.b32.xlu0 %v7433_v35, %s12498_s8 }
 0x12d   : > { %7518 = vrot.lane.b32.xlu0 %v7489_v43, %s12498_s8 }
 0x131   : > { %7522 = vrot.lane.b32.xlu0 %v7497_v44, %s12498_s8  ;;  %v608_v44 = vstv %s12836_s16  ;;  %s11650_s16 = sld [smem:[#allocation6 + $0x100]] }
 0x135   : > { %7526 = vrot.lane.b32.xlu0 %v7505_v46, %s12498_s8  ;;  %v12902_v46 = vstv %s12838_s17  ;;  %s12501_s17 = smov 126  }
 0x139   : > { %7530 = vrot.lane.b32.xlu0 %v7513_v24, %s12498_s8  ;;  %v12911_v24 = vstv %s12851_s20  ;;  %s12504_s20 = smov 116  }
 0x13d   : > { %7597 = vrot.lane.b32.xlu0 %v7568_v41, %s12498_s8  ;;  %v12917_v41 = vstv %s12855_s22  ;;  %s12506_s22 = smov 107  }
 0x141   : > { %7601 = vrot.lane.b32.xlu0 %v7576_v53, %s12498_s8  ;;  %v12923_v53 = vstv %s12863_s26  ;;  %s12520_s26 = smov 54  }
 0x194   : > { %v474_v21 = vpop.xlane.xlu0 %473 }
 0x195   : > { %v475_v47 = vmul.f32 0.001953125, %v474_v21  ;;  %v12905_v21 = vstv %s12840_s18  ;;  %s12502_s18 = smov 118  }
 0x197   : > { %v476_v48 = vadd.f32 1e-05, %v475_v47  ;;  %v12908_v47 = vstv %s12849_s19  ;;  %s12503_s19 = smov 117  }
 0x199   : > { %12412 = vrsqrt.f32 %v476_v48  ;;  %v12914_v48 = vstv %s12853_s21  ;;  %s12505_s21 = smov 108  }
 0x1a3   : > { %v12413_v52 = vpop.eup %12412 }
 0x1a4   : > { %v485_v54 = vrot.slane %v12413_v52, %v12739_v58  ;;  %v12920_v52 = vstv %s12861_s23  ;;  %s12514_s23 = smov 16  }
 0x1a6   : > { %v487_v55 = vmul.f32 %v485_v54, %v12743_v62  ;;  %v488_v56 = vmul.f32 %v485_v54, %v12746_v63  ;;  %v489_v57 = vmul.f32 %v485_v54, %v12749_v2  ;;  %v490_v59 = vmul.f32 %v485_v54, %v12756_v28 }
 0x1a7   : > { %v491_v58 = vmul.f32 %v485_v54, %v12764_v40  ;;  %v7584_v62 = vrot.slane %v12846_v27, %v12652_v5  ;;  %v12870_v63 = vmul.f32 %v7556_v49, %v12720_v32 }
 0x1a8   : > { %v12872_v2 = vmax.f32 %v487_v55, 0.0  ;;  %v12874_v61 = vmax.f32 %v488_v56, 0.0  ;;  %v12876_v28 = vmax.f32 %v489_v57, 0.0  ;;  %v12878_v25 = vmax.f32 %v490_v59, 0.0 }
 0x1a9   : > { %18035 = vst [vmem:[#allocation28_spill] sm:$0xff] %v12870_v63  ;;  %v12880_v40 = vmax.f32 %v491_v58, 0.0  ;;  %7605 = vrot.lane.b32.xlu0 %v7584_v62, %s12498_s8  ;;  %v7592_v36 = vrot.slane %v12870_v63, %v12652_v5  ;;  %v12940_v63 = vstv %s12893_s29  ;;  %s12515_s29 = smov 8  }
 0x1aa   : > { %v506_v33 = vmul.f32 %v505_v60, %v12872_v2  ;;  %v507_v34 = vmul.f32 %v505_v60, %v12874_v61  ;;  %v508_v35 = vmul.f32 %v505_v60, %v12876_v28  ;;  %v509_v37 = vmul.f32 %v505_v60, %v12878_v25 }
 0x1ab   : > { %v510_v43 = vmul.f32 %v505_v60, %v12880_v40  ;;  %v499_v54 = vmul.f32 %v498_v26, %v12872_v2  ;;  %v538_v58 = vmul.f32 %v537_v29, %v12872_v2  ;;  %v539_v60 = vmul.f32 %v537_v29, %v12874_v61 }
 0x1ac   : > { %v11341_v49 = vrot.slane %v506_v33, 9  ;;  %v11342_v55 = vrot.slane %v507_v34, 9  ;;  %v11343_v56 = vrot.slane %v508_v35, 9  ;;  %v11344_v57 = vrot.slane %v509_v37, 9 }
 0x1ad   : > { %7609 = vrot.lane.b32.xlu0 %v7592_v36, %s12498_s8  ;;  %v11345_v59 = vrot.slane %v510_v43, 9  ;;  %v540_v62 = vmul.f32 %v537_v29, %v12876_v28  ;;  %v500_v33 = vmul.f32 %v498_v26, %v12874_v61  ;;  %v501_v0 = vmul.f32 %v498_v26, %v12876_v28 }
 0x1ae   : > { %v502_v1 = vmul.f32 %v498_v26, %v12878_v25  ;;  %v541_v34 = vmul.f32 %v537_v29, %v12878_v25  ;;  %v503_v35 = vmul.f32 %v498_v26, %v12880_v40  ;;  %v531_v37 = vadd.f32 %v11341_v49, %v499_v54 }
 0x1af   : > { %v542_v36 = vmul.f32 %v537_v29, %v12880_v40  ;;  %v12937_v43 = vstv %s12888_s28  ;;  %v532_v5 = vadd.f32 %v11342_v55, %v500_v33  ;;  %v533_v4 = vadd.f32 %v11343_v56, %v501_v0  ;;  %s12507_s28 = smov 106  }
 0x1b0   : > { %v534_v10 = vadd.f32 %v11344_v57, %v502_v1  ;;  %v535_v27 = vadd.f32 %v11345_v59, %v503_v35  ;;  %v11347_v51 = vrot.slane %v538_v58, 10  ;;  %v11348_v50 = vrot.slane %v539_v60, 10 }
 0x1b1   : > { %v11349_v9 = vrot.slane %v540_v62, 10  ;;  %v11350_v22 = vrot.slane %v541_v34, 10  ;;  %v570_v45 = vmul.f32 %v569_v30, %v12872_v2  ;;  %v571_v39 = vmul.f32 %v569_v30, %v12874_v61 }
 0x1b2   : > { %v572_v26 = vmul.f32 %v569_v30, %v12876_v28  ;;  %v11351_v49 = vrot.slane %v542_v36, 10  ;;  %v563_v29 = vadd.f32 %v11347_v51, %v531_v37  ;;  %v573_v54 = vmul.f32 %v569_v30, %v12878_v25 }
 0x1b3   : > { %v574_v0 = vmul.f32 %v569_v30, %v12880_v40  ;;  %v564_v1 = vadd.f32 %v11348_v50, %v532_v5  ;;  %v565_v55 = vadd.f32 %v11349_v9, %v533_v4  ;;  %v566_v56 = vadd.f32 %v11350_v22, %v534_v10 }
 0x1b4   : > { %v609_v57 = vmul.f32 %v608_v44, %v12872_v2  ;;  %v610_v59 = vmul.f32 %v608_v44, %v12874_v61  ;;  %v611_v58 = vmul.f32 %v608_v44, %v12876_v28  ;;  %v612_v60 = vmul.f32 %v608_v44, %v12878_v25 }
 0x1b5   : > { %v613_v62 = vmul.f32 %v608_v44, %v12880_v40  ;;  %v567_v33 = vadd.f32 %v11351_v49, %v535_v27  ;;  %v11353_v34 = vrot.slane %v570_v45, 11  ;;  %v11354_v51 = vrot.slane %v571_v39, 11 }
 0x1b6   : > { %v11355_v35 = vrot.slane %v572_v26, 11  ;;  %v11356_v37 = vrot.slane %v573_v54, 11  ;;  %v11357_v36 = vrot.slane %v574_v0, 11  ;;  %v602_v4 = vmul.f32 %v12886_v31, %v12872_v2 }
 0x1b7   : > { %v11360_v5 = vrot.slane %v609_v57, 9  ;;  %v603_v9 = vmul.f32 %v12886_v31, %v12874_v61  ;;  %v604_v10 = vmul.f32 %v12886_v31, %v12876_v28  ;;  %v11361_v22 = vrot.slane %v610_v59, 9 }
 0x1b8   : > { %v11362_v50 = vrot.slane %v611_v58, 9  ;;  %v12958_v30 = vadd.f32 %v11353_v34, %v563_v29  ;;  %v11363_v27 = vrot.slane %v612_v60, 9  ;;  %v11364_v45 = vrot.slane %v613_v62, 9 }
 0x1b9   : > { %v641_v39 = vmul.f32 %v12902_v46, %v12872_v2  ;;  %v12962_v44 = vadd.f32 %v11354_v51, %v564_v1  ;;  %v642_v26 = vmul.f32 %v12902_v46, %v12874_v61  ;;  %v643_v49 = vmul.f32 %v12902_v46, %v12876_v28 }
 0x1ba   : > { %v644_v54 = vmul.f32 %v12902_v46, %v12878_v25  ;;  %v605_v29 = vmul.f32 %v12886_v31, %v12878_v25  ;;  %v606_v0 = vmul.f32 %v12886_v31, %v12880_v40  ;;  %v634_v57 = vadd.f32 %v11360_v5, %v602_v4 }
 0x1bb   : > { %v645_v1 = vmul.f32 %v12902_v46, %v12880_v40  ;;  %v12976_v59 = vadd.f32 %v11355_v35, %v565_v55  ;;  %v12978_v58 = vadd.f32 %v11356_v37, %v566_v56  ;;  %v635_v60 = vadd.f32 %v11361_v22, %v603_v9 }
 0x1bc   : > { %v636_v62 = vadd.f32 %v11362_v50, %v604_v10  ;;  %v12980_v34 = vadd.f32 %v11357_v36, %v567_v33  ;;  %v637_v51 = vadd.f32 %v11363_v27, %v605_v29  ;;  %v638_v38 = vadd.f32 %v11364_v45, %v606_v0 }
 0x1bd   : > { %v11366_v8 = vrot.slane %v641_v39, 10  ;;  %v11367_v32 = vrot.slane %v642_v26, 10  ;;  %v11368_v42 = vrot.slane %v643_v49, 10  ;;  %v11369_v20 = vrot.slane %v644_v54, 10 }
 0x1be   : > { %v673_v31 = vmul.f32 %v12905_v21, %v12872_v2  ;;  %v11370_v4 = vrot.slane %v645_v1, 10  ;;  %v674_v46 = vmul.f32 %v12905_v21, %v12874_v61  ;;  %v675_v55 = vmul.f32 %v12905_v21, %v12876_v28 }
 0x1bf   : > { %v666_v5 = vadd.f32 %v11366_v8, %v634_v57  ;;  %v667_v56 = vadd.f32 %v11367_v32, %v635_v60  ;;  %v668_v33 = vadd.f32 %v11368_v42, %v636_v62  ;;  %v676_v35 = vmul.f32 %v12905_v21, %v12878_v25 }
 0x1c0   : > { %v712_v37 = vmul.f32 %v12911_v24, %v12872_v2  ;;  %v669_v36 = vadd.f32 %v11369_v20, %v637_v51  ;;  %v677_v9 = vmul.f32 %v12905_v21, %v12880_v40  ;;  %v713_v8 = vmul.f32 %v12911_v24, %v12874_v61 }
 0x1c1   : > { %v714_v10 = vmul.f32 %v12911_v24, %v12876_v28  ;;  %v670_v22 = vadd.f32 %v11370_v4, %v638_v38  ;;  %v11372_v50 = vrot.slane %v673_v31, 11  ;;  %v715_v32 = vmul.f32 %v12911_v24, %v12878_v25 }
 0x1c2   : > { %v716_v42 = vmul.f32 %v12911_v24, %v12880_v40  ;;  %v11373_v27 = vrot.slane %v674_v46, 11  ;;  %v11374_v45 = vrot.slane %v675_v55, 11  ;;  %v705_v20 = vmul.f32 %v12908_v47, %v12872_v2 }
 0x1c3   : > { %v706_v21 = vmul.f32 %v12908_v47, %v12874_v61  ;;  %v11375_v39 = vrot.slane %v676_v35, 11  ;;  %v707_v26 = vmul.f32 %v12908_v47, %v12876_v28  ;;  %v11379_v38 = vrot.slane %v712_v37, 9 }
 0x1c4   : > { %v11380_v49 = vrot.slane %v713_v8, 9  ;;  %v11376_v54 = vrot.slane %v677_v9, 11  ;;  %v13008_v29 = vadd.f32 %v11372_v50, %v666_v5  ;;  %v11381_v0 = vrot.slane %v714_v10, 9 }
 0x1c5   : > { %v11382_v57 = vrot.slane %v715_v32, 9  ;;  %v11383_v24 = vrot.slane %v716_v42, 9  ;;  %v744_v1 = vmul.f32 %v12914_v48, %v12872_v2  ;;  %v745_v60 = vmul.f32 %v12914_v48, %v12874_v61 }
 0x1c6   : > { %v746_v62 = vmul.f32 %v12914_v48, %v12876_v28  ;;  %v13016_v51 = vadd.f32 %v11373_v27, %v667_v56  ;;  %v13018_v31 = vadd.f32 %v11374_v45, %v668_v33  ;;  %v708_v4 = vmul.f32 %v12908_v47, %v12878_v25 }
 0x1c7   : > { %v747_v5 = vmul.f32 %v12914_v48, %v12878_v25  ;;  %v709_v46 = vmul.f32 %v12908_v47, %v12880_v40  ;;  %v737_v55 = vadd.f32 %v11379_v38, %v705_v20  ;;  %v738_v35 = vadd.f32 %v11380_v49, %v706_v21 }
 0x1c8   : > { %v748_v37 = vmul.f32 %v12914_v48, %v12880_v40  ;;  %v13028_v9 = vadd.f32 %v11375_v39, %v669_v36  ;;  %v13030_v56 = vadd.f32 %v11376_v54, %v670_v22  ;;  %v739_v33 = vadd.f32 %v11381_v0, %v707_v26 }
 0x1c9   : > { %v740_v8 = vadd.f32 %v11382_v57, %v708_v4  ;;  %v741_v10 = vadd.f32 %v11383_v24, %v709_v46  ;;  %v11385_v50 = vrot.slane %v744_v1, 10  ;;  %v11386_v32 = vrot.slane %v745_v60, 10 }
 0x1ca   : > { %v11387_v42 = vrot.slane %v746_v62, 10  ;;  %v11388_v27 = vrot.slane %v747_v5, 10  ;;  %v776_v45 = vmul.f32 %v12917_v41, %v12872_v2  ;;  %v777_v47 = vmul.f32 %v12917_v41, %v12874_v61 }
 0x1cb   : > { %v778_v48 = vmul.f32 %v12917_v41, %v12876_v28  ;;  %v11389_v36 = vrot.slane %v748_v37, 10  ;;  %v769_v20 = vadd.f32 %v11385_v50, %v737_v55  ;;  %v770_v22 = vadd.f32 %v11386_v32, %v738_v35 }
 0x1cc   : > { %v779_v21 = vmul.f32 %v12917_v41, %v12878_v25  ;;  %v771_v39 = vadd.f32 %v11387_v42, %v739_v33  ;;  %v772_v26 = vadd.f32 %v11388_v27, %v740_v8  ;;  %v780_v38 = vmul.f32 %v12917_v41, %v12880_v40 }
 0x1cd   : > { %v815_v49 = vmul.f32 %v12923_v53, %v12872_v2  ;;  %v816_v54 = vmul.f32 %v12923_v53, %v12874_v61  ;;  %v817_v0 = vmul.f32 %v12923_v53, %v12876_v28  ;;  %v818_v57 = vmul.f32 %v12923_v53, %v12878_v25 }
 0x1ce   : > { %v819_v24 = vmul.f32 %v12923_v53, %v12880_v40  ;;  %v773_v1 = vadd.f32 %v11389_v36, %v741_v10  ;;  %v11391_v60 = vrot.slane %v776_v45, 11  ;;  %v11392_v62 = vrot.slane %v777_v47, 11 }
 0x1cf   : > { %v11393_v4 = vrot.slane %v778_v48, 11  ;;  %v11394_v41 = vrot.slane %v779_v21, 11  ;;  %v808_v5 = vmul.f32 %v12920_v52, %v12872_v2  ;;  %v11398_v46 = vrot.slane %v815_v49, 9 }
 0x1d0   : > { %v11399_v55 = vrot.slane %v816_v54, 9  ;;  %v11395_v35 = vrot.slane %v780_v38, 11  ;;  %v11400_v37 = vrot.slane %v817_v0, 9  ;;  %v11401_v33 = vrot.slane %v818_v57, 9 }
 0x1d1   : > { %v847_v8 = vmul.f32 %v12937_v43, %v12872_v2  ;;  %v809_v50 = vmul.f32 %v12920_v52, %v12874_v61  ;;  %v810_v53 = vmul.f32 %v12920_v52, %v12876_v28  ;;  %v11402_v10 = vrot.slane %v819_v24, 9 }
 0x1d2   : > { %v848_v32 = vmul.f32 %v12937_v43, %v12874_v61  ;;  %v811_v42 = vmul.f32 %v12920_v52, %v12878_v25  ;;  %v849_v27 = vmul.f32 %v12937_v43, %v12876_v28  ;;  %v850_v45 = vmul.f32 %v12937_v43, %v12878_v25 }
 0x1d3   : > { %v851_v47 = vmul.f32 %v12937_v43, %v12880_v40  ;;  %v13070_v48 = vadd.f32 %v11391_v60, %v769_v20  ;;  %v812_v36 = vmul.f32 %v12920_v52, %v12880_v40  ;;  %v840_v21 = vadd.f32 %v11398_v46, %v808_v5 }
 0x1d4   : > { %v841_v38 = vadd.f32 %v11399_v55, %v809_v50  ;;  %v13074_v49 = vadd.f32 %v11392_v62, %v770_v22  ;;  %v842_v54 = vadd.f32 %v11400_v37, %v810_v53  ;;  %v843_v0 = vadd.f32 %v11401_v33, %v811_v42 }
 0x1d5   : > { %v11404_v57 = vrot.slane %v847_v8, 10  ;;  %v844_v24 = vadd.f32 %v11402_v10, %v812_v36  ;;  %v11405_v23 = vrot.slane %v848_v32, 10  ;;  %v879_v19 = vmul.f32 %v12940_v63, %v12872_v2 }
 0x1d6   : > { %v880_v43 = vmul.f32 %v12940_v63, %v12874_v61  ;;  %v11406_v20 = vrot.slane %v849_v27, 10  ;;  %v11407_v60 = vrot.slane %v850_v45, 10  ;;  %v11408_v6 = vrot.slane %v851_v47, 10 }
 0x1d7   : > { %v881_v52 = vmul.f32 %v12940_v63, %v12876_v28  ;;  %v872_v22 = vadd.f32 %v11404_v57, %v840_v21  ;;  %v873_v62 = vadd.f32 %v11405_v23, %v841_v38  ;;  %v882_v5 = vmul.f32 %v12940_v63, %v12878_v25 }
 0x1d8   : > { %v883_v46 = vmul.f32 %v12940_v63, %v12880_v40  ;;  %v13086_v55 = vadd.f32 %v11393_v4, %v771_v39  ;;  %v13088_v2 = vadd.f32 %v11394_v41, %v772_v26  ;;  %v13090_v61 = vadd.f32 %v11395_v35, %v773_v1 }
 0x1d9   : > { %v874_v37 = vadd.f32 %v11406_v20, %v842_v54  ;;  %v875_v33 = vadd.f32 %v11407_v60, %v843_v0  ;;  %v876_v8 = vadd.f32 %v11408_v6, %v844_v24  ;;  %v11410_v28 = vrot.slane %v879_v19, 11 }
 0x1da   : > { %v11411_v50 = vrot.slane %v880_v43, 11  ;;  %v11412_v53 = vrot.slane %v881_v52, 11  ;;  %v917_v23 = vrot.slane %v12958_v30, %v12646_v3  ;;  %v921_v25 = vrot.slane %v12958_v30, %v12658_v7 }
 0x1db   : > { %v925_v63 = vrot.slane %v12962_v44, %v12646_v3  ;;  %v11413_v40 = vrot.slane %v882_v5, 11  ;;  %v11414_v39 = vrot.slane %v883_v46, 11  ;;  %v904_v26 = vadd.f32 %v11410_v28, %v872_v22 }
 0x1dc   : > { %v905_v1 = vadd.f32 %v11411_v50, %v873_v62  ;;  %v13098_v4 = vadd.f32 %v11412_v53, %v874_v37  ;;  %v929_v6 = vrot.slane %v12962_v44, %v12658_v7  ;;  %v933_v19 = vrot.slane %v12976_v59, %v12646_v3 }
 0x1dd   : > { %v937_v41 = vrot.slane %v12976_v59, %v12658_v7  ;;  %v967_v30 = vrot.slane %v13008_v29, %v12646_v3  ;;  %v971_v35 = vrot.slane %v13008_v29, %v12658_v7  ;;  %v975_v10 = vrot.slane %v13016_v51, %v12646_v3 }
 0x1de   : > { %v979_v32 = vrot.slane %v13016_v51, %v12658_v7  ;;  %v13114_v42 = vadd.f32 %v11413_v40, %v875_v33  ;;  %v13116_v44 = vadd.f32 %v11414_v39, %v876_v8  ;;  %v941_v27 = vrot.slane %v12978_v58, %v12646_v3 }
 0x1df   : > { %v945_v59 = vrot.slane %v12978_v58, %v12658_v7  ;;  %v983_v45 = vrot.slane %v13018_v31, %v12646_v3  ;;  %v1017_v29 = vrot.slane %v13070_v48, %v12646_v3  ;;  %v1021_v47 = vrot.slane %v13070_v48, %v12658_v7 }
 0x1e0   : > { %v1025_v51 = vrot.slane %v13074_v49, %v12646_v3  ;;  %v949_v36 = vrot.slane %v12980_v34, %v12646_v3  ;;  %v987_v21 = vrot.slane %v13018_v31, %v12658_v7  ;;  %v991_v58 = vrot.slane %v13028_v9, %v12646_v3 }
 0x1e1   : > { %v1029_v38 = vrot.slane %v13074_v49, %v12658_v7  ;;  %v1110_v54 = vsel %vm1109_vm1, %v917_v23, %v967_v30  ;;  %v1111_v0 = vsel %vm1109_vm1, %v921_v25, %v971_v35  ;;  %v1112_v48 = vsel %vm1109_vm1, %v925_v63, %v975_v10 }
 0x1e2   : > { %v1113_v57 = vsel %vm1109_vm1, %v929_v6, %v979_v32  ;;  %v995_v34 = vrot.slane %v13028_v9, %v12658_v7  ;;  %v1033_v31 = vrot.slane %v13086_v55, %v12646_v3  ;;  %v1067_v24 = vrot.slane %v904_v26, %v12646_v3 }
 0x1e3   : > { %v1071_v43 = vrot.slane %v904_v26, %v12658_v7  ;;  %v1114_v49 = vsel %vm1109_vm1, %v933_v19, %v983_v45  ;;  %v1120_v20 = vsel %vm1119_vm2, %v1110_v54, %v1017_v29  ;;  %v1121_v60 = vsel %vm1119_vm2, %v1111_v0, %v1021_v47 }
 0x1e4   : > { %v1122_v52 = vsel %vm1119_vm2, %v1112_v48, %v1025_v51  ;;  %v999_v22 = vrot.slane %v13030_v56, %v12646_v3  ;;  %v1037_v9 = vrot.slane %v13086_v55, %v12658_v7  ;;  %v1075_v62 = vrot.slane %v905_v1, %v12646_v3 }
 0x1e5   : > { %v1123_v5 = vsel %vm1119_vm2, %v1113_v57, %v1029_v38  ;;  %v1079_v46 = vrot.slane %v905_v1, %v12658_v7  ;;  %v1115_v37 = vsel %vm1109_vm1, %v937_v41, %v987_v21  ;;  %v13163_v33 = vsel %vm1129_vm3, %v1120_v20, %v1067_v24 }
 0x1e6   : > { %v13166_v8 = vsel %vm1129_vm3, %v1121_v60, %v1071_v43  ;;  %v1041_v56 = vrot.slane %v13088_v2, %v12646_v3  ;;  %v1045_v55 = vrot.slane %v13088_v2, %v12658_v7  ;;  %v1124_v28 = vsel %vm1119_vm2, %v1114_v49, %v1033_v31  ;;  %v18036_v31 = vld [vmem:[#allocation12_spill] sm:$0xff] }
 0x1e7   : > { %v13174_v50 = vsel %vm1129_vm3, %v1122_v52, %v1075_v62  ;;  %v1083_v53 = vrot.slane %v13098_v4, %v12646_v3  ;;  %v1116_v23 = vsel %vm1109_vm1, %v941_v27, %v991_v58  ;;  %v13180_v25 = vsel %vm1129_vm3, %v1123_v5, %v1079_v46  ;;  %v18037_v43 = vld [vmem:[#allocation16_spill] sm:$0xff] }
 0x1e8   : > { %v1139_v63 = vmul.f32 %v13163_v33, %v12675_v11  ;;  %v1049_v40 = vrot.slane %v13090_v61, %v12646_v3  ;;  %v1125_v2 = vsel %vm1119_vm2, %v1115_v37, %v1037_v9  ;;  %v1140_v39 = vmul.f32 %v13166_v8, %v12678_v12  ;;  %v18040_v46 = vld [vmem:[#allocation20_spill] sm:$0xff] }
 0x1e9   : > { %v1141_v26 = vmul.f32 %v13174_v50, %v12681_v13  ;;  %v1087_v1 = vrot.slane %v13098_v4, %v12658_v7  ;;  %v1091_v6 = vrot.slane %v13114_v42, %v12646_v3  ;;  %v1117_v19 = vsel %vm1109_vm1, %v945_v59, %v995_v34 }
 0x1ea   : > { %v13197_v41 = vsel %vm1129_vm3, %v1124_v28, %v1083_v53  ;;  %v1126_v61 = vsel %vm1119_vm2, %v1116_v23, %v1041_v56  ;;  %v1142_v30 = vmul.f32 %v13180_v25, %v12684_v14  ;;  %v1148_v35 = vsel %vm399_vm0, %v1139_v63, 0.0  ;;  %v18041_v53 = vld [vmem:[#allocation19_spill] sm:$0xff] }
 0x1eb   : > { %v1149_v10 = vsel %vm399_vm0, %v1140_v39, 0.0  ;;  %v1095_v4 = vrot.slane %v13114_v42, %v12658_v7  ;;  %v1118_v32 = vsel %vm1109_vm1, %v949_v36, %v999_v22  ;;  %v13208_v27 = vsel %vm1129_vm3, %v1125_v2, %v1087_v1  ;;  %v18039_v22 = vld [vmem:[#allocation17_spill] sm:$0xff] }
 0x1ec   : > { %v1150_v59 = vadd.f32 %v1149_v10, %v1148_v35  ;;  %v1127_v45 = vsel %vm1119_vm2, %v1117_v19, %v1045_v55  ;;  %v1143_v29 = vmul.f32 %v13197_v41, %v12693_v17  ;;  %v1151_v47 = vsel %vm399_vm0, %v1141_v26, 0.0  ;;  %v18042_v1 = vld [vmem:[#allocation13_spill] sm:$0xff]  ;;  %v18045_v35 = vld [vmem:[#allocation23_spill] sm:$0xff] }
 0x1ed   : > { %v7635_v51 = vstv %s13158_s30  ;;  %v13216_v21 = vsel %vm1129_vm3, %v1126_v61, %v1091_v6  ;;  %v1128_v38 = vsel %vm1119_vm2, %v1118_v32, %v1049_v40  ;;  %v1144_v54 = vmul.f32 %v13208_v27, %v12696_v18  ;;  %v18043_v6 = vld [vmem:[#allocation21_spill] sm:$0xff]  ;;  %v18044_v61 = vld [vmem:[#allocation22_spill] sm:$0xff]  ;;  %s12521_s30 = smov 46  }
 0x1ee   : > { %v1152_v58 = vadd.f32 %v1151_v47, %v1150_v59  ;;  %v7636_v42 = vmul.f32 %v7635_v51, %v12687_v15  ;;  %v7637_v36 = vmul.f32 %v7635_v51, %v12690_v16  ;;  %v1153_v0 = vsel %vm399_vm0, %v1142_v30, 0.0  ;;  %v18047_v59 = vld [vmem:[#allocation14_spill] sm:$0xff] }
 0x1ef   : > { %v1099_v48 = vrot.slane %v13116_v44, %v12646_v3  ;;  %v13227_v57 = vsel %vm1129_vm3, %v1127_v45, %v1095_v4  ;;  %v1145_v15 = vmul.f32 %v13216_v21, %v18037_v43  ;;  %v1155_v16 = vsel %vm399_vm0, %v1143_v29, 0.0  ;;  %v18038_v44 = vld [vmem:[#allocation18_spill] sm:$0xff]  ;;  %v18046_v4 = vld [vmem:[#allocation24_spill] sm:$0xff]  ;;  %v18048_v45 = vld [vmem:[#allocation25_spill] sm:$0xff] }
 0x1f0   : > { %v1154_v34 = vadd.f32 %v1153_v0, %v1152_v58  ;;  %v7647_v24 = vrot.slane %v7636_v42, %v18036_v31  ;;  %v7655_v60 = vrot.slane %v7637_v36, %v18036_v31  ;;  %v7638_v52 = vmul.f32 %v7635_v51, %v18038_v44  ;;  %v18049_v47 = vld [vmem:[#allocation26_spill] sm:$0xff]  ;;  %v18050_v58 = vld [vmem:[#allocation27_spill] sm:$0xff] }
 0x1f1   : > { %v13234_v49 = vsel %vm1129_vm3, %v1128_v38, %v1099_v48  ;;  %v1146_v9 = vmul.f32 %v13227_v57, %v18039_v22  ;;  %v1157_v62 = vsel %vm399_vm0, %v1144_v54, 0.0  ;;  %v1159_v56 = vsel %vm399_vm0, %v1145_v15, 0.0  ;;  %v18051_v54 = vld [vmem:[#allocation28_spill] sm:$0xff]  ;;  %v18052_v48 = vld [vmem:[#allocation15_spill] sm:$0xff]  ;;  %v13292_v44 = vld [vmem:[%s12672_s27 + $0x8] sm:$0xff] }
 0x1f2   : > { %v1156_v20 = vadd.f32 %v1155_v16, %v1154_v34  ;;  %7676 = vrot.lane.b32.xlu0 %v7647_v24, %s12498_s8  ;;  %v1147_v37 = vmul.f32 %v18040_v46, %v13234_v49  ;;  %v7663_v28 = vrot.slane %v7638_v52, %v18036_v31  ;;  %v7639_v23 = vmul.f32 %v7635_v51, %v18041_v53 }
 0x1f3   : > { %v1161_v63 = vsel %vm399_vm0, %v1146_v9, 0.0  ;;  %v7493_v19 = vrot.slane %v18043_v6, %v18042_v1  ;;  %v7501_v30 = vrot.slane %v18044_v61, %v18042_v1  ;;  %v7509_v10 = vrot.slane %v18045_v35, %v18042_v1  ;;  %v18054_v35 = vld [vmem:[#allocation11_spill] sm:$0xff] }
 0x1f4   : > { %v1158_v5 = vadd.f32 %v1157_v62, %v1156_v20  ;;  %v1163_v2 = vsel %vm399_vm0, %v1147_v37, 0.0  ;;  %v7671_v26 = vrot.slane %v7639_v23, %v18036_v31  ;;  %v7517_v32 = vrot.slane %v18046_v4, %v18042_v1  ;;  %v13303_v62 = vld [vmem:[%s12672_s27 + $0x10] sm:$0xff]  ;;  %v13354_v4 = vpop.permute.xlu1 %7440 }
 0x1f5   : > { %v7572_v29 = vrot.slane %v18048_v45, %v18047_v59  ;;  %v7580_v51 = vrot.slane %v18049_v47, %v18047_v59  ;;  %v7588_v38 = vrot.slane %v18050_v58, %v18047_v59  ;;  %v7596_v0 = vrot.slane %v18051_v54, %v18047_v59 }
 0x1f6   : > { %v1160_v55 = vadd.f32 %v1159_v56, %v1158_v5  ;;  %7680 = vrot.lane.b32.xlu0 %v7655_v60, %s12498_s8  ;;  %v7651_v34 = vrot.slane %v7636_v42, %v18052_v48  ;;  %v7659_v24 = vrot.slane %v7637_v36, %v18052_v48  ;;  %v7667_v15 = vrot.slane %v7638_v52, %v18052_v48  ;;  %v13286_v60 = vld [vmem:[%s12672_s27] sm:$0xff] }
 0x1f7   : > { %v7675_v16 = vrot.slane %v7639_v23, %v18052_v48  ;;  %v7896_v20 = vstv %s11640_s9  ;;  %v7975_v56 = vstv %s11641_s10  ;;  %v18053_v23 = vld [vmem:[#allocation10_spill] sm:$0xff]  ;;  %s12510_s9 = smov 28   ;;  %s12516_s10 = smov 7   ;;  %vm3660_vm1 = vcmask 211968  }
 0x1f8   : > { %v1162_v40 = vadd.f32 %v1161_v63, %v1160_v55  ;;  %v13289_v42 = vmul.f32 %v13286_v60, %v7896_v20  ;;  %v13295_v36 = vmul.f32 %v13292_v44, %v7896_v20  ;;  %v13306_v5 = vmul.f32 %v13303_v62, %v7896_v20 }
 0x1f9   : > { %v13312_v37 = vmul.f32 %v7896_v20, %v18041_v53  ;;  %vm3880_vm3 = vcmask 146432  }
 0x1fa   : > { %v1164_v39 = vadd.f32 %v1163_v2, %v1162_v40  ;;  %7684 = vrot.lane.b32.xlu0 %v7663_v28, %s12498_s8  ;;  %v7908_v52 = vrot.slane %v13289_v42, %v12646_v3  ;;  %v7916_v9 = vrot.slane %v13295_v36, %v12646_v3  ;;  %v7924_v46 = vrot.slane %v13306_v5, %v12646_v3 }
 0x1fb   : > { %v7932_v55 = vrot.slane %v13312_v37, %v12646_v3  ;;  %v13318_v28 = vmul.f32 %v13286_v60, %v7975_v56  ;;  %v13324_v40 = vmul.f32 %v13292_v44, %v7975_v56  ;;  %v13330_v2 = vmul.f32 %v13303_v62, %v7975_v56 }
 0x1fc   : > { %1165 = vadd.xlane.f32.xlu1 %v1164_v39 }
 0x1fd   : > { %v7987_v63 = vrot.slane %v13318_v28, %v18053_v23  ;;  %v7995_v53 = vrot.slane %v13324_v40, %v18053_v23  ;;  %v8003_v39 = vrot.slane %v13330_v2, %v18053_v23 }
 0x1fe   : > { %7688 = vrot.lane.b32.xlu0 %v7671_v26, %s12498_s8  ;;  %v13336_v26 = vld [vmem:[%s12672_s27 + $0x18] sm:$0xff] }
 0x1ff   : > { %v13339_v6 = vmul.f32 %v13336_v26, %v7975_v56 }
 0x201   : > { %v8011_v61 = vrot.slane %v13339_v6, %v18053_v23 }
 0x202   : > { %7937 = vrot.lane.b32.xlu0 %v7908_v52, %s12498_s8 }
 0x206   : > { %7941 = vrot.lane.b32.xlu0 %v7916_v9, %s12498_s8 }
 0x20a   : > { %7945 = vrot.lane.b32.xlu0 %v7924_v46, %s12498_s8 }
 0x20d   : > { %7520 = vrot.lane.b32.xlu1 %v7493_v19, %s12498_s8  ;;  %v13341_v19 = vstv %s11642_s11  ;;  %s12522_s11 = smov 45  }
 0x20e   : > { %7949 = vrot.lane.b32.xlu0 %v7932_v55, %s12498_s8 }
 0x211   : > { %7524 = vrot.lane.b32.xlu1 %v7501_v30, %s12498_s8  ;;  %v13348_v30 = vmul.f32 %v13286_v60, %v13341_v19 }
 0x212   : > { %8016 = vrot.lane.b32.xlu0 %v7987_v63, %s12498_s8 }
 0x215   : > { %7528 = vrot.lane.b32.xlu1 %v7509_v10, %s12498_s8  ;;  %v8066_v10 = vrot.slane %v13348_v30, %v18054_v35 }
 0x216   : > { %8020 = vrot.lane.b32.xlu0 %v7995_v53, %s12498_s8 }
 0x219   : > { %7532 = vrot.lane.b32.xlu1 %v7517_v32, %s12498_s8  ;;  %v13356_v32 = vpop.permute.xlu1 %7444 }
 0x21a   : > { %8024 = vrot.lane.b32.xlu0 %v8003_v39, %s12498_s8  ;;  %18055 = vst [vmem:[#allocation12_spill] sm:$0xff] %v13356_v32 }
 0x21d   : > { %7599 = vrot.lane.b32.xlu1 %v7572_v29, %s12498_s8  ;;  %v13358_v45 = vpop.permute.xlu1 %7448 }
 0x21e   : > { %8028 = vrot.lane.b32.xlu0 %v8011_v61, %s12498_s8  ;;  %18056 = vst [vmem:[#allocation16_spill] sm:$0xff] %v13358_v45 }
 0x221   : > { %7603 = vrot.lane.b32.xlu1 %v7580_v51, %s12498_s8  ;;  %v13360_v29 = vpop.permute.xlu1 %7452 }
 0x222   : > { %8095 = vrot.lane.b32.xlu0 %v8066_v10, %s12498_s8  ;;  %18057 = vst [vmem:[#allocation18_spill] sm:$0xff] %v13360_v29 }
 0x225   : > { %7607 = vrot.lane.b32.xlu1 %v7588_v38, %s12498_s8 }
 0x229   : > { %7611 = vrot.lane.b32.xlu1 %v7596_v0, %s12498_s8 }
 0x22d   : > { %7678 = vrot.lane.b32.xlu1 %v7651_v34, %s12498_s8 }
 0x231   : > { %7682 = vrot.lane.b32.xlu1 %v7659_v24, %s12498_s8 }
 0x235   : > { %7686 = vrot.lane.b32.xlu1 %v7667_v15, %s12498_s8 }
 0x239   : > { %7690 = vrot.lane.b32.xlu1 %v7675_v16, %s12498_s8 }
 0x289   : > { %v1166_v47 = vpop.xlane.xlu1 %1165 }
 0x28a   : > { %v1167_v51 = vmul.f32 0.001953125, %v1166_v47 }
 0x28c   : > { %v13363_v58 = vsub.f32 %v13163_v33, %v1167_v51  ;;  %v13366_v38 = vsub.f32 %v13166_v8, %v1167_v51  ;;  %v13369_v54 = vsub.f32 %v13174_v50, %v1167_v51  ;;  %v13372_v0 = vsub.f32 %v13180_v25, %v1167_v51 }
 0x28d   : > { %v13375_v34 = vsub.f32 %v13197_v41, %v1167_v51  ;;  %v13384_v8 = vsub.f32 %v13208_v27, %v1167_v51  ;;  %v13391_v16 = vsub.f32 %v13216_v21, %v1167_v51  ;;  %v13398_v27 = vsub.f32 %v13227_v57, %v1167_v51 }
 0x28e   : > { %v1177_v24 = vmul.f32 %v13363_v58, %v13363_v58  ;;  %v1178_v15 = vmul.f32 %v13366_v38, %v13366_v38  ;;  %v1179_v33 = vmul.f32 %v13369_v54, %v13369_v54  ;;  %v1180_v50 = vmul.f32 %v13372_v0, %v13372_v0 }
 0x28f   : > { %v1181_v20 = vmul.f32 %v13375_v34, %v13375_v34  ;;  %v1182_v46 = vmul.f32 %v13384_v8, %v13384_v8  ;;  %v13405_v21 = vsub.f32 %v13234_v49, %v1167_v51  ;;  %v1183_v53 = vmul.f32 %v13391_v16, %v13391_v16 }
 0x290   : > { %v1186_v25 = vmul.f32 %v1177_v24, %v12675_v11  ;;  %v1187_v41 = vmul.f32 %v1178_v15, %v12678_v12  ;;  %v1188_v52 = vmul.f32 %v1179_v33, %v12681_v13  ;;  %v1189_v56 = vmul.f32 %v1180_v50, %v12684_v14 }
 0x291   : > { %v1190_v39 = vmul.f32 %v1181_v20, %v12693_v17  ;;  %v1184_v10 = vmul.f32 %v13398_v27, %v13398_v27  ;;  %v1191_v47 = vmul.f32 %v1182_v46, %v12696_v18  ;;  %v1185_v49 = vmul.f32 %v13405_v21, %v13405_v21 }
 0x292   : > { %v1195_v9 = vsel %vm399_vm0, %v1186_v25, 0.0  ;;  %v1196_v55 = vsel %vm399_vm0, %v1187_v41, 0.0  ;;  %v1198_v61 = vsel %vm399_vm0, %v1188_v52, 0.0  ;;  %v1200_v24 = vsel %vm399_vm0, %v1189_v56, 0.0  ;;  %v12422_v52 = vld [vmem:[%s17826_s1 + $0x8] ss:$0 sm:$0xff] }
 0x293   : > { %v1197_v63 = vadd.f32 %v1196_v55, %v1195_v9  ;;  %v1192_v51 = vmul.f32 %v1183_v53, %v18037_v43  ;;  %v1202_v33 = vsel %vm399_vm0, %v1190_v39, 0.0  ;;  %v1193_v25 = vmul.f32 %v1184_v10, %v18039_v22 }
 0x294   : > { %v1204_v41 = vsel %vm399_vm0, %v1191_v47, 0.0  ;;  %v1194_v9 = vmul.f32 %v12422_v52, %v1185_v49  ;;  %v7920_v10 = vrot.slane %v13295_v36, %v12658_v7  ;;  %v8058_v49 = vmul.f32 %v13336_v26, %v13341_v19  ;;  %v13480_v52 = vpop.permute.xlu1 %7520 }
 0x295   : > { %v1199_v57 = vadd.f32 %v1198_v61, %v1197_v63  ;;  %v1206_v46 = vsel %vm399_vm0, %v1192_v51, 0.0  ;;  %v1208_v55 = vsel %vm399_vm0, %v1193_v25, 0.0  ;;  %v7912_v61 = vrot.slane %v13289_v42, %v12658_v7  ;;  %18058 = vst [vmem:[#allocation17_spill] sm:$0xff] %v13480_v52 }
 0x296   : > { %v1210_v53 = vsel %vm399_vm0, %v1194_v9, 0.0  ;;  %v7928_v42 = vrot.slane %v13306_v5, %v12658_v7  ;;  %v7936_v36 = vrot.slane %v13312_v37, %v12658_v7  ;;  %v8090_v51 = vrot.slane %v8058_v49, %v18054_v35 }
 0x297   : > { %v1201_v15 = vadd.f32 %v1200_v24, %v1199_v57  ;;  %v8056_v57 = vmul.f32 %v13292_v44, %v13341_v19  ;;  %v8057_v24 = vmul.f32 %v13303_v62, %v13341_v19  ;;  %v7991_v5 = vrot.slane %v13318_v28, %v18042_v1 }
 0x298   : > { %v8007_v25 = vrot.slane %v13330_v2, %v18042_v1  ;;  %v8015_v28 = vrot.slane %v13339_v6, %v18042_v1  ;;  %v8094_v2 = vrot.slane %v8058_v49, %v18047_v59 }
 0x299   : > { %v1203_v50 = vadd.f32 %v1202_v33, %v1201_v15  ;;  %v8074_v47 = vrot.slane %v8056_v57, %v18054_v35  ;;  %v8082_v15 = vrot.slane %v8057_v24, %v18054_v35  ;;  %v13453_v33 = vstv %s11643_s14  ;;  %s12523_s14 = smov 44  }
 0x29a   : > { %v8134_v19 = vmul.f32 %v13286_v60, %v13453_v33 }
 0x29b   : > { %v1205_v20 = vadd.f32 %v1204_v41, %v1203_v50  ;;  %8099 = vrot.lane.b32.xlu0 %v8074_v47, %s12498_s8  ;;  %v7999_v50 = vrot.slane %v13324_v40, %v18042_v1  ;;  %v8070_v41 = vrot.slane %v13348_v30, %v18047_v59  ;;  %v8078_v40 = vrot.slane %v8056_v57, %v18047_v59  ;;  %v13482_v30 = vpop.permute.xlu1 %7524 }
 0x29c   : > { %v8145_v37 = vrot.slane %v8134_v19, %v18036_v31  ;;  %v8149_v6 = vrot.slane %v8134_v19, %v18052_v48  ;;  %18059 = vst [vmem:[#allocation20_spill] sm:$0xff] %v13482_v30 }
 0x29d   : > { %v1207_v56 = vadd.f32 %v1206_v46, %v1205_v20  ;;  %v8086_v20 = vrot.slane %v8057_v24, %v18047_v59 }
 0x29f   : > { %v1209_v63 = vadd.f32 %v1208_v55, %v1207_v56  ;;  %8103 = vrot.lane.b32.xlu0 %v8082_v15, %s12498_s8  ;;  %v13484_v9 = vpop.permute.xlu1 %7528 }
 0x2a0   : > { %18060 = vst [vmem:[#allocation19_spill] sm:$0xff] %v13484_v9 }
 0x2a1   : > { %v1211_v39 = vadd.f32 %v1210_v53, %v1209_v63  ;;  %v13494_v53 = vpop.permute.xlu0 %7438 }
 0x2a3   : > { %1212 = vadd.xlane.f32.xlu1 %v1211_v39  ;;  %8107 = vrot.lane.b32.xlu0 %v8090_v51, %s12498_s8  ;;  %v13486_v46 = vpop.permute.xlu1 %7532 }
 0x2a4   : > { %18061 = vst [vmem:[#allocation13_spill] sm:$0xff] %v13486_v46 }
 0x2a7   : > { %8174 = vrot.lane.b32.xlu0 %v8145_v37, %s12498_s8  ;;  %v13488_v56 = vpop.permute.xlu1 %7599 }
 0x2a8   : > { %18062 = vst [vmem:[#allocation21_spill] sm:$0xff] %v13488_v56 }
 0x2ab   : > { %v13490_v55 = vpop.permute.xlu1 %7603 }
 0x2ac   : > { %18063 = vst [vmem:[#allocation22_spill] sm:$0xff] %v13490_v55 }
 0x2af   : > { %v13492_v63 = vpop.permute.xlu1 %7607 }
 0x2b0   : > { %18064 = vst [vmem:[#allocation23_spill] sm:$0xff] %v13492_v63 }
 0x2b3   : > { %v13496_v39 = vpop.permute.xlu1 %7611 }
 0x2b4   : > { %7939 = vrot.lane.b32.xlu1 %v7912_v61, %s12498_s8  ;;  %18065 = vst [vmem:[#allocation24_spill] sm:$0xff] %v13496_v39  ;;  %v13498_v61 = vpop.permute.xlu0 %7442 }
 0x2b7   : > { %v13500_v57 = vpop.permute.xlu1 %7678 }
 0x2b8   : > { %7943 = vrot.lane.b32.xlu1 %v7920_v10, %s12498_s8  ;;  %18066 = vst [vmem:[#allocation14_spill] sm:$0xff] %v13500_v57  ;;  %v13502_v10 = vpop.permute.xlu0 %7446 }
 0x2b9   : > { %18067 = vst [vmem:[#allocation25_spill] sm:$0xff] %v13502_v10 }
 0x2bb   : > { %v13504_v47 = vpop.permute.xlu1 %7682 }
 0x2bc   : > { %7947 = vrot.lane.b32.xlu1 %v7928_v42, %s12498_s8  ;;  %18068 = vst [vmem:[#allocation26_spill] sm:$0xff] %v13504_v47  ;;  %v13506_v24 = vpop.permute.xlu0 %7450 }
 0x2bd   : > { %18069 = vst [vmem:[#allocation27_spill] sm:$0xff] %v13506_v24 }
 0x2bf   : > { %v13508_v42 = vpop.permute.xlu1 %7686 }
 0x2c0   : > { %7951 = vrot.lane.b32.xlu1 %v7936_v36, %s12498_s8  ;;  %18070 = vst [vmem:[#allocation28_spill] sm:$0xff] %v13508_v42  ;;  %v13510_v15 = vpop.permute.xlu0 %7518 }
 0x2c1   : > { %18071 = vst [vmem:[#allocation15_spill] sm:$0xff] %v13510_v15 }
 0x2c3   : > { %v13512_v49 = vpop.permute.xlu1 %7690 }
 0x2c4   : > { %8018 = vrot.lane.b32.xlu1 %v7991_v5, %s12498_s8  ;;  %18072 = vst [vmem:[#allocation10_spill] sm:$0xff] %v13512_v49  ;;  %v13514_v36 = vpop.permute.xlu0 %7522 }
 0x2c5   : > { %18073 = vst [vmem:[#allocation11_spill] sm:$0xff] %v13514_v36 }
 0x2c8   : > { %8022 = vrot.lane.b32.xlu1 %v7999_v50, %s12498_s8  ;;  %v13516_v50 = vpop.permute.xlu0 %7526 }
 0x2c9   : > { %18074 = vst [vmem:[#allocation29_spill] sm:$0xff] %v13516_v50 }
 0x2cc   : > { %8026 = vrot.lane.b32.xlu1 %v8007_v25, %s12498_s8  ;;  %v13518_v37 = vpop.permute.xlu0 %7530 }
 0x2cd   : > { %18075 = vst [vmem:[#allocation30_spill] sm:$0xff] %v13518_v37 }
 0x2d0   : > { %8030 = vrot.lane.b32.xlu1 %v8015_v28, %s12498_s8 }
 0x2d4   : > { %8097 = vrot.lane.b32.xlu1 %v8070_v41, %s12498_s8 }
 0x2d8   : > { %8101 = vrot.lane.b32.xlu1 %v8078_v40, %s12498_s8 }
 0x2dc   : > { %8105 = vrot.lane.b32.xlu1 %v8086_v20, %s12498_s8  ;;  %v13528_v20 = vpop.permute.xlu0 %7597 }
 0x2dd   : > { %18076 = vst [vmem:[#allocation31_spill] sm:$0xff] %v13528_v20 }
 0x2e0   : > { %8109 = vrot.lane.b32.xlu1 %v8094_v2, %s12498_s8 }
 0x2e4   : > { %8176 = vrot.lane.b32.xlu1 %v8149_v6, %s12498_s8 }
 0x330   : > { %v1213_v51 = vpop.xlane.xlu1 %1212 }
 0x331   : > { %v1214_v5 = vmul.f32 0.001953125, %v1213_v51 }
 0x333   : > { %v1215_v19 = vadd.f32 1e-05, %v1214_v5 }
 0x335   : > { %12414 = vrsqrt.f32 %v1215_v19 }
 0x33f   : > { %v13520_v25 = vpop.eup %12414 }
 0x340   : > { %v1218_v28 = vmul.f32 %v13520_v25, %v13366_v38  ;;  %v1219_v41 = vmul.f32 %v13520_v25, %v13369_v54  ;;  %v1221_v40 = vmul.f32 %v13520_v25, %v13375_v34  ;;  %v1217_v2 = vmul.f32 %v13520_v25, %v13363_v58 }
 0x341   : > { %v1220_v6 = vmul.f32 %v13520_v25, %v13372_v0  ;;  %v1223_v19 = vmul.f32 %v13520_v25, %v13391_v16  ;;  %v1222_v34 = vmul.f32 %v13520_v25, %v13384_v8  ;;  %v13543_v0 = vpop.permute.xlu0 %7601 }
 0x342   : > { %v1227_v51 = vmax.f32 %v1218_v28, 0.0  ;;  %v1228_v5 = vmax.f32 %v1219_v41, 0.0  ;;  %v1230_v38 = vmax.f32 %v1221_v40, 0.0  ;;  %v1226_v49 = vmax.f32 %v1217_v2, 0.0  ;;  %18077 = vst [vmem:[#allocation32_spill] sm:$0xff] %v13543_v0 }
 0x343   : > { %v1229_v47 = vmax.f32 %v1220_v6, 0.0  ;;  %v1232_v28 = vmax.f32 %v1223_v19, 0.0  ;;  %v8135_v40 = vmul.f32 %v13292_v44, %v13453_v33  ;;  %v8136_v44 = vmul.f32 %v13303_v62, %v13453_v33 }
 0x344   : > { %v1236_v54 = vmul.f32 %v1227_v51, %v12678_v12  ;;  %v1235_v42 = vmul.f32 %v1226_v49, %v12675_v11  ;;  %v1237_v58 = vmul.f32 %v1228_v5, %v12681_v13  ;;  %v1239_v41 = vmul.f32 %v1230_v38, %v12693_v17 }
 0x345   : > { %v17868_v11 = vmov 0   ;;  %v1231_v12 = vmax.f32 %v1222_v34, 0.0  ;;  %v1238_v13 = vmul.f32 %v1229_v47, %v12684_v14  ;;  %v1241_v17 = vmul.f32 %v1232_v28, %v18037_v43  ;;  %v13562_v49 = vpop.permute.xlu0 %7605 }
 0x346   : > { %v13541_v57 = vpack.c.bf16 %v1236_v54, %v1236_v54  ;;  %v13546_v16 = vpack.c.bf16 %v1235_v42, %v1235_v42  ;;  %1344 = vmatprep.mubr.bf16.mxu0 %v17868_v11  ;;  %v13554_v8 = vpack.c.bf16 %v1237_v58, %v1237_v58  ;;  %1385 = vmatprep.mubr.bf16.mxu1 %v17868_v11  ;;  %v13594_v62 = vstv %s11650_s16  ;;  %s12518_s16 = smov 56  }
 0x347   : > { %v13558_v42 = vpack.c.bf16 %v1239_v41, %v1239_v41  ;;  %18078 = vst [vmem:[#allocation33_spill] sm:$0xff] %v13562_v49  ;;  %v1224_v14 = vmul.f32 %v13520_v25, %v13398_v27  ;;  %v1240_v47 = vmul.f32 %v1231_v12, %v12696_v18  ;;  %v13571_v2 = vpack.c.bf16 %v1238_v13, %v1238_v13 }
 0x348   : > { %1265 = vrot.lane.b32.xlu1 %v13541_v57, %s12499_s15  ;;  %1263 = vrot.lane.b32.xlu0 %v13546_v16, %s12499_s15  ;;  %v13573_v43 = vpack.c.bf16 %v1241_v17, %v1241_v17  ;;  %v8153_v6 = vrot.slane %v8135_v40, %v18036_v31  ;;  %v8157_v5 = vrot.slane %v8135_v40, %v18052_v48  ;;  %v13625_v40 = vpop.permute.xlu1 %7939 }
 0x349   : > { %v1233_v51 = vmax.f32 %v1224_v14, 0.0  ;;  %v13582_v27 = vpack.c.bf16 %v1240_v47, %v1240_v47  ;;  %v13584_v18 = vpop.permute.xlu0 %7609  ;;  %v8161_v19 = vrot.slane %v8136_v44, %v18036_v31  ;;  %v8137_v38 = vmul.f32 %v13336_v26, %v13453_v33  ;;  %18084 = vst [vmem:[#allocation39_spill] sm:$0xff] %v13625_v40 }
 0x34a   : > { %18079 = vst [vmem:[#allocation34_spill] sm:$0xff] %v13584_v18  ;;  %v8392_v28 = vmul.f32 %v13286_v60, %v13594_v62 }
 0x34b   : > { %v1242_v54 = vmul.f32 %v1233_v51, %v18039_v22  ;;  %v8169_v58 = vrot.slane %v8137_v38, %v18036_v31  ;;  %v8165_v22 = vrot.slane %v8136_v44, %v18052_v48  ;;  %v8173_v12 = vrot.slane %v8137_v38, %v18052_v48 }
 0x34c   : > { %1267 = vrot.lane.b32.xlu1 %v13554_v8, %s12499_s15  ;;  %1271 = vrot.lane.b32.xlu0 %v13558_v42, %s12499_s15  ;;  %v8403_v26 = vrot.slane %v8392_v28, %v12646_v3  ;;  %v8407_v60 = vrot.slane %v8392_v28, %v12658_v7  ;;  %v13632_v47 = vpop.permute.xlu1 %7943 }
 0x34d   : > { %v13597_v34 = vpop.permute.xlu0 %7676  ;;  %v13603_v41 = vpack.c.bf16 %v1242_v54, %v1242_v54  ;;  %18086 = vst [vmem:[#allocation41_spill] sm:$0xff] %v13632_v47 }
 0x34e   : > { %18080 = vst [vmem:[#allocation35_spill] sm:$0xff] %v13597_v34 }
 0x350   : > { %1269 = vrot.lane.b32.xlu1 %v13571_v2, %s12499_s15  ;;  %1275 = vrot.lane.b32.xlu0 %v13573_v43, %s12499_s15  ;;  %v13639_v44 = vpop.permute.xlu1 %7947 }
 0x351   : > { %v13610_v33 = vpop.permute.xlu0 %7680  ;;  %18088 = vst [vmem:[#allocation43_spill] sm:$0xff] %v13639_v44  ;;  %v17885_v44 = vmov 0.0  }
 0x352   : > { %18081 = vst [vmem:[#allocation36_spill] sm:$0xff] %v13610_v33 }
 0x354   : > { %1273 = vrot.lane.b32.xlu1 %v13582_v27, %s12499_s15  ;;  %8178 = vrot.lane.b32.xlu0 %v8153_v6, %s12498_s8 }
 0x355   : > { %v13617_v13 = vpop.permute.xlu0 %7684 }
 0x356   : > { %18082 = vst [vmem:[#allocation37_spill] sm:$0xff] %v13617_v13 }
 0x358   : > { %8180 = vrot.lane.b32.xlu1 %v8157_v5, %s12498_s8  ;;  %8182 = vrot.lane.b32.xlu0 %v8161_v19, %s12498_s8  ;;  %v13646_v5 = vpop.permute.xlu1 %7951 }
 0x359   : > { %v13622_v17 = vpop.permute.xlu0 %7688  ;;  %18090 = vst [vmem:[#allocation45_spill] sm:$0xff] %v13646_v5 }
 0x35a   : > { %18083 = vst [vmem:[#allocation38_spill] sm:$0xff] %v13622_v17 }
 0x35c   : > { %1277 = vrot.lane.b32.xlu1 %v13603_v41, %s12499_s15  ;;  %8186 = vrot.lane.b32.xlu0 %v8169_v58, %s12498_s8  ;;  %v13653_v38 = vpop.permute.xlu1 %8018  ;;  %s12512_s15 = smov 26  }
 0x35d   : > { %v13628_v14 = vpop.permute.xlu0 %7937  ;;  %18092 = vst [vmem:[#allocation47_spill] sm:$0xff] %v13653_v38 }
 0x35e   : > { %18085 = vst [vmem:[#allocation40_spill] sm:$0xff] %v13628_v14 }
 0x360   : > { %8184 = vrot.lane.b32.xlu1 %v8165_v22, %s12498_s8  ;;  %8432 = vrot.lane.b32.xlu0 %v8403_v26, %s12498_s8  ;;  %v13660_v58 = vpop.permute.xlu1 %8022 }
 0x361   : > { %v13636_v6 = vpop.permute.xlu0 %7941  ;;  %18094 = vst [vmem:[#allocation49_spill] sm:$0xff] %v13660_v58 }
 0x362   : > { %18087 = vst [vmem:[#allocation42_spill] sm:$0xff] %v13636_v6 }
 0x364   : > { %8188 = vrot.lane.b32.xlu1 %v8173_v12, %s12498_s8  ;;  %1664 = vrot.lane.b32.xlu0 %v13546_v16, %s12501_s17  ;;  %v13667_v22 = vpop.permute.xlu1 %8026 }
 0x365   : > { %v13642_v51 = vpop.permute.xlu0 %7945  ;;  %18096 = vst [vmem:[#allocation51_spill] sm:$0xff] %v13667_v22 }
 0x366   : > { %18089 = vst [vmem:[#allocation44_spill] sm:$0xff] %v13642_v51 }
 0x368   : > { %8434 = vrot.lane.b32.xlu1 %v8407_v60, %s12498_s8  ;;  %1668 = vrot.lane.b32.xlu0 %v13554_v8, %s12501_s17  ;;  %v13674_v12 = vpop.permute.xlu1 %8030 }
 0x369   : > { %v13650_v19 = vpop.permute.xlu0 %7949  ;;  %18098 = vst [vmem:[#allocation53_spill] sm:$0xff] %v13674_v12 }
 0x36a   : > { %18091 = vst [vmem:[#allocation46_spill] sm:$0xff] %v13650_v19 }
 0x36c   : > { %1666 = vrot.lane.b32.xlu1 %v13541_v57, %s12501_s17  ;;  %1672 = vrot.lane.b32.xlu0 %v13558_v42, %s12501_s17  ;;  %v13681_v11 = vpop.permute.xlu1 %8097 }
 0x36d   : > { %v13656_v54 = vpop.permute.xlu0 %8016  ;;  %18100 = vst [vmem:[#allocation55_spill] sm:$0xff] %v13681_v11 }
 0x36e   : > { %18093 = vst [vmem:[#allocation48_spill] sm:$0xff] %v13656_v54  ;;  %v11415_v54 = vld [vmem:[%s17828_s3 + $0x2] sm:$0x3] }
 0x370   : > { %1670 = vrot.lane.b32.xlu1 %v13571_v2, %s12501_s17  ;;  %1676 = vrot.lane.b32.xlu0 %v13573_v43, %s12501_s17 }
 0x371   : > { %v13664_v28 = vpop.permute.xlu0 %8020 }
 0x372   : > { %18095 = vst [vmem:[#allocation50_spill] sm:$0xff] %v13664_v28 }
 0x374   : > { %1674 = vrot.lane.b32.xlu1 %v13582_v27, %s12501_s17  ;;  %1884 = vrot.lane.b32.xlu0 %v13546_v16, %s12502_s18 }
 0x375   : > { %v13670_v26 = vpop.permute.xlu0 %8024 }
 0x376   : > { %18097 = vst [vmem:[#allocation52_spill] sm:$0xff] %v13670_v26  ;;  %v13688_v26 = vpop.permute.xlu1 %8101 }
 0x377   : > { %18102 = vst [vmem:[#allocation57_spill] sm:$0xff] %v13688_v26 }
 0x378   : > { %1678 = vrot.lane.b32.xlu1 %v13603_v41, %s12501_s17  ;;  %1888 = vrot.lane.b32.xlu0 %v13554_v8, %s12502_s18  ;;  %s12524_s17 = smov 36  }
 0x379   : > { %v13678_v60 = vpop.permute.xlu0 %8028 }
 0x37a   : > { %18099 = vst [vmem:[#allocation54_spill] sm:$0xff] %v13678_v60  ;;  %v13695_v11 = vpop.permute.xlu1 %8105 }
 0x37b   : > { %18104 = vst [vmem:[#allocation59_spill] sm:$0xff] %v13695_v11 }
 0x37c   : > { %1886 = vrot.lane.b32.xlu1 %v13541_v57, %s12502_s18  ;;  %1892 = vrot.lane.b32.xlu0 %v13558_v42, %s12502_s18 }
 0x37d   : > { %v13684_v22 = vpop.permute.xlu0 %8095 }
 0x37e   : > { %18101 = vst [vmem:[#allocation56_spill] sm:$0xff] %v13684_v22  ;;  %v13702_v26 = vpop.permute.xlu1 %8109 }
 0x37f   : > { %18106 = vst [vmem:[#allocation61_spill] sm:$0xff] %v13702_v26 }
 0x380   : > { %1890 = vrot.lane.b32.xlu1 %v13571_v2, %s12502_s18  ;;  %1896 = vrot.lane.b32.xlu0 %v13573_v43, %s12502_s18 }
 0x381   : > { %v13692_v12 = vpop.permute.xlu0 %8099 }
 0x382   : > { %18103 = vst [vmem:[#allocation58_spill] sm:$0xff] %v13692_v12  ;;  %v13709_v12 = vpop.permute.xlu1 %8176 }
 0x383   : > { %18108 = vst [vmem:[#allocation63_spill] sm:$0xff] %v13709_v12 }
 0x384   : > { %1894 = vrot.lane.b32.xlu1 %v13582_v27, %s12502_s18  ;;  %2104 = vrot.lane.b32.xlu0 %v13546_v16, %s12503_s19 }
 0x385   : > { %v13698_v22 = vpop.permute.xlu0 %8103 }
 0x386   : > { %18105 = vst [vmem:[#allocation60_spill] sm:$0xff] %v13698_v22 }
 0x388   : > { %1898 = vrot.lane.b32.xlu1 %v13603_v41, %s12502_s18  ;;  %2108 = vrot.lane.b32.xlu0 %v13554_v8, %s12503_s19  ;;  %s12513_s18 = smov 18  }
 0x389   : > { %v13705_v60 = vpop.permute.xlu0 %8107 }
 0x38a   : > { %18107 = vst [vmem:[#allocation62_spill] sm:$0xff] %v13705_v60 }
 0x38c   : > { %2106 = vrot.lane.b32.xlu1 %v13541_v57, %s12503_s19  ;;  %2112 = vrot.lane.b32.xlu0 %v13558_v42, %s12503_s19 }
 0x38d   : > { %v13713_v11 = vpop.permute.xlu0 %8174 }
 0x38e   : > { %18109 = vst [vmem:[#allocation64_spill] sm:$0xff] %v13713_v11 }
 0x390   : > { %2110 = vrot.lane.b32.xlu1 %v13571_v2, %s12503_s19  ;;  %2116 = vrot.lane.b32.xlu0 %v13573_v43, %s12503_s19 }
 0x394   : > { %2114 = vrot.lane.b32.xlu1 %v13582_v27, %s12503_s19  ;;  %2324 = vrot.lane.b32.xlu0 %v13546_v16, %s12504_s20 }
 0x398   : > { %2118 = vrot.lane.b32.xlu1 %v13603_v41, %s12503_s19  ;;  %2328 = vrot.lane.b32.xlu0 %v13554_v8, %s12504_s20  ;;  %s11661_s19 = sld [smem:[#allocation6 + $0x181]] }
 0x39c   : > { %2326 = vrot.lane.b32.xlu1 %v13541_v57, %s12504_s20  ;;  %2332 = vrot.lane.b32.xlu0 %v13558_v42, %s12504_s20 }
 0x3a0   : > { %2330 = vrot.lane.b32.xlu1 %v13571_v2, %s12504_s20  ;;  %2336 = vrot.lane.b32.xlu0 %v13573_v43, %s12504_s20 }
 0x3a4   : > { %2334 = vrot.lane.b32.xlu1 %v13582_v27, %s12504_s20  ;;  %2544 = vrot.lane.b32.xlu0 %v13546_v16, %s12505_s21 }
 0x3a8   : > { %2338 = vrot.lane.b32.xlu1 %v13603_v41, %s12504_s20  ;;  %2548 = vrot.lane.b32.xlu0 %v13554_v8, %s12505_s21  ;;  %s12525_s20 = smov 35  }
 0x3ac   : > { %2546 = vrot.lane.b32.xlu1 %v13541_v57, %s12505_s21  ;;  %2552 = vrot.lane.b32.xlu0 %v13558_v42, %s12505_s21 }
 0x3b0   : > { %2550 = vrot.lane.b32.xlu1 %v13571_v2, %s12505_s21  ;;  %2556 = vrot.lane.b32.xlu0 %v13573_v43, %s12505_s21 }
 0x3b4   : > { %2554 = vrot.lane.b32.xlu1 %v13582_v27, %s12505_s21  ;;  %2764 = vrot.lane.b32.xlu0 %v13546_v16, %s12506_s22 }
 0x3b8   : > { %2558 = vrot.lane.b32.xlu1 %v13603_v41, %s12505_s21  ;;  %2768 = vrot.lane.b32.xlu0 %v13554_v8, %s12506_s22  ;;  %s12519_s21 = smov 55  }
 0x3ba   : > { %v1266_v26 = vpop.permute.xlu1 %1265  ;;  %v1264_v60 = vpop.permute.xlu0 %1263 }
 0x3bb   : > { %v1280_v12 = vsel %vm1279_vm4, %v1264_v60, %v1266_v26 }
 0x3bc   : > { %2766 = vrot.lane.b32.xlu1 %v13541_v57, %s12506_s22  ;;  %2772 = vrot.lane.b32.xlu0 %v13558_v42, %s12506_s22  ;;  %v1292_v28 = vsel %vm1119_vm2, %v1280_v12, 0  ;;  %v18110_v12 = vmov 0  }
 0x3be   : > { %v1268_v22 = vpop.permute.xlu1 %1267  ;;  %v1272_v58 = vpop.permute.xlu0 %1271 }
 0x3bf   : > { %v1281_v11 = vsel %vm1279_vm4, %v1266_v26, %v1268_v22 }
 0x3c0   : > { %2770 = vrot.lane.b32.xlu1 %v13571_v2, %s12506_s22  ;;  %11416 = vmatprep.subr.msk.bf16.mxu0 %vm1119_vm2, %v1281_v11 }
 0x3c1   : > { %2776 = vrot.lane.b32.xlu0 %v13573_v43, %s12506_s22  ;;  %1313 = vmatpush1.bf16.msra.mxu0 %v1292_v28 }
 0x3c2   : > { %v1270_v60 = vpop.permute.xlu1 %1269  ;;  %v1276_v38 = vpop.permute.xlu0 %1275 }
 0x3c3   : > { %v1283_v26 = vsel %vm1279_vm4, %v1270_v60, %v1272_v58  ;;  %v1282_v5 = vsel %vm1279_vm4, %v1268_v22, %v1270_v60 }
 0x3c4   : > { %2774 = vrot.lane.b32.xlu1 %v13582_v27, %s12506_s22  ;;  %11417 = vmatmul.mubr.msk.bf16.vlgmr.msra.gmra.mrb[0].mxu0 %vm1287_vm5, %v11415_v54  ;;  %v1298_v11 = vsel %vm1119_vm2, %v1282_v5, 0 }
 0x3c5   : > { %2984 = vrot.lane.b32.xlu0 %v13546_v16, %s12507_s28  ;;  %11418 = vmatprep.subr.msk.bf16.mxu1 %vm1119_vm2, %v1283_v26 }
 0x3c6   : > { %1354 = vmatpush1.bf16.msra.mxu1 %v1298_v11  ;;  %v1274_v28 = vpop.permute.xlu1 %1273  ;;  %1426 = vmatprep.mubr.bf16.mxu0 %v18110_v12  ;;  %v13744_v22 = vpop.permute.xlu0 %8178 }
 0x3c7   : > { %v1284_v19 = vsel %vm1279_vm4, %v1272_v58, %v1274_v28  ;;  %18111 = vst [vmem:[#allocation65_spill] sm:$0xff] %v13744_v22  ;;  %v1285_v60 = vsel %vm1279_vm4, %v1274_v28, %v1276_v38  ;;  %11762 = vmatprep.subr.bf16.mxu1 %v17885_v44 }
 0x3c8   : > { %2778 = vrot.lane.b32.xlu1 %v13603_v41, %s12506_s22  ;;  %11420 = vmatprep.subr.msk.bf16.mxu0 %vm1119_vm2, %v1285_v60  ;;  %v1304_v5 = vsel %vm1119_vm2, %v1284_v19, 0  ;;  %v1479_v19 = vsel %vm1119_vm2, %v13546_v16, 0  ;;  %s11662_s22 = sld [smem:[#allocation6 + $0x182]] }
 0x3c9   : > { %2988 = vrot.lane.b32.xlu0 %v13554_v8, %s12507_s28  ;;  %1395 = vmatpush1.bf16.msra.mxu0 %v1304_v5 }
 0x3ca   : > { %v13754_v26 = vpop.permute.xlu1 %8180  ;;  %11423 = vmatprep.subr.msk.bf16.mxu0 %vm1119_vm2, %v13541_v57  ;;  %11419 = vmatmul.mubr.msk.bf16.vlgmr.msra.gmra.mrb[0].mxu1 %vm1287_vm5, %v11415_v54  ;;  %v13759_v58 = vpop.permute.xlu0 %8182 }
 0x3cb   : > { %18112 = vst [vmem:[#allocation66_spill] sm:$0xff] %v13754_v26  ;;  %18113 = vst [vmem:[#allocation67_spill] sm:$0xff] %v13759_v58  ;;  %11764 = vmatprep.mubr.msk.bf16.mxu1 %vm12509_vm6, %v17885_v44 }
 0x3cc   : > { %2986 = vrot.lane.b32.xlu1 %v13541_v57, %s12507_s28  ;;  %11421 = vmatmul.mubr.msk.bf16.vlgmr.msra.gmra.mrb[4].mxu0 %vm1287_vm5, %v11415_v54 }
 0x3cd   : > { %2992 = vrot.lane.b32.xlu0 %v13558_v42, %s12507_s28  ;;  %1500 = vmatpush1.bf16.msra.mxu0 %v1479_v19 }
 0x3ce   : > { %v1278_v11 = vpop.permute.xlu1 %1277  ;;  %11427 = vmatprep.subr.msk.bf16.mxu0 %vm1119_vm2, %v13582_v27  ;;  %1531 = vmatprep.mubr.bf16.mxu0 %v18110_v12  ;;  %v13774_v60 = vpop.permute.xlu0 %8186 }
 0x3cf   : > { %v1286_v28 = vsel %vm1279_vm4, %v1276_v38, %v1278_v11  ;;  %18114 = vst [vmem:[#allocation68_spill] sm:$0xff] %v13774_v60  ;;  %v1251_v38 = vld [vmem:[%s17828_s3] sm:$0x3]  ;;  %vm4100_vm4 = vcmask 138240  }
 0x3d0   : > { %v1310_v5 = vsel %vm1119_vm2, %v1286_v28, 0  ;;  %2990 = vrot.lane.b32.xlu1 %v13571_v2, %s12507_s28  ;;  %v1491_v28 = vsel %vm1119_vm2, %v13558_v42, 0 }
 0x3d1   : > { %2996 = vrot.lane.b32.xlu0 %v13573_v43, %s12507_s28  ;;  %11763 = vmatpush3.bf16.msra.mxu1 %v1310_v5  ;;  %v1485_v5 = vsel %vm1119_vm2, %v13554_v8, 0 }
 0x3d2   : > { %v13781_v19 = vpop.permute.xlu1 %8184  ;;  %11425 = vmatprep.subr.msk.bf16.mxu1 %vm1119_vm2, %v13571_v2  ;;  %v13788_v11 = vpop.permute.xlu0 %8432 }
 0x3d3   : > { %18115 = vst [vmem:[#allocation69_spill] sm:$0xff] %v13781_v19  ;;  %18116 = vst [vmem:[#allocation70_spill] sm:$0xff] %v13788_v11 }
 0x3d4   : > { %2994 = vrot.lane.b32.xlu1 %v13582_v27, %s12507_s28  ;;  %11765 = vmatmul.mubr.msk.bf16.vlgmr.msra.gmra.mrb[4].mxu1 %vm1287_vm5, %v11415_v54  ;;  %v18118_v54 = vmov 0.0  }
 0x3d5   : > { %3204 = vrot.lane.b32.xlu0 %v13546_v16, %s12510_s9  ;;  %11424 = vmatmul.mubr.msk.bf16.vlgmr.msra.gmra.mrb[0].mxu0 %vm1287_vm5, %v1251_v38 }
 0x3d6   : > { %1582 = vmatpush1.bf16.msra.mxu0 %v1491_v28  ;;  %1541 = vmatpush1.bf16.msra.mxu1 %v1485_v5  ;;  %v13800_v44 = vpop.permute.xlu1 %8188  ;;  %v1665_v11 = vpop.permute.xlu0 %1664  ;;  %v1497_v28 = vsel %vm1119_vm2, %v13573_v43, 0 }
 0x3d7   : > { %18117 = vst [vmem:[#allocation71_spill] sm:$0xff] %v13800_v44  ;;  %1572 = vmatprep.mubr.bf16.mxu1 %v18110_v12  ;;  %1613 = vmatprep.mubr.bf16.mxu0 %v18110_v12 }
 0x3d8   : > { %2998 = vrot.lane.b32.xlu1 %v13603_v41, %s12507_s28  ;;  %11768 = vmatprep.subr.bf16.mxu1 %v18118_v54  ;;  %s11663_s28 = sld [smem:[#allocation6 + $0x183]] }
 0x3d9   : > { %3208 = vrot.lane.b32.xlu0 %v13554_v8, %s12510_s9 }
 0x3da   : > { %v13809_v60 = vpop.permute.xlu1 %8434  ;;  %v1669_v19 = vpop.permute.xlu0 %1668 }
 0x3db   : > { %18119 = vst [vmem:[#allocation72_spill] sm:$0xff] %v13809_v60 }
 0x3dc   : > { %3206 = vrot.lane.b32.xlu1 %v13541_v57, %s12510_s9  ;;  %11426 = vmatmul.mubr.msk.bf16.vlgmr.msra.gmra.mrb[0].mxu1 %vm1287_vm5, %v1251_v38 }
 0x3dd   : > { %3212 = vrot.lane.b32.xlu0 %v13558_v42, %s12510_s9  ;;  %11428 = vmatmul.mubr.msk.bf16.vlgmr.msra.gmra.mrb[4].mxu0 %vm1287_vm5, %v1251_v38 }
 0x3de   : > { %11769 = vmatpush3.bf16.msra.mxu1 %v1497_v28  ;;  %v1667_v5 = vpop.permute.xlu1 %1666  ;;  %11770 = vmatprep.mubr.msk.bf16.mxu1 %vm12509_vm6, %v18118_v54  ;;  %v1673_v44 = vpop.permute.xlu0 %1672 }
 0x3df   : > { %v1681_v60 = vsel %vm1680_vm7, %v1665_v11, %v1667_v5  ;;  %v1682_v58 = vsel %vm1680_vm7, %v1667_v5, %v1669_v19  ;;  %1744 = vmatprep.mubr.bf16.mxu0 %v18110_v12  ;;  %v11430_v11 = vld [vmem:[%s17828_s3 + $0x4] sm:$0x3] }
 0x3e0   : > { %3210 = vrot.lane.b32.xlu1 %v13571_v2, %s12510_s9  ;;  %11431 = vmatprep.subr.msk.bf16.mxu0 %vm1119_vm2, %v1682_v58  ;;  %v1692_v26 = vsel %vm1119_vm2, %v1681_v60, 0 }
 0x3e1   : > { %3216 = vrot.lane.b32.xlu0 %v13573_v43, %s12510_s9  ;;  %1713 = vmatpush1.bf16.msra.mxu0 %v1692_v26 }
 0x3e2   : > { %v1671_v28 = vpop.permute.xlu1 %1670  ;;  %v1677_v22 = vpop.permute.xlu0 %1676 }
 0x3e3   : > { %v1683_v5 = vsel %vm1680_vm7, %v1669_v19, %v1671_v28  ;;  %v1684_v51 = vsel %vm1680_vm7, %v1671_v28, %v1673_v44 }
 0x3e4   : > { %3214 = vrot.lane.b32.xlu1 %v13582_v27, %s12510_s9  ;;  %11771 = vmatmul.mubr.msk.bf16.vlgmr.msra.gmra.mrb[4].mxu1 %vm1287_vm5, %v1251_v38  ;;  %v1698_v58 = vsel %vm1119_vm2, %v1683_v5, 0 }
 0x3e5   : > { %3424 = vrot.lane.b32.xlu0 %v13546_v16, %s12511_s12  ;;  %11432 = vmatmul.mubr.msk.bf16.vlgmr.msra.gmra.mrb[0].mxu0 %vm1287_vm5, %v11430_v11 }
 0x3e6   : > { %11433 = vmatprep.subr.msk.bf16.mxu1 %vm1119_vm2, %v1684_v51  ;;  %v1675_v26 = vpop.permute.xlu1 %1674  ;;  %1785 = vmatprep.mubr.bf16.mxu1 %v18110_v12  ;;  %v1885_v19 = vpop.permute.xlu0 %1884 }
 0x3e7   : > { %1754 = vmatpush1.bf16.msra.mxu1 %v1698_v58  ;;  %v1685_v60 = vsel %vm1680_vm7, %v1673_v44, %v1675_v26  ;;  %v1686_v28 = vsel %vm1680_vm7, %v1675_v26, %v1677_v22  ;;  %1826 = vmatprep.mubr.bf16.mxu0 %v18110_v12 }
 0x3e8   : > { %3218 = vrot.lane.b32.xlu1 %v13603_v41, %s12510_s9  ;;  %11435 = vmatprep.subr.msk.bf16.mxu0 %vm1119_vm2, %v1686_v28  ;;  %v1704_v38 = vsel %vm1119_vm2, %v1685_v60, 0  ;;  %s11670_s9 = sld [smem:[#allocation6 + $0x200]] }
 0x3e9   : > { %3428 = vrot.lane.b32.xlu0 %v13554_v8, %s12511_s12  ;;  %1795 = vmatpush1.bf16.msra.mxu0 %v1704_v38 }
 0x3ea   : > { %v1679_v51 = vpop.permute.xlu1 %1678  ;;  %11774 = vmatprep.subr.bf16.mxu1 %v18118_v54  ;;  %v1889_v5 = vpop.permute.xlu0 %1888 }
 0x3eb   : > { %v1687_v44 = vsel %vm1680_vm7, %v1677_v22, %v1679_v51  ;;  %vm4320_vm7 = vcmask 130048  }
 0x3ec   : > { %v1710_v58 = vsel %vm1119_vm2, %v1687_v44, 0  ;;  %3426 = vrot.lane.b32.xlu1 %v13541_v57, %s12511_s12  ;;  %11434 = vmatmul.mubr.msk.bf16.vlgmr.msra.gmra.mrb[0].mxu1 %vm1287_vm5, %v11430_v11 }
 0x3ed   : > { %3432 = vrot.lane.b32.xlu0 %v13558_v42, %s12511_s12  ;;  %11436 = vmatmul.mubr.msk.bf16.vlgmr.msra.gmra.mrb[4].mxu0 %vm1287_vm5, %v11430_v11 }
 0x3ee   : > { %11775 = vmatpush3.bf16.msra.mxu1 %v1710_v58  ;;  %v1887_v26 = vpop.permute.xlu1 %1886  ;;  %11776 = vmatprep.mubr.msk.bf16.mxu1 %vm12509_vm6, %v18118_v54  ;;  %v1893_v60 = vpop.permute.xlu0 %1892 }
 0x3ef   : > { %v1901_v22 = vsel %vm1900_vm8, %v1885_v19, %v1887_v26  ;;  %v1902_v28 = vsel %vm1900_vm8, %v1887_v26, %v1889_v5  ;;  %1964 = vmatprep.mubr.bf16.mxu0 %v18110_v12  ;;  %v11438_v19 = vld [vmem:[%s17828_s3 + $0x6] sm:$0x3] }
 0x3f0   : > { %3430 = vrot.lane.b32.xlu1 %v13571_v2, %s12511_s12  ;;  %11439 = vmatprep.subr.msk.bf16.mxu0 %vm1119_vm2, %v1902_v28  ;;  %v1912_v38 = vsel %vm1119_vm2, %v1901_v22, 0 }
 0x3f1   : > { %3436 = vrot.lane.b32.xlu0 %v13573_v43, %s12511_s12  ;;  %1933 = vmatpush1.bf16.msra.mxu0 %v1912_v38 }
 0x3f2   : > { %v1891_v51 = vpop.permute.xlu1 %1890  ;;  %v1897_v58 = vpop.permute.xlu0 %1896 }
 0x3f3   : > { %v1903_v44 = vsel %vm1900_vm8, %v1889_v5, %v1891_v51  ;;  %v1904_v26 = vsel %vm1900_vm8, %v1891_v51, %v1893_v60 }
 0x3f4   : > { %3434 = vrot.lane.b32.xlu1 %v13582_v27, %s12511_s12  ;;  %11777 = vmatmul.mubr.msk.bf16.vlgmr.msra.gmra.mrb[4].mxu1 %vm1287_vm5, %v11430_v11  ;;  %v1918_v22 = vsel %vm1119_vm2, %v1903_v44, 0 }
 0x3f5   : > { %3644 = vrot.lane.b32.xlu0 %v13546_v16, %s12512_s15  ;;  %11440 = vmatmul.mubr.msk.bf16.vlgmr.msra.gmra.mrb[0].mxu0 %vm1287_vm5, %v11438_v19 }
 0x3f6   : > { %11441 = vmatprep.subr.msk.bf16.mxu1 %vm1119_vm2, %v1904_v26  ;;  %v1895_v28 = vpop.permute.xlu1 %1894  ;;  %2005 = vmatprep.mubr.bf16.mxu1 %v18110_v12  ;;  %v2105_v38 = vpop.permute.xlu0 %2104 }
 0x3f7   : > { %1974 = vmatpush1.bf16.msra.mxu1 %v1918_v22  ;;  %v1905_v5 = vsel %vm1900_vm8, %v1893_v60, %v1895_v28  ;;  %v1906_v51 = vsel %vm1900_vm8, %v1895_v28, %v1897_v58  ;;  %2046 = vmatprep.mubr.bf16.mxu0 %v18110_v12 }
 0x3f8   : > { %3438 = vrot.lane.b32.xlu1 %v13603_v41, %s12511_s12  ;;  %11443 = vmatprep.subr.msk.bf16.mxu0 %vm1119_vm2, %v1906_v51  ;;  %v1924_v11 = vsel %vm1119_vm2, %v1905_v5, 0  ;;  %s11673_s12 = sld [smem:[#allocation6 + $0x203]] }
 0x3f9   : > { %3648 = vrot.lane.b32.xlu0 %v13554_v8, %s12512_s15  ;;  %2015 = vmatpush1.bf16.msra.mxu0 %v1924_v11 }
 0x3fa   : > { %v1899_v44 = vpop.permute.xlu1 %1898  ;;  %11780 = vmatprep.subr.bf16.mxu1 %v18118_v54  ;;  %v2109_v26 = vpop.permute.xlu0 %2108 }
 0x3fb   : > { %v1907_v60 = vsel %vm1900_vm8, %v1897_v58, %v1899_v44  ;;  %vm4540_vm8 = vcmask 64512  }
 0x3fc   : > { %v1930_v22 = vsel %vm1119_vm2, %v1907_v60, 0  ;;  %3646 = vrot.lane.b32.xlu1 %v13541_v57, %s12512_s15  ;;  %11442 = vmatmul.mubr.msk.bf16.vlgmr.msra.gmra.mrb[0].mxu1 %vm1287_vm5, %v11438_v19 }
 0x3fd   : > { %3652 = vrot.lane.b32.xlu0 %v13558_v42, %s12512_s15  ;;  %11444 = vmatmul.mubr.msk.bf16.vlgmr.msra.gmra.mrb[4].mxu0 %vm1287_vm5, %v11438_v19 }
 0x3fe   : > { %11781 = vmatpush3.bf16.msra.mxu1 %v1930_v22  ;;  %v2107_v28 = vpop.permute.xlu1 %2106  ;;  %11782 = vmatprep.mubr.msk.bf16.mxu1 %vm12509_vm6, %v18118_v54  ;;  %v2113_v5 = vpop.permute.xlu0 %2112 }
 0x3ff   : > { %v2121_v58 = vsel %vm2120_vm9, %v2105_v38, %v2107_v28  ;;  %v2122_v51 = vsel %vm2120_vm9, %v2107_v28, %v2109_v26  ;;  %2184 = vmatprep.mubr.bf16.mxu0 %v18110_v12  ;;  %v11446_v38 = vld [vmem:[%s17828_s3 + $0x8] sm:$0x3] }
 0x400   : > { %3650 = vrot.lane.b32.xlu1 %v13571_v2, %s12512_s15  ;;  %11447 = vmatprep.subr.msk.bf16.mxu0 %vm1119_vm2, %v2122_v51  ;;  %v2132_v11 = vsel %vm1119_vm2, %v2121_v58, 0 }
 0x401   : > { %3656 = vrot.lane.b32.xlu0 %v13573_v43, %s12512_s15  ;;  %2153 = vmatpush1.bf16.msra.mxu0 %v2132_v11 }
 0x402   : > { %v2111_v44 = vpop.permute.xlu1 %2110  ;;  %v2117_v22 = vpop.permute.xlu0 %2116 }
 0x403   : > { %v2123_v60 = vsel %vm2120_vm9, %v2109_v26, %v2111_v44  ;;  %v2124_v28 = vsel %vm2120_vm9, %v2111_v44, %v2113_v5 }
 0x404   : > { %3654 = vrot.lane.b32.xlu1 %v13582_v27, %s12512_s15  ;;  %11783 = vmatmul.mubr.msk.bf16.vlgmr.msra.gmra.mrb[4].mxu1 %vm1287_vm5, %v11438_v19  ;;  %v2138_v58 = vsel %vm1119_vm2, %v2123_v60, 0 }
 0x405   : > { %3864 = vrot.lane.b32.xlu0 %v13546_v16, %s12513_s18  ;;  %11448 = vmatmul.mubr.msk.bf16.vlgmr.msra.gmra.mrb[0].mxu0 %vm1287_vm5, %v11446_v38 }
 0x406   : > { %11449 = vmatprep.subr.msk.bf16.mxu1 %vm1119_vm2, %v2124_v28  ;;  %v2115_v51 = vpop.permute.xlu1 %2114  ;;  %2225 = vmatprep.mubr.bf16.mxu1 %v18110_v12  ;;  %v2325_v11 = vpop.permute.xlu0 %2324 }
 0x407   : > { %2194 = vmatpush1.bf16.msra.mxu1 %v2138_v58  ;;  %v2125_v26 = vsel %vm2120_vm9, %v2113_v5, %v2115_v51  ;;  %v2126_v44 = vsel %vm2120_vm9, %v2115_v51, %v2117_v22  ;;  %2266 = vmatprep.mubr.bf16.mxu0 %v18110_v12 }
 0x408   : > { %3658 = vrot.lane.b32.xlu1 %v13603_v41, %s12512_s15  ;;  %11451 = vmatprep.subr.msk.bf16.mxu0 %vm1119_vm2, %v2126_v44  ;;  %v2144_v19 = vsel %vm1119_vm2, %v2125_v26, 0  ;;  %s11682_s15 = sld [smem:[#allocation6 + $0x282]] }
 0x409   : > { %3868 = vrot.lane.b32.xlu0 %v13554_v8, %s12513_s18  ;;  %2235 = vmatpush1.bf16.msra.mxu0 %v2144_v19 }
 0x40a   : > { %v2119_v60 = vpop.permute.xlu1 %2118  ;;  %11786 = vmatprep.subr.bf16.mxu1 %v18118_v54  ;;  %v2329_v28 = vpop.permute.xlu0 %2328 }
 0x40b   : > { %v2127_v5 = vsel %vm2120_vm9, %v2117_v22, %v2119_v60  ;;  %vm4760_vm9 = vcmask 56320  }
 0x40c   : > { %v2150_v58 = vsel %vm1119_vm2, %v2127_v5, 0  ;;  %3866 = vrot.lane.b32.xlu1 %v13541_v57, %s12513_s18  ;;  %11450 = vmatmul.mubr.msk.bf16.vlgmr.msra.gmra.mrb[0].mxu1 %vm1287_vm5, %v11446_v38 }
 0x40d   : > { %3872 = vrot.lane.b32.xlu0 %v13558_v42, %s12513_s18  ;;  %11452 = vmatmul.mubr.msk.bf16.vlgmr.msra.gmra.mrb[4].mxu0 %vm1287_vm5, %v11446_v38 }
 0x40e   : > { %11787 = vmatpush3.bf16.msra.mxu1 %v2150_v58  ;;  %v2327_v51 = vpop.permute.xlu1 %2326  ;;  %11788 = vmatprep.mubr.msk.bf16.mxu1 %vm12509_vm6, %v18118_v54  ;;  %v2333_v26 = vpop.permute.xlu0 %2332 }
 0x40f   : > { %v2341_v22 = vsel %vm2340_vm10, %v2325_v11, %v2327_v51  ;;  %v2342_v44 = vsel %vm2340_vm10, %v2327_v51, %v2329_v28  ;;  %2404 = vmatprep.mubr.bf16.mxu0 %v18110_v12  ;;  %v11454_v11 = vld [vmem:[%s17828_s3 + $0xa] sm:$0x3] }
 0x410   : > { %3870 = vrot.lane.b32.xlu1 %v13571_v2, %s12513_s18  ;;  %11455 = vmatprep.subr.msk.bf16.mxu0 %vm1119_vm2, %v2342_v44  ;;  %v2352_v19 = vsel %vm1119_vm2, %v2341_v22, 0 }
 0x411   : > { %3876 = vrot.lane.b32.xlu0 %v13573_v43, %s12513_s18  ;;  %2373 = vmatpush1.bf16.msra.mxu0 %v2352_v19 }
 0x412   : > { %v2331_v60 = vpop.permute.xlu1 %2330  ;;  %v2337_v58 = vpop.permute.xlu0 %2336 }
 0x413   : > { %v2343_v5 = vsel %vm2340_vm10, %v2329_v28, %v2331_v60  ;;  %v2344_v51 = vsel %vm2340_vm10, %v2331_v60, %v2333_v26 }
 0x414   : > { %3874 = vrot.lane.b32.xlu1 %v13582_v27, %s12513_s18  ;;  %11789 = vmatmul.mubr.msk.bf16.vlgmr.msra.gmra.mrb[4].mxu1 %vm1287_vm5, %v11446_v38  ;;  %v2358_v22 = vsel %vm1119_vm2, %v2343_v5, 0 }
 0x415   : > { %4084 = vrot.lane.b32.xlu0 %v13546_v16, %s12498_s8  ;;  %11456 = vmatmul.mubr.msk.bf16.vlgmr.msra.gmra.mrb[0].mxu0 %vm1287_vm5, %v11454_v11 }
 0x416   : > { %11457 = vmatprep.subr.msk.bf16.mxu1 %vm1119_vm2, %v2344_v51  ;;  %v2335_v44 = vpop.permute.xlu1 %2334  ;;  %2445 = vmatprep.mubr.bf16.mxu1 %v18110_v12  ;;  %v2545_v19 = vpop.permute.xlu0 %2544 }
 0x417   : > { %2414 = vmatpush1.bf16.msra.mxu1 %v2358_v22  ;;  %v2345_v28 = vsel %vm2340_vm10, %v2333_v26, %v2335_v44  ;;  %v2346_v60 = vsel %vm2340_vm10, %v2335_v44, %v2337_v58  ;;  %2486 = vmatprep.mubr.bf16.mxu0 %v18110_v12 }
 0x418   : > { %3878 = vrot.lane.b32.xlu1 %v13603_v41, %s12513_s18  ;;  %11459 = vmatprep.subr.msk.bf16.mxu0 %vm1119_vm2, %v2346_v60  ;;  %v2364_v38 = vsel %vm1119_vm2, %v2345_v28, 0  ;;  %s11691_s18 = sld [smem:[#allocation6 + $0x301]] }
 0x419   : > { %4088 = vrot.lane.b32.xlu0 %v13554_v8, %s12498_s8  ;;  %2455 = vmatpush1.bf16.msra.mxu0 %v2364_v38 }
 0x41a   : > { %v2339_v5 = vpop.permute.xlu1 %2338  ;;  %11792 = vmatprep.subr.bf16.mxu1 %v18118_v54  ;;  %v2549_v51 = vpop.permute.xlu0 %2548 }
 0x41b   : > { %v2347_v26 = vsel %vm2340_vm10, %v2337_v58, %v2339_v5  ;;  %vm4980_vm10 = vcmask 48128  }
 0x41c   : > { %v2370_v22 = vsel %vm1119_vm2, %v2347_v26, 0  ;;  %4086 = vrot.lane.b32.xlu1 %v13541_v57, %s12498_s8  ;;  %11458 = vmatmul.mubr.msk.bf16.vlgmr.msra.gmra.mrb[0].mxu1 %vm1287_vm5, %v11454_v11 }
 0x41d   : > { %4092 = vrot.lane.b32.xlu0 %v13558_v42, %s12498_s8  ;;  %11460 = vmatmul.mubr.msk.bf16.vlgmr.msra.gmra.mrb[4].mxu0 %vm1287_vm5, %v11454_v11 }
 0x41e   : > { %11793 = vmatpush3.bf16.msra.mxu1 %v2370_v22  ;;  %v2547_v44 = vpop.permute.xlu1 %2546  ;;  %11794 = vmatprep.mubr.msk.bf16.mxu1 %vm12509_vm6, %v18118_v54  ;;  %v2553_v28 = vpop.permute.xlu0 %2552 }
 0x41f   : > { %v2561_v58 = vsel %vm2560_vm11, %v2545_v19, %v2547_v44  ;;  %v2562_v60 = vsel %vm2560_vm11, %v2547_v44, %v2549_v51  ;;  %2624 = vmatprep.mubr.bf16.mxu0 %v18110_v12  ;;  %v11462_v19 = vld [vmem:[%s17828_s3 + $0xc] sm:$0x3] }
 0x420   : > { %4090 = vrot.lane.b32.xlu1 %v13571_v2, %s12498_s8  ;;  %11463 = vmatprep.subr.msk.bf16.mxu0 %vm1119_vm2, %v2562_v60  ;;  %v2572_v38 = vsel %vm1119_vm2, %v2561_v58, 0 }
 0x421   : > { %4096 = vrot.lane.b32.xlu0 %v13573_v43, %s12498_s8  ;;  %2593 = vmatpush1.bf16.msra.mxu0 %v2572_v38 }
 0x422   : > { %v2551_v5 = vpop.permute.xlu1 %2550  ;;  %v2557_v22 = vpop.permute.xlu0 %2556 }
 0x423   : > { %v2563_v26 = vsel %vm2560_vm11, %v2549_v51, %v2551_v5  ;;  %v2564_v44 = vsel %vm2560_vm11, %v2551_v5, %v2553_v28 }
 0x424   : > { %4094 = vrot.lane.b32.xlu1 %v13582_v27, %s12498_s8  ;;  %11795 = vmatmul.mubr.msk.bf16.vlgmr.msra.gmra.mrb[4].mxu1 %vm1287_vm5, %v11454_v11  ;;  %v2578_v58 = vsel %vm1119_vm2, %v2563_v26, 0 }
 0x425   : > { %4304 = vrot.lane.b32.xlu0 %v13546_v16, %s12514_s23  ;;  %11464 = vmatmul.mubr.msk.bf16.vlgmr.msra.gmra.mrb[0].mxu0 %vm1287_vm5, %v11462_v19 }
 0x426   : > { %11465 = vmatprep.subr.msk.bf16.mxu1 %vm1119_vm2, %v2564_v44  ;;  %v2555_v60 = vpop.permute.xlu1 %2554  ;;  %2665 = vmatprep.mubr.bf16.mxu1 %v18110_v12  ;;  %v2765_v38 = vpop.permute.xlu0 %2764 }
 0x427   : > { %2634 = vmatpush1.bf16.msra.mxu1 %v2578_v58  ;;  %v2565_v51 = vsel %vm2560_vm11, %v2553_v28, %v2555_v60  ;;  %v2566_v5 = vsel %vm2560_vm11, %v2555_v60, %v2557_v22  ;;  %2706 = vmatprep.mubr.bf16.mxu0 %v18110_v12 }
 0x428   : > { %4098 = vrot.lane.b32.xlu1 %v13603_v41, %s12498_s8  ;;  %11467 = vmatprep.subr.msk.bf16.mxu0 %vm1119_vm2, %v2566_v5  ;;  %v2584_v11 = vsel %vm1119_vm2, %v2565_v51, 0 }
 0x429   : > { %4308 = vrot.lane.b32.xlu0 %v13554_v8, %s12514_s23  ;;  %2675 = vmatpush1.bf16.msra.mxu0 %v2584_v11 }
 0x42a   : > { %v2559_v26 = vpop.permute.xlu1 %2558  ;;  %11798 = vmatprep.subr.bf16.mxu1 %v18118_v54  ;;  %v2769_v44 = vpop.permute.xlu0 %2768 }
 0x42b   : > { %v2567_v28 = vsel %vm2560_vm11, %v2557_v22, %v2559_v26  ;;  %vm5202_vm11 = vcmask 457728  }
 0x42c   : > { %v2590_v58 = vsel %vm1119_vm2, %v2567_v28, 0  ;;  %4306 = vrot.lane.b32.xlu1 %v13541_v57, %s12514_s23  ;;  %11466 = vmatmul.mubr.msk.bf16.vlgmr.msra.gmra.mrb[0].mxu1 %vm1287_vm5, %v11462_v19 }
 0x42d   : > { %4312 = vrot.lane.b32.xlu0 %v13558_v42, %s12514_s23  ;;  %11468 = vmatmul.mubr.msk.bf16.vlgmr.msra.gmra.mrb[4].mxu0 %vm1287_vm5, %v11462_v19 }
 0x42e   : > { %11799 = vmatpush3.bf16.msra.mxu1 %v2590_v58  ;;  %v2767_v60 = vpop.permute.xlu1 %2766  ;;  %11800 = vmatprep.mubr.msk.bf16.mxu1 %vm12509_vm6, %v18118_v54  ;;  %v2773_v51 = vpop.permute.xlu0 %2772 }
 0x42f   : > { %v2781_v22 = vsel %vm2780_vm12, %v2765_v38, %v2767_v60  ;;  %v2782_v5 = vsel %vm2780_vm12, %v2767_v60, %v2769_v44  ;;  %2844 = vmatprep.mubr.bf16.mxu0 %v18110_v12  ;;  %v11470_v38 = vld [vmem:[%s17828_s3 + $0xe] sm:$0x3] }
 0x430   : > { %4310 = vrot.lane.b32.xlu1 %v13571_v2, %s12514_s23  ;;  %11471 = vmatprep.subr.msk.bf16.mxu0 %vm1119_vm2, %v2782_v5  ;;  %v2792_v11 = vsel %vm1119_vm2, %v2781_v22, 0 }
 0x431   : > { %4316 = vrot.lane.b32.xlu0 %v13573_v43, %s12514_s23  ;;  %2813 = vmatpush1.bf16.msra.mxu0 %v2792_v11 }
 0x432   : > { %v2771_v26 = vpop.permute.xlu1 %2770 }
 0x433   : > { %v2783_v28 = vsel %vm2780_vm12, %v2769_v44, %v2771_v26  ;;  %v2777_v58 = vpop.permute.xlu0 %2776  ;;  %v2784_v60 = vsel %vm2780_vm12, %v2771_v26, %v2773_v51 }
 0x434   : > { %4314 = vrot.lane.b32.xlu1 %v13582_v27, %s12514_s23  ;;  %11801 = vmatmul.mubr.msk.bf16.vlgmr.msra.gmra.mrb[4].mxu1 %vm1287_vm5, %v11462_v19  ;;  %v2798_v22 = vsel %vm1119_vm2, %v2783_v28, 0 }
 0x435   : > { %4524 = vrot.lane.b32.xlu0 %v13546_v16, %s12515_s29  ;;  %11472 = vmatmul.mubr.msk.bf16.vlgmr.msra.gmra.mrb[0].mxu0 %vm1287_vm5, %v11470_v38 }
 0x436   : > { %11473 = vmatprep.subr.msk.bf16.mxu1 %vm1119_vm2, %v2784_v60  ;;  %v2775_v5 = vpop.permute.xlu1 %2774  ;;  %2885 = vmatprep.mubr.bf16.mxu1 %v18110_v12 }
 0x437   : > { %2854 = vmatpush1.bf16.msra.mxu1 %v2798_v22  ;;  %v2785_v44 = vsel %vm2780_vm12, %v2773_v51, %v2775_v5  ;;  %v2985_v11 = vpop.permute.xlu0 %2984  ;;  %v2786_v26 = vsel %vm2780_vm12, %v2775_v5, %v2777_v58  ;;  %2926 = vmatprep.mubr.bf16.mxu0 %v18110_v12 }
 0x438   : > { %4318 = vrot.lane.b32.xlu1 %v13603_v41, %s12514_s23  ;;  %11475 = vmatprep.subr.msk.bf16.mxu0 %vm1119_vm2, %v2786_v26  ;;  %v2804_v19 = vsel %vm1119_vm2, %v2785_v44, 0  ;;  %s12526_s23 = smov 34  }
 0x439   : > { %4528 = vrot.lane.b32.xlu0 %v13554_v8, %s12515_s29  ;;  %2895 = vmatpush1.bf16.msra.mxu0 %v2804_v19 }
 0x43a   : > { %v2779_v28 = vpop.permute.xlu1 %2778  ;;  %11804 = vmatprep.subr.bf16.mxu1 %v18118_v54 }
 0x43b   : > { %v2787_v51 = vsel %vm2780_vm12, %v2777_v58, %v2779_v28  ;;  %v2989_v60 = vpop.permute.xlu0 %2988  ;;  %vm5422_vm12 = vcmask 449536  }
 0x43c   : > { %v2810_v22 = vsel %vm1119_vm2, %v2787_v51, 0  ;;  %4526 = vrot.lane.b32.xlu1 %v13541_v57, %s12515_s29  ;;  %11474 = vmatmul.mubr.msk.bf16.vlgmr.msra.gmra.mrb[0].mxu1 %vm1287_vm5, %v11470_v38 }
 0x43d   : > { %4532 = vrot.lane.b32.xlu0 %v13558_v42, %s12515_s29  ;;  %11476 = vmatmul.mubr.msk.bf16.vlgmr.msra.gmra.mrb[4].mxu0 %vm1287_vm5, %v11470_v38 }
 0x43e   : > { %11805 = vmatpush3.bf16.msra.mxu1 %v2810_v22  ;;  %v2987_v5 = vpop.permute.xlu1 %2986  ;;  %11806 = vmatprep.mubr.msk.bf16.mxu1 %vm12509_vm6, %v18118_v54 }
 0x43f   : > { %v3001_v58 = vsel %vm3000_vm13, %v2985_v11, %v2987_v5  ;;  %v2993_v44 = vpop.permute.xlu0 %2992  ;;  %v3002_v26 = vsel %vm3000_vm13, %v2987_v5, %v2989_v60  ;;  %3064 = vmatprep.mubr.bf16.mxu0 %v18110_v12  ;;  %v11478_v11 = vld [vmem:[%s17828_s3 + $0x10] sm:$0x3] }
 0x440   : > { %4530 = vrot.lane.b32.xlu1 %v13571_v2, %s12515_s29  ;;  %11479 = vmatprep.subr.msk.bf16.mxu0 %vm1119_vm2, %v3002_v26  ;;  %v3012_v19 = vsel %vm1119_vm2, %v3001_v58, 0 }
 0x441   : > { %4536 = vrot.lane.b32.xlu0 %v13573_v43, %s12515_s29  ;;  %3033 = vmatpush1.bf16.msra.mxu0 %v3012_v19 }
 0x442   : > { %v2991_v28 = vpop.permute.xlu1 %2990 }
 0x443   : > { %v3003_v51 = vsel %vm3000_vm13, %v2989_v60, %v2991_v28  ;;  %v2997_v22 = vpop.permute.xlu0 %2996  ;;  %v3004_v5 = vsel %vm3000_vm13, %v2991_v28, %v2993_v44 }
 0x444   : > { %4534 = vrot.lane.b32.xlu1 %v13582_v27, %s12515_s29  ;;  %11807 = vmatmul.mubr.msk.bf16.vlgmr.msra.gmra.mrb[4].mxu1 %vm1287_vm5, %v11470_v38  ;;  %v3018_v58 = vsel %vm1119_vm2, %v3003_v51, 0 }
 0x445   : > { %4744 = vrot.lane.b32.xlu0 %v13546_v16, %s12516_s10  ;;  %11480 = vmatmul.mubr.msk.bf16.vlgmr.msra.gmra.mrb[0].mxu0 %vm1287_vm5, %v11478_v11 }
 0x446   : > { %11481 = vmatprep.subr.msk.bf16.mxu1 %vm1119_vm2, %v3004_v5  ;;  %v2995_v26 = vpop.permute.xlu1 %2994  ;;  %3105 = vmatprep.mubr.bf16.mxu1 %v18110_v12 }
 0x447   : > { %3074 = vmatpush1.bf16.msra.mxu1 %v3018_v58  ;;  %v3005_v60 = vsel %vm3000_vm13, %v2993_v44, %v2995_v26  ;;  %v3205_v19 = vpop.permute.xlu0 %3204  ;;  %v3006_v28 = vsel %vm3000_vm13, %v2995_v26, %v2997_v22  ;;  %3146 = vmatprep.mubr.bf16.mxu0 %v18110_v12 }
 0x448   : > { %4538 = vrot.lane.b32.xlu1 %v13603_v41, %s12515_s29  ;;  %11483 = vmatprep.subr.msk.bf16.mxu0 %vm1119_vm2, %v3006_v28  ;;  %v3024_v38 = vsel %vm1119_vm2, %v3005_v60, 0  ;;  %s11703_s29 = sld [smem:[#allocation6 + $0x383]] }
 0x449   : > { %4748 = vrot.lane.b32.xlu0 %v13554_v8, %s12516_s10  ;;  %3115 = vmatpush1.bf16.msra.mxu0 %v3024_v38 }
 0x44a   : > { %v2999_v51 = vpop.permute.xlu1 %2998  ;;  %11810 = vmatprep.subr.bf16.mxu1 %v18118_v54 }
 0x44b   : > { %v3007_v44 = vsel %vm3000_vm13, %v2997_v22, %v2999_v51  ;;  %v3209_v5 = vpop.permute.xlu0 %3208  ;;  %vm5642_vm13 = vcmask 441344  }
 0x44c   : > { %v3030_v58 = vsel %vm1119_vm2, %v3007_v44, 0  ;;  %4746 = vrot.lane.b32.xlu1 %v13541_v57, %s12516_s10  ;;  %11482 = vmatmul.mubr.msk.bf16.vlgmr.msra.gmra.mrb[0].mxu1 %vm1287_vm5, %v11478_v11 }
 0x44d   : > { %4752 = vrot.lane.b32.xlu0 %v13558_v42, %s12516_s10  ;;  %11484 = vmatmul.mubr.msk.bf16.vlgmr.msra.gmra.mrb[4].mxu0 %vm1287_vm5, %v11478_v11 }
 0x44e   : > { %11811 = vmatpush3.bf16.msra.mxu1 %v3030_v58  ;;  %v3207_v26 = vpop.permute.xlu1 %3206  ;;  %11812 = vmatprep.mubr.msk.bf16.mxu1 %vm12509_vm6, %v18118_v54 }
 0x44f   : > { %v3221_v22 = vsel %vm3220_vm14, %v3205_v19, %v3207_v26  ;;  %v3213_v60 = vpop.permute.xlu0 %3212  ;;  %v3222_v28 = vsel %vm3220_vm14, %v3207_v26, %v3209_v5  ;;  %3284 = vmatprep.mubr.bf16.mxu0 %v18110_v12  ;;  %v11486_v19 = vld [vmem:[%s17828_s3 + $0x12] sm:$0x3] }
 0x450   : > { %4750 = vrot.lane.b32.xlu1 %v13571_v2, %s12516_s10  ;;  %11487 = vmatprep.subr.msk.bf16.mxu0 %vm1119_vm2, %v3222_v28  ;;  %v3232_v38 = vsel %vm1119_vm2, %v3221_v22, 0 }
 0x451   : > { %4756 = vrot.lane.b32.xlu0 %v13573_v43, %s12516_s10  ;;  %3253 = vmatpush1.bf16.msra.mxu0 %v3232_v38 }
 0x452   : > { %v3211_v51 = vpop.permute.xlu1 %3210 }
 0x453   : > { %v3223_v44 = vsel %vm3220_vm14, %v3209_v5, %v3211_v51  ;;  %v3217_v58 = vpop.permute.xlu0 %3216  ;;  %v3224_v26 = vsel %vm3220_vm14, %v3211_v51, %v3213_v60 }
 0x454   : > { %4754 = vrot.lane.b32.xlu1 %v13582_v27, %s12516_s10  ;;  %11813 = vmatmul.mubr.msk.bf16.vlgmr.msra.gmra.mrb[4].mxu1 %vm1287_vm5, %v11478_v11  ;;  %v3238_v22 = vsel %vm1119_vm2, %v3223_v44, 0 }
 0x455   : > { %4964 = vrot.lane.b32.xlu0 %v13546_v16, %s12517_s13  ;;  %11488 = vmatmul.mubr.msk.bf16.vlgmr.msra.gmra.mrb[0].mxu0 %vm1287_vm5, %v11486_v19 }
 0x456   : > { %11489 = vmatprep.subr.msk.bf16.mxu1 %vm1119_vm2, %v3224_v26  ;;  %v3215_v28 = vpop.permute.xlu1 %3214  ;;  %3325 = vmatprep.mubr.bf16.mxu1 %v18110_v12 }
 0x457   : > { %3294 = vmatpush1.bf16.msra.mxu1 %v3238_v22  ;;  %v3225_v5 = vsel %vm3220_vm14, %v3213_v60, %v3215_v28  ;;  %v3425_v38 = vpop.permute.xlu0 %3424  ;;  %v3226_v51 = vsel %vm3220_vm14, %v3215_v28, %v3217_v58  ;;  %3366 = vmatprep.mubr.bf16.mxu0 %v18110_v12 }
 0x458   : > { %4758 = vrot.lane.b32.xlu1 %v13603_v41, %s12516_s10  ;;  %11491 = vmatprep.subr.msk.bf16.mxu0 %vm1119_vm2, %v3226_v51  ;;  %v3244_v16 = vsel %vm1119_vm2, %v3225_v5, 0  ;;  %s11652_s10 = sld [smem:[#allocation6 + $0x102]] }
 0x459   : > { %4968 = vrot.lane.b32.xlu0 %v13554_v8, %s12517_s13  ;;  %3335 = vmatpush1.bf16.msra.mxu0 %v3244_v16 }
 0x45a   : > { %v3219_v11 = vpop.permute.xlu1 %3218  ;;  %11816 = vmatprep.subr.bf16.mxu1 %v18118_v54 }
 0x45b   : > { %v3227_v60 = vsel %vm3220_vm14, %v3217_v58, %v3219_v11  ;;  %v3429_v44 = vpop.permute.xlu0 %3428  ;;  %vm5862_vm14 = vcmask 375808  }
 0x45c   : > { %v3250_v26 = vsel %vm1119_vm2, %v3227_v60, 0  ;;  %4966 = vrot.lane.b32.xlu1 %v13541_v57, %s12517_s13  ;;  %11490 = vmatmul.mubr.msk.bf16.vlgmr.msra.gmra.mrb[0].mxu1 %vm1287_vm5, %v11486_v19 }
 0x45d   : > { %4972 = vrot.lane.b32.xlu0 %v13558_v42, %s12517_s13  ;;  %11492 = vmatmul.mubr.msk.bf16.vlgmr.msra.gmra.mrb[4].mxu0 %vm1287_vm5, %v11486_v19 }
 0x45e   : > { %11817 = vmatpush3.bf16.msra.mxu1 %v3250_v26  ;;  %v3427_v22 = vpop.permute.xlu1 %3426  ;;  %11818 = vmatprep.mubr.msk.bf16.mxu1 %vm12509_vm6, %v18118_v54 }
 0x45f   : > { %v3441_v58 = vsel %vm3440_vm15, %v3425_v38, %v3427_v22  ;;  %v3433_v28 = vpop.permute.xlu0 %3432  ;;  %v3442_v5 = vsel %vm3440_vm15, %v3427_v22, %v3429_v44  ;;  %3504 = vmatprep.mubr.bf16.mxu0 %v18110_v12  ;;  %v11494_v38 = vld [vmem:[%s17828_s3 + $0x14] sm:$0x3] }
 0x460   : > { %4970 = vrot.lane.b32.xlu1 %v13571_v2, %s12517_s13  ;;  %11495 = vmatprep.subr.msk.bf16.mxu0 %vm1119_vm2, %v3442_v5  ;;  %v3452_v51 = vsel %vm1119_vm2, %v3441_v58, 0 }
 0x461   : > { %4976 = vrot.lane.b32.xlu0 %v13573_v43, %s12517_s13  ;;  %3473 = vmatpush1.bf16.msra.mxu0 %v3452_v51 }
 0x462   : > { %v3431_v16 = vpop.permute.xlu1 %3430 }
 0x463   : > { %v3443_v11 = vsel %vm3440_vm15, %v3429_v44, %v3431_v16  ;;  %v3437_v60 = vpop.permute.xlu0 %3436  ;;  %v3444_v26 = vsel %vm3440_vm15, %v3431_v16, %v3433_v28 }
 0x464   : > { %4974 = vrot.lane.b32.xlu1 %v13582_v27, %s12517_s13  ;;  %11819 = vmatmul.mubr.msk.bf16.vlgmr.msra.gmra.mrb[4].mxu1 %vm1287_vm5, %v11486_v19  ;;  %v3458_v22 = vsel %vm1119_vm2, %v3443_v11, 0 }
 0x465   : > { %5186 = vrot.lane.b32.xlu0 %v13541_v57, %s12518_s16  ;;  %11496 = vmatmul.mubr.msk.bf16.vlgmr.msra.gmra.mrb[0].mxu0 %vm1287_vm5, %v11494_v38 }
 0x466   : > { %11497 = vmatprep.subr.msk.bf16.mxu1 %vm1119_vm2, %v3444_v26  ;;  %v3435_v58 = vpop.permute.xlu1 %3434  ;;  %3545 = vmatprep.mubr.bf16.mxu1 %v18110_v12 }
 0x467   : > { %3514 = vmatpush1.bf16.msra.mxu1 %v3458_v22  ;;  %v3445_v44 = vsel %vm3440_vm15, %v3433_v28, %v3435_v58  ;;  %v3645_v5 = vpop.permute.xlu0 %3644  ;;  %v3446_v51 = vsel %vm3440_vm15, %v3435_v58, %v3437_v60  ;;  %3586 = vmatprep.mubr.bf16.mxu0 %v18110_v12  ;;  %v1225_v28 = vmul.f32 %v13520_v25, %v13405_v21 }
 0x468   : > { %4978 = vrot.lane.b32.xlu1 %v13603_v41, %s12517_s13  ;;  %11499 = vmatprep.subr.msk.bf16.mxu0 %vm1119_vm2, %v3446_v51  ;;  %v3464_v19 = vsel %vm1119_vm2, %v3445_v44, 0  ;;  %s11653_s13 = sld [smem:[#allocation6 + $0x103]] }
 0x469   : > { %5190 = vrot.lane.b32.xlu0 %v13571_v2, %s12518_s16  ;;  %3555 = vmatpush1.bf16.msra.mxu0 %v3464_v19  ;;  %v1234_v21 = vmax.f32 %v1225_v28, 0.0 }
 0x46a   : > { %v3439_v16 = vpop.permute.xlu1 %3438  ;;  %11822 = vmatprep.subr.bf16.mxu1 %v18118_v54 }
 0x46b   : > { %v3447_v11 = vsel %vm3440_vm15, %v3437_v60, %v3439_v16  ;;  %v3649_v26 = vpop.permute.xlu0 %3648  ;;  %v12423_v16 = vld [vmem:[%s17826_s1 + $0x8] ss:$0 sm:$0xff]  ;;  %vm6082_vm15 = vcmask 367616  }
 0x46c   : > { %v3470_v22 = vsel %vm1119_vm2, %v3447_v11, 0  ;;  %5188 = vrot.lane.b32.xlu1 %v13554_v8, %s12518_s16  ;;  %11498 = vmatmul.mubr.msk.bf16.vlgmr.msra.gmra.mrb[0].mxu1 %vm1287_vm5, %v11494_v38  ;;  %v1243_v28 = vmul.f32 %v12423_v16, %v1234_v21 }
 0x46d   : > { %5194 = vrot.lane.b32.xlu0 %v13582_v27, %s12518_s16  ;;  %11500 = vmatmul.mubr.msk.bf16.vlgmr.msra.gmra.mrb[4].mxu0 %vm1287_vm5, %v11494_v38 }
 0x46e   : > { %11823 = vmatpush3.bf16.msra.mxu1 %v3470_v22  ;;  %v3647_v58 = vpop.permute.xlu1 %3646  ;;  %11824 = vmatprep.mubr.msk.bf16.mxu1 %vm12509_vm6, %v18118_v54 }
 0x46f   : > { %v3661_v25 = vsel %vm3660_vm1, %v3645_v5, %v3647_v58  ;;  %v3653_v60 = vpop.permute.xlu0 %3652  ;;  %v3662_v44 = vsel %vm3660_vm1, %v3647_v58, %v3649_v26  ;;  %3724 = vmatprep.mubr.bf16.mxu0 %v18110_v12  ;;  %v11502_v5 = vld [vmem:[%s17828_s3 + $0x16] sm:$0x3] }
 0x470   : > { %5192 = vrot.lane.b32.xlu1 %v13558_v42, %s12518_s16  ;;  %11503 = vmatprep.subr.msk.bf16.mxu0 %vm1119_vm2, %v3662_v44  ;;  %v3672_v51 = vsel %vm1119_vm2, %v3661_v25, 0 }
 0x471   : > { %5198 = vrot.lane.b32.xlu0 %v13603_v41, %s12518_s16  ;;  %3693 = vmatpush1.bf16.msra.mxu0 %v3672_v51 }
 0x472   : > { %v3651_v19 = vpop.permute.xlu1 %3650 }
 0x473   : > { %v3663_v11 = vsel %vm3660_vm1, %v3649_v26, %v3651_v19  ;;  %v3657_v22 = vpop.permute.xlu0 %3656  ;;  %v3664_v58 = vsel %vm3660_vm1, %v3651_v19, %v3653_v60  ;;  %v14235_v26 = vpack.c.bf16 %v1243_v28, %v1243_v28 }
 0x474   : > { %5196 = vrot.lane.b32.xlu1 %v13573_v43, %s12518_s16  ;;  %11825 = vmatmul.mubr.msk.bf16.vlgmr.msra.gmra.mrb[4].mxu1 %vm1287_vm5, %v11494_v38  ;;  %v3678_v25 = vsel %vm1119_vm2, %v3663_v11, 0 }
 0x475   : > { %5406 = vrot.lane.b32.xlu0 %v13541_v57, %s12519_s21  ;;  %11504 = vmatmul.mubr.msk.bf16.vlgmr.msra.gmra.mrb[0].mxu0 %vm1287_vm5, %v11502_v5 }
 0x476   : > { %11505 = vmatprep.subr.msk.bf16.mxu1 %vm1119_vm2, %v3664_v58  ;;  %v3655_v21 = vpop.permute.xlu1 %3654  ;;  %3765 = vmatprep.mubr.bf16.mxu1 %v18110_v12 }
 0x477   : > { %3734 = vmatpush1.bf16.msra.mxu1 %v3678_v25  ;;  %v3665_v44 = vsel %vm3660_vm1, %v3653_v60, %v3655_v21  ;;  %v3865_v51 = vpop.permute.xlu0 %3864  ;;  %v3666_v38 = vsel %vm3660_vm1, %v3655_v21, %v3657_v22  ;;  %3806 = vmatprep.mubr.bf16.mxu0 %v18110_v12 }
 0x478   : > { %5200 = vrot.lane.b32.xlu1 %v14235_v26, %s12518_s16  ;;  %11507 = vmatprep.subr.msk.bf16.mxu0 %vm1119_vm2, %v3666_v38  ;;  %v3684_v19 = vsel %vm1119_vm2, %v3665_v44, 0  ;;  %s11660_s16 = sld [smem:[#allocation6 + $0x180]] }
 0x479   : > { %5410 = vrot.lane.b32.xlu0 %v13571_v2, %s12519_s21  ;;  %3775 = vmatpush1.bf16.msra.mxu0 %v3684_v19 }
 0x47a   : > { %v3659_v16 = vpop.permute.xlu1 %3658  ;;  %11828 = vmatprep.subr.bf16.mxu1 %v18118_v54 }
 0x47b   : > { %v3667_v60 = vsel %vm3660_vm1, %v3657_v22, %v3659_v16  ;;  %v3869_v28 = vpop.permute.xlu0 %3868  ;;  %vm6302_vm1 = vcmask 359424  }
 0x47c   : > { %v3690_v11 = vsel %vm1119_vm2, %v3667_v60, 0  ;;  %5408 = vrot.lane.b32.xlu1 %v13554_v8, %s12519_s21  ;;  %11506 = vmatmul.mubr.msk.bf16.vlgmr.msra.gmra.mrb[0].mxu1 %vm1287_vm5, %v11502_v5 }
 0x47d   : > { %5414 = vrot.lane.b32.xlu0 %v13582_v27, %s12519_s21  ;;  %11508 = vmatmul.mubr.msk.bf16.vlgmr.msra.gmra.mrb[4].mxu0 %vm1287_vm5, %v11502_v5 }
 0x47e   : > { %11829 = vmatpush3.bf16.msra.mxu1 %v3690_v11  ;;  %v3867_v58 = vpop.permute.xlu1 %3866  ;;  %11830 = vmatprep.mubr.msk.bf16.mxu1 %vm12509_vm6, %v18118_v54 }
 0x47f   : > { %v3881_v22 = vsel %vm3880_vm3, %v3865_v51, %v3867_v58  ;;  %v3873_v25 = vpop.permute.xlu0 %3872  ;;  %v3882_v21 = vsel %vm3880_vm3, %v3867_v58, %v3869_v28  ;;  %3944 = vmatprep.mubr.bf16.mxu0 %v18110_v12  ;;  %v11510_v51 = vld [vmem:[%s17828_s3 + $0x18] sm:$0x3] }
 0x480   : > { %5412 = vrot.lane.b32.xlu1 %v13558_v42, %s12519_s21  ;;  %11511 = vmatprep.subr.msk.bf16.mxu0 %vm1119_vm2, %v3882_v21  ;;  %v3892_v44 = vsel %vm1119_vm2, %v3881_v22, 0 }
 0x481   : > { %5418 = vrot.lane.b32.xlu0 %v13603_v41, %s12519_s21  ;;  %3913 = vmatpush1.bf16.msra.mxu0 %v3892_v44 }
 0x482   : > { %v3871_v38 = vpop.permute.xlu1 %3870 }
 0x483   : > { %v3883_v19 = vsel %vm3880_vm3, %v3869_v28, %v3871_v38  ;;  %v3877_v16 = vpop.permute.xlu0 %3876  ;;  %v3884_v60 = vsel %vm3880_vm3, %v3871_v38, %v3873_v25 }
 0x484   : > { %5416 = vrot.lane.b32.xlu1 %v13573_v43, %s12519_s21  ;;  %11831 = vmatmul.mubr.msk.bf16.vlgmr.msra.gmra.mrb[4].mxu1 %vm1287_vm5, %v11502_v5  ;;  %v3898_v11 = vsel %vm1119_vm2, %v3883_v19, 0 }
 0x485   : > { %5626 = vrot.lane.b32.xlu0 %v13541_v57, %s12520_s26  ;;  %11512 = vmatmul.mubr.msk.bf16.vlgmr.msra.gmra.mrb[0].mxu0 %vm1287_vm5, %v11510_v51 }
 0x486   : > { %11513 = vmatprep.subr.msk.bf16.mxu1 %vm1119_vm2, %v3884_v60  ;;  %v3875_v58 = vpop.permute.xlu1 %3874  ;;  %3985 = vmatprep.mubr.bf16.mxu1 %v18110_v12 }
 0x487   : > { %3954 = vmatpush1.bf16.msra.mxu1 %v3898_v11  ;;  %v3885_v28 = vsel %vm3880_vm3, %v3873_v25, %v3875_v58  ;;  %v4085_v22 = vpop.permute.xlu0 %4084  ;;  %v3886_v21 = vsel %vm3880_vm3, %v3875_v58, %v3877_v16  ;;  %4026 = vmatprep.mubr.bf16.mxu0 %v18110_v12 }
 0x488   : > { %5420 = vrot.lane.b32.xlu1 %v14235_v26, %s12519_s21  ;;  %11515 = vmatprep.subr.msk.bf16.mxu0 %vm1119_vm2, %v3886_v21  ;;  %v3904_v5 = vsel %vm1119_vm2, %v3885_v28, 0  ;;  %s11700_s21 = sld [smem:[#allocation6 + $0x380]] }
 0x489   : > { %5630 = vrot.lane.b32.xlu0 %v13571_v2, %s12520_s26  ;;  %3995 = vmatpush1.bf16.msra.mxu0 %v3904_v5 }
 0x48a   : > { %v3879_v44 = vpop.permute.xlu1 %3878  ;;  %11834 = vmatprep.subr.bf16.mxu1 %v18118_v54 }
 0x48b   : > { %v3887_v25 = vsel %vm3880_vm3, %v3877_v16, %v3879_v44  ;;  %v4089_v38 = vpop.permute.xlu0 %4088  ;;  %vm6522_vm3 = vcmask 293888  }
 0x48c   : > { %v3910_v19 = vsel %vm1119_vm2, %v3887_v25, 0  ;;  %5628 = vrot.lane.b32.xlu1 %v13554_v8, %s12520_s26  ;;  %11514 = vmatmul.mubr.msk.bf16.vlgmr.msra.gmra.mrb[0].mxu1 %vm1287_vm5, %v11510_v51 }
 0x48d   : > { %5634 = vrot.lane.b32.xlu0 %v13582_v27, %s12520_s26  ;;  %11516 = vmatmul.mubr.msk.bf16.vlgmr.msra.gmra.mrb[4].mxu0 %vm1287_vm5, %v11510_v51 }
 0x48e   : > { %11835 = vmatpush3.bf16.msra.mxu1 %v3910_v19  ;;  %v4087_v60 = vpop.permute.xlu1 %4086  ;;  %11836 = vmatprep.mubr.msk.bf16.mxu1 %vm12509_vm6, %v18118_v54 }
 0x48f   : > { %v4101_v16 = vsel %vm4100_vm4, %v4085_v22, %v4087_v60  ;;  %v4093_v11 = vpop.permute.xlu0 %4092  ;;  %v4102_v58 = vsel %vm4100_vm4, %v4087_v60, %v4089_v38  ;;  %4164 = vmatprep.mubr.bf16.mxu0 %v18110_v12  ;;  %v11518_v22 = vld [vmem:[%s17828_s3 + $0x1a] sm:$0x3] }
 0x490   : > { %5632 = vrot.lane.b32.xlu1 %v13558_v42, %s12520_s26  ;;  %11519 = vmatprep.subr.msk.bf16.mxu0 %vm1119_vm2, %v4102_v58  ;;  %v4112_v28 = vsel %vm1119_vm2, %v4101_v16, 0 }
 0x491   : > { %5638 = vrot.lane.b32.xlu0 %v13603_v41, %s12520_s26  ;;  %4133 = vmatpush1.bf16.msra.mxu0 %v4112_v28 }
 0x492   : > { %v4091_v21 = vpop.permute.xlu1 %4090 }
 0x493   : > { %v4103_v5 = vsel %vm4100_vm4, %v4089_v38, %v4091_v21  ;;  %v4097_v44 = vpop.permute.xlu0 %4096  ;;  %v4104_v25 = vsel %vm4100_vm4, %v4091_v21, %v4093_v11 }
 0x494   : > { %5636 = vrot.lane.b32.xlu1 %v13573_v43, %s12520_s26  ;;  %11837 = vmatmul.mubr.msk.bf16.vlgmr.msra.gmra.mrb[4].mxu1 %vm1287_vm5, %v11510_v51  ;;  %v4118_v19 = vsel %vm1119_vm2, %v4103_v5, 0 }
 0x495   : > { %5846 = vrot.lane.b32.xlu0 %v13541_v57, %s12521_s30  ;;  %11520 = vmatmul.mubr.msk.bf16.vlgmr.msra.gmra.mrb[0].mxu0 %vm1287_vm5, %v11518_v22 }
 0x496   : > { %11521 = vmatprep.subr.msk.bf16.mxu1 %vm1119_vm2, %v4104_v25  ;;  %v4095_v60 = vpop.permute.xlu1 %4094  ;;  %4205 = vmatprep.mubr.bf16.mxu1 %v18110_v12 }
 0x497   : > { %4174 = vmatpush1.bf16.msra.mxu1 %v4118_v19  ;;  %v4105_v38 = vsel %vm4100_vm4, %v4093_v11, %v4095_v60  ;;  %v4305_v16 = vpop.permute.xlu0 %4304  ;;  %v4106_v58 = vsel %vm4100_vm4, %v4095_v60, %v4097_v44  ;;  %4246 = vmatprep.mubr.bf16.mxu0 %v18110_v12 }
 0x498   : > { %5640 = vrot.lane.b32.xlu1 %v14235_v26, %s12520_s26  ;;  %11523 = vmatprep.subr.msk.bf16.mxu0 %vm1119_vm2, %v4106_v58  ;;  %v4124_v51 = vsel %vm1119_vm2, %v4105_v38, 0  ;;  %s14571_s26 = sld [smem:[#allocation6 + $0x101]] }
 0x499   : > { %5850 = vrot.lane.b32.xlu0 %v13571_v2, %s12521_s30  ;;  %4215 = vmatpush1.bf16.msra.mxu0 %v4124_v51 }
 0x49a   : > { %v4099_v28 = vpop.permute.xlu1 %4098  ;;  %11840 = vmatprep.subr.bf16.mxu1 %v18118_v54 }
 0x49b   : > { %v4107_v11 = vsel %vm4100_vm4, %v4097_v44, %v4099_v28  ;;  %v4309_v21 = vpop.permute.xlu0 %4308 }
 0x49c   : > { %v4130_v5 = vsel %vm1119_vm2, %v4107_v11, 0  ;;  %5848 = vrot.lane.b32.xlu1 %v13554_v8, %s12521_s30  ;;  %11522 = vmatmul.mubr.msk.bf16.vlgmr.msra.gmra.mrb[0].mxu1 %vm1287_vm5, %v11518_v22 }
 0x49d   : > { %5854 = vrot.lane.b32.xlu0 %v13582_v27, %s12521_s30  ;;  %11524 = vmatmul.mubr.msk.bf16.vlgmr.msra.gmra.mrb[4].mxu0 %vm1287_vm5, %v11518_v22 }
 0x49e   : > { %11841 = vmatpush3.bf16.msra.mxu1 %v4130_v5  ;;  %v4307_v25 = vpop.permute.xlu1 %4306  ;;  %11842 = vmatprep.mubr.msk.bf16.mxu1 %vm12509_vm6, %v18118_v54 }
 0x49f   : > { %v4321_v44 = vsel %vm4320_vm7, %v4305_v16, %v4307_v25  ;;  %v4313_v19 = vpop.permute.xlu0 %4312  ;;  %v4322_v60 = vsel %vm4320_vm7, %v4307_v25, %v4309_v21  ;;  %4384 = vmatprep.mubr.bf16.mxu0 %v18110_v12  ;;  %v11526_v16 = vld [vmem:[%s17828_s3 + $0x1c] sm:$0x3] }
 0x4a0   : > { %5852 = vrot.lane.b32.xlu1 %v13558_v42, %s12521_s30  ;;  %11527 = vmatprep.subr.msk.bf16.mxu0 %vm1119_vm2, %v4322_v60  ;;  %v4332_v38 = vsel %vm1119_vm2, %v4321_v44, 0 }
 0x4a1   : > { %5858 = vrot.lane.b32.xlu0 %v13603_v41, %s12521_s30  ;;  %4353 = vmatpush1.bf16.msra.mxu0 %v4332_v38 }
 0x4a2   : > { %v4311_v58 = vpop.permute.xlu1 %4310 }
 0x4a3   : > { %v4323_v51 = vsel %vm4320_vm7, %v4309_v21, %v4311_v58  ;;  %v4317_v28 = vpop.permute.xlu0 %4316  ;;  %v4324_v11 = vsel %vm4320_vm7, %v4311_v58, %v4313_v19 }
 0x4a4   : > { %5856 = vrot.lane.b32.xlu1 %v13573_v43, %s12521_s30  ;;  %11843 = vmatmul.mubr.msk.bf16.vlgmr.msra.gmra.mrb[4].mxu1 %vm1287_vm5, %v11518_v22  ;;  %v4338_v5 = vsel %vm1119_vm2, %v4323_v51, 0 }
 0x4a5   : > { %6066 = vrot.lane.b32.xlu0 %v13541_v57, %s12522_s11  ;;  %11528 = vmatmul.mubr.msk.bf16.vlgmr.msra.gmra.mrb[0].mxu0 %vm1287_vm5, %v11526_v16 }
 0x4a6   : > { %11529 = vmatprep.subr.msk.bf16.mxu1 %vm1119_vm2, %v4324_v11  ;;  %v4315_v25 = vpop.permute.xlu1 %4314  ;;  %4425 = vmatprep.mubr.bf16.mxu1 %v18110_v12 }
 0x4a7   : > { %4394 = vmatpush1.bf16.msra.mxu1 %v4338_v5  ;;  %v4325_v21 = vsel %vm4320_vm7, %v4313_v19, %v4315_v25  ;;  %v4525_v44 = vpop.permute.xlu0 %4524  ;;  %v4326_v60 = vsel %vm4320_vm7, %v4315_v25, %v4317_v28  ;;  %4466 = vmatprep.mubr.bf16.mxu0 %v18110_v12 }
 0x4a8   : > { %5860 = vrot.lane.b32.xlu1 %v14235_v26, %s12521_s30  ;;  %11531 = vmatprep.subr.msk.bf16.mxu0 %vm1119_vm2, %v4326_v60  ;;  %v4344_v22 = vsel %vm1119_vm2, %v4325_v21, 0  ;;  %s16689_s30 = sld [smem:[#allocation4 + $0x382]] }
 0x4a9   : > { %6070 = vrot.lane.b32.xlu0 %v13571_v2, %s12522_s11  ;;  %4435 = vmatpush1.bf16.msra.mxu0 %v4344_v22 }
 0x4aa   : > { %v4319_v38 = vpop.permute.xlu1 %4318  ;;  %11846 = vmatprep.subr.bf16.mxu1 %v18118_v54 }
 0x4ab   : > { %v4327_v19 = vsel %vm4320_vm7, %v4317_v28, %v4319_v38  ;;  %v4529_v58 = vpop.permute.xlu0 %4528  ;;  %vm6742_vm7 = vcmask 285696  }
 0x4ac   : > { %v4350_v51 = vsel %vm1119_vm2, %v4327_v19, 0  ;;  %6068 = vrot.lane.b32.xlu1 %v13554_v8, %s12522_s11  ;;  %11530 = vmatmul.mubr.msk.bf16.vlgmr.msra.gmra.mrb[0].mxu1 %vm1287_vm5, %v11526_v16 }
 0x4ad   : > { %6074 = vrot.lane.b32.xlu0 %v13582_v27, %s12522_s11  ;;  %11532 = vmatmul.mubr.msk.bf16.vlgmr.msra.gmra.mrb[4].mxu0 %vm1287_vm5, %v11526_v16 }
 0x4ae   : > { %11847 = vmatpush3.bf16.msra.mxu1 %v4350_v51  ;;  %v4527_v11 = vpop.permute.xlu1 %4526  ;;  %11848 = vmatprep.mubr.msk.bf16.mxu1 %vm12509_vm6, %v18118_v54 }
 0x4af   : > { %v4541_v28 = vsel %vm4540_vm8, %v4525_v44, %v4527_v11  ;;  %v4533_v5 = vpop.permute.xlu0 %4532  ;;  %v4542_v25 = vsel %vm4540_vm8, %v4527_v11, %v4529_v58  ;;  %4604 = vmatprep.mubr.bf16.mxu0 %v18110_v12  ;;  %v11534_v44 = vld [vmem:[%s17828_s3 + $0x1e] sm:$0x3] }
 0x4b0   : > { %6072 = vrot.lane.b32.xlu1 %v13558_v42, %s12522_s11  ;;  %11535 = vmatprep.subr.msk.bf16.mxu0 %vm1119_vm2, %v4542_v25  ;;  %v4552_v21 = vsel %vm1119_vm2, %v4541_v28, 0 }
 0x4b1   : > { %6078 = vrot.lane.b32.xlu0 %v13603_v41, %s12522_s11  ;;  %4573 = vmatpush1.bf16.msra.mxu0 %v4552_v21 }
 0x4b2   : > { %v4531_v60 = vpop.permute.xlu1 %4530 }
 0x4b3   : > { %v4543_v22 = vsel %vm4540_vm8, %v4529_v58, %v4531_v60  ;;  %v4537_v38 = vpop.permute.xlu0 %4536  ;;  %v4544_v19 = vsel %vm4540_vm8, %v4531_v60, %v4533_v5 }
 0x4b4   : > { %6076 = vrot.lane.b32.xlu1 %v13573_v43, %s12522_s11  ;;  %11849 = vmatmul.mubr.msk.bf16.vlgmr.msra.gmra.mrb[4].mxu1 %vm1287_vm5, %v11526_v16  ;;  %v4558_v51 = vsel %vm1119_vm2, %v4543_v22, 0 }
 0x4b5   : > { %6286 = vrot.lane.b32.xlu0 %v13541_v57, %s12523_s14  ;;  %11536 = vmatmul.mubr.msk.bf16.vlgmr.msra.gmra.mrb[0].mxu0 %vm1287_vm5, %v11534_v44 }
 0x4b6   : > { %11537 = vmatprep.subr.msk.bf16.mxu1 %vm1119_vm2, %v4544_v19  ;;  %v4535_v11 = vpop.permute.xlu1 %4534  ;;  %4645 = vmatprep.mubr.bf16.mxu1 %v18110_v12 }
 0x4b7   : > { %4614 = vmatpush1.bf16.msra.mxu1 %v4558_v51  ;;  %v4545_v58 = vsel %vm4540_vm8, %v4533_v5, %v4535_v11  ;;  %v4745_v28 = vpop.permute.xlu0 %4744  ;;  %v4546_v25 = vsel %vm4540_vm8, %v4535_v11, %v4537_v38  ;;  %4686 = vmatprep.mubr.bf16.mxu0 %v18110_v12 }
 0x4b8   : > { %6080 = vrot.lane.b32.xlu1 %v14235_v26, %s12522_s11  ;;  %11539 = vmatprep.subr.msk.bf16.mxu0 %vm1119_vm2, %v4546_v25  ;;  %v4564_v16 = vsel %vm1119_vm2, %v4545_v58, 0  ;;  %s11672_s11 = sld [smem:[#allocation6 + $0x202]] }
 0x4b9   : > { %6290 = vrot.lane.b32.xlu0 %v13571_v2, %s12523_s14  ;;  %4655 = vmatpush1.bf16.msra.mxu0 %v4564_v16 }
 0x4ba   : > { %v4539_v21 = vpop.permute.xlu1 %4538  ;;  %11852 = vmatprep.subr.bf16.mxu1 %v18118_v54 }
 0x4bb   : > { %v4547_v5 = vsel %vm4540_vm8, %v4537_v38, %v4539_v21  ;;  %v4749_v60 = vpop.permute.xlu0 %4748  ;;  %vm6962_vm8 = vcmask 277504  }
 0x4bc   : > { %v4570_v22 = vsel %vm1119_vm2, %v4547_v5, 0  ;;  %6288 = vrot.lane.b32.xlu1 %v13554_v8, %s12523_s14  ;;  %11538 = vmatmul.mubr.msk.bf16.vlgmr.msra.gmra.mrb[0].mxu1 %vm1287_vm5, %v11534_v44 }
 0x4bd   : > { %6294 = vrot.lane.b32.xlu0 %v13582_v27, %s12523_s14  ;;  %11540 = vmatmul.mubr.msk.bf16.vlgmr.msra.gmra.mrb[4].mxu0 %vm1287_vm5, %v11534_v44 }
 0x4be   : > { %11853 = vmatpush3.bf16.msra.mxu1 %v4570_v22  ;;  %v4747_v19 = vpop.permute.xlu1 %4746  ;;  %11854 = vmatprep.mubr.msk.bf16.mxu1 %vm12509_vm6, %v18118_v54 }
 0x4bf   : > { %v4761_v38 = vsel %vm4760_vm9, %v4745_v28, %v4747_v19  ;;  %v4753_v51 = vpop.permute.xlu0 %4752  ;;  %v4762_v11 = vsel %vm4760_vm9, %v4747_v19, %v4749_v60  ;;  %4824 = vmatprep.mubr.bf16.mxu0 %v18110_v12  ;;  %v11542_v28 = vld [vmem:[%s17828_s3 + $0x20] sm:$0x3] }
 0x4c0   : > { %6292 = vrot.lane.b32.xlu1 %v13558_v42, %s12523_s14  ;;  %11543 = vmatprep.subr.msk.bf16.mxu0 %vm1119_vm2, %v4762_v11  ;;  %v4772_v58 = vsel %vm1119_vm2, %v4761_v38, 0 }
 0x4c1   : > { %6298 = vrot.lane.b32.xlu0 %v13603_v41, %s12523_s14  ;;  %4793 = vmatpush1.bf16.msra.mxu0 %v4772_v58 }
 0x4c2   : > { %v4751_v25 = vpop.permute.xlu1 %4750 }
 0x4c3   : > { %v4763_v16 = vsel %vm4760_vm9, %v4749_v60, %v4751_v25  ;;  %v4757_v21 = vpop.permute.xlu0 %4756  ;;  %v4764_v5 = vsel %vm4760_vm9, %v4751_v25, %v4753_v51 }
 0x4c4   : > { %6296 = vrot.lane.b32.xlu1 %v13573_v43, %s12523_s14  ;;  %11855 = vmatmul.mubr.msk.bf16.vlgmr.msra.gmra.mrb[4].mxu1 %vm1287_vm5, %v11534_v44  ;;  %v4778_v22 = vsel %vm1119_vm2, %v4763_v16, 0 }
 0x4c5   : > { %6506 = vrot.lane.b32.xlu0 %v13541_v57, %s12524_s17  ;;  %11544 = vmatmul.mubr.msk.bf16.vlgmr.msra.gmra.mrb[0].mxu0 %vm1287_vm5, %v11542_v28 }
 0x4c6   : > { %11545 = vmatprep.subr.msk.bf16.mxu1 %vm1119_vm2, %v4764_v5  ;;  %v4755_v19 = vpop.permute.xlu1 %4754  ;;  %4865 = vmatprep.mubr.bf16.mxu1 %v18110_v12 }
 0x4c7   : > { %4834 = vmatpush1.bf16.msra.mxu1 %v4778_v22  ;;  %v4765_v60 = vsel %vm4760_vm9, %v4753_v51, %v4755_v19  ;;  %v4965_v38 = vpop.permute.xlu0 %4964  ;;  %v4766_v11 = vsel %vm4760_vm9, %v4755_v19, %v4757_v21  ;;  %4906 = vmatprep.mubr.bf16.mxu0 %v18110_v12 }
 0x4c8   : > { %6300 = vrot.lane.b32.xlu1 %v14235_v26, %s12523_s14  ;;  %11547 = vmatprep.subr.msk.bf16.mxu0 %vm1119_vm2, %v4766_v11  ;;  %v4784_v44 = vsel %vm1119_vm2, %v4765_v60, 0  ;;  %s11681_s14 = sld [smem:[#allocation6 + $0x281]] }
 0x4c9   : > { %6510 = vrot.lane.b32.xlu0 %v13571_v2, %s12524_s17  ;;  %4875 = vmatpush1.bf16.msra.mxu0 %v4784_v44 }
 0x4ca   : > { %v4759_v58 = vpop.permute.xlu1 %4758  ;;  %11858 = vmatprep.subr.bf16.mxu1 %v18118_v54 }
 0x4cb   : > { %v4767_v51 = vsel %vm4760_vm9, %v4757_v21, %v4759_v58  ;;  %v4969_v25 = vpop.permute.xlu0 %4968 }
 0x4cc   : > { %v4790_v16 = vsel %vm1119_vm2, %v4767_v51, 0  ;;  %6508 = vrot.lane.b32.xlu1 %v13554_v8, %s12524_s17  ;;  %11546 = vmatmul.mubr.msk.bf16.vlgmr.msra.gmra.mrb[0].mxu1 %vm1287_vm5, %v11542_v28 }
 0x4cd   : > { %6514 = vrot.lane.b32.xlu0 %v13582_v27, %s12524_s17  ;;  %11548 = vmatmul.mubr.msk.bf16.vlgmr.msra.gmra.mrb[4].mxu0 %vm1287_vm5, %v11542_v28 }
 0x4ce   : > { %11859 = vmatpush3.bf16.msra.mxu1 %v4790_v16  ;;  %v4967_v5 = vpop.permute.xlu1 %4966  ;;  %11860 = vmatprep.mubr.msk.bf16.mxu1 %vm12509_vm6, %v18118_v54 }
 0x4cf   : > { %v4981_v21 = vsel %vm4980_vm10, %v4965_v38, %v4967_v5  ;;  %v4973_v22 = vpop.permute.xlu0 %4972  ;;  %v4982_v19 = vsel %vm4980_vm10, %v4967_v5, %v4969_v25  ;;  %5044 = vmatprep.mubr.bf16.mxu0 %v18110_v12  ;;  %v11550_v38 = vld [vmem:[%s17828_s3 + $0x22] sm:$0x3] }
 0x4d0   : > { %6512 = vrot.lane.b32.xlu1 %v13558_v42, %s12524_s17  ;;  %11551 = vmatprep.subr.msk.bf16.mxu0 %vm1119_vm2, %v4982_v19  ;;  %v4992_v60 = vsel %vm1119_vm2, %v4981_v21, 0 }
 0x4d1   : > { %6518 = vrot.lane.b32.xlu0 %v13603_v41, %s12524_s17  ;;  %5013 = vmatpush1.bf16.msra.mxu0 %v4992_v60 }
 0x4d2   : > { %v4971_v11 = vpop.permute.xlu1 %4970 }
 0x4d3   : > { %v4983_v44 = vsel %vm4980_vm10, %v4969_v25, %v4971_v11  ;;  %v4977_v58 = vpop.permute.xlu0 %4976  ;;  %v4984_v51 = vsel %vm4980_vm10, %v4971_v11, %v4973_v22 }
 0x4d4   : > { %6516 = vrot.lane.b32.xlu1 %v13573_v43, %s12524_s17  ;;  %11861 = vmatmul.mubr.msk.bf16.vlgmr.msra.gmra.mrb[4].mxu1 %vm1287_vm5, %v11542_v28  ;;  %v4998_v16 = vsel %vm1119_vm2, %v4983_v44, 0 }
 0x4d5   : > { %6726 = vrot.lane.b32.xlu0 %v13541_v57, %s12525_s20  ;;  %11552 = vmatmul.mubr.msk.bf16.vlgmr.msra.gmra.mrb[0].mxu0 %vm1287_vm5, %v11550_v38 }
 0x4d6   : > { %11553 = vmatprep.subr.msk.bf16.mxu1 %vm1119_vm2, %v4984_v51  ;;  %v4975_v5 = vpop.permute.xlu1 %4974  ;;  %5085 = vmatprep.mubr.bf16.mxu1 %v18110_v12 }
 0x4d7   : > { %5054 = vmatpush1.bf16.msra.mxu1 %v4998_v16  ;;  %v4985_v25 = vsel %vm4980_vm10, %v4973_v22, %v4975_v5  ;;  %v5187_v21 = vpop.permute.xlu0 %5186  ;;  %v4986_v19 = vsel %vm4980_vm10, %v4975_v5, %v4977_v58  ;;  %5126 = vmatprep.mubr.bf16.mxu0 %v18110_v12 }
 0x4d8   : > { %6520 = vrot.lane.b32.xlu1 %v14235_v26, %s12524_s17  ;;  %11555 = vmatprep.subr.msk.bf16.mxu0 %vm1119_vm2, %v4986_v19  ;;  %v5004_v28 = vsel %vm1119_vm2, %v4985_v25, 0  ;;  %s11690_s17 = sld [smem:[#allocation6 + $0x300]] }
 0x4d9   : > { %6730 = vrot.lane.b32.xlu0 %v13571_v2, %s12525_s20  ;;  %5095 = vmatpush1.bf16.msra.mxu0 %v5004_v28 }
 0x4da   : > { %v4979_v60 = vpop.permute.xlu1 %4978  ;;  %11864 = vmatprep.subr.bf16.mxu1 %v18118_v54 }
 0x4db   : > { %v4987_v22 = vsel %vm4980_vm10, %v4977_v58, %v4979_v60  ;;  %v5191_v11 = vpop.permute.xlu0 %5190 }
 0x4dc   : > { %v5010_v44 = vsel %vm1119_vm2, %v4987_v22, 0  ;;  %6728 = vrot.lane.b32.xlu1 %v13554_v8, %s12525_s20  ;;  %11554 = vmatmul.mubr.msk.bf16.vlgmr.msra.gmra.mrb[0].mxu1 %vm1287_vm5, %v11550_v38 }
 0x4dd   : > { %6734 = vrot.lane.b32.xlu0 %v13582_v27, %s12525_s20  ;;  %11556 = vmatmul.mubr.msk.bf16.vlgmr.msra.gmra.mrb[4].mxu0 %vm1287_vm5, %v11550_v38 }
 0x4de   : > { %11865 = vmatpush3.bf16.msra.mxu1 %v5010_v44  ;;  %v5189_v51 = vpop.permute.xlu1 %5188  ;;  %11866 = vmatprep.mubr.msk.bf16.mxu1 %vm12509_vm6, %v18118_v54 }
 0x4df   : > { %v5203_v58 = vsel %vm5202_vm11, %v5187_v21, %v5189_v51  ;;  %v5195_v16 = vpop.permute.xlu0 %5194  ;;  %v5204_v5 = vsel %vm5202_vm11, %v5189_v51, %v5191_v11  ;;  %5266 = vmatprep.mubr.bf16.mxu0 %v18110_v12  ;;  %v11558_v21 = vld [vmem:[%s17828_s3 + $0x24] sm:$0x3] }
 0x4e0   : > { %6732 = vrot.lane.b32.xlu1 %v13558_v42, %s12525_s20  ;;  %11559 = vmatprep.subr.msk.bf16.mxu0 %vm1119_vm2, %v5204_v5  ;;  %v5214_v25 = vsel %vm1119_vm2, %v5203_v58, 0 }
 0x4e1   : > { %6738 = vrot.lane.b32.xlu0 %v13603_v41, %s12525_s20  ;;  %5235 = vmatpush1.bf16.msra.mxu0 %v5214_v25 }
 0x4e2   : > { %v5193_v19 = vpop.permute.xlu1 %5192 }
 0x4e3   : > { %v5205_v28 = vsel %vm5202_vm11, %v5191_v11, %v5193_v19  ;;  %v5199_v60 = vpop.permute.xlu0 %5198  ;;  %v5206_v22 = vsel %vm5202_vm11, %v5193_v19, %v5195_v16 }
 0x4e4   : > { %6736 = vrot.lane.b32.xlu1 %v13573_v43, %s12525_s20  ;;  %11867 = vmatmul.mubr.msk.bf16.vlgmr.msra.gmra.mrb[4].mxu1 %vm1287_vm5, %v11550_v38  ;;  %v5220_v44 = vsel %vm1119_vm2, %v5205_v28, 0 }
 0x4e5   : > { %6946 = vrot.lane.b32.xlu0 %v13541_v57, %s12526_s23  ;;  %11560 = vmatmul.mubr.msk.bf16.vlgmr.msra.gmra.mrb[0].mxu0 %vm1287_vm5, %v11558_v21 }
 0x4e6   : > { %11561 = vmatprep.subr.msk.bf16.mxu1 %vm1119_vm2, %v5206_v22  ;;  %v5197_v51 = vpop.permute.xlu1 %5196  ;;  %5307 = vmatprep.mubr.bf16.mxu1 %v18110_v12 }
 0x4e7   : > { %5276 = vmatpush1.bf16.msra.mxu1 %v5220_v44  ;;  %v5207_v11 = vsel %vm5202_vm11, %v5195_v16, %v5197_v51  ;;  %v5407_v58 = vpop.permute.xlu0 %5406  ;;  %v5208_v5 = vsel %vm5202_vm11, %v5197_v51, %v5199_v60  ;;  %5348 = vmatprep.mubr.bf16.mxu0 %v18110_v12 }
 0x4e8   : > { %6740 = vrot.lane.b32.xlu1 %v14235_v26, %s12525_s20  ;;  %11563 = vmatprep.subr.msk.bf16.mxu0 %vm1119_vm2, %v5208_v5  ;;  %v5226_v57 = vsel %vm1119_vm2, %v5207_v11, 0  ;;  %v14577_v11 = vld [vmem:[%s12672_s27 + $0x10] sm:$0xff]  ;;  %s11693_s20 = sld [smem:[#allocation6 + $0x303]] }
 0x4e9   : > { %6950 = vrot.lane.b32.xlu0 %v13571_v2, %s12526_s23  ;;  %5317 = vmatpush1.bf16.msra.mxu0 %v5226_v57  ;;  %v14558_v2 = vld [vmem:[%s12672_s27 + $0x8] sm:$0xff] }
 0x4ea   : > { %v5201_v38 = vpop.permute.xlu1 %5200  ;;  %11870 = vmatprep.subr.bf16.mxu1 %v18118_v54  ;;  %v8393_v28 = vmul.f32 %v14558_v2, %v13594_v62 }
 0x4eb   : > { %v5209_v16 = vsel %vm5202_vm11, %v5199_v60, %v5201_v38  ;;  %v5411_v25 = vpop.permute.xlu0 %5410 }
 0x4ec   : > { %v5232_v19 = vsel %vm1119_vm2, %v5209_v16, 0  ;;  %6948 = vrot.lane.b32.xlu1 %v13554_v8, %s12526_s23  ;;  %11562 = vmatmul.mubr.msk.bf16.vlgmr.msra.gmra.mrb[0].mxu1 %vm1287_vm5, %v11558_v21  ;;  %v8411_v51 = vrot.slane %v8393_v28, %v12646_v3 }
 0x4ed   : > { %6954 = vrot.lane.b32.xlu0 %v13582_v27, %s12526_s23  ;;  %11564 = vmatmul.mubr.msk.bf16.vlgmr.msra.gmra.mrb[4].mxu0 %vm1287_vm5, %v11558_v21 }
 0x4ee   : > { %11871 = vmatpush3.bf16.msra.mxu1 %v5232_v19  ;;  %v5409_v60 = vpop.permute.xlu1 %5408  ;;  %11872 = vmatprep.mubr.msk.bf16.mxu1 %vm12509_vm6, %v18118_v54  ;;  %v8415_v19 = vrot.slane %v8393_v28, %v12658_v7  ;;  %v14600_v28 = vld [vmem:[%s12672_s27 + $0x18] sm:$0xff] }
 0x4ef   : > { %v5423_v8 = vsel %vm5422_vm12, %v5407_v58, %v5409_v60  ;;  %v5415_v22 = vpop.permute.xlu0 %5414  ;;  %v5424_v44 = vsel %vm5422_vm12, %v5409_v60, %v5411_v25  ;;  %5486 = vmatprep.mubr.bf16.mxu0 %v18110_v12  ;;  %v8394_v58 = vmul.f32 %v14577_v11, %v13594_v62 }
 0x4f0   : > { %6952 = vrot.lane.b32.xlu1 %v13558_v42, %s12526_s23  ;;  %11567 = vmatprep.subr.msk.bf16.mxu0 %vm1119_vm2, %v5424_v44  ;;  %v5434_v27 = vsel %vm1119_vm2, %v5423_v8, 0  ;;  %v11566_v42 = vld [vmem:[%s17828_s3 + $0x26] sm:$0x3]  ;;  %v8395_v44 = vmul.f32 %v14600_v28, %v13594_v62 }
 0x4f1   : > { %6958 = vrot.lane.b32.xlu0 %v13603_v41, %s12526_s23  ;;  %5455 = vmatpush1.bf16.msra.mxu0 %v5434_v27 }
 0x4f2   : > { %v5413_v5 = vpop.permute.xlu1 %5412 }
 0x4f3   : > { %v5425_v57 = vsel %vm5422_vm12, %v5411_v25, %v5413_v5  ;;  %v5419_v38 = vpop.permute.xlu0 %5418  ;;  %v5426_v16 = vsel %vm5422_vm12, %v5413_v5, %v5415_v22  ;;  %v8419_v25 = vrot.slane %v8394_v58, %v12646_v3 }
 0x4f4   : > { %6956 = vrot.lane.b32.xlu1 %v13573_v43, %s12526_s23  ;;  %11873 = vmatmul.mubr.msk.bf16.vlgmr.msra.gmra.mrb[4].mxu1 %vm1287_vm5, %v11558_v21  ;;  %v5440_v41 = vsel %vm1119_vm2, %v5425_v57, 0 }
 0x4f5   : > { %8436 = vrot.lane.b32.xlu0 %v8411_v51, %s12498_s8  ;;  %11568 = vmatmul.mubr.msk.bf16.vlgmr.msra.gmra.mrb[0].mxu0 %vm1287_vm5, %v11566_v42  ;;  %v8470_v51 = vstv %s14571_s26  ;;  %s15468_s26 = sld [smem:[#allocation6 + $0x381]] }
 0x4f6   : > { %11569 = vmatprep.subr.msk.bf16.mxu1 %vm1119_vm2, %v5426_v16  ;;  %v5417_v60 = vpop.permute.xlu1 %5416  ;;  %5527 = vmatprep.mubr.bf16.mxu1 %v18110_v12  ;;  %v8427_v16 = vrot.slane %v8395_v44, %v12646_v3 }
 0x4f7   : > { %5496 = vmatpush1.bf16.msra.mxu1 %v5440_v41  ;;  %v5427_v43 = vsel %vm5422_vm12, %v5415_v22, %v5417_v60  ;;  %v5627_v21 = vpop.permute.xlu0 %5626  ;;  %v5428_v8 = vsel %vm5422_vm12, %v5417_v60, %v5419_v38  ;;  %5568 = vmatprep.mubr.bf16.mxu0 %v18110_v12  ;;  %v14613_v41 = vld [vmem:[%s12672_s27] sm:$0xff] }
 0x4f8   : > { %8438 = vrot.lane.b32.xlu1 %v8415_v19, %s12498_s8  ;;  %11571 = vmatprep.subr.msk.bf16.mxu0 %vm1119_vm2, %v5428_v8  ;;  %v5446_v27 = vsel %vm1119_vm2, %v5427_v43, 0  ;;  %v8471_v62 = vmul.f32 %v14613_v41, %v8470_v51 }
 0x4f9   : > { %8440 = vrot.lane.b32.xlu0 %v8419_v25, %s12498_s8  ;;  %5537 = vmatpush1.bf16.msra.mxu0 %v5446_v27  ;;  %v8423_v25 = vrot.slane %v8394_v58, %v12658_v7  ;;  %v8472_v27 = vmul.f32 %v14558_v2, %v8470_v51 }
 0x4fa   : > { %v5421_v22 = vpop.permute.xlu1 %5420  ;;  %11876 = vmatprep.subr.bf16.mxu1 %v18118_v54 }
 0x4fb   : > { %v5429_v5 = vsel %vm5422_vm12, %v5419_v38, %v5421_v22  ;;  %v5631_v57 = vpop.permute.xlu0 %5630 }
 0x4fc   : > { %v5452_v19 = vsel %vm1119_vm2, %v5429_v5, 0  ;;  %6960 = vrot.lane.b32.xlu1 %v14235_v26, %s12526_s23  ;;  %11570 = vmatmul.mubr.msk.bf16.vlgmr.msra.gmra.mrb[0].mxu1 %vm1287_vm5, %v11566_v42  ;;  %v8482_v26 = vrot.slane %v8471_v62, %v18053_v23  ;;  %s16842_s23 = sld [smem:[#allocation4 + $0x181]] }
 0x4fd   : > { %11572 = vmatmul.mubr.msk.bf16.vlgmr.msra.gmra.mrb[4].mxu0 %vm1287_vm5, %v11566_v42  ;;  %11877 = vmatpush3.bf16.msra.mxu1 %v5452_v19 }
 0x4fe   : > { %v5629_v38 = vpop.permute.xlu1 %5628  ;;  %11878 = vmatprep.mubr.msk.bf16.mxu1 %vm12509_vm6, %v18118_v54  ;;  %5706 = vmatprep.mubr.bf16.mxu0 %v18110_v12 }
 0x4ff   : > { %v5643_v60 = vsel %vm5642_vm13, %v5627_v21, %v5629_v38  ;;  %v5635_v43 = vpop.permute.xlu0 %5634  ;;  %v5644_v8 = vsel %vm5642_vm13, %v5629_v38, %v5631_v57  ;;  %8444 = vrot.lane.b32.xlu0 %v8427_v16, %s12498_s8  ;;  %v14636_v21 = vld [vmem:[%s17828_s3 + $0x28] sm:$0x3]  ;;  %v8431_v38 = vrot.slane %v8395_v44, %v12658_v7 }
 0x500   : > { %11575 = vmatprep.subr.msk.bf16.mxu0 %vm1119_vm2, %v5644_v8  ;;  %v5654_v58 = vsel %vm1119_vm2, %v5643_v60, 0  ;;  %8442 = vrot.lane.b32.xlu1 %v8423_v25, %s12498_s8  ;;  %v8490_v60 = vrot.slane %v8472_v27, %v18053_v23  ;;  %v8473_v8 = vmul.f32 %v14577_v11, %v8470_v51 }
 0x501   : > { %5675 = vmatpush1.bf16.msra.mxu0 %v5654_v58  ;;  %v8486_v58 = vrot.slane %v8471_v62, %v18042_v1 }
 0x502   : > { %v5633_v22 = vpop.permute.xlu1 %5632 }
 0x503   : > { %v5645_v5 = vsel %vm5642_vm13, %v5631_v57, %v5633_v22  ;;  %v5639_v16 = vpop.permute.xlu0 %5638  ;;  %v5646_v19 = vsel %vm5642_vm13, %v5633_v22, %v5635_v43  ;;  %8511 = vrot.lane.b32.xlu0 %v8482_v26, %s12498_s8 }
 0x504   : > { %11879 = vmatmul.mubr.msk.bf16.vlgmr.msra.gmra.mrb[4].mxu1 %vm1287_vm5, %v11566_v42  ;;  %11577 = vmatprep.subr.msk.bf16.mxu1 %vm1119_vm2, %v5646_v19  ;;  %v5660_v25 = vsel %vm1119_vm2, %v5645_v5, 0  ;;  %v8498_v5 = vrot.slane %v8473_v8, %v18053_v23  ;;  %v8474_v19 = vmul.f32 %v14600_v28, %v8470_v51  ;;  %v8549_v51 = vstv %s11652_s10  ;;  %s11671_s10 = sld [smem:[#allocation6 + $0x201]] }
 0x505   : > { %11576 = vmatmul.mubr.msk.bf16.vlgmr.msra.gmra.mrb[0].mxu0 %vm1287_vm5, %v14636_v21  ;;  %5716 = vmatpush1.bf16.msra.mxu1 %v5660_v25 }
 0x506   : > { %v5637_v57 = vpop.permute.xlu1 %5636  ;;  %5747 = vmatprep.mubr.bf16.mxu1 %v18110_v12  ;;  %5788 = vmatprep.mubr.bf16.mxu0 %v18110_v12 }
 0x507   : > { %v5647_v42 = vsel %vm5642_vm13, %v5635_v43, %v5637_v57  ;;  %v5847_v44 = vpop.permute.xlu0 %5846  ;;  %v5648_v26 = vsel %vm5642_vm13, %v5637_v57, %v5639_v16  ;;  %11882 = vmatprep.subr.bf16.mxu1 %v18118_v54  ;;  %8446 = vrot.lane.b32.xlu1 %v8431_v38, %s12498_s8  ;;  %v8494_v38 = vrot.slane %v8472_v27, %v18042_v1 }
 0x508   : > { %11579 = vmatprep.subr.msk.bf16.mxu0 %vm1119_vm2, %v5648_v26  ;;  %v5666_v22 = vsel %vm1119_vm2, %v5647_v42, 0  ;;  %8515 = vrot.lane.b32.xlu0 %v8490_v60, %s12498_s8  ;;  %v8506_v60 = vrot.slane %v8474_v19, %v18053_v23 }
 0x509   : > { %5757 = vmatpush1.bf16.msra.mxu0 %v5666_v22  ;;  %v8550_v22 = vmul.f32 %v14613_v41, %v8549_v51 }
 0x50a   : > { %v5641_v43 = vpop.permute.xlu1 %5640 }
 0x50b   : > { %v5649_v25 = vsel %vm5642_vm13, %v5639_v16, %v5641_v43  ;;  %v5851_v57 = vpop.permute.xlu0 %5850  ;;  %8513 = vrot.lane.b32.xlu1 %v8486_v58, %s12498_s8  ;;  %v8502_v58 = vrot.slane %v8473_v8, %v18042_v1 }
 0x50c   : > { %v5672_v62 = vsel %vm1119_vm2, %v5649_v25, 0  ;;  %11578 = vmatmul.mubr.msk.bf16.vlgmr.msra.gmra.mrb[0].mxu1 %vm1287_vm5, %v14636_v21  ;;  %8519 = vrot.lane.b32.xlu0 %v8498_v5, %s12498_s8  ;;  %v8551_v25 = vmul.f32 %v14558_v2, %v8549_v51 }
 0x50d   : > { %11580 = vmatmul.mubr.msk.bf16.vlgmr.msra.gmra.mrb[4].mxu0 %vm1287_vm5, %v14636_v21  ;;  %11883 = vmatpush3.bf16.msra.mxu1 %v5672_v62 }
 0x50e   : > { %v5849_v16 = vpop.permute.xlu1 %5848  ;;  %11884 = vmatprep.mubr.msk.bf16.mxu1 %vm12509_vm6, %v18118_v54  ;;  %5926 = vmatprep.mubr.bf16.mxu0 %v18110_v12 }
 0x50f   : > { %v5863_v27 = vsel %vm5862_vm14, %v5847_v44, %v5849_v16  ;;  %v5855_v42 = vpop.permute.xlu0 %5854  ;;  %v5864_v26 = vsel %vm5862_vm14, %v5849_v16, %v5851_v57  ;;  %8517 = vrot.lane.b32.xlu1 %v8494_v38, %s12498_s8  ;;  %v14685_v44 = vld [vmem:[%s17828_s3 + $0x2a] sm:$0x3]  ;;  %v8561_v16 = vrot.slane %v8550_v22, %v18054_v35 }
 0x510   : > { %11583 = vmatprep.subr.msk.bf16.mxu0 %vm1119_vm2, %v5864_v26  ;;  %v5874_v5 = vsel %vm1119_vm2, %v5863_v27, 0  ;;  %8523 = vrot.lane.b32.xlu0 %v8506_v60, %s12498_s8  ;;  %v8510_v27 = vrot.slane %v8474_v19, %v18042_v1  ;;  %v8569_v26 = vrot.slane %v8551_v25, %v18054_v35  ;;  %v8552_v19 = vmul.f32 %v14577_v11, %v8549_v51 }
 0x511   : > { %5895 = vmatpush1.bf16.msra.mxu0 %v5874_v5 }
 0x512   : > { %v5853_v43 = vpop.permute.xlu1 %5852 }
 0x513   : > { %v5865_v38 = vsel %vm5862_vm14, %v5851_v57, %v5853_v43  ;;  %v5859_v8 = vpop.permute.xlu0 %5858  ;;  %v5866_v62 = vsel %vm5862_vm14, %v5853_v43, %v5855_v42  ;;  %8521 = vrot.lane.b32.xlu1 %v8502_v58, %s12498_s8 }
 0x514   : > { %11885 = vmatmul.mubr.msk.bf16.vlgmr.msra.gmra.mrb[4].mxu1 %vm1287_vm5, %v14636_v21  ;;  %11585 = vmatprep.subr.msk.bf16.mxu1 %vm1119_vm2, %v5866_v62  ;;  %v5880_v60 = vsel %vm1119_vm2, %v5865_v38, 0  ;;  %v8565_v38 = vrot.slane %v8550_v22, %v18047_v59  ;;  %v8573_v22 = vrot.slane %v8551_v25, %v18047_v59 }
 0x515   : > { %11584 = vmatmul.mubr.msk.bf16.vlgmr.msra.gmra.mrb[0].mxu0 %vm1287_vm5, %v14685_v44  ;;  %5936 = vmatpush1.bf16.msra.mxu1 %v5880_v60 }
 0x516   : > { %v5857_v57 = vpop.permute.xlu1 %5856  ;;  %5967 = vmatprep.mubr.bf16.mxu1 %v18110_v12  ;;  %6008 = vmatprep.mubr.bf16.mxu0 %v18110_v12 }
 0x517   : > { %v5867_v21 = vsel %vm5862_vm14, %v5855_v42, %v5857_v57  ;;  %v6067_v58 = vpop.permute.xlu0 %6066  ;;  %v5868_v5 = vsel %vm5862_vm14, %v5857_v57, %v5859_v8  ;;  %11888 = vmatprep.subr.bf16.mxu1 %v18118_v54  ;;  %8590 = vrot.lane.b32.xlu0 %v8561_v16, %s12498_s8  ;;  %v8577_v57 = vrot.slane %v8552_v19, %v18054_v35 }
 0x518   : > { %11587 = vmatprep.subr.msk.bf16.mxu0 %vm1119_vm2, %v5868_v5  ;;  %v5886_v43 = vsel %vm1119_vm2, %v5867_v21, 0  ;;  %8525 = vrot.lane.b32.xlu1 %v8510_v27, %s12498_s8  ;;  %v8553_v16 = vmul.f32 %v14600_v28, %v8549_v51 }
 0x519   : > { %5977 = vmatpush1.bf16.msra.mxu0 %v5886_v43 }
 0x51a   : > { %v5861_v62 = vpop.permute.xlu1 %5860  ;;  %v8585_v25 = vrot.slane %v8553_v16, %v18054_v35 }
 0x51b   : > { %v5869_v42 = vsel %vm5862_vm14, %v5859_v8, %v5861_v62  ;;  %v6071_v60 = vpop.permute.xlu0 %6070  ;;  %8594 = vrot.lane.b32.xlu0 %v8569_v26, %s12498_s8  ;;  %v14722_v8 = vstv %s11653_s13  ;;  %s11680_s13 = sld [smem:[#allocation6 + $0x280]] }
 0x51c   : > { %v5892_v47 = vsel %vm1119_vm2, %v5869_v42, 0  ;;  %11586 = vmatmul.mubr.msk.bf16.vlgmr.msra.gmra.mrb[0].mxu1 %vm1287_vm5, %v14685_v44  ;;  %8592 = vrot.lane.b32.xlu1 %v8565_v38, %s12498_s8  ;;  %v8629_v5 = vmul.f32 %v14613_v41, %v14722_v8 }
 0x51d   : > { %11588 = vmatmul.mubr.msk.bf16.vlgmr.msra.gmra.mrb[4].mxu0 %vm1287_vm5, %v14685_v44  ;;  %11889 = vmatpush3.bf16.msra.mxu1 %v5892_v47 }
 0x51e   : > { %v6069_v27 = vpop.permute.xlu1 %6068  ;;  %11890 = vmatprep.mubr.msk.bf16.mxu1 %vm12509_vm6, %v18118_v54  ;;  %6146 = vmatprep.mubr.bf16.mxu0 %v18110_v12 }
 0x51f   : > { %v6083_v51 = vsel %vm6082_vm15, %v6067_v58, %v6069_v27  ;;  %v6075_v26 = vpop.permute.xlu0 %6074  ;;  %v6084_v21 = vsel %vm6082_vm15, %v6069_v27, %v6071_v60  ;;  %8598 = vrot.lane.b32.xlu0 %v8577_v57, %s12498_s8  ;;  %v14739_v58 = vld [vmem:[%s17828_s3 + $0x2c] sm:$0x3]  ;;  %v8581_v57 = vrot.slane %v8552_v19, %v18047_v59  ;;  %v8640_v27 = vrot.slane %v8629_v5, %v18036_v31 }
 0x520   : > { %11591 = vmatprep.subr.msk.bf16.mxu0 %vm1119_vm2, %v6084_v21  ;;  %v6094_v47 = vsel %vm1119_vm2, %v6083_v51, 0  ;;  %8596 = vrot.lane.b32.xlu1 %v8573_v22, %s12498_s8  ;;  %v8630_v51 = vmul.f32 %v14558_v2, %v14722_v8 }
 0x521   : > { %6115 = vmatpush1.bf16.msra.mxu0 %v6094_v47 }
 0x522   : > { %v6073_v43 = vpop.permute.xlu1 %6072 }
 0x523   : > { %v6085_v38 = vsel %vm6082_vm15, %v6071_v60, %v6073_v43  ;;  %v6079_v62 = vpop.permute.xlu0 %6078  ;;  %v6086_v42 = vsel %vm6082_vm15, %v6073_v43, %v6075_v26  ;;  %8602 = vrot.lane.b32.xlu0 %v8585_v25, %s12498_s8  ;;  %v8589_v25 = vrot.slane %v8553_v16, %v18047_v59  ;;  %v8648_v43 = vrot.slane %v8630_v51, %v18036_v31 }
 0x524   : > { %11891 = vmatmul.mubr.msk.bf16.vlgmr.msra.gmra.mrb[4].mxu1 %vm1287_vm5, %v14685_v44  ;;  %11593 = vmatprep.subr.msk.bf16.mxu1 %vm1119_vm2, %v6086_v42  ;;  %v6100_v22 = vsel %vm1119_vm2, %v6085_v38, 0  ;;  %v8644_v16 = vrot.slane %v8629_v5, %v18052_v48 }
 0x525   : > { %11592 = vmatmul.mubr.msk.bf16.vlgmr.msra.gmra.mrb[0].mxu0 %vm1287_vm5, %v14739_v58  ;;  %6156 = vmatpush1.bf16.msra.mxu1 %v6100_v22 }
 0x526   : > { %v6077_v60 = vpop.permute.xlu1 %6076  ;;  %6187 = vmatprep.mubr.bf16.mxu1 %v18110_v12  ;;  %6228 = vmatprep.mubr.bf16.mxu0 %v18110_v12 }
 0x527   : > { %v6087_v44 = vsel %vm6082_vm15, %v6075_v26, %v6077_v60  ;;  %v6287_v19 = vpop.permute.xlu0 %6286  ;;  %v6088_v21 = vsel %vm6082_vm15, %v6077_v60, %v6079_v62  ;;  %11894 = vmatprep.subr.bf16.mxu1 %v18118_v54  ;;  %8600 = vrot.lane.b32.xlu1 %v8581_v57, %s12498_s8  ;;  %v8631_v26 = vmul.f32 %v14577_v11, %v14722_v8 }
 0x528   : > { %11595 = vmatprep.subr.msk.bf16.mxu0 %vm1119_vm2, %v6088_v21  ;;  %v6106_v47 = vsel %vm1119_vm2, %v6087_v44, 0  ;;  %8669 = vrot.lane.b32.xlu0 %v8640_v27, %s12498_s8  ;;  %v8652_v21 = vrot.slane %v8630_v51, %v18052_v48 }
 0x529   : > { %6197 = vmatpush1.bf16.msra.mxu0 %v6106_v47  ;;  %v8656_v27 = vrot.slane %v8631_v26, %v18036_v31 }
 0x52a   : > { %v6081_v38 = vpop.permute.xlu1 %6080 }
 0x52b   : > { %v6089_v42 = vsel %vm6082_vm15, %v6079_v62, %v6081_v38  ;;  %v6291_v22 = vpop.permute.xlu0 %6290  ;;  %8604 = vrot.lane.b32.xlu1 %v8589_v25, %s12498_s8  ;;  %v8632_v25 = vmul.f32 %v14600_v28, %v14722_v8 }
 0x52c   : > { %v6112_v57 = vsel %vm1119_vm2, %v6089_v42, 0  ;;  %11594 = vmatmul.mubr.msk.bf16.vlgmr.msra.gmra.mrb[0].mxu1 %vm1287_vm5, %v14739_v58  ;;  %8673 = vrot.lane.b32.xlu0 %v8648_v43, %s12498_s8  ;;  %v8886_v43 = vstv %s11660_s16  ;;  %s11683_s16 = sld [smem:[#allocation6 + $0x283]] }
 0x52d   : > { %11596 = vmatmul.mubr.msk.bf16.vlgmr.msra.gmra.mrb[4].mxu0 %vm1287_vm5, %v14739_v58  ;;  %11895 = vmatpush3.bf16.msra.mxu1 %v6112_v57  ;;  %v8664_v8 = vrot.slane %v8632_v25, %v18036_v31  ;;  %v8887_v57 = vmul.f32 %v14613_v41, %v8886_v43 }
 0x52e   : > { %v6289_v62 = vpop.permute.xlu1 %6288  ;;  %11896 = vmatprep.mubr.msk.bf16.mxu1 %vm12509_vm6, %v18118_v54  ;;  %6366 = vmatprep.mubr.bf16.mxu0 %v18110_v12 }
 0x52f   : > { %v6303_v5 = vsel %vm6302_vm1, %v6287_v19, %v6289_v62  ;;  %v6295_v60 = vpop.permute.xlu0 %6294  ;;  %v6304_v44 = vsel %vm6302_vm1, %v6289_v62, %v6291_v22  ;;  %8671 = vrot.lane.b32.xlu1 %v8644_v16, %s12498_s8  ;;  %v14792_v19 = vld [vmem:[%s17828_s3 + $0x2e] sm:$0x3]  ;;  %v8660_v62 = vrot.slane %v8631_v26, %v18052_v48  ;;  %v8898_v26 = vrot.slane %v8887_v57, %v12646_v3 }
 0x530   : > { %11599 = vmatprep.subr.msk.bf16.mxu0 %vm1119_vm2, %v6304_v44  ;;  %v6314_v47 = vsel %vm1119_vm2, %v6303_v5, 0  ;;  %8677 = vrot.lane.b32.xlu0 %v8656_v27, %s12498_s8  ;;  %v8888_v5 = vmul.f32 %v14558_v2, %v8886_v43 }
 0x531   : > { %6335 = vmatpush1.bf16.msra.mxu0 %v6314_v47 }
 0x532   : > { %v6293_v38 = vpop.permute.xlu1 %6292 }
 0x533   : > { %v6305_v42 = vsel %vm6302_vm1, %v6291_v22, %v6293_v38  ;;  %v6299_v51 = vpop.permute.xlu0 %6298  ;;  %v6306_v16 = vsel %vm6302_vm1, %v6293_v38, %v6295_v60  ;;  %8675 = vrot.lane.b32.xlu1 %v8652_v21, %s12498_s8  ;;  %v8668_v38 = vrot.slane %v8632_v25, %v18052_v48  ;;  %v8902_v25 = vrot.slane %v8887_v57, %v12658_v7 }
 0x534   : > { %11897 = vmatmul.mubr.msk.bf16.vlgmr.msra.gmra.mrb[4].mxu1 %vm1287_vm5, %v14739_v58  ;;  %11601 = vmatprep.subr.msk.bf16.mxu1 %vm1119_vm2, %v6306_v16  ;;  %v6320_v27 = vsel %vm1119_vm2, %v6305_v42, 0 }
 0x535   : > { %11600 = vmatmul.mubr.msk.bf16.vlgmr.msra.gmra.mrb[0].mxu0 %vm1287_vm5, %v14792_v19  ;;  %6376 = vmatpush1.bf16.msra.mxu1 %v6320_v27  ;;  %v8889_v27 = vmul.f32 %v14577_v11, %v8886_v43 }
 0x536   : > { %v6297_v22 = vpop.permute.xlu1 %6296  ;;  %6407 = vmatprep.mubr.bf16.mxu1 %v18110_v12  ;;  %6448 = vmatprep.mubr.bf16.mxu0 %v18110_v12 }
 0x537   : > { %v6307_v44 = vsel %vm6302_vm1, %v6295_v60, %v6297_v22  ;;  %v6507_v58 = vpop.permute.xlu0 %6506  ;;  %v6308_v21 = vsel %vm6302_vm1, %v6297_v22, %v6299_v51  ;;  %11900 = vmatprep.subr.bf16.mxu1 %v18118_v54  ;;  %8681 = vrot.lane.b32.xlu0 %v8664_v8, %s12498_s8  ;;  %v8906_v8 = vrot.slane %v8888_v5, %v12646_v3 }
 0x538   : > { %11603 = vmatprep.subr.msk.bf16.mxu0 %vm1119_vm2, %v6308_v21  ;;  %v6326_v47 = vsel %vm1119_vm2, %v6307_v44, 0  ;;  %8679 = vrot.lane.b32.xlu1 %v8660_v62, %s12498_s8 }
 0x539   : > { %6417 = vmatpush1.bf16.msra.mxu0 %v6326_v47  ;;  %v8890_v47 = vmul.f32 %v14600_v28, %v8886_v43 }
 0x53a   : > { %v6301_v60 = vpop.permute.xlu1 %6300 }
 0x53b   : > { %v6309_v42 = vsel %vm6302_vm1, %v6299_v51, %v6301_v60  ;;  %v6511_v16 = vpop.permute.xlu0 %6510  ;;  %8927 = vrot.lane.b32.xlu0 %v8898_v26, %s12498_s8  ;;  %v8914_v26 = vrot.slane %v8889_v27, %v12646_v3 }
 0x53c   : > { %v6332_v22 = vsel %vm1119_vm2, %v6309_v42, 0  ;;  %11602 = vmatmul.mubr.msk.bf16.vlgmr.msra.gmra.mrb[0].mxu1 %vm1287_vm5, %v14792_v19  ;;  %8683 = vrot.lane.b32.xlu1 %v8668_v38, %s12498_s8  ;;  %v14840_v38 = vstv %s11661_s19  ;;  %s11692_s19 = sld [smem:[#allocation6 + $0x302]] }
 0x53d   : > { %11604 = vmatmul.mubr.msk.bf16.vlgmr.msra.gmra.mrb[4].mxu0 %vm1287_vm5, %v14792_v19  ;;  %11901 = vmatpush3.bf16.msra.mxu1 %v6332_v22 }
 0x53e   : > { %v6509_v51 = vpop.permute.xlu1 %6508  ;;  %11902 = vmatprep.mubr.msk.bf16.mxu1 %vm12509_vm6, %v18118_v54  ;;  %6586 = vmatprep.mubr.bf16.mxu0 %v18110_v12 }
 0x53f   : > { %v6523_v62 = vsel %vm6522_vm3, %v6507_v58, %v6509_v51  ;;  %v6515_v44 = vpop.permute.xlu0 %6514  ;;  %v6524_v21 = vsel %vm6522_vm3, %v6509_v51, %v6511_v16  ;;  %8931 = vrot.lane.b32.xlu0 %v8906_v8, %s12498_s8  ;;  %v14845_v58 = vld [vmem:[%s17828_s3 + $0x30] sm:$0x3]  ;;  %v8922_v51 = vrot.slane %v8890_v47, %v12646_v3 }
 0x540   : > { %11607 = vmatprep.subr.msk.bf16.mxu0 %vm1119_vm2, %v6524_v21  ;;  %v6534_v57 = vsel %vm1119_vm2, %v6523_v62, 0  ;;  %8929 = vrot.lane.b32.xlu1 %v8902_v25, %s12498_s8  ;;  %v8910_v25 = vrot.slane %v8888_v5, %v12658_v7  ;;  %v8966_v62 = vmul.f32 %v14613_v41, %v14840_v38 }
 0x541   : > { %6555 = vmatpush1.bf16.msra.mxu0 %v6534_v57 }
 0x542   : > { %v6513_v60 = vpop.permute.xlu1 %6512 }
 0x543   : > { %v6525_v42 = vsel %vm6522_vm3, %v6511_v16, %v6513_v60  ;;  %v6519_v8 = vpop.permute.xlu0 %6518  ;;  %v6526_v22 = vsel %vm6522_vm3, %v6513_v60, %v6515_v44  ;;  %8935 = vrot.lane.b32.xlu0 %v8914_v26, %s12498_s8  ;;  %v8918_v26 = vrot.slane %v8889_v27, %v12658_v7  ;;  %v8977_v60 = vrot.slane %v8966_v62, %v18053_v23 }
 0x544   : > { %11903 = vmatmul.mubr.msk.bf16.vlgmr.msra.gmra.mrb[4].mxu1 %vm1287_vm5, %v14792_v19  ;;  %11609 = vmatprep.subr.msk.bf16.mxu1 %vm1119_vm2, %v6526_v22  ;;  %v6540_v43 = vsel %vm1119_vm2, %v6525_v42, 0  ;;  %v8926_v27 = vrot.slane %v8890_v47, %v12658_v7 }
 0x545   : > { %11608 = vmatmul.mubr.msk.bf16.vlgmr.msra.gmra.mrb[0].mxu0 %vm1287_vm5, %v14845_v58  ;;  %6596 = vmatpush1.bf16.msra.mxu1 %v6540_v43 }
 0x546   : > { %v6517_v16 = vpop.permute.xlu1 %6516  ;;  %6627 = vmatprep.mubr.bf16.mxu1 %v18110_v12  ;;  %6668 = vmatprep.mubr.bf16.mxu0 %v18110_v12 }
 0x547   : > { %v6527_v19 = vsel %vm6522_vm3, %v6515_v44, %v6517_v16  ;;  %v6727_v5 = vpop.permute.xlu0 %6726  ;;  %v6528_v21 = vsel %vm6522_vm3, %v6517_v16, %v6519_v8  ;;  %11906 = vmatprep.subr.bf16.mxu1 %v18118_v54  ;;  %8933 = vrot.lane.b32.xlu1 %v8910_v25, %s12498_s8  ;;  %v8967_v44 = vmul.f32 %v14558_v2, %v14840_v38 }
 0x548   : > { %11611 = vmatprep.subr.msk.bf16.mxu0 %vm1119_vm2, %v6528_v21  ;;  %v6546_v57 = vsel %vm1119_vm2, %v6527_v19, 0  ;;  %8939 = vrot.lane.b32.xlu0 %v8922_v51, %s12498_s8  ;;  %v8981_v21 = vrot.slane %v8966_v62, %v18042_v1 }
 0x549   : > { %6637 = vmatpush1.bf16.msra.mxu0 %v6546_v57  ;;  %v8985_v51 = vrot.slane %v8967_v44, %v18053_v23 }
 0x54a   : > { %v6521_v42 = vpop.permute.xlu1 %6520 }
 0x54b   : > { %v6529_v22 = vsel %vm6522_vm3, %v6519_v8, %v6521_v42  ;;  %v6731_v43 = vpop.permute.xlu0 %6730  ;;  %8937 = vrot.lane.b32.xlu1 %v8918_v26, %s12498_s8  ;;  %v8968_v26 = vmul.f32 %v14577_v11, %v14840_v38  ;;  %v14900_v42 = vstv %s11662_s22  ;;  %s16840_s22 = sld [smem:[#allocation4 + $0x180]] }
 0x54c   : > { %v6552_v25 = vsel %vm1119_vm2, %v6529_v22, 0  ;;  %11610 = vmatmul.mubr.msk.bf16.vlgmr.msra.gmra.mrb[0].mxu1 %vm1287_vm5, %v14845_v58  ;;  %9006 = vrot.lane.b32.xlu0 %v8977_v60, %s12498_s8 }
 0x54d   : > { %11612 = vmatmul.mubr.msk.bf16.vlgmr.msra.gmra.mrb[4].mxu0 %vm1287_vm5, %v14845_v58  ;;  %11907 = vmatpush3.bf16.msra.mxu1 %v6552_v25  ;;  %v8993_v25 = vrot.slane %v8968_v26, %v18053_v23 }
 0x54e   : > { %v6729_v8 = vpop.permute.xlu1 %6728  ;;  %11908 = vmatprep.mubr.msk.bf16.mxu1 %vm12509_vm6, %v18118_v54  ;;  %6806 = vmatprep.mubr.bf16.mxu0 %v18110_v12 }
 0x54f   : > { %v6743_v47 = vsel %vm6742_vm7, %v6727_v5, %v6729_v8  ;;  %v6735_v16 = vpop.permute.xlu0 %6734  ;;  %v6744_v19 = vsel %vm6742_vm7, %v6729_v8, %v6731_v43  ;;  %8941 = vrot.lane.b32.xlu1 %v8926_v27, %s12498_s8  ;;  %v14898_v5 = vld [vmem:[%s17828_s3 + $0x32] sm:$0x3] }
 0x550   : > { %11615 = vmatprep.subr.msk.bf16.mxu0 %vm1119_vm2, %v6744_v19  ;;  %v6754_v57 = vsel %vm1119_vm2, %v6743_v47, 0  ;;  %9010 = vrot.lane.b32.xlu0 %v8985_v51, %s12498_s8  ;;  %v8969_v51 = vmul.f32 %v14600_v28, %v14840_v38  ;;  %v8989_v47 = vrot.slane %v8967_v44, %v18042_v1  ;;  %v9045_v38 = vmul.f32 %v14613_v41, %v14900_v42 }
 0x551   : > { %6775 = vmatpush1.bf16.msra.mxu0 %v6754_v57 }
 0x552   : > { %v6733_v60 = vpop.permute.xlu1 %6732  ;;  %v9001_v44 = vrot.slane %v8969_v51, %v18053_v23 }
 0x553   : > { %v6745_v62 = vsel %vm6742_vm7, %v6731_v43, %v6733_v60  ;;  %v6739_v22 = vpop.permute.xlu0 %6738  ;;  %v6746_v27 = vsel %vm6742_vm7, %v6733_v60, %v6735_v16  ;;  %9008 = vrot.lane.b32.xlu1 %v8981_v21, %s12498_s8  ;;  %v8997_v60 = vrot.slane %v8968_v26, %v18042_v1  ;;  %v9005_v26 = vrot.slane %v8969_v51, %v18042_v1 }
 0x554   : > { %11909 = vmatmul.mubr.msk.bf16.vlgmr.msra.gmra.mrb[4].mxu1 %vm1287_vm5, %v14845_v58  ;;  %11617 = vmatprep.subr.msk.bf16.mxu1 %vm1119_vm2, %v6746_v27  ;;  %v6760_v8 = vsel %vm1119_vm2, %v6745_v62, 0 }
 0x555   : > { %11616 = vmatmul.mubr.msk.bf16.vlgmr.msra.gmra.mrb[0].mxu0 %vm1287_vm5, %v14898_v5  ;;  %6816 = vmatpush1.bf16.msra.mxu1 %v6760_v8  ;;  %v9056_v8 = vrot.slane %v9045_v38, %v18054_v35 }
 0x556   : > { %v6737_v43 = vpop.permute.xlu1 %6736  ;;  %6847 = vmatprep.mubr.bf16.mxu1 %v18110_v12  ;;  %6888 = vmatprep.mubr.bf16.mxu0 %v18110_v12 }
 0x557   : > { %v6747_v58 = vsel %vm6742_vm7, %v6735_v16, %v6737_v43  ;;  %v6947_v19 = vpop.permute.xlu0 %6946  ;;  %v6748_v21 = vsel %vm6742_vm7, %v6737_v43, %v6739_v22  ;;  %11912 = vmatprep.subr.bf16.mxu1 %v18118_v54  ;;  %9014 = vrot.lane.b32.xlu0 %v8993_v25, %s12498_s8  ;;  %v9046_v25 = vmul.f32 %v14558_v2, %v14900_v42 }
 0x558   : > { %11619 = vmatprep.subr.msk.bf16.mxu0 %vm1119_vm2, %v6748_v21  ;;  %v6766_v57 = vsel %vm1119_vm2, %v6747_v58, 0  ;;  %9012 = vrot.lane.b32.xlu1 %v8989_v47, %s12498_s8 }
 0x559   : > { %6857 = vmatpush1.bf16.msra.mxu0 %v6766_v57  ;;  %v9064_v51 = vrot.slane %v9046_v25, %v18054_v35  ;;  %v9047_v57 = vmul.f32 %v14577_v11, %v14900_v42 }
 0x55a   : > { %v6741_v62 = vpop.permute.xlu1 %6740 }
 0x55b   : > { %v6749_v16 = vsel %vm6742_vm7, %v6739_v22, %v6741_v62  ;;  %v6951_v27 = vpop.permute.xlu0 %6950  ;;  %9018 = vrot.lane.b32.xlu0 %v9001_v44, %s12498_s8 }
 0x55c   : > { %v6772_v43 = vsel %vm1119_vm2, %v6749_v16, 0  ;;  %11618 = vmatmul.mubr.msk.bf16.vlgmr.msra.gmra.mrb[0].mxu1 %vm1287_vm5, %v14898_v5  ;;  %9016 = vrot.lane.b32.xlu1 %v8997_v60, %s12498_s8 }
 0x55d   : > { %11620 = vmatmul.mubr.msk.bf16.vlgmr.msra.gmra.mrb[4].mxu0 %vm1287_vm5, %v14898_v5  ;;  %11913 = vmatpush3.bf16.msra.mxu1 %v6772_v43  ;;  %v9060_v43 = vrot.slane %v9045_v38, %v18047_v59 }
 0x55e   : > { %v6949_v22 = vpop.permute.xlu1 %6948  ;;  %11914 = vmatprep.mubr.msk.bf16.mxu1 %vm12509_vm6, %v18118_v54  ;;  %7026 = vmatprep.mubr.bf16.mxu0 %v18110_v12 }
 0x55f   : > { %v6963_v47 = vsel %vm6962_vm8, %v6947_v19, %v6949_v22  ;;  %v6955_v58 = vpop.permute.xlu0 %6954  ;;  %v6964_v21 = vsel %vm6962_vm8, %v6949_v22, %v6951_v27  ;;  %9085 = vrot.lane.b32.xlu0 %v9056_v8, %s12498_s8  ;;  %v11622_v19 = vld [vmem:[%s17828_s3 + $0x34] sm:$0x3]  ;;  %v9072_v22 = vrot.slane %v9047_v57, %v18054_v35 }
 0x560   : > { %11623 = vmatprep.subr.msk.bf16.mxu0 %vm1119_vm2, %v6964_v21  ;;  %v6974_v44 = vsel %vm1119_vm2, %v6963_v47, 0  ;;  %9020 = vrot.lane.b32.xlu1 %v9005_v26, %s12498_s8  ;;  %v9048_v47 = vmul.f32 %v14600_v28, %v14900_v42  ;;  %v9068_v42 = vrot.slane %v9046_v25, %v18047_v59 }
 0x561   : > { %6995 = vmatpush1.bf16.msra.mxu0 %v6974_v44 }
 0x562   : > { %v6953_v60 = vpop.permute.xlu1 %6952 }
 0x563   : > { %v6965_v62 = vsel %vm6962_vm8, %v6951_v27, %v6953_v60  ;;  %v6959_v16 = vpop.permute.xlu0 %6958  ;;  %v6966_v8 = vsel %vm6962_vm8, %v6953_v60, %v6955_v58  ;;  %9089 = vrot.lane.b32.xlu0 %v9064_v51, %s12498_s8  ;;  %v9123_v27 = vstv %s11663_s28  ;;  %s11702_s28 = sld [smem:[#allocation6 + $0x382]] }
 0x564   : > { %11915 = vmatmul.mubr.msk.bf16.vlgmr.msra.gmra.mrb[4].mxu1 %vm1287_vm5, %v14898_v5  ;;  %11625 = vmatprep.subr.msk.bf16.mxu1 %vm1119_vm2, %v6966_v8  ;;  %v6980_v26 = vsel %vm1119_vm2, %v6965_v62, 0  ;;  %v9076_v62 = vrot.slane %v9047_v57, %v18047_v59  ;;  %v9125_v8 = vmul.f32 %v14558_v2, %v9123_v27  ;;  %v9084_v57 = vrot.slane %v9048_v47, %v18047_v59 }
 0x565   : > { %11624 = vmatmul.mubr.msk.bf16.vlgmr.msra.gmra.mrb[0].mxu0 %vm1287_vm5, %v11622_v19  ;;  %7036 = vmatpush1.bf16.msra.mxu1 %v6980_v26 }
 0x566   : > { %v6957_v21 = vpop.permute.xlu1 %6956  ;;  %7067 = vmatprep.mubr.bf16.mxu1 %v18110_v12  ;;  %7108 = vmatprep.mubr.bf16.mxu0 %v18110_v12  ;;  %v9080_v12 = vrot.slane %v9048_v47, %v18054_v35 }
 0x567   : > { %v6967_v5 = vsel %vm6962_vm8, %v6955_v58, %v6957_v21  ;;  %v14970_v38 = vpop.permute.xlu0 %8436  ;;  %v6968_v51 = vsel %vm6962_vm8, %v6957_v21, %v6959_v16  ;;  %11918 = vmatprep.subr.bf16.mxu1 %v18118_v54  ;;  %9087 = vrot.lane.b32.xlu1 %v9060_v43, %s12498_s8  ;;  %v9124_v58 = vmul.f32 %v14613_v41, %v9123_v27 }
 0x568   : > { %18120 = vst [vmem:[#allocation73_spill] sm:$0xff] %v14970_v38  ;;  %11627 = vmatprep.subr.msk.bf16.mxu0 %vm1119_vm2, %v6968_v51  ;;  %v6986_v44 = vsel %vm1119_vm2, %v6967_v5, 0  ;;  %9093 = vrot.lane.b32.xlu0 %v9072_v22, %s12498_s8  ;;  %v9143_v5 = vrot.slane %v9125_v8, %v18036_v31  ;;  %v9126_v51 = vmul.f32 %v14577_v11, %v9123_v27 }
 0x569   : > { %7077 = vmatpush1.bf16.msra.mxu0 %v6986_v44  ;;  %v9135_v25 = vrot.slane %v9124_v58, %v18036_v31  ;;  %v9127_v44 = vmul.f32 %v14600_v28, %v9123_v27 }
 0x56a   : > { %v14981_v60 = vpop.permute.xlu1 %8438  ;;  %v9151_v47 = vrot.slane %v9126_v51, %v18036_v31  ;;  %v9155_v27 = vrot.slane %v9126_v51, %v18052_v48 }
 0x56b   : > { %18121 = vst [vmem:[#allocation74_spill] sm:$0xff] %v14981_v60  ;;  %9091 = vrot.lane.b32.xlu1 %v9068_v42, %s12498_s8  ;;  %v14989_v43 = vpop.permute.xlu0 %8440 }
 0x56c   : > { %11626 = vmatmul.mubr.msk.bf16.vlgmr.msra.gmra.mrb[0].mxu1 %vm1287_vm5, %v11622_v19  ;;  %9097 = vrot.lane.b32.xlu0 %v9080_v12, %s12498_s8  ;;  %18122 = vst [vmem:[#allocation75_spill] sm:$0xff] %v14989_v43  ;;  %v9381_v12 = vstv %s11670_s9  ;;  %s16691_s9 = sld [smem:[#allocation4 + $0x383]] }
 0x56d   : > { %11628 = vmatmul.mubr.msk.bf16.vlgmr.msra.gmra.mrb[4].mxu0 %vm1287_vm5, %v11622_v19  ;;  %11920 = vmatprep.mubr.msk.bf16.mxu1 %vm12509_vm6, %v18118_v54  ;;  %v9139_v54 = vrot.slane %v9124_v58, %v18052_v48  ;;  %v9159_v58 = vrot.slane %v9127_v44, %v18036_v31  ;;  %v9384_v51 = vmul.f32 %v14577_v11, %v9381_v12 }
 0x56e   : > { %v6961_v26 = vpop.permute.xlu1 %6960 }
 0x56f   : > { %v6969_v22 = vsel %vm6962_vm8, %v6959_v16, %v6961_v26  ;;  %9095 = vrot.lane.b32.xlu1 %v9076_v62, %s12498_s8  ;;  %v9382_v26 = vmul.f32 %v14613_v41, %v9381_v12 }
 0x570   : > { %v6992_v21 = vsel %vm1119_vm2, %v6969_v22, 0  ;;  %9164 = vrot.lane.b32.xlu0 %v9135_v25, %s12498_s8  ;;  %v9147_v25 = vrot.slane %v9125_v8, %v18052_v48  ;;  %v9383_v8 = vmul.f32 %v14558_v2, %v9381_v12 }
 0x571   : > { %11919 = vmatpush3.bf16.msra.mxu1 %v6992_v21  ;;  %v15001_v42 = vpop.permute.xlu0 %8444 }
 0x572   : > { %18123 = vst [vmem:[#allocation76_spill] sm:$0xff] %v15001_v42  ;;  %v15005_v16 = vpop.permute.xlu1 %8442 }
 0x573   : > { %9099 = vrot.lane.b32.xlu1 %v9084_v57, %s12498_s8  ;;  %18124 = vst [vmem:[#allocation77_spill] sm:$0xff] %v15005_v16  ;;  %v9393_v57 = vrot.slane %v9382_v26, %v12646_v3 }
 0x574   : > { %11921 = vmatmul.mubr.msk.bf16.vlgmr.msra.gmra.mrb[4].mxu1 %vm1287_vm5, %v11622_v19  ;;  %9168 = vrot.lane.b32.xlu0 %v9143_v5, %s12498_s8 }
 0x575   : > { %v15011_v62 = vpop.permute.xlu0 %8511 }
 0x576   : > { %18125 = vst [vmem:[#allocation78_spill] sm:$0xff] %v15011_v62  ;;  %v9405_v62 = vrot.slane %v9383_v8, %v12658_v7 }
 0x577   : > { %9166 = vrot.lane.b32.xlu1 %v9139_v54, %s12498_s8  ;;  %v9163_v54 = vrot.slane %v9127_v44, %v18052_v48  ;;  %v9385_v44 = vmul.f32 %v14600_v28, %v9381_v12  ;;  %v9413_v12 = vrot.slane %v9384_v51, %v12658_v7 }
 0x578   : > { %9172 = vrot.lane.b32.xlu0 %v9151_v47, %s12498_s8  ;;  %v9401_v47 = vrot.slane %v9383_v8, %v12646_v3 }
 0x579   : > { %v15018_v19 = vpop.permute.xlu1 %8446 }
 0x57a   : > { %18126 = vst [vmem:[#allocation79_spill] sm:$0xff] %v15018_v19  ;;  %v15020_v22 = vpop.permute.xlu0 %8515 }
 0x57b   : > { %18127 = vst [vmem:[#allocation80_spill] sm:$0xff] %v15020_v22  ;;  %9170 = vrot.lane.b32.xlu1 %v9147_v25, %s12498_s8 }
 0x57c   : > { %9176 = vrot.lane.b32.xlu0 %v9159_v58, %s12498_s8  ;;  %v9397_v58 = vrot.slane %v9382_v26, %v12658_v7 }
 0x57d   : > { %v15027_v21 = vpop.permute.xlu1 %8513 }
 0x57e   : > { %18128 = vst [vmem:[#allocation81_spill] sm:$0xff] %v15027_v21  ;;  %v15029_v5 = vpop.permute.xlu0 %8519 }
 0x57f   : > { %18129 = vst [vmem:[#allocation82_spill] sm:$0xff] %v15029_v5  ;;  %9174 = vrot.lane.b32.xlu1 %v9155_v27, %s12498_s8  ;;  %v9409_v27 = vrot.slane %v9384_v51, %v12646_v3 }
 0x580   : > { %9422 = vrot.lane.b32.xlu0 %v9393_v57, %s12498_s8  ;;  %v9460_v57 = vstv %s11671_s10  ;;  %s16713_s10 = sld [smem:[#allocation4]] }
 0x581   : > { %v15036_v25 = vpop.permute.xlu1 %8517  ;;  %v9461_v26 = vmul.f32 %v14613_v41, %v9460_v57  ;;  %v9462_v8 = vmul.f32 %v14558_v2, %v9460_v57  ;;  %v9463_v51 = vmul.f32 %v14577_v11, %v9460_v57 }
 0x582   : > { %18130 = vst [vmem:[#allocation83_spill] sm:$0xff] %v15036_v25  ;;  %v15040_v22 = vpop.permute.xlu0 %8523 }
 0x583   : > { %9178 = vrot.lane.b32.xlu1 %v9163_v54, %s12498_s8  ;;  %18131 = vst [vmem:[#allocation84_spill] sm:$0xff] %v15040_v22  ;;  %v9417_v54 = vrot.slane %v9385_v44, %v12646_v3  ;;  %v9476_v2 = vrot.slane %v9461_v26, %v18042_v1  ;;  %v9484_v11 = vrot.slane %v9462_v8, %v18042_v1 }
 0x584   : > { %9426 = vrot.lane.b32.xlu0 %v9401_v47, %s12498_s8 }
 0x585   : > { %v15045_v5 = vpop.permute.xlu1 %8521 }
 0x586   : > { %18132 = vst [vmem:[#allocation85_spill] sm:$0xff] %v15045_v5 }
 0x587   : > { %9424 = vrot.lane.b32.xlu1 %v9397_v58, %s12498_s8  ;;  %v9472_v58 = vrot.slane %v9461_v26, %v18053_v23 }
 0x588   : > { %9430 = vrot.lane.b32.xlu0 %v9409_v27, %s12498_s8 }
 0x589   : > { %v15052_v22 = vpop.permute.xlu0 %8590 }
 0x58a   : > { %18133 = vst [vmem:[#allocation86_spill] sm:$0xff] %v15052_v22  ;;  %v15054_v47 = vpop.permute.xlu1 %8525  ;;  %v9421_v22 = vrot.slane %v9385_v44, %v12658_v7  ;;  %v9464_v44 = vmul.f32 %v14600_v28, %v9460_v57  ;;  %v9492_v28 = vrot.slane %v9463_v51, %v18042_v1 }
 0x58b   : > { %18134 = vst [vmem:[#allocation87_spill] sm:$0xff] %v15054_v47  ;;  %9428 = vrot.lane.b32.xlu1 %v9405_v62, %s12498_s8  ;;  %v9480_v62 = vrot.slane %v9462_v8, %v18053_v23  ;;  %v15095_v8 = vld [vmem:[%s12672_s27 + $0x8] sm:$0xff]  ;;  %v9618_v47 = vstv %s11673_s12  ;;  %s16732_s12 = sld [smem:[#allocation4 + $0x2]] }
 0x58c   : > { %9434 = vrot.lane.b32.xlu0 %v9417_v54, %s12498_s8 }
 0x58d   : > { %v15061_v5 = vpop.permute.xlu0 %8594 }
 0x58e   : > { %18135 = vst [vmem:[#allocation88_spill] sm:$0xff] %v15061_v5  ;;  %v15063_v27 = vpop.permute.xlu1 %8592 }
 0x58f   : > { %18136 = vst [vmem:[#allocation89_spill] sm:$0xff] %v15063_v27  ;;  %9432 = vrot.lane.b32.xlu1 %v9413_v12, %s12498_s8  ;;  %v9488_v12 = vrot.slane %v9463_v51, %v18053_v23 }
 0x590   : > { %9501 = vrot.lane.b32.xlu0 %v9472_v58, %s12498_s8  ;;  %v9539_v58 = vstv %s11672_s11  ;;  %s16715_s11 = sld [smem:[#allocation4 + $0x1]] }
 0x591   : > { %v15070_v54 = vpop.permute.xlu0 %8598  ;;  %v9540_v26 = vmul.f32 %v14613_v41, %v9539_v58 }
 0x592   : > { %18137 = vst [vmem:[#allocation90_spill] sm:$0xff] %v15070_v54  ;;  %v15074_v5 = vpop.permute.xlu1 %8596 }
 0x593   : > { %9436 = vrot.lane.b32.xlu1 %v9421_v22, %s12498_s8  ;;  %18138 = vst [vmem:[#allocation91_spill] sm:$0xff] %v15074_v5  ;;  %v9496_v22 = vrot.slane %v9464_v44, %v18053_v23  ;;  %v9551_v57 = vrot.slane %v9540_v26, %v18054_v35 }
 0x594   : > { %9505 = vrot.lane.b32.xlu0 %v9480_v62, %s12498_s8 }
 0x595   : > { %v15079_v27 = vpop.permute.xlu0 %8602 }
 0x596   : > { %18139 = vst [vmem:[#allocation92_spill] sm:$0xff] %v15079_v27 }
 0x597   : > { %9503 = vrot.lane.b32.xlu1 %v9476_v2, %s12498_s8  ;;  %v9541_v2 = vmul.f32 %v15095_v8, %v9539_v58 }
 0x598   : > { %9509 = vrot.lane.b32.xlu0 %v9488_v12, %s12498_s8 }
 0x599   : > { %v15086_v62 = vpop.permute.xlu1 %8600  ;;  %v9559_v51 = vrot.slane %v9541_v2, %v18054_v35 }
 0x59a   : > { %18140 = vst [vmem:[#allocation93_spill] sm:$0xff] %v15086_v62  ;;  %v15088_v54 = vpop.permute.xlu0 %8669 }
 0x59b   : > { %18141 = vst [vmem:[#allocation94_spill] sm:$0xff] %v15088_v54  ;;  %9507 = vrot.lane.b32.xlu1 %v9484_v11, %s12498_s8  ;;  %v9500_v11 = vrot.slane %v9464_v44, %v18042_v1 }
 0x59c   : > { %9513 = vrot.lane.b32.xlu0 %v9496_v22, %s12498_s8  ;;  %v15107_v22 = vld [vmem:[%s12672_s27 + $0x10] sm:$0xff] }
 0x59d   : > { %v15098_v12 = vpop.permute.xlu1 %8604  ;;  %v9542_v54 = vmul.f32 %v15107_v22, %v9539_v58 }
 0x59e   : > { %18142 = vst [vmem:[#allocation95_spill] sm:$0xff] %v15098_v12  ;;  %v15100_v27 = vpop.permute.xlu0 %8673  ;;  %v9555_v12 = vrot.slane %v9540_v26, %v18047_v59 }
 0x59f   : > { %18143 = vst [vmem:[#allocation96_spill] sm:$0xff] %v15100_v27  ;;  %9511 = vrot.lane.b32.xlu1 %v9492_v28, %s12498_s8  ;;  %v9567_v44 = vrot.slane %v9542_v54, %v18054_v35  ;;  %v15119_v28 = vld [vmem:[%s12672_s27 + $0x18] sm:$0xff] }
 0x5a0   : > { %9580 = vrot.lane.b32.xlu0 %v9551_v57, %s12498_s8  ;;  %v9543_v57 = vmul.f32 %v15119_v28, %v9539_v58  ;;  %v9571_v58 = vrot.slane %v9542_v54, %v18047_v59 }
 0x5a1   : > { %v15110_v62 = vpop.permute.xlu1 %8671 }
 0x5a2   : > { %18144 = vst [vmem:[#allocation97_spill] sm:$0xff] %v15110_v62  ;;  %v15114_v5 = vpop.permute.xlu0 %8677  ;;  %v9563_v62 = vrot.slane %v9541_v2, %v18047_v59  ;;  %v9575_v26 = vrot.slane %v9543_v57, %v18054_v35  ;;  %v9620_v2 = vmul.f32 %v15095_v8, %v9618_v47 }
 0x5a3   : > { %9515 = vrot.lane.b32.xlu1 %v9500_v11, %s12498_s8  ;;  %18145 = vst [vmem:[#allocation98_spill] sm:$0xff] %v15114_v5  ;;  %v9619_v11 = vmul.f32 %v14613_v41, %v9618_v47  ;;  %v9579_v41 = vrot.slane %v9543_v57, %v18047_v59  ;;  %v9622_v57 = vmul.f32 %v15119_v28, %v9618_v47 }
 0x5a4   : > { %9584 = vrot.lane.b32.xlu0 %v9559_v51, %s12498_s8  ;;  %v9638_v54 = vrot.slane %v9620_v2, %v18036_v31 }
 0x5a5   : > { %v15122_v27 = vpop.permute.xlu1 %8675 }
 0x5a6   : > { %18146 = vst [vmem:[#allocation99_spill] sm:$0xff] %v15122_v27 }
 0x5a7   : > { %9582 = vrot.lane.b32.xlu1 %v9555_v12, %s12498_s8  ;;  %v9630_v12 = vrot.slane %v9619_v11, %v18036_v31 }
 0x5a8   : > { %9588 = vrot.lane.b32.xlu0 %v9567_v44, %s12498_s8 }
 0x5a9   : > { %v15129_v51 = vpop.permute.xlu0 %8681 }
 0x5aa   : > { %18147 = vst [vmem:[#allocation100_spill] sm:$0xff] %v15129_v51  ;;  %v15131_v5 = vpop.permute.xlu1 %8679 }
 0x5ab   : > { %18148 = vst [vmem:[#allocation101_spill] sm:$0xff] %v15131_v5  ;;  %9586 = vrot.lane.b32.xlu1 %v9563_v62, %s12498_s8  ;;  %v9621_v62 = vmul.f32 %v15107_v22, %v9618_v47  ;;  %v9642_v5 = vrot.slane %v9620_v2, %v18052_v48 }
 0x5ac   : > { %9592 = vrot.lane.b32.xlu0 %v9575_v26, %s12498_s8 }
 0x5ad   : > { %v15138_v27 = vpop.permute.xlu0 %8927  ;;  %v9650_v47 = vrot.slane %v9621_v62, %v18052_v48 }
 0x5ae   : > { %18149 = vst [vmem:[#allocation102_spill] sm:$0xff] %v15138_v27  ;;  %v15140_v44 = vpop.permute.xlu1 %8683  ;;  %v9634_v27 = vrot.slane %v9619_v11, %v18052_v48  ;;  %v15163_v11 = vld [vmem:[%s12672_s27] sm:$0xff] }
 0x5af   : > { %18150 = vst [vmem:[#allocation103_spill] sm:$0xff] %v15140_v44  ;;  %9590 = vrot.lane.b32.xlu1 %v9571_v58, %s12498_s8  ;;  %v9646_v58 = vrot.slane %v9621_v62, %v18036_v31  ;;  %v9876_v44 = vstv %s11680_s13  ;;  %s16734_s13 = sld [smem:[#allocation4 + $0x3]] }
 0x5b0   : > { %9659 = vrot.lane.b32.xlu0 %v9630_v12, %s12498_s8  ;;  %v9878_v2 = vmul.f32 %v15095_v8, %v9876_v44  ;;  %v9879_v62 = vmul.f32 %v15107_v22, %v9876_v44 }
 0x5b1   : > { %v15147_v26 = vpop.permute.xlu0 %8931 }
 0x5b2   : > { %18151 = vst [vmem:[#allocation104_spill] sm:$0xff] %v15147_v26  ;;  %v15151_v51 = vpop.permute.xlu1 %8929  ;;  %v9877_v26 = vmul.f32 %v15163_v11, %v9876_v44  ;;  %v9900_v25 = vrot.slane %v9878_v2, %v12658_v7 }
 0x5b3   : > { %9594 = vrot.lane.b32.xlu1 %v9579_v41, %s12498_s8  ;;  %18152 = vst [vmem:[#allocation105_spill] sm:$0xff] %v15151_v51  ;;  %v9654_v41 = vrot.slane %v9622_v57, %v18036_v31 }
 0x5b4   : > { %9663 = vrot.lane.b32.xlu0 %v9638_v54, %s12498_s8 }
 0x5b5   : > { %v15156_v12 = vpop.permute.xlu0 %8935 }
 0x5b6   : > { %18153 = vst [vmem:[#allocation106_spill] sm:$0xff] %v15156_v12 }
 0x5b7   : > { %9661 = vrot.lane.b32.xlu1 %v9634_v27, %s12498_s8  ;;  %v9888_v27 = vrot.slane %v9877_v26, %v12646_v3 }
 0x5b8   : > { %9667 = vrot.lane.b32.xlu0 %v9646_v58, %s12498_s8 }
 0x5b9   : > { %v15166_v54 = vpop.permute.xlu1 %8933 }
 0x5ba   : > { %18154 = vst [vmem:[#allocation107_spill] sm:$0xff] %v15166_v54  ;;  %v15168_v51 = vpop.permute.xlu0 %8939  ;;  %v9658_v54 = vrot.slane %v9622_v57, %v18052_v48  ;;  %v9880_v57 = vmul.f32 %v15119_v28, %v9876_v44  ;;  %v9908_v44 = vrot.slane %v9879_v62, %v12658_v7 }
 0x5bb   : > { %18155 = vst [vmem:[#allocation108_spill] sm:$0xff] %v15168_v51  ;;  %9665 = vrot.lane.b32.xlu1 %v9642_v5, %s12498_s8  ;;  %v9896_v5 = vrot.slane %v9878_v2, %v12646_v3  ;;  %v9892_v51 = vrot.slane %v9877_v26, %v12658_v7 }
 0x5bc   : > { %9671 = vrot.lane.b32.xlu0 %v9654_v41, %s12498_s8 }
 0x5bd   : > { %v15175_v58 = vpop.permute.xlu1 %8937 }
 0x5be   : > { %18156 = vst [vmem:[#allocation109_spill] sm:$0xff] %v15175_v58  ;;  %v15177_v12 = vpop.permute.xlu0 %9006 }
 0x5bf   : > { %18157 = vst [vmem:[#allocation110_spill] sm:$0xff] %v15177_v12  ;;  %9669 = vrot.lane.b32.xlu1 %v9650_v47, %s12498_s8  ;;  %v9904_v47 = vrot.slane %v9879_v62, %v12646_v3 }
 0x5c0   : > { %9917 = vrot.lane.b32.xlu0 %v9888_v27, %s12498_s8  ;;  %v9955_v27 = vstv %s11681_s14  ;;  %s16756_s14 = sld [smem:[#allocation4 + $0x80]] }
 0x5c1   : > { %v15184_v41 = vpop.permute.xlu1 %8941  ;;  %v9956_v26 = vmul.f32 %v15163_v11, %v9955_v27  ;;  %v9957_v2 = vmul.f32 %v15095_v8, %v9955_v27  ;;  %v9958_v62 = vmul.f32 %v15107_v22, %v9955_v27 }
 0x5c2   : > { %18158 = vst [vmem:[#allocation111_spill] sm:$0xff] %v15184_v41  ;;  %v15188_v58 = vpop.permute.xlu0 %9010 }
 0x5c3   : > { %9673 = vrot.lane.b32.xlu1 %v9658_v54, %s12498_s8  ;;  %18159 = vst [vmem:[#allocation112_spill] sm:$0xff] %v15188_v58  ;;  %v9912_v54 = vrot.slane %v9880_v57, %v12646_v3  ;;  %v9979_v41 = vrot.slane %v9957_v2, %v18042_v1 }
 0x5c4   : > { %9921 = vrot.lane.b32.xlu0 %v9896_v5, %s12498_s8 }
 0x5c5   : > { %v15193_v12 = vpop.permute.xlu1 %9008 }
 0x5c6   : > { %18160 = vst [vmem:[#allocation113_spill] sm:$0xff] %v15193_v12 }
 0x5c7   : > { %9919 = vrot.lane.b32.xlu1 %v9892_v51, %s12498_s8  ;;  %v9967_v51 = vrot.slane %v9956_v26, %v18053_v23 }
 0x5c8   : > { %9925 = vrot.lane.b32.xlu0 %v9904_v47, %s12498_s8 }
 0x5c9   : > { %v15200_v58 = vpop.permute.xlu0 %9014 }
 0x5ca   : > { %18161 = vst [vmem:[#allocation114_spill] sm:$0xff] %v15200_v58  ;;  %v15202_v5 = vpop.permute.xlu1 %9012  ;;  %v9916_v58 = vrot.slane %v9880_v57, %v12658_v7  ;;  %v9959_v57 = vmul.f32 %v15119_v28, %v9955_v27  ;;  %v9987_v27 = vrot.slane %v9958_v62, %v18042_v1 }
 0x5cb   : > { %18162 = vst [vmem:[#allocation115_spill] sm:$0xff] %v15202_v5  ;;  %9923 = vrot.lane.b32.xlu1 %v9900_v25, %s12498_s8  ;;  %v9975_v25 = vrot.slane %v9957_v2, %v18053_v23 }
 0x5cc   : > { %9929 = vrot.lane.b32.xlu0 %v9912_v54, %s12498_s8 }
 0x5cd   : > { %v15209_v12 = vpop.permute.xlu0 %9018 }
 0x5ce   : > { %18163 = vst [vmem:[#allocation116_spill] sm:$0xff] %v15209_v12  ;;  %v15211_v47 = vpop.permute.xlu1 %9016  ;;  %v9971_v12 = vrot.slane %v9956_v26, %v18042_v1 }
 0x5cf   : > { %18164 = vst [vmem:[#allocation117_spill] sm:$0xff] %v15211_v47  ;;  %9927 = vrot.lane.b32.xlu1 %v9908_v44, %s12498_s8  ;;  %v9983_v44 = vrot.slane %v9958_v62, %v18053_v23 }
 0x5d0   : > { %9996 = vrot.lane.b32.xlu0 %v9967_v51, %s12498_s8  ;;  %v10034_v51 = vstv %s11682_s15  ;;  %s16758_s15 = sld [smem:[#allocation4 + $0x81]] }
 0x5d1   : > { %v15218_v54 = vpop.permute.xlu0 %9085  ;;  %v10036_v2 = vmul.f32 %v15095_v8, %v10034_v51  ;;  %v10037_v62 = vmul.f32 %v15107_v22, %v10034_v51 }
 0x5d2   : > { %18165 = vst [vmem:[#allocation118_spill] sm:$0xff] %v15218_v54  ;;  %v15221_v5 = vpop.permute.xlu1 %9020  ;;  %v10035_v54 = vmul.f32 %v15163_v11, %v10034_v51 }
 0x5d3   : > { %9931 = vrot.lane.b32.xlu1 %v9916_v58, %s12498_s8  ;;  %18166 = vst [vmem:[#allocation119_spill] sm:$0xff] %v15221_v5  ;;  %v9991_v58 = vrot.slane %v9959_v57, %v18053_v23 }
 0x5d4   : > { %10000 = vrot.lane.b32.xlu0 %v9975_v25, %s12498_s8 }
 0x5d5   : > { %v15227_v47 = vpop.permute.xlu0 %9089 }
 0x5d6   : > { %18167 = vst [vmem:[#allocation120_spill] sm:$0xff] %v15227_v47 }
 0x5d7   : > { %9998 = vrot.lane.b32.xlu1 %v9971_v12, %s12498_s8  ;;  %v10046_v12 = vrot.slane %v10035_v54, %v18054_v35 }
 0x5d8   : > { %10004 = vrot.lane.b32.xlu0 %v9983_v44, %s12498_s8 }
 0x5d9   : > { %v15234_v26 = vpop.permute.xlu1 %9087 }
 0x5da   : > { %18168 = vst [vmem:[#allocation121_spill] sm:$0xff] %v15234_v26  ;;  %v15236_v25 = vpop.permute.xlu0 %9093  ;;  %v9995_v26 = vrot.slane %v9959_v57, %v18042_v1  ;;  %v10038_v57 = vmul.f32 %v15119_v28, %v10034_v51  ;;  %v10066_v51 = vrot.slane %v10037_v62, %v18047_v59 }
 0x5db   : > { %18169 = vst [vmem:[#allocation122_spill] sm:$0xff] %v15236_v25  ;;  %10002 = vrot.lane.b32.xlu1 %v9979_v41, %s12498_s8  ;;  %v10054_v41 = vrot.slane %v10036_v2, %v18054_v35 }
 0x5dc   : > { %10008 = vrot.lane.b32.xlu0 %v9991_v58, %s12498_s8 }
 0x5dd   : > { %v15243_v47 = vpop.permute.xlu1 %9091 }
 0x5de   : > { %18170 = vst [vmem:[#allocation123_spill] sm:$0xff] %v15243_v47  ;;  %v15245_v44 = vpop.permute.xlu0 %9097  ;;  %v10050_v47 = vrot.slane %v10035_v54, %v18047_v59 }
 0x5df   : > { %18171 = vst [vmem:[#allocation124_spill] sm:$0xff] %v15245_v44  ;;  %10006 = vrot.lane.b32.xlu1 %v9987_v27, %s12498_s8  ;;  %v10062_v27 = vrot.slane %v10037_v62, %v18054_v35 }
 0x5e0   : > { %10075 = vrot.lane.b32.xlu0 %v10046_v12, %s12498_s8  ;;  %v10113_v12 = vstv %s11683_s16  ;;  %s16775_s16 = sld [smem:[#allocation4 + $0x82]] }
 0x5e1   : > { %v15252_v58 = vpop.permute.xlu1 %9095  ;;  %v10114_v54 = vmul.f32 %v15163_v11, %v10113_v12  ;;  %v10116_v62 = vmul.f32 %v15107_v22, %v10113_v12 }
 0x5e2   : > { %18172 = vst [vmem:[#allocation125_spill] sm:$0xff] %v15252_v58  ;;  %v15254_v25 = vpop.permute.xlu0 %9164  ;;  %v10058_v58 = vrot.slane %v10036_v2, %v18047_v59  ;;  %v10115_v2 = vmul.f32 %v15095_v8, %v10113_v12 }
 0x5e3   : > { %18173 = vst [vmem:[#allocation126_spill] sm:$0xff] %v15254_v25  ;;  %10010 = vrot.lane.b32.xlu1 %v9995_v26, %s12498_s8  ;;  %v10070_v26 = vrot.slane %v10038_v57, %v18054_v35 }
 0x5e4   : > { %10079 = vrot.lane.b32.xlu0 %v10054_v41, %s12498_s8 }
 0x5e5   : > { %v15261_v44 = vpop.permute.xlu1 %9099 }
 0x5e6   : > { %18174 = vst [vmem:[#allocation127_spill] sm:$0xff] %v15261_v44  ;;  %v15263_v5 = vpop.permute.xlu0 %9168 }
 0x5e7   : > { %18175 = vst [vmem:[#allocation128_spill] sm:$0xff] %v15263_v5  ;;  %10077 = vrot.lane.b32.xlu1 %v10050_v47, %s12498_s8  ;;  %v10125_v47 = vrot.slane %v10114_v54, %v18036_v31 }
 0x5e8   : > { %10083 = vrot.lane.b32.xlu0 %v10062_v27, %s12498_s8 }
 0x5e9   : > { %v15270_v41 = vpop.permute.xlu1 %9166 }
 0x5ea   : > { %18176 = vst [vmem:[#allocation129_spill] sm:$0xff] %v15270_v41  ;;  %v15272_v25 = vpop.permute.xlu0 %9172  ;;  %v10074_v41 = vrot.slane %v10038_v57, %v18047_v59  ;;  %v10117_v57 = vmul.f32 %v15119_v28, %v10113_v12  ;;  %v10145_v12 = vrot.slane %v10116_v62, %v18052_v48 }
 0x5eb   : > { %18177 = vst [vmem:[#allocation130_spill] sm:$0xff] %v15272_v25  ;;  %10081 = vrot.lane.b32.xlu1 %v10058_v58, %s12498_s8  ;;  %v10133_v58 = vrot.slane %v10115_v2, %v18036_v31 }
 0x5ec   : > { %10087 = vrot.lane.b32.xlu0 %v10070_v26, %s12498_s8 }
 0x5ed   : > { %v15279_v5 = vpop.permute.xlu1 %9170 }
 0x5ee   : > { %18178 = vst [vmem:[#allocation131_spill] sm:$0xff] %v15279_v5  ;;  %v15281_v27 = vpop.permute.xlu0 %9176  ;;  %v10129_v5 = vrot.slane %v10114_v54, %v18052_v48 }
 0x5ef   : > { %18179 = vst [vmem:[#allocation132_spill] sm:$0xff] %v15281_v27  ;;  %10085 = vrot.lane.b32.xlu1 %v10066_v51, %s12498_s8  ;;  %v10141_v51 = vrot.slane %v10116_v62, %v18036_v31 }
 0x5f0   : > { %10154 = vrot.lane.b32.xlu0 %v10125_v47, %s12498_s8  ;;  %v10371_v47 = vstv %s11690_s17  ;;  %s16777_s17 = sld [smem:[#allocation4 + $0x83]] }
 0x5f1   : > { %v15288_v26 = vpop.permute.xlu1 %9174  ;;  %v10372_v54 = vmul.f32 %v15163_v11, %v10371_v47  ;;  %v10374_v62 = vmul.f32 %v15107_v22, %v10371_v47 }
 0x5f2   : > { %18180 = vst [vmem:[#allocation133_spill] sm:$0xff] %v15288_v26  ;;  %v15290_v25 = vpop.permute.xlu0 %9422  ;;  %v10137_v26 = vrot.slane %v10115_v2, %v18052_v48  ;;  %v10373_v2 = vmul.f32 %v15095_v8, %v10371_v47 }
 0x5f3   : > { %18181 = vst [vmem:[#allocation134_spill] sm:$0xff] %v15290_v25  ;;  %10089 = vrot.lane.b32.xlu1 %v10074_v41, %s12498_s8  ;;  %v10149_v41 = vrot.slane %v10117_v57, %v18036_v31 }
 0x5f4   : > { %10158 = vrot.lane.b32.xlu0 %v10133_v58, %s12498_s8 }
 0x5f5   : > { %v15297_v27 = vpop.permute.xlu1 %9178 }
 0x5f6   : > { %18182 = vst [vmem:[#allocation135_spill] sm:$0xff] %v15297_v27  ;;  %v15299_v44 = vpop.permute.xlu0 %9426 }
 0x5f7   : > { %18183 = vst [vmem:[#allocation136_spill] sm:$0xff] %v15299_v44  ;;  %10156 = vrot.lane.b32.xlu1 %v10129_v5, %s12498_s8  ;;  %v10383_v5 = vrot.slane %v10372_v54, %v12646_v3 }
 0x5f8   : > { %10162 = vrot.lane.b32.xlu0 %v10141_v51, %s12498_s8 }
 0x5f9   : > { %v15306_v58 = vpop.permute.xlu1 %9424 }
 0x5fa   : > { %18184 = vst [vmem:[#allocation137_spill] sm:$0xff] %v15306_v58  ;;  %v15308_v25 = vpop.permute.xlu0 %9430  ;;  %v10153_v58 = vrot.slane %v10117_v57, %v18052_v48 }
 0x5fb   : > { %18185 = vst [vmem:[#allocation138_spill] sm:$0xff] %v15308_v25  ;;  %10160 = vrot.lane.b32.xlu1 %v10137_v26, %s12498_s8  ;;  %v10391_v26 = vrot.slane %v10373_v2, %v12646_v3 }
 0x5fc   : > { %10166 = vrot.lane.b32.xlu0 %v10149_v41, %s12498_s8 }
 0x5fd   : > { %v15315_v44 = vpop.permute.xlu1 %9428 }
 0x5fe   : > { %18186 = vst [vmem:[#allocation139_spill] sm:$0xff] %v15315_v44  ;;  %v15317_v51 = vpop.permute.xlu0 %9434  ;;  %v10387_v44 = vrot.slane %v10372_v54, %v12658_v7  ;;  %v10403_v54 = vrot.slane %v10374_v62, %v12658_v7 }
 0x5ff   : > { %18187 = vst [vmem:[#allocation140_spill] sm:$0xff] %v15317_v51  ;;  %10164 = vrot.lane.b32.xlu1 %v10145_v12, %s12498_s8  ;;  %v10399_v12 = vrot.slane %v10374_v62, %v12646_v3  ;;  %v10395_v51 = vrot.slane %v10373_v2, %v12658_v7 }
 0x600   : > { %10412 = vrot.lane.b32.xlu0 %v10383_v5, %s12498_s8 }
 0x601   : > { %v15324_v25 = vpop.permute.xlu1 %9432 }
 0x602   : > { %18188 = vst [vmem:[#allocation141_spill] sm:$0xff] %v15324_v25  ;;  %v15326_v41 = vpop.permute.xlu0 %9501 }
 0x603   : > { %18189 = vst [vmem:[#allocation142_spill] sm:$0xff] %v15326_v41  ;;  %10168 = vrot.lane.b32.xlu1 %v10153_v58, %s12498_s8 }
 0x604   : > { %10416 = vrot.lane.b32.xlu0 %v10391_v26, %s12498_s8  ;;  %v15346_v26 = vmul.f32 %v15119_v28, %v10371_v47 }
 0x605   : > { %v15332_v57 = vpop.permute.xlu1 %9436 }
 0x606   : > { %18190 = vst [vmem:[#allocation143_spill] sm:$0xff] %v15332_v57  ;;  %v15334_v5 = vpop.permute.xlu0 %9505  ;;  %v10450_v57 = vstv %s11691_s18  ;;  %s16801_s18 = sld [smem:[#allocation4 + $0x100]] }
 0x607   : > { %18191 = vst [vmem:[#allocation144_spill] sm:$0xff] %v15334_v5  ;;  %10414 = vrot.lane.b32.xlu1 %v10387_v44, %s12498_s8  ;;  %v10411_v44 = vrot.slane %v15346_v26, %v12658_v7  ;;  %v15356_v2 = vmul.f32 %v15163_v11, %v10450_v57  ;;  %v15366_v62 = vmul.f32 %v15095_v8, %v10450_v57 }
 0x608   : > { %10420 = vrot.lane.b32.xlu0 %v10399_v12, %s12498_s8 }
 0x609   : > { %v15339_v41 = vpop.permute.xlu1 %9503  ;;  %v10466_v47 = vrot.slane %v15356_v2, %v18042_v1 }
 0x60a   : > { %18192 = vst [vmem:[#allocation145_spill] sm:$0xff] %v15339_v41  ;;  %v15341_v58 = vpop.permute.xlu0 %9509 }
 0x60b   : > { %18193 = vst [vmem:[#allocation146_spill] sm:$0xff] %v15341_v58  ;;  %10418 = vrot.lane.b32.xlu1 %v10395_v51, %s12498_s8 }
 0x60d   : > { %v15348_v25 = vpop.permute.xlu1 %9507 }
 0x60e   : > { %18194 = vst [vmem:[#allocation147_spill] sm:$0xff] %v15348_v25  ;;  %v15350_v5 = vpop.permute.xlu0 %9513 }
 0x60f   : > { %18195 = vst [vmem:[#allocation148_spill] sm:$0xff] %v15350_v5  ;;  %10422 = vrot.lane.b32.xlu1 %v10403_v54, %s12498_s8 }
 0x611   : > { %v15358_v12 = vpop.permute.xlu1 %9511 }
 0x612   : > { %18196 = vst [vmem:[#allocation149_spill] sm:$0xff] %v15358_v12  ;;  %v15360_v51 = vpop.permute.xlu0 %9580  ;;  %v10474_v12 = vrot.slane %v15366_v62, %v18042_v1 }
 0x613   : > { %18197 = vst [vmem:[#allocation150_spill] sm:$0xff] %v15360_v51  ;;  %10426 = vrot.lane.b32.xlu1 %v10411_v44, %s12498_s8  ;;  %v15376_v51 = vmul.f32 %v15107_v22, %v10450_v57 }
 0x615   : > { %v15368_v54 = vpop.permute.xlu1 %9515  ;;  %v10482_v25 = vrot.slane %v15376_v51, %v18042_v1 }
 0x616   : > { %18198 = vst [vmem:[#allocation151_spill] sm:$0xff] %v15368_v54  ;;  %v15370_v5 = vpop.permute.xlu0 %9584  ;;  %v15386_v54 = vmul.f32 %v15119_v28, %v10450_v57 }
 0x617   : > { %18199 = vst [vmem:[#allocation152_spill] sm:$0xff] %v15370_v5  ;;  %10493 = vrot.lane.b32.xlu1 %v10466_v47, %s12498_s8  ;;  %v10529_v5 = vstv %s11692_s19  ;;  %s16803_s19 = sld [smem:[#allocation4 + $0x101]] }
 0x619   : > { %v15378_v44 = vpop.permute.xlu1 %9582 }
 0x61a   : > { %18200 = vst [vmem:[#allocation153_spill] sm:$0xff] %v15378_v44  ;;  %v15380_v58 = vpop.permute.xlu0 %9588  ;;  %v10490_v44 = vrot.slane %v15386_v54, %v18042_v1 }
 0x61b   : > { %18201 = vst [vmem:[#allocation154_spill] sm:$0xff] %v15380_v58  ;;  %10497 = vrot.lane.b32.xlu1 %v10474_v12, %s12498_s8  ;;  %v15396_v58 = vmul.f32 %v15163_v11, %v10529_v5 }
 0x61d   : > { %v15388_v47 = vpop.permute.xlu1 %9586  ;;  %v10545_v57 = vrot.slane %v15396_v58, %v18047_v59 }
 0x61e   : > { %18202 = vst [vmem:[#allocation155_spill] sm:$0xff] %v15388_v47  ;;  %v15390_v41 = vpop.permute.xlu0 %9592  ;;  %v15406_v47 = vmul.f32 %v15095_v8, %v10529_v5 }
 0x61f   : > { %18203 = vst [vmem:[#allocation156_spill] sm:$0xff] %v15390_v41  ;;  %10501 = vrot.lane.b32.xlu1 %v10482_v25, %s12498_s8 }
 0x621   : > { %v15398_v12 = vpop.permute.xlu1 %9590 }
 0x622   : > { %18204 = vst [vmem:[#allocation157_spill] sm:$0xff] %v15398_v12  ;;  %v15400_v27 = vpop.permute.xlu0 %9659  ;;  %v10553_v12 = vrot.slane %v15406_v47, %v18047_v59 }
 0x623   : > { %18205 = vst [vmem:[#allocation158_spill] sm:$0xff] %v15400_v27  ;;  %10505 = vrot.lane.b32.xlu1 %v10490_v44, %s12498_s8  ;;  %v15416_v27 = vmul.f32 %v15107_v22, %v10529_v5 }
 0x625   : > { %v15408_v25 = vpop.permute.xlu1 %9594 }
 0x626   : > { %18206 = vst [vmem:[#allocation159_spill] sm:$0xff] %v15408_v25  ;;  %v15410_v41 = vpop.permute.xlu0 %9663  ;;  %v10561_v25 = vrot.slane %v15416_v27, %v18047_v59 }
 0x627   : > { %18207 = vst [vmem:[#allocation160_spill] sm:$0xff] %v15410_v41  ;;  %10572 = vrot.lane.b32.xlu1 %v10545_v57, %s12498_s8  ;;  %v15426_v41 = vmul.f32 %v15119_v28, %v10529_v5  ;;  %v15428_v57 = vstv %s11693_s20  ;;  %v326_v5 = vld [vmem:[%s17827_s2] sm:$0xff]  ;;  %s16820_s20 = sld [smem:[#allocation4 + $0x102]] }
 0x629   : > { %v15418_v44 = vpop.permute.xlu1 %9661 }
 0x62a   : > { %18208 = vst [vmem:[#allocation161_spill] sm:$0xff] %v15418_v44  ;;  %v15420_v21 = vpop.permute.xlu0 %9667  ;;  %v10569_v44 = vrot.slane %v15426_v41, %v18047_v59 }
 0x62b   : > { %18209 = vst [vmem:[#allocation162_spill] sm:$0xff] %v15420_v21  ;;  %10576 = vrot.lane.b32.xlu1 %v10553_v12, %s12498_s8  ;;  %v15439_v12 = vmul.f32 %v15163_v11, %v15428_v57  ;;  %v10866_v21 = vstv %s11700_s21  ;;  %s16822_s21 = sld [smem:[#allocation4 + $0x103]] }
 0x62c   : > { %v15464_v6 = vmul.f32 %v15095_v8, %v10866_v21  ;;  %v15487_v55 = vmul.f32 %v15107_v22, %v10866_v21 }
 0x62d   : > { %v15430_v19 = vpop.permute.xlu1 %9665 }
 0x62e   : > { %18210 = vst [vmem:[#allocation163_spill] sm:$0xff] %v15430_v19  ;;  %v15432_v42 = vpop.permute.xlu0 %9671  ;;  %v15453_v19 = vrot.slane %v326_v5, %v12646_v3  ;;  %v10890_v49 = vrot.slane %v15464_v6, %v12658_v7 }
 0x62f   : > { %18211 = vst [vmem:[#allocation164_spill] sm:$0xff] %v15432_v42  ;;  %10580 = vrot.lane.b32.xlu1 %v10561_v25, %s12498_s8  ;;  %v10624_v25 = vrot.slane %v15439_v12, %v18052_v48  ;;  %v15450_v42 = vmul.f32 %v15163_v11, %v10866_v21 }
 0x631   : > { %v15441_v16 = vpop.permute.xlu1 %9669 }
 0x632   : > { %18212 = vst [vmem:[#allocation165_spill] sm:$0xff] %v15441_v16  ;;  %v9918_v43 = vpop.permute.xlu0 %9917  ;;  %v15458_v16 = vrot.slane %v326_v5, %v18053_v23 }
 0x633   : > { %10584 = vrot.lane.b32.xlu1 %v10569_v44, %s12498_s8  ;;  %v10882_v44 = vrot.slane %v15450_v42, %v12658_v7 }
 0x635   : > { %v15455_v60 = vpop.permute.xlu1 %9673 }
 0x636   : > { %18213 = vst [vmem:[#allocation166_spill] sm:$0xff] %v15455_v60  ;;  %v9922_v38 = vpop.permute.xlu0 %9921 }
 0x637   : > { %10651 = vrot.lane.b32.xlu1 %v10624_v25, %s12498_s8 }
 0x638   : > { %v15466_v14 = vpop.f32.mrb[0].mxu0 }
 0x639   : > { %v7200_v40 = vmul.f32 %v15453_v19, %v15466_v14  ;;  %v15472_v60 = vpop.f32.mrb[1].mxu0  ;;  %v9920_v17 = vpop.permute.xlu1 %9919 }
 0x63a   : > { %v7201_v13 = vmul.f32 %v15458_v16, %v15472_v60  ;;  %v7032_v25 = vpop.f32.mrb[2].mxu0  ;;  %v15477_v33 = vsel %vm4100_vm4, %v9918_v43, %v9920_v17  ;;  %v15480_v34 = vsel %vm4100_vm4, %v9920_v17, %v9922_v38  ;;  %v9926_v39 = vpop.permute.xlu0 %9925  ;;  %v15491_v43 = vrot.slane %v326_v5, %v18054_v35 }
 0x63b   : > { %18214 = vst [vmem:[#allocation167_spill] sm:$0xff] %v15477_v33  ;;  %18215 = vst [vmem:[#allocation168_spill] sm:$0xff] %v15480_v34  ;;  %v7207_v18 = vsel %vm399_vm0, %v7200_v40, 0.0  ;;  %v7033_v63 = vpop.f32.mrb[3].mxu0  ;;  %10909 = vrot.lane.b32.xlu1 %v10882_v44, %s12498_s8  ;;  %v15494_v34 = vrot.slane %v326_v5, %v18036_v31 }
 0x63c   : > { %v7208_v25 = vsel %vm399_vm0, %v7201_v13, 0.0  ;;  %v15497_v63 = vrot.slane %v326_v5, %v12658_v7 }
 0x63d   : > { %v7209_v17 = vadd.f32 %v7208_v25, %v7207_v18  ;;  %v9924_v40 = vpop.permute.xlu1 %9923  ;;  %v10898_v18 = vrot.slane %v15487_v55, %v12658_v7  ;;  %v15511_v25 = vmul.f32 %v15119_v28, %v10866_v21 }
 0x63e   : > { %v15500_v44 = vsel %vm4100_vm4, %v9922_v38, %v9924_v40  ;;  %v15503_v33 = vsel %vm4100_vm4, %v9924_v40, %v9926_v39  ;;  %v9930_v0 = vpop.permute.xlu0 %9929  ;;  %v15520_v40 = vrot.slane %v326_v5, %v18042_v1 }
 0x63f   : > { %18216 = vst [vmem:[#allocation169_spill] sm:$0xff] %v15500_v44  ;;  %18217 = vst [vmem:[#allocation170_spill] sm:$0xff] %v15503_v33  ;;  %v15505_v13 = vpop.f32.mrb[0].mxu1  ;;  %10913 = vrot.lane.b32.xlu1 %v10890_v49, %s12498_s8  ;;  %v10945_v33 = vstv %s15468_s26  ;;  %v10906_v29 = vrot.slane %v15511_v25, %v12658_v7  ;;  %s16860_s26 = sld [smem:[#allocation4 + $0x182]] }
 0x640   : > { %v7202_v20 = vmul.f32 %v15491_v43, %v15505_v13  ;;  %v15515_v56 = vpop.f32.mrb[4].mxu0  ;;  %v15517_v38 = vpop.f32.mrb[1].mxu1  ;;  %v15535_v24 = vmul.f32 %v15163_v11, %v10945_v33  ;;  %v15555_v45 = vmul.f32 %v15095_v8, %v10945_v33  ;;  %v15568_v32 = vmul.f32 %v15107_v22, %v10945_v33 }
 0x641   : > { %v7203_v49 = vmul.f32 %v15494_v34, %v15517_v38  ;;  %v15525_v44 = vpop.f32.mrb[5].mxu0  ;;  %v7073_v46 = vpop.f32.mrb[2].mxu1  ;;  %v7204_v37 = vmul.f32 %v15497_v63, %v15515_v56 }
 0x642   : > { %v7210_v21 = vsel %vm399_vm0, %v7202_v20, 0.0  ;;  %v7114_v9 = vpop.f32.mrb[6].mxu0  ;;  %v7074_v50 = vpop.f32.mrb[3].mxu1  ;;  %v7205_v46 = vmul.f32 %v15520_v40, %v15525_v44  ;;  %v15540_v20 = vrot.slane %v326_v5, %v18047_v59  ;;  %v10961_v5 = vrot.slane %v15535_v24, %v18042_v1 }
 0x643   : > { %v7211_v30 = vadd.f32 %v7210_v21, %v7209_v17  ;;  %v7212_v36 = vsel %vm399_vm0, %v7203_v49, 0.0  ;;  %v7115_v15 = vpop.f32.mrb[7].mxu0  ;;  %v9928_v52 = vpop.permute.xlu1 %9927  ;;  %10917 = vrot.lane.b32.xlu1 %v10898_v18, %s12498_s8  ;;  %v7214_v18 = vsel %vm399_vm0, %v7204_v37, 0.0 }
 0x644   : > { %v15543_v9 = vsel %vm4100_vm4, %v9926_v39, %v9928_v52  ;;  %v15546_v15 = vsel %vm4100_vm4, %v9928_v52, %v9930_v0  ;;  %v9997_v50 = vpop.permute.xlu0 %9996  ;;  %v7216_v39 = vsel %vm399_vm0, %v7205_v46, 0.0  ;;  %v10969_v46 = vrot.slane %v15555_v45, %v18042_v1 }
 0x645   : > { %18218 = vst [vmem:[#allocation171_spill] sm:$0xff] %v15543_v9  ;;  %18219 = vst [vmem:[#allocation172_spill] sm:$0xff] %v15546_v15  ;;  %v7213_v17 = vadd.f32 %v7212_v36, %v7211_v30 }
 0x647   : > { %v7215_v7 = vadd.f32 %v7214_v18, %v7213_v17  ;;  %v15549_v49 = vpop.f32.mrb[4].mxu1  ;;  %v9932_v21 = vpop.permute.xlu1 %9931  ;;  %10921 = vrot.lane.b32.xlu1 %v10906_v29, %s12498_s8 }
 0x648   : > { %v7206_v52 = vmul.f32 %v15540_v20, %v15549_v49  ;;  %v11922_v30 = vpop.f32.mrb[5].mxu1  ;;  %v15561_v36 = vsel %vm4100_vm4, %v9930_v0, %v9932_v21  ;;  %v10001_v37 = vpop.permute.xlu0 %10000 }
 0x649   : > { %18220 = vst [vmem:[#allocation173_spill] sm:$0xff] %v15561_v36  ;;  %v7217_v17 = vadd.f32 %v7216_v39, %v7215_v7  ;;  %v7154_v18 = vpop.f32.mrb[6].mxu1  ;;  %v18272_v36 = vld [vmem:[#allocation20_spill] sm:$0xff] }
 0x64a   : > { %v7218_v29 = vsel %vm399_vm0, %v7206_v52, 0.0  ;;  %v11923_v15 = vpop.f32.mrb[7].mxu1 }
 0x64b   : > { %v7219_v9 = vadd.f32 %v7218_v29, %v7217_v17  ;;  %v9999_v10 = vpop.permute.xlu1 %9998  ;;  %10988 = vrot.lane.b32.xlu1 %v10961_v5, %s12498_s8  ;;  %v10977_v15 = vrot.slane %v15568_v32, %v18042_v1  ;;  %v15580_v5 = vmul.f32 %v15119_v28, %v10945_v33 }
 0x64c   : > { %v15571_v0 = vsel %vm4100_vm4, %v9997_v50, %v9999_v10  ;;  %v15574_v21 = vsel %vm4100_vm4, %v9999_v10, %v10001_v37  ;;  %v10005_v7 = vpop.permute.xlu0 %10004  ;;  %v15588_v10 = vstv %s11702_s28  ;;  %s16862_s28 = sld [smem:[#allocation4 + $0x183]] }
 0x64d   : > { %18221 = vst [vmem:[#allocation174_spill] sm:$0xff] %v15571_v0  ;;  %18222 = vst [vmem:[#allocation175_spill] sm:$0xff] %v15574_v21  ;;  %7220 = vadd.xlane.f32.xlu0 %v7219_v9  ;;  %v10985_v9 = vrot.slane %v15580_v5, %v18042_v1  ;;  %v15595_v18 = vmul.f32 %v15163_v11, %v15588_v10  ;;  %v15608_v1 = vmul.f32 %v15095_v8, %v15588_v10  ;;  %v18270_v0 = vld [vmem:[#allocation11_spill] sm:$0xff] }
 0x64e   : > { %v15649_v21 = vmul.f32 %v15107_v22, %v15428_v57 }
 0x64f   : > { %v10003_v39 = vpop.permute.xlu1 %10002  ;;  %10992 = vrot.lane.b32.xlu1 %v10969_v46, %s12498_s8 }
 0x650   : > { %v15583_v52 = vsel %vm4100_vm4, %v10001_v37, %v10003_v39  ;;  %v15586_v50 = vsel %vm4100_vm4, %v10003_v39, %v10005_v7  ;;  %v10009_v30 = vpop.permute.xlu0 %10008  ;;  %v11040_v39 = vrot.slane %v15595_v18, %v18047_v59 }
 0x651   : > { %18223 = vst [vmem:[#allocation176_spill] sm:$0xff] %v15583_v52  ;;  %18224 = vst [vmem:[#allocation177_spill] sm:$0xff] %v15586_v50 }
 0x653   : > { %v10007_v17 = vpop.permute.xlu1 %10006  ;;  %10996 = vrot.lane.b32.xlu1 %v10977_v15, %s12498_s8 }
 0x654   : > { %v15598_v33 = vsel %vm4100_vm4, %v10005_v7, %v10007_v17  ;;  %v15601_v37 = vsel %vm4100_vm4, %v10007_v17, %v10009_v30  ;;  %v10076_v29 = vpop.permute.xlu0 %10075  ;;  %v11048_v17 = vrot.slane %v15608_v1, %v18047_v59 }
 0x655   : > { %18225 = vst [vmem:[#allocation178_spill] sm:$0xff] %v15598_v33  ;;  %18226 = vst [vmem:[#allocation179_spill] sm:$0xff] %v15601_v37 }
 0x657   : > { %v10011_v46 = vpop.permute.xlu1 %10010  ;;  %11000 = vrot.lane.b32.xlu1 %v10985_v9, %s12498_s8  ;;  %v15618_v9 = vmul.f32 %v15107_v22, %v15588_v10 }
 0x658   : > { %v15611_v15 = vsel %vm4100_vm4, %v10009_v30, %v10011_v46  ;;  %v10080_v50 = vpop.permute.xlu0 %10079  ;;  %v10407_v30 = vrot.slane %v15346_v26, %v12646_v3  ;;  %v10462_v26 = vrot.slane %v15356_v2, %v18053_v23  ;;  %v10470_v2 = vrot.slane %v15366_v62, %v18053_v23 }
 0x659   : > { %18227 = vst [vmem:[#allocation180_spill] sm:$0xff] %v15611_v15  ;;  %v15633_v15 = vmul.f32 %v15095_v8, %v15428_v57 }
 0x65b   : > { %v10078_v7 = vpop.permute.xlu1 %10077  ;;  %11067 = vrot.lane.b32.xlu1 %v11040_v39, %s12498_s8  ;;  %v11056_v39 = vrot.slane %v15618_v9, %v18047_v59 }
 0x65c   : > { %v15621_v37 = vsel %vm4100_vm4, %v10076_v29, %v10078_v7  ;;  %v15624_v33 = vsel %vm4100_vm4, %v10078_v7, %v10080_v50  ;;  %v10084_v52 = vpop.permute.xlu0 %10083 }
 0x65d   : > { %18228 = vst [vmem:[#allocation181_spill] sm:$0xff] %v15621_v37  ;;  %18229 = vst [vmem:[#allocation182_spill] sm:$0xff] %v15624_v33  ;;  %v10628_v37 = vrot.slane %v15633_v15, %v18036_v31 }
 0x65f   : > { %v10082_v46 = vpop.permute.xlu1 %10081  ;;  %11071 = vrot.lane.b32.xlu1 %v11048_v17, %s12498_s8 }
 0x660   : > { %v15636_v29 = vsel %vm4100_vm4, %v10080_v50, %v10082_v46  ;;  %v15639_v7 = vsel %vm4100_vm4, %v10082_v46, %v10084_v52  ;;  %v10088_v33 = vpop.permute.xlu0 %10087 }
 0x661   : > { %18230 = vst [vmem:[#allocation183_spill] sm:$0xff] %v15636_v29  ;;  %18231 = vst [vmem:[#allocation184_spill] sm:$0xff] %v15639_v7  ;;  %v10636_v7 = vrot.slane %v15649_v21, %v18036_v31  ;;  %v15665_v29 = vmul.f32 %v15119_v28, %v15428_v57 }
 0x663   : > { %10424 = vrot.lane.b32.xlu0 %v10407_v30, %s12498_s8  ;;  %v10086_v17 = vpop.permute.xlu1 %10085  ;;  %11075 = vrot.lane.b32.xlu1 %v11056_v39, %s12498_s8 }
 0x664   : > { %v15652_v50 = vsel %vm4100_vm4, %v10084_v52, %v10086_v17  ;;  %v15655_v46 = vsel %vm4100_vm4, %v10086_v17, %v10088_v33  ;;  %v10155_v30 = vpop.permute.xlu0 %10154 }
 0x665   : > { %18232 = vst [vmem:[#allocation185_spill] sm:$0xff] %v15652_v50  ;;  %18233 = vst [vmem:[#allocation186_spill] sm:$0xff] %v15655_v46  ;;  %v18268_v50 = vld [vmem:[#allocation15_spill] sm:$0xff] }
 0x667   : > { %10491 = vrot.lane.b32.xlu0 %v10462_v26, %s12498_s8  ;;  %v10090_v39 = vpop.permute.xlu1 %10089  ;;  %10653 = vrot.lane.b32.xlu1 %v10628_v37, %s12498_s8  ;;  %v10478_v26 = vrot.slane %v15376_v51, %v18053_v23  ;;  %v10644_v37 = vrot.slane %v15665_v29, %v18036_v31 }
 0x668   : > { %v15668_v52 = vsel %vm4100_vm4, %v10088_v33, %v10090_v39  ;;  %v10159_v17 = vpop.permute.xlu0 %10158 }
 0x669   : > { %18234 = vst [vmem:[#allocation187_spill] sm:$0xff] %v15668_v52  ;;  %v18267_v52 = vld [vmem:[#allocation17_spill] sm:$0xff] }
 0x66b   : > { %10495 = vrot.lane.b32.xlu0 %v10470_v2, %s12498_s8  ;;  %v10157_v62 = vpop.permute.xlu1 %10156  ;;  %10657 = vrot.lane.b32.xlu1 %v10636_v7, %s12498_s8  ;;  %v10486_v2 = vrot.slane %v15386_v54, %v18053_v23 }
 0x66c   : > { %v15677_v46 = vsel %vm4100_vm4, %v10155_v30, %v10157_v62  ;;  %v15680_v57 = vsel %vm4100_vm4, %v10157_v62, %v10159_v17  ;;  %v10163_v33 = vpop.permute.xlu0 %10162  ;;  %v10541_v62 = vrot.slane %v15396_v58, %v18054_v35  ;;  %v10557_v58 = vrot.slane %v15416_v27, %v18054_v35 }
 0x66d   : > { %18235 = vst [vmem:[#allocation188_spill] sm:$0xff] %v15677_v46  ;;  %18236 = vst [vmem:[#allocation189_spill] sm:$0xff] %v15680_v57  ;;  %v10620_v27 = vrot.slane %v15439_v12, %v18036_v31  ;;  %v10902_v12 = vrot.slane %v15511_v25, %v12646_v3  ;;  %v11028_v25 = vmul.f32 %v15119_v28, %v15588_v10  ;;  %v18265_v46 = vld [vmem:[#allocation18_spill] sm:$0xff] }
 0x66f   : > { %10499 = vrot.lane.b32.xlu0 %v10478_v26, %s12498_s8  ;;  %v10161_v39 = vpop.permute.xlu1 %10160  ;;  %10661 = vrot.lane.b32.xlu1 %v10644_v37, %s12498_s8  ;;  %v11064_v28 = vrot.slane %v11028_v25, %v18047_v59 }
 0x670   : > { %v15687_v51 = vsel %vm4100_vm4, %v10159_v17, %v10161_v39  ;;  %v15690_v7 = vsel %vm4100_vm4, %v10161_v39, %v10163_v33  ;;  %v10167_v30 = vpop.permute.xlu0 %10166  ;;  %v10549_v17 = vrot.slane %v15406_v47, %v18054_v35  ;;  %v10565_v47 = vrot.slane %v15426_v41, %v18054_v35 }
 0x671   : > { %18237 = vst [vmem:[#allocation190_spill] sm:$0xff] %v15687_v51  ;;  %18238 = vst [vmem:[#allocation191_spill] sm:$0xff] %v15690_v7  ;;  %v10886_v41 = vrot.slane %v15464_v6, %v12646_v3  ;;  %v10965_v6 = vrot.slane %v15555_v45, %v18053_v23  ;;  %v11044_v45 = vrot.slane %v15608_v1, %v18054_v35  ;;  %v15771_v1 = vstv %s11703_s29  ;;  %v18263_v51 = vld [vmem:[#allocation27_spill] sm:$0xff]  ;;  %s16898_s29 = sld [smem:[#allocation4 + $0x200]] }
 0x673   : > { %10503 = vrot.lane.b32.xlu0 %v10486_v2, %s12498_s8  ;;  %v10165_v57 = vpop.permute.xlu1 %10164 }
 0x674   : > { %v15696_v26 = vsel %vm4100_vm4, %v10163_v33, %v10165_v57  ;;  %v15699_v54 = vsel %vm4100_vm4, %v10165_v57, %v10167_v30  ;;  %v10413_v37 = vpop.permute.xlu0 %10412 }
 0x675   : > { %18239 = vst [vmem:[#allocation192_spill] sm:$0xff] %v15696_v26  ;;  %18240 = vst [vmem:[#allocation193_spill] sm:$0xff] %v15699_v54  ;;  %v18257_v26 = vld [vmem:[#allocation12_spill] sm:$0xff] }
 0x677   : > { %10570 = vrot.lane.b32.xlu0 %v10541_v62, %s12498_s8  ;;  %v10169_v39 = vpop.permute.xlu1 %10168 }
 0x678   : > { %v15705_v7 = vsel %vm4100_vm4, %v10167_v30, %v10169_v39  ;;  %v10417_v2 = vpop.permute.xlu0 %10416 }
 0x679   : > { %18241 = vst [vmem:[#allocation194_spill] sm:$0xff] %v15705_v7  ;;  %v15944_v7 = vsel %vm4100_vm4, %v13494_v53, %v13354_v4 }
 0x67a   : > { %18255 = vst [vmem:[#allocation206_spill] sm:$0xff] %v15944_v7 }
 0x67b   : > { %10574 = vrot.lane.b32.xlu0 %v10549_v17, %s12498_s8  ;;  %v10415_v33 = vpop.permute.xlu1 %10414  ;;  %v10894_v17 = vrot.slane %v15487_v55, %v12646_v3  ;;  %v10973_v55 = vrot.slane %v15568_v32, %v18053_v23  ;;  %v11052_v32 = vrot.slane %v15618_v9, %v18054_v35  ;;  %v15785_v9 = vmul.f32 %v15107_v22, %v15771_v1 }
 0x67c   : > { %v15711_v57 = vsel %vm4100_vm4, %v10413_v37, %v10415_v33  ;;  %v15714_v54 = vsel %vm4100_vm4, %v10415_v33, %v10417_v2  ;;  %v10878_v37 = vrot.slane %v15450_v42, %v12646_v3  ;;  %v10957_v42 = vrot.slane %v15535_v24, %v18053_v23 }
 0x67d   : > { %18242 = vst [vmem:[#allocation195_spill] sm:$0xff] %v15711_v57  ;;  %18243 = vst [vmem:[#allocation196_spill] sm:$0xff] %v15714_v54  ;;  %v10981_v3 = vrot.slane %v15580_v5, %v18053_v23  ;;  %v11036_v24 = vrot.slane %v15595_v18, %v18054_v35  ;;  %v11060_v23 = vrot.slane %v11028_v25, %v18054_v35  ;;  %v18253_v54 = vld [vmem:[#allocation9_spill] sm:$0xff] }
 0x67e   : > { %v10632_v5 = vrot.slane %v15633_v15, %v18052_v48  ;;  %v10640_v18 = vrot.slane %v15649_v21, %v18052_v48  ;;  %v11104_v35 = vmul.f32 %v15163_v11, %v15771_v1  ;;  %v11105_v15 = vmul.f32 %v15095_v8, %v15771_v1  ;;  %v15794_v8 = vpop.permute.xlu0 %10420 }
 0x67f   : > { %10578 = vrot.lane.b32.xlu0 %v10557_v58, %s12498_s8  ;;  %v15719_v30 = vpop.permute.xlu1 %10418  ;;  %v11135_v59 = vrot.slane %v15785_v9, %v18052_v48  ;;  %v10648_v11 = vrot.slane %v15665_v29, %v18052_v48 }
 0x680   : > { %v15723_v62 = vsel %vm4100_vm4, %v10417_v2, %v15719_v30  ;;  %v11119_v10 = vrot.slane %v11104_v35, %v18052_v48  ;;  %v11127_v21 = vrot.slane %v11105_v15, %v18052_v48 }
 0x681   : > { %18244 = vst [vmem:[#allocation197_spill] sm:$0xff] %v15723_v62 }
 0x683   : > { %10582 = vrot.lane.b32.xlu0 %v10565_v47, %s12498_s8 }
 0x687   : > { %10649 = vrot.lane.b32.xlu0 %v10620_v27, %s12498_s8 }
 0x68b   : > { %10907 = vrot.lane.b32.xlu0 %v10878_v37, %s12498_s8 }
 0x68f   : > { %10911 = vrot.lane.b32.xlu0 %v10886_v41, %s12498_s8 }
 0x693   : > { %10915 = vrot.lane.b32.xlu0 %v10894_v17, %s12498_s8 }
 0x697   : > { %10919 = vrot.lane.b32.xlu0 %v10902_v12, %s12498_s8 }
 0x69b   : > { %10986 = vrot.lane.b32.xlu0 %v10957_v42, %s12498_s8 }
 0x69f   : > { %10990 = vrot.lane.b32.xlu0 %v10965_v6, %s12498_s8 }
 0x6a3   : > { %10994 = vrot.lane.b32.xlu0 %v10973_v55, %s12498_s8 }
 0x6a7   : > { %10998 = vrot.lane.b32.xlu0 %v10981_v3, %s12498_s8 }
 0x6ab   : > { %11065 = vrot.lane.b32.xlu0 %v11036_v24, %s12498_s8 }
 0x6af   : > { %11069 = vrot.lane.b32.xlu0 %v11044_v45, %s12498_s8 }
 0x6b3   : > { %11073 = vrot.lane.b32.xlu0 %v11052_v32, %s12498_s8 }
 0x6b7   : > { %11077 = vrot.lane.b32.xlu0 %v11060_v23, %s12498_s8 }
 0x6bb   : > { %10655 = vrot.lane.b32.xlu0 %v10632_v5, %s12498_s8 }
 0x6bf   : > { %10659 = vrot.lane.b32.xlu0 %v10640_v18, %s12498_s8 }
 0x6c3   : > { %11079 = vrot.lane.b32.xlu0 %v11064_v28, %s12498_s8 }
 0x6c7   : > { %11146 = vrot.lane.b32.xlu0 %v11119_v10, %s12498_s8 }
 0x6cb   : > { %11150 = vrot.lane.b32.xlu0 %v11127_v21, %s12498_s8 }
 0x6cf   : > { %11154 = vrot.lane.b32.xlu0 %v11135_v59, %s12498_s8  ;;  %v15850_v59 = vpop.permute.xlu1 %10422 }
 0x6d3   : > { %10663 = vrot.lane.b32.xlu0 %v10648_v11, %s12498_s8 }
 0x6da   : > { %v7221_v39 = vpop.xlane.xlu0 %7220 }
 0x6db   : > { %v7222_v2 = vmul.f32 0.001953125, %v7221_v39 }
 0x6dd   : > { %v15797_v58 = vsub.f32 %v15466_v14, %v7222_v2  ;;  %v15800_v22 = vsub.f32 %v15472_v60, %v7222_v2  ;;  %v15803_v33 = vsub.f32 %v15505_v13, %v7222_v2  ;;  %v15806_v47 = vsub.f32 %v15517_v38, %v7222_v2 }
 0x6de   : > { %v15809_v29 = vsub.f32 %v15515_v56, %v7222_v2  ;;  %v15811_v27 = vpop.permute.xlu0 %10424  ;;  %v15814_v37 = vsub.f32 %v15525_v44, %v7222_v2  ;;  %v15825_v56 = vsub.f32 %v15549_v49, %v7222_v2 }
 0x6df   : > { %18245 = vst [vmem:[#allocation198_spill] sm:$0xff] %v15806_v47  ;;  %v7230_v14 = vmul.f32 %v15797_v58, %v15797_v58  ;;  %v7231_v60 = vmul.f32 %v15800_v22, %v15800_v22  ;;  %v7232_v13 = vmul.f32 %v15803_v33, %v15803_v33  ;;  %v7233_v38 = vmul.f32 %v15806_v47, %v15806_v47  ;;  %v18542_v47 = vld [vmem:[#allocation160_spill] sm:$0xff] }
 0x6e0   : > { %18246 = vst [vmem:[#allocation199_spill] sm:$0xff] %v15809_v29  ;;  %18247 = vst [vmem:[#allocation200_spill] sm:$0xff] %v15814_v37  ;;  %v7234_v41 = vmul.f32 %v15809_v29, %v15809_v29  ;;  %v7235_v42 = vmul.f32 %v15814_v37, %v15814_v37  ;;  %v7236_v45 = vmul.f32 %v15825_v56, %v15825_v56  ;;  %v18486_v37 = vld [vmem:[#allocation130_spill] sm:$0xff]  ;;  %v18512_v29 = vld [vmem:[#allocation144_spill] sm:$0xff] }
 0x6e1   : > { %18248 = vst [vmem:[#allocation201_spill] sm:$0xff] %v15825_v56  ;;  %v7237_v44 = vmul.f32 %v7230_v14, %v15453_v19  ;;  %v7238_v17 = vmul.f32 %v7231_v60, %v15458_v16  ;;  %v7239_v12 = vmul.f32 %v7232_v13, %v15491_v43  ;;  %v7240_v6 = vmul.f32 %v7233_v38, %v15494_v34 }
 0x6e2   : > { %v15837_v24 = vpop.permute.xlu0 %10491  ;;  %v7241_v19 = vmul.f32 %v7234_v41, %v15497_v63  ;;  %v7242_v32 = vmul.f32 %v7235_v42, %v15520_v40  ;;  %v7243_v23 = vmul.f32 %v7236_v45, %v15540_v20  ;;  %v15853_v40 = vpop.permute.xlu1 %10426  ;;  %v11115_v13 = vrot.slane %v11104_v35, %v18036_v31 }
 0x6e3   : > { %v7244_v55 = vsel %vm399_vm0, %v7237_v44, 0.0  ;;  %v7245_v3 = vsel %vm399_vm0, %v7238_v17, 0.0  ;;  %v7247_v16 = vsel %vm399_vm0, %v7239_v12, 0.0  ;;  %v7249_v25 = vsel %vm399_vm0, %v7240_v6, 0.0  ;;  %v12432_v12 = vld [vmem:[%s12672_s27 + $0x18] sm:$0xff]  ;;  %s16665_s27 = sld [smem:[#allocation4 + $0x380]] }
 0x6e4   : > { %v7246_v49 = vadd.f32 %v7245_v3, %v7244_v55  ;;  %v7251_v5 = vsel %vm399_vm0, %v7241_v19, 0.0  ;;  %v7253_v10 = vsel %vm399_vm0, %v7242_v32, 0.0  ;;  %v7255_v63 = vsel %vm399_vm0, %v7243_v23, 0.0 }
 0x6e5   : > { %v11123_v38 = vrot.slane %v11105_v15, %v18036_v31  ;;  %v11131_v17 = vrot.slane %v15785_v9, %v18036_v31  ;;  %v11107_v42 = vmul.f32 %v12432_v12, %v15771_v1 }
 0x6e6   : > { %v7248_v43 = vadd.f32 %v7247_v16, %v7246_v49  ;;  %v15847_v28 = vpop.permute.xlu0 %10495  ;;  %v15857_v20 = vpop.permute.xlu1 %10493 }
 0x6e7   : > { %v11139_v35 = vrot.slane %v11107_v42, %v18036_v31  ;;  %v11143_v15 = vrot.slane %v11107_v42, %v18052_v48 }
 0x6e8   : > { %v7250_v34 = vadd.f32 %v7249_v25, %v7248_v43 }
 0x6ea   : > { %v7252_v18 = vadd.f32 %v7251_v5, %v7250_v34  ;;  %v15855_v39 = vpop.permute.xlu0 %10499  ;;  %v15861_v14 = vpop.permute.xlu1 %10497 }
 0x6ec   : > { %v7254_v21 = vadd.f32 %v7253_v10, %v7252_v18 }
 0x6ee   : > { %v7256_v11 = vadd.f32 %v7255_v63, %v7254_v21  ;;  %v15859_v2 = vpop.permute.xlu0 %10503  ;;  %v15868_v41 = vpop.permute.xlu1 %10501 }
 0x6f0   : > { %7257 = vadd.xlane.f32.xlu1 %v7256_v11 }
 0x6f2   : > { %v15863_v60 = vpop.permute.xlu0 %10570  ;;  %v15877_v6 = vpop.permute.xlu1 %10505 }
 0x6f6   : > { %v15870_v44 = vpop.permute.xlu0 %10574  ;;  %v15885_v3 = vpop.permute.xlu1 %10572 }
 0x6fa   : > { %v15879_v55 = vpop.permute.xlu0 %10578  ;;  %v15890_v9 = vpop.permute.xlu1 %10576 }
 0x6fe   : > { %v15887_v49 = vpop.permute.xlu0 %10582  ;;  %v15894_v45 = vpop.permute.xlu1 %10580 }
 0x701   : > { %11144 = vrot.lane.b32.xlu1 %v11115_v13, %s12498_s8 }
 0x702   : > { %v15892_v1 = vpop.permute.xlu0 %10649  ;;  %v15898_v16 = vpop.permute.xlu1 %10584 }
 0x705   : > { %11148 = vrot.lane.b32.xlu1 %v11123_v38, %s12498_s8 }
 0x706   : > { %v15896_v19 = vpop.permute.xlu0 %10907  ;;  %v15902_v43 = vpop.permute.xlu1 %10651 }
 0x709   : > { %11152 = vrot.lane.b32.xlu1 %v11131_v17, %s12498_s8  ;;  %v12527_v17 = vmov 1966171168  }
 0x70a   : > { %v15900_v31 = vpop.permute.xlu0 %10911  ;;  %v15906_v32 = vpop.permute.xlu1 %10909  ;;  %v7724_v12 = vunpack.c.l.s4 %v12527_v17  ;;  %v15949_v17 = vsel %vm4100_vm4, %v13354_v4, %v13498_v61 }
 0x70b   : > { %18256 = vst [vmem:[#allocation207_spill] sm:$0xff] %v15949_v17  ;;  %v18359_v17 = vld [vmem:[#allocation64_spill] sm:$0xff] }
 0x70d   : > { %11156 = vrot.lane.b32.xlu1 %v11139_v35, %s12498_s8 }
 0x70e   : > { %v15904_v48 = vpop.permute.xlu0 %10915  ;;  %v15910_v34 = vpop.permute.xlu1 %10913 }
 0x711   : > { %11158 = vrot.lane.b32.xlu1 %v11143_v15, %s12498_s8  ;;  %v7725_v15 = vunpack.c.0.s8 %v7724_v12  ;;  %v15954_v12 = vsel %vm4100_vm4, %v13498_v61, %v18257_v26  ;;  %v15974_v61 = vsel %vm4100_vm4, %v18263_v51, %v18265_v46  ;;  %s16667_s8 = sld [smem:[#allocation4 + $0x381]] }
 0x712   : > { %v15908_v25 = vpop.permute.xlu0 %10919  ;;  %v15914_v5 = vpop.permute.xlu1 %10917  ;;  %18258 = vst [vmem:[#allocation12_spill] sm:$0xff] %v15954_v12  ;;  %18266 = vst [vmem:[#allocation18_spill] sm:$0xff] %v15974_v61  ;;  %v18283_v61 = vld [vmem:[#allocation31_spill] sm:$0xff] }
 0x713   : > { %18249 = vst [vmem:[#allocation202_spill] sm:$0xff] %v15908_v25  ;;  %v15939_v57 = vsub.s32 %v7725_v15, %v18253_v54  ;;  %v18261_v15 = vld [vmem:[#allocation16_spill] sm:$0xff] }
 0x714   : > { %v15969_v4 = vsel %vm4100_vm4, %v18261_v15, %v18263_v51  ;;  %v18276_v51 = vld [vmem:[#allocation19_spill] sm:$0xff] }
 0x715   : > { %18254 = vst [vmem:[#allocation9_spill] sm:$0xff] %v15939_v57  ;;  %18264 = vst [vmem:[#allocation27_spill] sm:$0xff] %v15969_v4  ;;  %v18274_v4 = vld [vmem:[#allocation29_spill] sm:$0xff]  ;;  %v18408_v57 = vld [vmem:[#allocation91_spill] sm:$0xff] }
 0x716   : > { %v15912_v23 = vpop.permute.xlu0 %10986  ;;  %v15918_v10 = vpop.permute.xlu1 %10921  ;;  %v15994_v46 = vsel %vm4100_vm4, %v18272_v36, %v18274_v4 }
 0x717   : > { %18250 = vst [vmem:[#allocation203_spill] sm:$0xff] %v15918_v10  ;;  %18275 = vst [vmem:[#allocation20_spill] sm:$0xff] %v15994_v46  ;;  %v18285_v46 = vld [vmem:[#allocation32_spill] sm:$0xff] }
 0x71a   : > { %v15916_v18 = vpop.permute.xlu0 %10990  ;;  %v15922_v63 = vpop.permute.xlu1 %10988 }
 0x71e   : > { %v15920_v21 = vpop.permute.xlu0 %10994  ;;  %v15926_v13 = vpop.permute.xlu1 %10992 }
 0x722   : > { %v15924_v11 = vpop.permute.xlu0 %10998  ;;  %v15930_v42 = vpop.permute.xlu1 %10996 }
 0x723   : > { %18251 = vst [vmem:[#allocation204_spill] sm:$0xff] %v15924_v11 }
 0x726   : > { %v15928_v38 = vpop.permute.xlu0 %11065  ;;  %v15934_v62 = vpop.permute.xlu1 %11000 }
 0x727   : > { %18252 = vst [vmem:[#allocation205_spill] sm:$0xff] %v15934_v62  ;;  %v18259_v62 = vld [vmem:[#allocation25_spill] sm:$0xff] }
 0x728   : > { %v15959_v54 = vsel %vm4100_vm4, %v18257_v26, %v18259_v62  ;;  %v15964_v53 = vsel %vm4100_vm4, %v18259_v62, %v18261_v15  ;;  %v15979_v26 = vsel %vm4100_vm4, %v18268_v50, %v18267_v52  ;;  %v15984_v62 = vsel %vm4100_vm4, %v18267_v52, %v18270_v0 }
 0x729   : > { %18260 = vst [vmem:[#allocation25_spill] sm:$0xff] %v15959_v54  ;;  %18262 = vst [vmem:[#allocation16_spill] sm:$0xff] %v15964_v53  ;;  %v15989_v15 = vsel %vm4100_vm4, %v18270_v0, %v18272_v36  ;;  %v15999_v50 = vsel %vm4100_vm4, %v18274_v4, %v18276_v51  ;;  %v18305_v54 = vld [vmem:[#allocation37_spill] sm:$0xff] }
 0x72a   : > { %v15932_v35 = vpop.permute.xlu0 %11069  ;;  %18269 = vst [vmem:[#allocation17_spill] sm:$0xff] %v15979_v26  ;;  %18271 = vst [vmem:[#allocation15_spill] sm:$0xff] %v15984_v62  ;;  %v18278_v26 = vld [vmem:[#allocation30_spill] sm:$0xff]  ;;  %v18280_v62 = vld [vmem:[#allocation13_spill] sm:$0xff] }
 0x72b   : > { %18273 = vst [vmem:[#allocation11_spill] sm:$0xff] %v15989_v15  ;;  %18277 = vst [vmem:[#allocation29_spill] sm:$0xff] %v15999_v50  ;;  %v16004_v52 = vsel %vm4100_vm4, %v18276_v51, %v18278_v26  ;;  %v16009_v0 = vsel %vm4100_vm4, %v18278_v26, %v18280_v62  ;;  %v18282_v15 = vld [vmem:[#allocation21_spill] sm:$0xff]  ;;  %v18287_v50 = vld [vmem:[#allocation22_spill] sm:$0xff] }
 0x72c   : > { %18279 = vst [vmem:[#allocation19_spill] sm:$0xff] %v16004_v52  ;;  %18281 = vst [vmem:[#allocation30_spill] sm:$0xff] %v16009_v0  ;;  %v16014_v36 = vsel %vm4100_vm4, %v18283_v61, %v18282_v15  ;;  %v16019_v4 = vsel %vm4100_vm4, %v18282_v15, %v18285_v46  ;;  %v16024_v51 = vsel %vm4100_vm4, %v18285_v46, %v18287_v50  ;;  %v18289_v52 = vld [vmem:[#allocation33_spill] sm:$0xff]  ;;  %v18291_v62 = vld [vmem:[#allocation23_spill] sm:$0xff] }
 0x72d   : > { %18284 = vst [vmem:[#allocation13_spill] sm:$0xff] %v16014_v36  ;;  %18286 = vst [vmem:[#allocation21_spill] sm:$0xff] %v16019_v4  ;;  %v16029_v26 = vsel %vm4100_vm4, %v18287_v50, %v18289_v52  ;;  %v16034_v61 = vsel %vm4100_vm4, %v18289_v52, %v18291_v62  ;;  %v18293_v36 = vld [vmem:[#allocation34_spill] sm:$0xff]  ;;  %v16041_v4 = vpop.permute.xlu1 %11067  ;;  %v18296_v46 = vld [vmem:[#allocation24_spill] sm:$0xff] }
 0x72e   : > { %v15936_v10 = vpop.permute.xlu0 %11073  ;;  %18288 = vst [vmem:[#allocation31_spill] sm:$0xff] %v16024_v51  ;;  %18290 = vst [vmem:[#allocation32_spill] sm:$0xff] %v16029_v26  ;;  %v16039_v15 = vsel %vm4100_vm4, %v18291_v62, %v18293_v36  ;;  %v16048_v51 = vsel %vm4100_vm4, %v18293_v36, %v18296_v46  ;;  %v18298_v50 = vld [vmem:[#allocation14_spill] sm:$0xff]  ;;  %v18299_v26 = vld [vmem:[#allocation35_spill] sm:$0xff] }
 0x72f   : > { %18292 = vst [vmem:[#allocation22_spill] sm:$0xff] %v16034_v61  ;;  %18294 = vst [vmem:[#allocation33_spill] sm:$0xff] %v16039_v15  ;;  %v16053_v53 = vsel %vm4100_vm4, %v18299_v26, %v18298_v50  ;;  %v18301_v52 = vld [vmem:[#allocation36_spill] sm:$0xff]  ;;  %v18303_v62 = vld [vmem:[#allocation26_spill] sm:$0xff] }
 0x730   : > { %18297 = vst [vmem:[#allocation34_spill] sm:$0xff] %v16048_v51  ;;  %18300 = vst [vmem:[#allocation24_spill] sm:$0xff] %v16053_v53  ;;  %v16058_v61 = vsel %vm4100_vm4, %v18298_v50, %v18301_v52  ;;  %v16063_v15 = vsel %vm4100_vm4, %v18301_v52, %v18303_v62  ;;  %v16068_v36 = vsel %vm4100_vm4, %v18303_v62, %v18305_v54  ;;  %v18307_v46 = vld [vmem:[#allocation28_spill] sm:$0xff]  ;;  %v18309_v53 = vld [vmem:[#allocation38_spill] sm:$0xff] }
 0x731   : > { %18302 = vst [vmem:[#allocation14_spill] sm:$0xff] %v16058_v61  ;;  %18304 = vst [vmem:[#allocation35_spill] sm:$0xff] %v16063_v15  ;;  %v16073_v26 = vsel %vm4100_vm4, %v18305_v54, %v18307_v46  ;;  %v16078_v50 = vsel %vm4100_vm4, %v18307_v46, %v18309_v53  ;;  %v18311_v61 = vld [vmem:[#allocation10_spill] sm:$0xff]  ;;  %v18313_v15 = vld [vmem:[#allocation39_spill] sm:$0xff] }
 0x732   : > { %v16043_v0 = vpop.permute.xlu0 %11077  ;;  %18306 = vst [vmem:[#allocation36_spill] sm:$0xff] %v16068_v36  ;;  %18308 = vst [vmem:[#allocation26_spill] sm:$0xff] %v16073_v26  ;;  %v16083_v52 = vsel %vm4100_vm4, %v18309_v53, %v18311_v61  ;;  %v18314_v51 = vld [vmem:[#allocation40_spill] sm:$0xff]  ;;  %v18316_v36 = vld [vmem:[#allocation42_spill] sm:$0xff] }
 0x733   : > { %18295 = vst [vmem:[#allocation23_spill] sm:$0xff] %v16043_v0  ;;  %18310 = vst [vmem:[#allocation37_spill] sm:$0xff] %v16078_v50  ;;  %v16088_v62 = vsel %vm4100_vm4, %v18314_v51, %v18313_v15  ;;  %v16093_v54 = vsel %vm4100_vm4, %v18313_v15, %v18316_v36  ;;  %v18318_v26 = vld [vmem:[#allocation41_spill] sm:$0xff]  ;;  %v18320_v50 = vld [vmem:[#allocation44_spill] sm:$0xff] }
 0x734   : > { %18312 = vst [vmem:[#allocation28_spill] sm:$0xff] %v16083_v52  ;;  %18315 = vst [vmem:[#allocation38_spill] sm:$0xff] %v16088_v62  ;;  %v16098_v46 = vsel %vm4100_vm4, %v18316_v36, %v18318_v26  ;;  %v16103_v53 = vsel %vm4100_vm4, %v18318_v26, %v18320_v50  ;;  %v18322_v61 = vld [vmem:[#allocation43_spill] sm:$0xff]  ;;  %v18324_v62 = vld [vmem:[#allocation46_spill] sm:$0xff] }
 0x735   : > { %18317 = vst [vmem:[#allocation10_spill] sm:$0xff] %v16093_v54  ;;  %18319 = vst [vmem:[#allocation39_spill] sm:$0xff] %v16098_v46  ;;  %v16108_v51 = vsel %vm4100_vm4, %v18320_v50, %v18322_v61  ;;  %v16113_v15 = vsel %vm4100_vm4, %v18322_v61, %v18324_v62  ;;  %v18326_v54 = vld [vmem:[#allocation45_spill] sm:$0xff]  ;;  %v18328_v46 = vld [vmem:[#allocation47_spill] sm:$0xff] }
 0x736   : > { %18321 = vst [vmem:[#allocation40_spill] sm:$0xff] %v16103_v53  ;;  %18323 = vst [vmem:[#allocation42_spill] sm:$0xff] %v16108_v51  ;;  %v16118_v36 = vsel %vm4100_vm4, %v18324_v62, %v18326_v54  ;;  %v18329_v52 = vld [vmem:[#allocation48_spill] sm:$0xff]  ;;  %v18331_v53 = vld [vmem:[#allocation50_spill] sm:$0xff]  ;;  %v16167_v12 = vpop.permute.xlu0 %10655 }
 0x737   : > { %18325 = vst [vmem:[#allocation41_spill] sm:$0xff] %v16113_v15  ;;  %18327 = vst [vmem:[#allocation44_spill] sm:$0xff] %v16118_v36  ;;  %v16123_v26 = vsel %vm4100_vm4, %v18329_v52, %v18328_v46  ;;  %v16128_v50 = vsel %vm4100_vm4, %v18328_v46, %v18331_v53  ;;  %v18333_v51 = vld [vmem:[#allocation49_spill] sm:$0xff]  ;;  %v18335_v15 = vld [vmem:[#allocation52_spill] sm:$0xff] }
 0x738   : > { %18330 = vst [vmem:[#allocation43_spill] sm:$0xff] %v16123_v26  ;;  %18332 = vst [vmem:[#allocation46_spill] sm:$0xff] %v16128_v50  ;;  %v16133_v61 = vsel %vm4100_vm4, %v18331_v53, %v18333_v51  ;;  %v16138_v62 = vsel %vm4100_vm4, %v18333_v51, %v18335_v15  ;;  %v18337_v54 = vld [vmem:[#allocation51_spill] sm:$0xff]  ;;  %v18339_v26 = vld [vmem:[#allocation54_spill] sm:$0xff] }
 0x739   : > { %18334 = vst [vmem:[#allocation45_spill] sm:$0xff] %v16133_v61  ;;  %18336 = vst [vmem:[#allocation47_spill] sm:$0xff] %v16138_v62  ;;  %v16143_v52 = vsel %vm4100_vm4, %v18335_v15, %v18337_v54  ;;  %v16148_v46 = vsel %vm4100_vm4, %v18337_v54, %v18339_v26  ;;  %v18341_v50 = vld [vmem:[#allocation53_spill] sm:$0xff]  ;;  %v18343_v61 = vld [vmem:[#allocation55_spill] sm:$0xff] }
 0x73a   : > { %18338 = vst [vmem:[#allocation48_spill] sm:$0xff] %v16143_v52  ;;  %18340 = vst [vmem:[#allocation50_spill] sm:$0xff] %v16148_v46  ;;  %v16153_v53 = vsel %vm4100_vm4, %v18339_v26, %v18341_v50  ;;  %v18344_v36 = vld [vmem:[#allocation56_spill] sm:$0xff]  ;;  %v18346_v62 = vld [vmem:[#allocation58_spill] sm:$0xff]  ;;  %v16165_v52 = vpop.permute.xlu1 %11071 }
 0x73b   : > { %18342 = vst [vmem:[#allocation49_spill] sm:$0xff] %v16153_v53  ;;  %v16158_v51 = vsel %vm4100_vm4, %v18344_v36, %v18343_v61  ;;  %v16163_v15 = vsel %vm4100_vm4, %v18343_v61, %v18346_v62  ;;  %v18348_v54 = vld [vmem:[#allocation57_spill] sm:$0xff]  ;;  %v18350_v26 = vld [vmem:[#allocation60_spill] sm:$0xff]  ;;  %v18352_v36 = vld [vmem:[#allocation59_spill] sm:$0xff] }
 0x73c   : > { %18345 = vst [vmem:[#allocation52_spill] sm:$0xff] %v16158_v51  ;;  %18347 = vst [vmem:[#allocation51_spill] sm:$0xff] %v16163_v15  ;;  %v16172_v46 = vsel %vm4100_vm4, %v18346_v62, %v18348_v54  ;;  %v16177_v50 = vsel %vm4100_vm4, %v18348_v54, %v18350_v26  ;;  %v16182_v51 = vsel %vm4100_vm4, %v18350_v26, %v18352_v36  ;;  %v18354_v61 = vld [vmem:[#allocation62_spill] sm:$0xff]  ;;  %v18356_v53 = vld [vmem:[#allocation61_spill] sm:$0xff] }
 0x73d   : > { %18349 = vst [vmem:[#allocation54_spill] sm:$0xff] %v16172_v46  ;;  %18351 = vst [vmem:[#allocation53_spill] sm:$0xff] %v16177_v50  ;;  %v16187_v15 = vsel %vm4100_vm4, %v18352_v36, %v18354_v61  ;;  %v16192_v62 = vsel %vm4100_vm4, %v18354_v61, %v18356_v53  ;;  %v18358_v46 = vld [vmem:[#allocation63_spill] sm:$0xff]  ;;  %v18361_v50 = vld [vmem:[#allocation65_spill] sm:$0xff] }
 0x73e   : > { %18353 = vst [vmem:[#allocation55_spill] sm:$0xff] %v16182_v51  ;;  %18355 = vst [vmem:[#allocation56_spill] sm:$0xff] %v16187_v15  ;;  %v16197_v54 = vsel %vm4100_vm4, %v18359_v17, %v18358_v46  ;;  %v16202_v26 = vsel %vm4100_vm4, %v18358_v46, %v18361_v50  ;;  %v18363_v51 = vld [vmem:[#allocation66_spill] sm:$0xff]  ;;  %v18365_v15 = vld [vmem:[#allocation67_spill] sm:$0xff] }
 0x73f   : > { %18357 = vst [vmem:[#allocation58_spill] sm:$0xff] %v16192_v62  ;;  %18360 = vst [vmem:[#allocation57_spill] sm:$0xff] %v16197_v54  ;;  %v16207_v36 = vsel %vm4100_vm4, %v18361_v50, %v18363_v51  ;;  %v16212_v53 = vsel %vm4100_vm4, %v18363_v51, %v18365_v15  ;;  %v18367_v61 = vld [vmem:[#allocation69_spill] sm:$0xff]  ;;  %v18369_v54 = vld [vmem:[#allocation68_spill] sm:$0xff] }
 0x740   : > { %18362 = vst [vmem:[#allocation60_spill] sm:$0xff] %v16202_v26  ;;  %18364 = vst [vmem:[#allocation59_spill] sm:$0xff] %v16207_v36  ;;  %v16217_v17 = vsel %vm4100_vm4, %v18365_v15, %v18367_v61  ;;  %v16222_v46 = vsel %vm4100_vm4, %v18367_v61, %v18369_v54  ;;  %v18371_v26 = vld [vmem:[#allocation71_spill] sm:$0xff]  ;;  %v18373_v36 = vld [vmem:[#allocation72_spill] sm:$0xff] }
 0x741   : > { %18366 = vst [vmem:[#allocation62_spill] sm:$0xff] %v16212_v53  ;;  %18368 = vst [vmem:[#allocation61_spill] sm:$0xff] %v16217_v17  ;;  %v16227_v50 = vsel %vm4100_vm4, %v18369_v54, %v18371_v26  ;;  %v18374_v62 = vld [vmem:[#allocation70_spill] sm:$0xff]  ;;  %v18376_v53 = vld [vmem:[#allocation73_spill] sm:$0xff] }
 0x742   : > { %18370 = vst [vmem:[#allocation63_spill] sm:$0xff] %v16222_v46  ;;  %18372 = vst [vmem:[#allocation64_spill] sm:$0xff] %v16227_v50  ;;  %v16232_v51 = vsel %vm4100_vm4, %v18374_v62, %v18373_v36  ;;  %v16237_v15 = vsel %vm4100_vm4, %v18373_v36, %v18376_v53  ;;  %v18378_v17 = vld [vmem:[#allocation74_spill] sm:$0xff]  ;;  %v18380_v46 = vld [vmem:[#allocation75_spill] sm:$0xff] }
 0x743   : > { %18375 = vst [vmem:[#allocation65_spill] sm:$0xff] %v16232_v51  ;;  %18377 = vst [vmem:[#allocation66_spill] sm:$0xff] %v16237_v15  ;;  %v16242_v61 = vsel %vm4100_vm4, %v18376_v53, %v18378_v17  ;;  %v16247_v54 = vsel %vm4100_vm4, %v18378_v17, %v18380_v46  ;;  %v18382_v26 = vld [vmem:[#allocation77_spill] sm:$0xff]  ;;  %v18384_v51 = vld [vmem:[#allocation76_spill] sm:$0xff] }
 0x744   : > { %18379 = vst [vmem:[#allocation67_spill] sm:$0xff] %v16242_v61  ;;  %18381 = vst [vmem:[#allocation69_spill] sm:$0xff] %v16247_v54  ;;  %v16252_v62 = vsel %vm4100_vm4, %v18380_v46, %v18382_v26  ;;  %v16257_v36 = vsel %vm4100_vm4, %v18382_v26, %v18384_v51  ;;  %v18386_v15 = vld [vmem:[#allocation79_spill] sm:$0xff]  ;;  %v18388_v61 = vld [vmem:[#allocation81_spill] sm:$0xff] }
 0x745   : > { %18383 = vst [vmem:[#allocation68_spill] sm:$0xff] %v16252_v62  ;;  %18385 = vst [vmem:[#allocation71_spill] sm:$0xff] %v16257_v36  ;;  %v16262_v53 = vsel %vm4100_vm4, %v18384_v51, %v18386_v15  ;;  %v18389_v50 = vld [vmem:[#allocation78_spill] sm:$0xff]  ;;  %v18391_v54 = vld [vmem:[#allocation80_spill] sm:$0xff] }
 0x746   : > { %18387 = vst [vmem:[#allocation72_spill] sm:$0xff] %v16262_v53  ;;  %v16267_v17 = vsel %vm4100_vm4, %v18389_v50, %v18388_v61  ;;  %v16272_v46 = vsel %vm4100_vm4, %v18388_v61, %v18391_v54  ;;  %v18393_v62 = vld [vmem:[#allocation83_spill] sm:$0xff]  ;;  %v18395_v36 = vld [vmem:[#allocation82_spill] sm:$0xff]  ;;  %v18397_v15 = vld [vmem:[#allocation85_spill] sm:$0xff]  ;;  %v16291_v53 = vpop.permute.xlu0 %10659 }
 0x747   : > { %18390 = vst [vmem:[#allocation70_spill] sm:$0xff] %v16267_v17  ;;  %18392 = vst [vmem:[#allocation73_spill] sm:$0xff] %v16272_v46  ;;  %v16277_v26 = vsel %vm4100_vm4, %v18391_v54, %v18393_v62  ;;  %v16282_v51 = vsel %vm4100_vm4, %v18393_v62, %v18395_v36  ;;  %v16287_v50 = vsel %vm4100_vm4, %v18395_v36, %v18397_v15  ;;  %v16289_v17 = vpop.permute.xlu1 %11075  ;;  %v18399_v61 = vld [vmem:[#allocation84_spill] sm:$0xff]  ;;  %v18401_v54 = vld [vmem:[#allocation87_spill] sm:$0xff] }
 0x748   : > { %18394 = vst [vmem:[#allocation74_spill] sm:$0xff] %v16277_v26  ;;  %18396 = vst [vmem:[#allocation75_spill] sm:$0xff] %v16282_v51  ;;  %v16296_v46 = vsel %vm4100_vm4, %v18397_v15, %v18399_v61  ;;  %v16301_v26 = vsel %vm4100_vm4, %v18399_v61, %v18401_v54  ;;  %v18403_v62 = vld [vmem:[#allocation89_spill] sm:$0xff]  ;;  %v18404_v51 = vld [vmem:[#allocation86_spill] sm:$0xff] }
 0x749   : > { %18398 = vst [vmem:[#allocation77_spill] sm:$0xff] %v16287_v50  ;;  %18400 = vst [vmem:[#allocation76_spill] sm:$0xff] %v16296_v46  ;;  %v16306_v7 = vsel %vm4100_vm4, %v18404_v51, %v18403_v62  ;;  %v18406_v36 = vld [vmem:[#allocation88_spill] sm:$0xff]  ;;  %v18410_v46 = vld [vmem:[#allocation90_spill] sm:$0xff] }
 0x74a   : > { %18402 = vst [vmem:[#allocation79_spill] sm:$0xff] %v16301_v26  ;;  %18405 = vst [vmem:[#allocation81_spill] sm:$0xff] %v16306_v7  ;;  %v16311_v50 = vsel %vm4100_vm4, %v18403_v62, %v18406_v36  ;;  %v16316_v15 = vsel %vm4100_vm4, %v18406_v36, %v18408_v57  ;;  %v16321_v61 = vsel %vm4100_vm4, %v18408_v57, %v18410_v46  ;;  %v18412_v54 = vld [vmem:[#allocation93_spill] sm:$0xff]  ;;  %v18414_v7 = vld [vmem:[#allocation92_spill] sm:$0xff]  ;;  %v16415_v56 = vpop.permute.xlu0 %11079 }
 0x74b   : > { %18407 = vst [vmem:[#allocation78_spill] sm:$0xff] %v16311_v50  ;;  %18409 = vst [vmem:[#allocation80_spill] sm:$0xff] %v16316_v15  ;;  %v16326_v51 = vsel %vm4100_vm4, %v18410_v46, %v18412_v54  ;;  %v16331_v62 = vsel %vm4100_vm4, %v18412_v54, %v18414_v7  ;;  %v18416_v50 = vld [vmem:[#allocation95_spill] sm:$0xff]  ;;  %v18418_v15 = vld [vmem:[#allocation97_spill] sm:$0xff] }
 0x74c   : > { %18411 = vst [vmem:[#allocation83_spill] sm:$0xff] %v16321_v61  ;;  %18413 = vst [vmem:[#allocation82_spill] sm:$0xff] %v16326_v51  ;;  %v16336_v36 = vsel %vm4100_vm4, %v18414_v7, %v18416_v50  ;;  %v18419_v26 = vld [vmem:[#allocation94_spill] sm:$0xff]  ;;  %v18421_v61 = vld [vmem:[#allocation96_spill] sm:$0xff] }
 0x74d   : > { %18415 = vst [vmem:[#allocation85_spill] sm:$0xff] %v16331_v62  ;;  %18417 = vst [vmem:[#allocation84_spill] sm:$0xff] %v16336_v36  ;;  %v16341_v57 = vsel %vm4100_vm4, %v18419_v26, %v18418_v15  ;;  %v16346_v46 = vsel %vm4100_vm4, %v18418_v15, %v18421_v61  ;;  %v18423_v51 = vld [vmem:[#allocation99_spill] sm:$0xff]  ;;  %v18425_v62 = vld [vmem:[#allocation98_spill] sm:$0xff] }
 0x74e   : > { %18420 = vst [vmem:[#allocation87_spill] sm:$0xff] %v16341_v57  ;;  %18422 = vst [vmem:[#allocation89_spill] sm:$0xff] %v16346_v46  ;;  %v16351_v54 = vsel %vm4100_vm4, %v18421_v61, %v18423_v51  ;;  %v16356_v7 = vsel %vm4100_vm4, %v18423_v51, %v18425_v62  ;;  %v18427_v50 = vld [vmem:[#allocation101_spill] sm:$0xff]  ;;  %v18429_v57 = vld [vmem:[#allocation100_spill] sm:$0xff] }
 0x74f   : > { %18424 = vst [vmem:[#allocation86_spill] sm:$0xff] %v16351_v54  ;;  %18426 = vst [vmem:[#allocation88_spill] sm:$0xff] %v16356_v7  ;;  %v16361_v26 = vsel %vm4100_vm4, %v18425_v62, %v18427_v50  ;;  %v16366_v15 = vsel %vm4100_vm4, %v18427_v50, %v18429_v57  ;;  %v18431_v46 = vld [vmem:[#allocation103_spill] sm:$0xff]  ;;  %v18433_v54 = vld [vmem:[#allocation105_spill] sm:$0xff] }
 0x750   : > { %18428 = vst [vmem:[#allocation91_spill] sm:$0xff] %v16361_v26  ;;  %18430 = vst [vmem:[#allocation90_spill] sm:$0xff] %v16366_v15  ;;  %v16371_v61 = vsel %vm4100_vm4, %v18429_v57, %v18431_v46  ;;  %v18434_v36 = vld [vmem:[#allocation102_spill] sm:$0xff]  ;;  %v18436_v7 = vld [vmem:[#allocation104_spill] sm:$0xff] }
 0x751   : > { %18432 = vst [vmem:[#allocation93_spill] sm:$0xff] %v16371_v61  ;;  %v16376_v51 = vsel %vm4100_vm4, %v18434_v36, %v18433_v54  ;;  %v16381_v62 = vsel %vm4100_vm4, %v18433_v54, %v18436_v7  ;;  %v18438_v26 = vld [vmem:[#allocation107_spill] sm:$0xff]  ;;  %v18440_v15 = vld [vmem:[#allocation106_spill] sm:$0xff]  ;;  %v18442_v46 = vld [vmem:[#allocation109_spill] sm:$0xff] }
 0x752   : > { %18435 = vst [vmem:[#allocation92_spill] sm:$0xff] %v16376_v51  ;;  %18437 = vst [vmem:[#allocation95_spill] sm:$0xff] %v16381_v62  ;;  %v16386_v50 = vsel %vm4100_vm4, %v18436_v7, %v18438_v26  ;;  %v16391_v57 = vsel %vm4100_vm4, %v18438_v26, %v18440_v15  ;;  %v16396_v36 = vsel %vm4100_vm4, %v18440_v15, %v18442_v46  ;;  %v18444_v51 = vld [vmem:[#allocation108_spill] sm:$0xff]  ;;  %v18446_v62 = vld [vmem:[#allocation111_spill] sm:$0xff] }
 0x753   : > { %18439 = vst [vmem:[#allocation97_spill] sm:$0xff] %v16386_v50  ;;  %18441 = vst [vmem:[#allocation94_spill] sm:$0xff] %v16391_v57  ;;  %v16401_v54 = vsel %vm4100_vm4, %v18442_v46, %v18444_v51  ;;  %v16406_v7 = vsel %vm4100_vm4, %v18444_v51, %v18446_v62  ;;  %v18448_v50 = vld [vmem:[#allocation113_spill] sm:$0xff]  ;;  %v18449_v61 = vld [vmem:[#allocation110_spill] sm:$0xff]  ;;  %v16413_v57 = vpop.permute.xlu1 %10653 }
 0x754   : > { %18443 = vst [vmem:[#allocation96_spill] sm:$0xff] %v16396_v36  ;;  %18445 = vst [vmem:[#allocation99_spill] sm:$0xff] %v16401_v54  ;;  %v16411_v26 = vsel %vm4100_vm4, %v18449_v61, %v18448_v50  ;;  %v18452_v15 = vld [vmem:[#allocation112_spill] sm:$0xff]  ;;  %v18454_v46 = vld [vmem:[#allocation115_spill] sm:$0xff] }
 0x755   : > { %18447 = vst [vmem:[#allocation98_spill] sm:$0xff] %v16406_v7  ;;  %18450 = vst [vmem:[#allocation101_spill] sm:$0xff] %v16411_v26  ;;  %v16420_v36 = vsel %vm4100_vm4, %v18448_v50, %v18452_v15  ;;  %v16425_v54 = vsel %vm4100_vm4, %v18452_v15, %v18454_v46  ;;  %v18456_v51 = vld [vmem:[#allocation114_spill] sm:$0xff]  ;;  %v18458_v61 = vld [vmem:[#allocation117_spill] sm:$0xff] }
 0x756   : > { %18451 = vst [vmem:[#allocation100_spill] sm:$0xff] %v16415_v56  ;;  %18453 = vst [vmem:[#allocation103_spill] sm:$0xff] %v16420_v36  ;;  %v16430_v62 = vsel %vm4100_vm4, %v18454_v46, %v18456_v51  ;;  %v16435_v26 = vsel %vm4100_vm4, %v18456_v51, %v18458_v61  ;;  %v18460_v56 = vld [vmem:[#allocation116_spill] sm:$0xff]  ;;  %v18462_v36 = vld [vmem:[#allocation119_spill] sm:$0xff] }
 0x757   : > { %18455 = vst [vmem:[#allocation105_spill] sm:$0xff] %v16425_v54  ;;  %18457 = vst [vmem:[#allocation102_spill] sm:$0xff] %v16430_v62  ;;  %v16440_v50 = vsel %vm4100_vm4, %v18458_v61, %v18460_v56  ;;  %v16445_v15 = vsel %vm4100_vm4, %v18460_v56, %v18462_v36  ;;  %v18464_v54 = vld [vmem:[#allocation121_spill] sm:$0xff]  ;;  %v18465_v7 = vld [vmem:[#allocation118_spill] sm:$0xff] }
 0x758   : > { %18459 = vst [vmem:[#allocation104_spill] sm:$0xff] %v16435_v26  ;;  %18461 = vst [vmem:[#allocation107_spill] sm:$0xff] %v16440_v50  ;;  %v16450_v46 = vsel %vm4100_vm4, %v18465_v7, %v18464_v54  ;;  %v18467_v62 = vld [vmem:[#allocation120_spill] sm:$0xff]  ;;  %v18469_v26 = vld [vmem:[#allocation123_spill] sm:$0xff] }
 0x759   : > { %18463 = vst [vmem:[#allocation106_spill] sm:$0xff] %v16445_v15  ;;  %18466 = vst [vmem:[#allocation109_spill] sm:$0xff] %v16450_v46  ;;  %v16455_v51 = vsel %vm4100_vm4, %v18464_v54, %v18467_v62  ;;  %v16460_v61 = vsel %vm4100_vm4, %v18467_v62, %v18469_v26  ;;  %v18471_v50 = vld [vmem:[#allocation122_spill] sm:$0xff]  ;;  %v18473_v36 = vld [vmem:[#allocation125_spill] sm:$0xff] }
 0x75a   : > { %18468 = vst [vmem:[#allocation108_spill] sm:$0xff] %v16455_v51  ;;  %18470 = vst [vmem:[#allocation111_spill] sm:$0xff] %v16460_v61  ;;  %v16465_v56 = vsel %vm4100_vm4, %v18469_v26, %v18471_v50  ;;  %v16470_v7 = vsel %vm4100_vm4, %v18471_v50, %v18473_v36  ;;  %v18475_v46 = vld [vmem:[#allocation124_spill] sm:$0xff]  ;;  %v18477_v51 = vld [vmem:[#allocation127_spill] sm:$0xff] }
 0x75b   : > { %18472 = vst [vmem:[#allocation113_spill] sm:$0xff] %v16465_v56  ;;  %18474 = vst [vmem:[#allocation110_spill] sm:$0xff] %v16470_v7  ;;  %v16475_v54 = vsel %vm4100_vm4, %v18473_v36, %v18475_v46  ;;  %v16480_v62 = vsel %vm4100_vm4, %v18475_v46, %v18477_v51  ;;  %v18479_v61 = vld [vmem:[#allocation129_spill] sm:$0xff]  ;;  %v18480_v15 = vld [vmem:[#allocation126_spill] sm:$0xff] }
 0x75c   : > { %18476 = vst [vmem:[#allocation112_spill] sm:$0xff] %v16475_v54  ;;  %18478 = vst [vmem:[#allocation115_spill] sm:$0xff] %v16480_v62  ;;  %v16485_v26 = vsel %vm4100_vm4, %v18480_v15, %v18479_v61  ;;  %v18482_v56 = vld [vmem:[#allocation128_spill] sm:$0xff]  ;;  %v18484_v7 = vld [vmem:[#allocation131_spill] sm:$0xff]  ;;  %v16497_v54 = vpop.permute.xlu1 %10657 }
 0x75d   : > { %18481 = vst [vmem:[#allocation114_spill] sm:$0xff] %v16485_v26  ;;  %v16490_v50 = vsel %vm4100_vm4, %v18479_v61, %v18482_v56  ;;  %v16495_v36 = vsel %vm4100_vm4, %v18482_v56, %v18484_v7  ;;  %v16502_v46 = vsel %vm4100_vm4, %v18484_v7, %v18486_v37  ;;  %v18488_v51 = vld [vmem:[#allocation133_spill] sm:$0xff]  ;;  %v18490_v26 = vld [vmem:[#allocation132_spill] sm:$0xff]  ;;  %v18495_v62 = vld [vmem:[#allocation134_spill] sm:$0xff] }
 0x75e   : > { %18483 = vst [vmem:[#allocation117_spill] sm:$0xff] %v16490_v50  ;;  %18485 = vst [vmem:[#allocation116_spill] sm:$0xff] %v16495_v36  ;;  %v16507_v15 = vsel %vm4100_vm4, %v18486_v37, %v18488_v51  ;;  %v16512_v61 = vsel %vm4100_vm4, %v18488_v51, %v18490_v26  ;;  %v18492_v50 = vld [vmem:[#allocation135_spill] sm:$0xff]  ;;  %v18494_v36 = vld [vmem:[#allocation137_spill] sm:$0xff] }
 0x75f   : > { %18487 = vst [vmem:[#allocation119_spill] sm:$0xff] %v16502_v46  ;;  %18489 = vst [vmem:[#allocation121_spill] sm:$0xff] %v16507_v15  ;;  %v16517_v56 = vsel %vm4100_vm4, %v18490_v26, %v18492_v50  ;;  %v16522_v7 = vsel %vm4100_vm4, %v18495_v62, %v18494_v36  ;;  %v18497_v46 = vld [vmem:[#allocation136_spill] sm:$0xff]  ;;  %v18499_v15 = vld [vmem:[#allocation139_spill] sm:$0xff]  ;;  %v16539_v50 = vpop.permute.xlu0 %11146 }
 0x760   : > { %18491 = vst [vmem:[#allocation118_spill] sm:$0xff] %v16512_v61  ;;  %18493 = vst [vmem:[#allocation120_spill] sm:$0xff] %v16517_v56  ;;  %v16527_v37 = vsel %vm4100_vm4, %v18494_v36, %v18497_v46  ;;  %v16532_v51 = vsel %vm4100_vm4, %v18497_v46, %v18499_v15  ;;  %v18501_v61 = vld [vmem:[#allocation138_spill] sm:$0xff]  ;;  %v18503_v56 = vld [vmem:[#allocation141_spill] sm:$0xff] }
 0x761   : > { %18496 = vst [vmem:[#allocation123_spill] sm:$0xff] %v16522_v7  ;;  %18498 = vst [vmem:[#allocation122_spill] sm:$0xff] %v16527_v37  ;;  %v16537_v26 = vsel %vm4100_vm4, %v18499_v15, %v18501_v61  ;;  %v16544_v62 = vsel %vm4100_vm4, %v18501_v61, %v18503_v56  ;;  %v18505_v7 = vld [vmem:[#allocation140_spill] sm:$0xff]  ;;  %v18507_v37 = vld [vmem:[#allocation143_spill] sm:$0xff] }
 0x762   : > { %18500 = vst [vmem:[#allocation125_spill] sm:$0xff] %v16532_v51  ;;  %18502 = vst [vmem:[#allocation124_spill] sm:$0xff] %v16537_v26  ;;  %v16549_v36 = vsel %vm4100_vm4, %v18503_v56, %v18505_v7  ;;  %v16554_v46 = vsel %vm4100_vm4, %v18505_v7, %v18507_v37  ;;  %v18509_v51 = vld [vmem:[#allocation145_spill] sm:$0xff]  ;;  %v18510_v15 = vld [vmem:[#allocation142_spill] sm:$0xff] }
 0x763   : > { %18504 = vst [vmem:[#allocation127_spill] sm:$0xff] %v16544_v62  ;;  %18506 = vst [vmem:[#allocation129_spill] sm:$0xff] %v16549_v36  ;;  %v16559_v26 = vsel %vm4100_vm4, %v18510_v15, %v18509_v51  ;;  %v16564_v61 = vsel %vm4100_vm4, %v18509_v51, %v18512_v29  ;;  %v18514_v62 = vld [vmem:[#allocation147_spill] sm:$0xff]  ;;  %v18516_v36 = vld [vmem:[#allocation146_spill] sm:$0xff] }
 0x764   : > { %18508 = vst [vmem:[#allocation126_spill] sm:$0xff] %v16554_v46  ;;  %18511 = vst [vmem:[#allocation128_spill] sm:$0xff] %v16559_v26  ;;  %v16569_v56 = vsel %vm4100_vm4, %v18512_v29, %v18514_v62  ;;  %v16574_v7 = vsel %vm4100_vm4, %v18514_v62, %v18516_v36  ;;  %v18518_v37 = vld [vmem:[#allocation149_spill] sm:$0xff]  ;;  %v18520_v26 = vld [vmem:[#allocation148_spill] sm:$0xff] }
 0x765   : > { %18513 = vst [vmem:[#allocation131_spill] sm:$0xff] %v16564_v61  ;;  %18515 = vst [vmem:[#allocation130_spill] sm:$0xff] %v16569_v56  ;;  %v16579_v15 = vsel %vm4100_vm4, %v18516_v36, %v18518_v37  ;;  %v16584_v51 = vsel %vm4100_vm4, %v18518_v37, %v18520_v26  ;;  %v18522_v61 = vld [vmem:[#allocation151_spill] sm:$0xff]  ;;  %v18524_v56 = vld [vmem:[#allocation153_spill] sm:$0xff] }
 0x766   : > { %18517 = vst [vmem:[#allocation133_spill] sm:$0xff] %v16574_v7  ;;  %18519 = vst [vmem:[#allocation132_spill] sm:$0xff] %v16579_v15  ;;  %v16589_v29 = vsel %vm4100_vm4, %v18520_v26, %v18522_v61  ;;  %v18525_v46 = vld [vmem:[#allocation150_spill] sm:$0xff]  ;;  %v18527_v7 = vld [vmem:[#allocation152_spill] sm:$0xff] }
 0x767   : > { %18521 = vst [vmem:[#allocation135_spill] sm:$0xff] %v16584_v51  ;;  %18523 = vst [vmem:[#allocation137_spill] sm:$0xff] %v16589_v29  ;;  %v16594_v62 = vsel %vm4100_vm4, %v18525_v46, %v18524_v56  ;;  %v16599_v36 = vsel %vm4100_vm4, %v18524_v56, %v18527_v7  ;;  %v18529_v15 = vld [vmem:[#allocation155_spill] sm:$0xff]  ;;  %v18531_v51 = vld [vmem:[#allocation154_spill] sm:$0xff] }
 0x768   : > { %18526 = vst [vmem:[#allocation134_spill] sm:$0xff] %v16594_v62  ;;  %18528 = vst [vmem:[#allocation136_spill] sm:$0xff] %v16599_v36  ;;  %v16604_v37 = vsel %vm4100_vm4, %v18527_v7, %v18529_v15  ;;  %v16609_v26 = vsel %vm4100_vm4, %v18529_v15, %v18531_v51  ;;  %v18533_v61 = vld [vmem:[#allocation157_spill] sm:$0xff]  ;;  %v18535_v62 = vld [vmem:[#allocation156_spill] sm:$0xff]  ;;  %v16621_v36 = vpop.permute.xlu1 %10661 }
 0x769   : > { %18530 = vst [vmem:[#allocation139_spill] sm:$0xff] %v16604_v37  ;;  %18532 = vst [vmem:[#allocation138_spill] sm:$0xff] %v16609_v26  ;;  %v16614_v46 = vsel %vm4100_vm4, %v18531_v51, %v18533_v61  ;;  %v16619_v56 = vsel %vm4100_vm4, %v18533_v61, %v18535_v62  ;;  %v18537_v29 = vld [vmem:[#allocation159_spill] sm:$0xff]  ;;  %v18539_v37 = vld [vmem:[#allocation161_spill] sm:$0xff] }
 0x76a   : > { %18534 = vst [vmem:[#allocation141_spill] sm:$0xff] %v16614_v46  ;;  %18536 = vst [vmem:[#allocation140_spill] sm:$0xff] %v16619_v56  ;;  %v16626_v7 = vsel %vm4100_vm4, %v18535_v62, %v18537_v29  ;;  %v18540_v15 = vld [vmem:[#allocation158_spill] sm:$0xff]  ;;  %v16636_v51 = vsel %vm4100_vm4, %v18539_v37, %v18542_v47  ;;  %v18544_v46 = vld [vmem:[#allocation163_spill] sm:$0xff] }
 0x76b   : > { %18538 = vst [vmem:[#allocation143_spill] sm:$0xff] %v16626_v7  ;;  %v16631_v26 = vsel %vm4100_vm4, %v18540_v15, %v18539_v37  ;;  %18543 = vst [vmem:[#allocation142_spill] sm:$0xff] %v16636_v51  ;;  %v16641_v61 = vsel %vm4100_vm4, %v18542_v47, %v18544_v46  ;;  %v18546_v56 = vld [vmem:[#allocation162_spill] sm:$0xff]  ;;  %v18548_v62 = vld [vmem:[#allocation165_spill] sm:$0xff] }
 0x76c   : > { %18541 = vst [vmem:[#allocation145_spill] sm:$0xff] %v16631_v26  ;;  %18545 = vst [vmem:[#allocation144_spill] sm:$0xff] %v16641_v61  ;;  %v16646_v29 = vsel %vm4100_vm4, %v18544_v46, %v18546_v56  ;;  %v16651_v15 = vsel %vm4100_vm4, %v18546_v56, %v18548_v62  ;;  %v18550_v26 = vld [vmem:[#allocation164_spill] sm:$0xff]  ;;  %v18552_v51 = vld [vmem:[#allocation166_spill] sm:$0xff]  ;;  %v16663_v61 = vpop.permute.xlu0 %11150  ;;  %v16672_v46 = vsel %vm4100_vm4, %v15719_v30, %v15794_v8 }
 0x76d   : > { %18547 = vst [vmem:[#allocation147_spill] sm:$0xff] %v16646_v29  ;;  %18549 = vst [vmem:[#allocation146_spill] sm:$0xff] %v16651_v15  ;;  %v16656_v37 = vsel %vm4100_vm4, %v18548_v62, %v18550_v26  ;;  %v16661_v47 = vsel %vm4100_vm4, %v18550_v26, %v18552_v51  ;;  %v16677_v56 = vsel %vm4100_vm4, %v15794_v8, %v15850_v59 }
 0x76e   : > { %18551 = vst [vmem:[#allocation149_spill] sm:$0xff] %v16656_v37  ;;  %18553 = vst [vmem:[#allocation148_spill] sm:$0xff] %v16661_v47  ;;  %v16682_v26 = vsel %vm4100_vm4, %v15850_v59, %v15811_v27  ;;  %v16687_v51 = vsel %vm4100_vm4, %v15902_v43, %v16413_v57  ;;  %v16696_v30 = vsel %vm4100_vm4, %v15811_v27, %v15853_v40 }
 0x76f   : > { %18554 = vst [vmem:[#allocation151_spill] sm:$0xff] %v16672_v46  ;;  %18555 = vst [vmem:[#allocation153_spill] sm:$0xff] %v16677_v56  ;;  %v16701_v8 = vsel %vm4100_vm4, %v15837_v24, %v15857_v20  ;;  %v16706_v59 = vsel %vm4100_vm4, %v15857_v20, %v15847_v28  ;;  %v16711_v62 = vsel %vm4100_vm4, %v15847_v28, %v15861_v14  ;;  %v17004_v46 = vstv %s16898_s29 }
 0x770   : > { %18556 = vst [vmem:[#allocation150_spill] sm:$0xff] %v16682_v26  ;;  %18557 = vst [vmem:[#allocation152_spill] sm:$0xff] %v16687_v51  ;;  %v16720_v27 = vsel %vm4100_vm4, %v15861_v14, %v15855_v39  ;;  %v16725_v24 = vsel %vm4100_vm4, %v15855_v39, %v15868_v41  ;;  %v16730_v28 = vsel %vm4100_vm4, %v15868_v41, %v15859_v2 }
 0x771   : > { %18558 = vst [vmem:[#allocation155_spill] sm:$0xff] %v16696_v30  ;;  %18559 = vst [vmem:[#allocation154_spill] sm:$0xff] %v16701_v8  ;;  %v16739_v20 = vsel %vm4100_vm4, %v15859_v2, %v15877_v6  ;;  %v16744_v39 = vsel %vm4100_vm4, %v15863_v60, %v15885_v3  ;;  %v16749_v14 = vsel %vm4100_vm4, %v15885_v3, %v15870_v44  ;;  %v18593_v8 = vld [vmem:[#allocation199_spill] sm:$0xff] }
 0x772   : > { %18560 = vst [vmem:[#allocation157_spill] sm:$0xff] %v16706_v59  ;;  %18561 = vst [vmem:[#allocation156_spill] sm:$0xff] %v16711_v62  ;;  %v16754_v41 = vsel %vm4100_vm4, %v15870_v44, %v15890_v9  ;;  %v16763_v2 = vsel %vm4100_vm4, %v15890_v9, %v15879_v55  ;;  %v16768_v60 = vsel %vm4100_vm4, %v15879_v55, %v15894_v45  ;;  %v18592_v62 = vld [vmem:[#allocation198_spill] sm:$0xff] }
 0x773   : > { %18562 = vst [vmem:[#allocation159_spill] sm:$0xff] %v16720_v27  ;;  %18563 = vst [vmem:[#allocation161_spill] sm:$0xff] %v16725_v24  ;;  %v16773_v6 = vsel %vm4100_vm4, %v15894_v45, %v15887_v49  ;;  %v16782_v3 = vsel %vm4100_vm4, %v15887_v49, %v15898_v16  ;;  %v16787_v55 = vsel %vm4100_vm4, %v15892_v1, %v15902_v43 }
 0x774   : > { %18564 = vst [vmem:[#allocation158_spill] sm:$0xff] %v16730_v28  ;;  %18565 = vst [vmem:[#allocation160_spill] sm:$0xff] %v16739_v20  ;;  %v16792_v9 = vsel %vm4100_vm4, %v15896_v19, %v15906_v32  ;;  %v16797_v45 = vsel %vm4100_vm4, %v15906_v32, %v15900_v31  ;;  %v16808_v49 = vsel %vm4100_vm4, %v15900_v31, %v15910_v34  ;;  %v16835_v32 = vstv %s16665_s27  ;;  %s12341_s27 = smul.u32 56, %s18818_s25 }
 0x775   : > { %18566 = vst [vmem:[#allocation163_spill] sm:$0xff] %v16744_v39  ;;  %18567 = vst [vmem:[#allocation162_spill] sm:$0xff] %v16749_v14  ;;  %v16813_v1 = vsel %vm4100_vm4, %v15910_v34, %v15904_v48  ;;  %v16818_v19 = vsel %vm4100_vm4, %v15904_v48, %v15914_v5  ;;  %v16827_v31 = vsel %vm4100_vm4, %v15914_v5, %v15908_v25  ;;  %v16838_v48 = vstv %s16667_s8 }
 0x776   : > { %18568 = vst [vmem:[#allocation165_spill] sm:$0xff] %v16754_v41  ;;  %18569 = vst [vmem:[#allocation164_spill] sm:$0xff] %v16763_v2  ;;  %v16832_v43 = vsel %vm4100_vm4, %v15912_v23, %v15922_v63  ;;  %v16847_v34 = vsel %vm4100_vm4, %v15922_v63, %v15916_v18  ;;  %v16852_v23 = vsel %vm4100_vm4, %v15916_v18, %v15926_v13  ;;  %v16855_v5 = vstv %s16689_s30  ;;  %s17255_s30 = scalar_lea.vmem %s17832_s7, %s12341_s27 }
 0x777   : > { %18570 = vst [vmem:[#allocation166_spill] sm:$0xff] %v16768_v60  ;;  %18571 = vst [vmem:[#allocation208_spill] sm:$0xff] %v16773_v6  ;;  %v16872_v63 = vsel %vm4100_vm4, %v15920_v21, %v15930_v42  ;;  %v16877_v18 = vsel %vm4100_vm4, %v15930_v42, %v15924_v11  ;;  %v16880_v25 = vstv %s16713_s10  ;;  %v16903_v42 = vsel %vm4100_vm4, %v15932_v35, %v16165_v52  ;;  %s17506_s10 = sld [smem:[#allocation4 + $0x202]] }
 0x778   : > { %18572 = vst [vmem:[#allocation209_spill] sm:$0xff] %v16782_v3  ;;  %18573 = vst [vmem:[#allocation210_spill] sm:$0xff] %v16787_v55  ;;  %v16885_v55 = vsel %vm4100_vm4, %v15928_v38, %v16041_v4  ;;  %v16896_v3 = vstv %s16732_s12  ;;  %v16908_v38 = vsel %vm4100_vm4, %v16165_v52, %v15936_v10  ;;  %v16916_v6 = vstv %s16734_s13  ;;  %s17561_s12 = sld [smem:[#allocation4 + $0x280]]  ;;  %s17590_s13 = sld [smem:[#allocation4 + $0x281]] }
 0x779   : > { %18574 = vst [vmem:[#allocation211_spill] sm:$0xff] %v16916_v6  ;;  %v16926_v52 = vsel %vm4100_vm4, %v16413_v57, %v16167_v12  ;;  %v16934_v2 = vstv %s16756_s14  ;;  %v16944_v57 = vsel %vm4100_vm4, %v16291_v53, %v16621_v36  ;;  %v16960_v41 = vstv %s16801_s18  ;;  %18595 = vst [vmem:[#allocation198_spill] sm:$0xff] %v17004_v46  ;;  %s17622_s14 = sld [smem:[#allocation4 + $0x282]] }
 0x77a   : > { %18575 = vst [vmem:[#allocation212_spill] sm:$0xff] %v16926_v52  ;;  %18577 = vst [vmem:[#allocation214_spill] sm:$0xff] %v16934_v2  ;;  %v16950_v52 = vstv %s16775_s16  ;;  %v16969_v14 = vstv %s16822_s21  ;;  %v16989_v20 = vstv %s16862_s28  ;;  %s17642_s16 = sld [smem:[#allocation4 + $0x300]]  ;;  %s17679_s18 = sld [smem:[#allocation4 + $0x302]] }
 0x77b   : > { %18579 = vst [vmem:[#allocation216_spill] sm:$0xff] %v16944_v57  ;;  %18581 = vst [vmem:[#allocation218_spill] sm:$0xff] %v16950_v52  ;;  %v16975_v57 = vstv %s16842_s23 }
 0x77c   : > { %18584 = vst [vmem:[#allocation221_spill] sm:$0xff] %v16960_v41  ;;  %18587 = vst [vmem:[#allocation224_spill] sm:$0xff] %v16969_v14 }
 0x77d   : > { %v7258_v51 = vpop.xlane.xlu1 %7257  ;;  %18589 = vst [vmem:[#allocation226_spill] sm:$0xff] %v16975_v57  ;;  %18591 = vst [vmem:[#allocation228_spill] sm:$0xff] %v16989_v20 }
 0x77e   : > { %v7259_v40 = vmul.f32 0.001953125, %v7258_v51  ;;  %v16799_v51 = vpop.permute.xlu0 %11154 }
 0x780   : > { %v7260_v44 = vadd.f32 1e-05, %v7259_v40  ;;  %v16858_v40 = vstv %s16691_s9  ;;  %s17499_s9 = sld [smem:[#allocation4 + $0x201]] }
 0x781   : > { %v11145_v16 = vpop.permute.xlu1 %11144 }
 0x782   : > { %12416 = vrsqrt.f32 %v7260_v44  ;;  %v16867_v44 = vsel %vm4100_vm4, %v15926_v13, %v15920_v21  ;;  %v16890_v13 = vsel %vm4100_vm4, %v16041_v4, %v15932_v35  ;;  %v16893_v21 = vstv %s16715_s11  ;;  %v10664_v11 = vpop.permute.xlu0 %10663  ;;  %s17508_s11 = sld [smem:[#allocation4 + $0x203]] }
 0x783   : > { %v16913_v4 = vsel %vm4100_vm4, %v15936_v10, %v16289_v17  ;;  %v16921_v35 = vsel %vm4100_vm4, %v16289_v17, %v16043_v0  ;;  %v16931_v10 = vsel %vm4100_vm4, %v16167_v12, %v16497_v54  ;;  %v16939_v17 = vsel %vm4100_vm4, %v16497_v54, %v16291_v53 }
 0x784   : > { %18576 = vst [vmem:[#allocation213_spill] sm:$0xff] %v16931_v10  ;;  %18578 = vst [vmem:[#allocation215_spill] sm:$0xff] %v16939_v17  ;;  %v16947_v0 = vstv %s16758_s15  ;;  %v16954_v12 = vsel %vm4100_vm4, %v16621_v36, %v10664_v11  ;;  %v16957_v10 = vstv %s16777_s17  ;;  %v16963_v54 = vstv %s16803_s19  ;;  %s17624_s15 = sld [smem:[#allocation4 + $0x283]]  ;;  %s17677_s17 = sld [smem:[#allocation4 + $0x301]] }
 0x785   : > { %v11149_v60 = vpop.permute.xlu1 %11148  ;;  %18580 = vst [vmem:[#allocation217_spill] sm:$0xff] %v16947_v0  ;;  %18582 = vst [vmem:[#allocation219_spill] sm:$0xff] %v16954_v12  ;;  %v16966_v17 = vstv %s16820_s20  ;;  %v16972_v53 = vstv %s16840_s22  ;;  %v16979_v11 = vsel %vm4100_vm4, %v11145_v16, %v16539_v50  ;;  %v16986_v12 = vstv %s16860_s26  ;;  %v18594_v16 = vld [vmem:[#allocation200_spill] sm:$0xff]  ;;  %s17718_s19 = sld [smem:[#allocation4 + $0x303]] }
 0x786   : > { %18583 = vst [vmem:[#allocation220_spill] sm:$0xff] %v16957_v10  ;;  %18585 = vst [vmem:[#allocation222_spill] sm:$0xff] %v16963_v54  ;;  %v16983_v36 = vsel %vm4100_vm4, %v16539_v50, %v11149_v60  ;;  %v16999_v50 = vsel %vm4100_vm4, %v11149_v60, %v16663_v61 }
 0x787   : > { %18586 = vst [vmem:[#allocation223_spill] sm:$0xff] %v16966_v17  ;;  %18588 = vst [vmem:[#allocation225_spill] sm:$0xff] %v16972_v53 }
 0x788   : > { %18590 = vst [vmem:[#allocation227_spill] sm:$0xff] %v16986_v12 }
 0x789   : > { %v17001_v56 = vpop.permute.xlu1 %11152 }
 0x78c   : > { %v12417_v39 = vpop.eup %12416 }
 0x78d   : > { %v7262_v28 = vmul.f32 %v12417_v39, %v15797_v58  ;;  %v7263_v24 = vmul.f32 %v12417_v39, %v15800_v22  ;;  %v7264_v27 = vmul.f32 %v12417_v39, %v15803_v33  ;;  %v7265_v59 = vmul.f32 %v12417_v39, %v18592_v62 }
 0x78e   : > { %v7266_v30 = vmul.f32 %v12417_v39, %v18593_v8  ;;  %v7267_v26 = vmul.f32 %v12417_v39, %v18594_v16  ;;  %v17015_v33 = vsel %vm4100_vm4, %v16663_v61, %v17001_v56  ;;  %v18596_v8 = vld [vmem:[#allocation201_spill] sm:$0xff] }
 0x78f   : > { %v17006_v47 = vmax.f32 %v7262_v28, 0.0  ;;  %v17008_v58 = vmax.f32 %v7263_v24, 0.0  ;;  %v17010_v22 = vmax.f32 %v7264_v27, 0.0  ;;  %v17018_v62 = vmul.f32 %v12417_v39, %v18596_v8 }
 0x790   : > { %v17020_v60 = vmax.f32 %v7265_v59, 0.0  ;;  %v17022_v16 = vmax.f32 %v7266_v30, 0.0  ;;  %v17024_v37 = vmax.f32 %v7267_v26, 0.0 }
 0x791   : > { %v10747_v24 = vmul.f32 %v16835_v32, %v17006_v47  ;;  %v10756_v27 = vmul.f32 %v16838_v48, %v17006_v47  ;;  %v10793_v28 = vmul.f32 %v16855_v5, %v17006_v47  ;;  %v10830_v61 = vmul.f32 %v16858_v40, %v17006_v47 }
 0x792   : > { %v10748_v59 = vmul.f32 %v16835_v32, %v17008_v58  ;;  %v10749_v30 = vmul.f32 %v16835_v32, %v17010_v22  ;;  %v10757_v26 = vmul.f32 %v16838_v48, %v17008_v58  ;;  %v10758_v39 = vmul.f32 %v16838_v48, %v17010_v22 }
 0x793   : > { %v10770_v8 = vrot.slane %v10756_v27, 1  ;;  %v10807_v15 = vrot.slane %v10793_v28, 2  ;;  %v10844_v29 = vrot.slane %v10830_v61, 3  ;;  %v10794_v7 = vmul.f32 %v16855_v5, %v17008_v58 }
 0x794   : > { %v10771_v46 = vrot.slane %v10757_v26, 1  ;;  %v10772_v20 = vrot.slane %v10758_v39, 1  ;;  %v10795_v12 = vmul.f32 %v16855_v5, %v17010_v22  ;;  %v10831_v57 = vmul.f32 %v16858_v40, %v17008_v58 }
 0x795   : > { %v10784_v53 = vadd.f32 %v10770_v8, %v10747_v24  ;;  %v10808_v14 = vrot.slane %v10794_v7, 2  ;;  %v10832_v17 = vmul.f32 %v16858_v40, %v17010_v22  ;;  %v10750_v27 = vmul.f32 %v16835_v32, %v17020_v60 }
 0x796   : > { %v10785_v28 = vadd.f32 %v10771_v46, %v10748_v59  ;;  %v10786_v61 = vadd.f32 %v10772_v20, %v10749_v30  ;;  %v10809_v54 = vrot.slane %v10795_v12, 2  ;;  %v10845_v41 = vrot.slane %v10831_v57, 3 }
 0x797   : > { %v10821_v26 = vadd.f32 %v10807_v15, %v10784_v53  ;;  %v10846_v39 = vrot.slane %v10832_v17, 3  ;;  %v10751_v10 = vmul.f32 %v16835_v32, %v17022_v16  ;;  %v10759_v52 = vmul.f32 %v16838_v48, %v17020_v60 }
 0x798   : > { %v10822_v24 = vadd.f32 %v10808_v14, %v10785_v28  ;;  %v10823_v7 = vadd.f32 %v10809_v54, %v10786_v61  ;;  %v10760_v8 = vmul.f32 %v16838_v48, %v17022_v16  ;;  %v10796_v0 = vmul.f32 %v16855_v5, %v17020_v60 }
 0x799   : > { %v10858_v46 = vadd.f32 %v10844_v29, %v10821_v26  ;;  %v10773_v20 = vrot.slane %v10759_v52, 1  ;;  %v10797_v15 = vmul.f32 %v16855_v5, %v17022_v16  ;;  %v10833_v17 = vmul.f32 %v16858_v40, %v17020_v60 }
 0x79a   : > { %v10859_v57 = vadd.f32 %v10845_v41, %v10822_v24  ;;  %v10860_v12 = vadd.f32 %v10846_v39, %v10823_v7  ;;  %v10774_v53 = vrot.slane %v10760_v8, 1  ;;  %v10810_v59 = vrot.slane %v10796_v0, 2 }
 0x79b   : > { %v10937_v14 = vadd.f32 %v16792_v9, %v10858_v46  ;;  %v10787_v54 = vadd.f32 %v10773_v20, %v10750_v27  ;;  %v10811_v30 = vrot.slane %v10797_v15, 2  ;;  %v10834_v28 = vmul.f32 %v16858_v40, %v17022_v16 }
 0x79c   : > { %v10938_v29 = vadd.f32 %v16797_v45, %v10859_v57  ;;  %v10939_v52 = vadd.f32 %v16808_v49, %v10860_v12  ;;  %v10788_v61 = vadd.f32 %v10774_v53, %v10751_v10  ;;  %v10847_v26 = vrot.slane %v10833_v17, 3 }
 0x79d   : > { %v11016_v2 = vadd.f32 %v16832_v43, %v10937_v14  ;;  %v10824_v6 = vadd.f32 %v10810_v59, %v10787_v54  ;;  %v10848_v41 = vrot.slane %v10834_v28, 3  ;;  %v10752_v0 = vmul.f32 %v16835_v32, %v17024_v37 }
 0x79e   : > { %v11017_v9 = vadd.f32 %v16847_v34, %v10938_v29  ;;  %v11018_v27 = vadd.f32 %v16852_v23, %v10939_v52  ;;  %v10825_v39 = vadd.f32 %v10811_v30, %v10788_v61  ;;  %v10761_v24 = vmul.f32 %v16838_v48, %v17024_v37  ;;  %v17083_v23 = vpop.permute.xlu1 %11156 }
 0x79f   : > { %v11095_v45 = vadd.f32 %v16885_v55, %v11016_v2  ;;  %v10861_v49 = vadd.f32 %v10847_v26, %v10824_v6  ;;  %v10798_v10 = vmul.f32 %v16855_v5, %v17024_v37  ;;  %v10835_v43 = vmul.f32 %v16858_v40, %v17024_v37 }
 0x7a0   : > { %v11096_v7 = vadd.f32 %v16890_v13, %v11017_v9  ;;  %v11097_v8 = vadd.f32 %v16903_v42, %v11018_v27  ;;  %v10862_v34 = vadd.f32 %v10848_v41, %v10825_v39  ;;  %v10775_v46 = vrot.slane %v10761_v24, 1 }
 0x7a1   : > { %v11174_v20 = vadd.f32 %v16979_v11, %v11095_v45  ;;  %v10940_v15 = vadd.f32 %v16813_v1, %v10861_v49  ;;  %v11164_v2 = vsel %vm4100_vm4, %v17001_v56, %v16799_v51  ;;  %v17093_v6 = vsel %vm4100_vm4, %v16799_v51, %v17083_v23 }
 0x7a2   : > { %v11175_v55 = vadd.f32 %v16983_v36, %v11096_v7  ;;  %v10941_v13 = vadd.f32 %v16818_v19, %v10862_v34  ;;  %v10789_v42 = vadd.f32 %v10775_v46, %v10752_v0  ;;  %v10812_v17 = vrot.slane %v10798_v10, 2 }
 0x7a3   : > { %v17098_v57 = vmax.f32 %v17018_v62, 0.0  ;;  %v11176_v1 = vadd.f32 %v16999_v50, %v11097_v8  ;;  %v11019_v11 = vadd.f32 %v16867_v44, %v10940_v15  ;;  %v10849_v12 = vrot.slane %v10835_v43, 3  ;;  %v18597_v44 = vld [vmem:[#allocation9_spill] sm:$0xff] }
 0x7a4   : > { %v11188_v56 = vcombine.low %v11174_v20, %v11175_v55  ;;  %v11020_v53 = vadd.f32 %v16872_v63, %v10941_v13  ;;  %v10826_v59 = vadd.f32 %v10812_v17, %v10789_v42  ;;  %v7278_v51 = vmul.f32 %v16880_v25, %v17006_v47 }
 0x7a5   : > { %v11098_v36 = vadd.f32 %v16908_v38, %v11019_v11  ;;  %v7279_v19 = vmul.f32 %v16880_v25, %v17008_v58  ;;  %v7280_v62 = vmul.f32 %v16880_v25, %v17010_v22  ;;  %v7281_v50 = vmul.f32 %v16880_v25, %v17020_v60 }
 0x7a6   : > { %v17113_v14 = vrot.slane %v11188_v56, %v18597_v44  ;;  %v10863_v54 = vadd.f32 %v10849_v12, %v10826_v59  ;;  %v7282_v63 = vmul.f32 %v16880_v25, %v17022_v16  ;;  %v7287_v30 = vmul.f32 %v16893_v21, %v17006_v47 }
 0x7a7   : > { %v11177_v38 = vadd.f32 %v17015_v33, %v11098_v36  ;;  %v7288_v28 = vmul.f32 %v16893_v21, %v17008_v58  ;;  %v7289_v29 = vmul.f32 %v16893_v21, %v17010_v22  ;;  %v7290_v52 = vmul.f32 %v16893_v21, %v17020_v60 }
 0x7a8   : > { %v11099_v61 = vadd.f32 %v16913_v4, %v11020_v53  ;;  %v10942_v26 = vadd.f32 %v16827_v31, %v10863_v54  ;;  %v7291_v41 = vmul.f32 %v16893_v21, %v17022_v16  ;;  %v7292_v0 = vmul.f32 %v16893_v21, %v17024_v37 }
 0x7a9   : > { %v11189_v33 = vcombine.low %v11176_v1, %v11177_v38  ;;  %v7293_v9 = vmul.f32 %v16893_v21, %v17098_v57  ;;  %v7301_v27 = vrot.slane %v7287_v30, 1  ;;  %v7302_v39 = vrot.slane %v7288_v28, 1 }
 0x7aa   : > { %v11021_v24 = vadd.f32 %v16877_v18, %v10942_v26  ;;  %v7303_v45 = vrot.slane %v7289_v29, 1  ;;  %v7304_v49 = vrot.slane %v7290_v52, 1  ;;  %v7305_v10 = vrot.slane %v7291_v41, 1  ;;  %v18598_v26 = vld [vmem:[#allocation211_spill] sm:$0xff] }
 0x7ab   : > { %v17136_v4 = vrot.slane %v11189_v33, %v18597_v44  ;;  %v7283_v31 = vmul.f32 %v16880_v25, %v17024_v37  ;;  %v7284_v43 = vmul.f32 %v16880_v25, %v17098_v57  ;;  %v7306_v7 = vrot.slane %v7292_v0, 1 }
 0x7ac   : > { %v17142_v8 = vadd.f32 %v11164_v2, %v11099_v61  ;;  %v11100_v21 = vadd.f32 %v16921_v35, %v11021_v24  ;;  %v7307_v34 = vrot.slane %v7293_v9, 1  ;;  %v7315_v46 = vadd.f32 %v7301_v27, %v7278_v51 }
 0x7ad   : > { %v11219_v18 = vcombine.low %v17113_v14, %v17136_v4  ;;  %v7316_v20 = vadd.f32 %v7302_v39, %v7279_v19  ;;  %v7317_v15 = vadd.f32 %v7303_v45, %v7280_v62  ;;  %v7318_v55 = vadd.f32 %v7304_v49, %v7281_v50  ;;  %v18599_v49 = vld [vmem:[#allocation214_spill] sm:$0xff] }
 0x7ae   : > { %v7319_v13 = vadd.f32 %v7305_v10, %v7282_v63  ;;  %v7324_v42 = vmul.f32 %v16896_v3, %v17006_v47  ;;  %v7325_v25 = vmul.f32 %v16896_v3, %v17008_v58  ;;  %v7326_v2 = vmul.f32 %v16896_v3, %v17010_v22 }
 0x7af   : > { %v7320_v17 = vadd.f32 %v7306_v7, %v7283_v31  ;;  %v7327_v35 = vmul.f32 %v16896_v3, %v17020_v60  ;;  %v7328_v1 = vmul.f32 %v16896_v3, %v17022_v16  ;;  %v7329_v11 = vmul.f32 %v16896_v3, %v17024_v37 }
 0x7b0   : > { %v7321_v12 = vadd.f32 %v7307_v34, %v7284_v43  ;;  %v7330_v56 = vmul.f32 %v16896_v3, %v17098_v57  ;;  %v7338_v53 = vrot.slane %v7324_v42, 2  ;;  %v7339_v59 = vrot.slane %v7325_v25, 2 }
 0x7b1   : > { %v7340_v51 = vrot.slane %v7326_v2, 2  ;;  %v7341_v36 = vrot.slane %v7327_v35, 2  ;;  %v7342_v19 = vrot.slane %v7328_v1, 2  ;;  %v7343_v62 = vrot.slane %v7329_v11, 2  ;;  %v18600_v2 = vld [vmem:[#allocation206_spill] sm:$0xff]  ;;  %v18601_v35 = vld [vmem:[#allocation207_spill] sm:$0xff] }
 0x7b2   : > { %v17162_v50 = vadd.f32 %v17093_v6, %v11100_v21  ;;  %v7344_v54 = vrot.slane %v7330_v56, 2  ;;  %v7352_v63 = vadd.f32 %v7338_v53, %v7315_v46  ;;  %v7353_v30 = vadd.f32 %v7339_v59, %v7316_v20  ;;  %v18602_v11 = vld [vmem:[#allocation12_spill] sm:$0xff]  ;;  %v18603_v53 = vld [vmem:[#allocation25_spill] sm:$0xff] }
 0x7b3   : > { %v7354_v38 = vadd.f32 %v7340_v51, %v7317_v15  ;;  %v7355_v28 = vadd.f32 %v7341_v36, %v7318_v55  ;;  %v7356_v29 = vadd.f32 %v7342_v19, %v7319_v13  ;;  %v7357_v52 = vadd.f32 %v7343_v62, %v7320_v17  ;;  %v18604_v51 = vld [vmem:[#allocation16_spill] sm:$0xff]  ;;  %v18605_v19 = vld [vmem:[#allocation27_spill] sm:$0xff] }
 0x7b4   : > { %v7358_v61 = vadd.f32 %v7344_v54, %v7321_v12  ;;  %v7361_v3 = vmul.f32 %v18598_v26, %v17006_v47  ;;  %v7362_v41 = vmul.f32 %v18598_v26, %v17008_v58  ;;  %v7363_v0 = vmul.f32 %v18598_v26, %v17010_v22  ;;  %v18606_v54 = vld [vmem:[#allocation18_spill] sm:$0xff] }
 0x7b5   : > { %v7364_v6 = vmul.f32 %v18598_v26, %v17020_v60  ;;  %v7365_v33 = vmul.f32 %v18598_v26, %v17022_v16  ;;  %v7366_v9 = vmul.f32 %v18598_v26, %v17024_v37  ;;  %v7367_v27 = vmul.f32 %v18598_v26, %v17098_v57 }
 0x7b6   : > { %v7375_v39 = vrot.slane %v7361_v3, 3  ;;  %v7376_v24 = vrot.slane %v7362_v41, 3  ;;  %v7377_v45 = vrot.slane %v7363_v0, 3  ;;  %v17180_v10 = vmul.f32 %v18599_v49, %v17006_v47  ;;  %v18610_v3 = vld [vmem:[#allocation20_spill] sm:$0xff]  ;;  %v18611_v0 = vld [vmem:[#allocation29_spill] sm:$0xff] }
 0x7b7   : > { %v7378_v31 = vrot.slane %v7364_v6, 3  ;;  %v7379_v43 = vrot.slane %v7365_v33, 3  ;;  %v7380_v7 = vrot.slane %v7366_v9, 3  ;;  %v7381_v21 = vrot.slane %v7367_v27, 3  ;;  %v18612_v33 = vld [vmem:[#allocation19_spill] sm:$0xff]  ;;  %v18613_v27 = vld [vmem:[#allocation30_spill] sm:$0xff] }
 0x7b8   : > { %v7389_v34 = vadd.f32 %v7375_v39, %v7352_v63  ;;  %v7390_v46 = vadd.f32 %v7376_v24, %v7353_v30  ;;  %v7391_v20 = vadd.f32 %v7377_v45, %v7354_v38  ;;  %v17184_v15 = vmul.f32 %v18599_v49, %v17008_v58  ;;  %v18607_v30 = vld [vmem:[#allocation17_spill] sm:$0xff] }
 0x7b9   : > { %v7392_v55 = vadd.f32 %v7378_v31, %v7355_v28  ;;  %v7393_v13 = vadd.f32 %v7379_v43, %v7356_v29  ;;  %v7394_v42 = vadd.f32 %v7380_v7, %v7357_v52  ;;  %v7395_v25 = vadd.f32 %v7381_v21, %v7358_v61  ;;  %v18608_v28 = vld [vmem:[#allocation15_spill] sm:$0xff]  ;;  %v18614_v24 = vld [vmem:[#allocation13_spill] sm:$0xff] }
 0x7ba   : > { %v7469_v17 = vadd.f32 %v18600_v2, %v7389_v34  ;;  %v7470_v1 = vadd.f32 %v18601_v35, %v7390_v46  ;;  %v7471_v12 = vadd.f32 %v18602_v11, %v7391_v20  ;;  %v7779_v56 = vmul.f32 %v18599_v49, %v17010_v22  ;;  %v18609_v52 = vld [vmem:[#allocation11_spill] sm:$0xff]  ;;  %v18615_v31 = vld [vmem:[#allocation21_spill] sm:$0xff]  ;;  %v18617_v46 = vld [vmem:[#allocation32_spill] sm:$0xff] }
 0x7bb   : > { %v7472_v59 = vadd.f32 %v18603_v53, %v7392_v55  ;;  %v7473_v36 = vadd.f32 %v18604_v51, %v7393_v13  ;;  %v7474_v62 = vadd.f32 %v18605_v19, %v7394_v42  ;;  %v7475_v63 = vadd.f32 %v18606_v54, %v7395_v25  ;;  %v18616_v7 = vld [vmem:[#allocation31_spill] sm:$0xff]  ;;  %v18618_v55 = vld [vmem:[#allocation22_spill] sm:$0xff]  ;;  %v18619_v42 = vld [vmem:[#allocation33_spill] sm:$0xff] }
 0x7bc   : > { %v7548_v38 = vadd.f32 %v18607_v30, %v7469_v17  ;;  %v7549_v29 = vadd.f32 %v18608_v28, %v7470_v1  ;;  %v7550_v61 = vadd.f32 %v18609_v52, %v7471_v12  ;;  %v7780_v26 = vmul.f32 %v18599_v49, %v17020_v60  ;;  %v18620_v2 = vld [vmem:[#allocation34_spill] sm:$0xff]  ;;  %v18621_v35 = vld [vmem:[#allocation24_spill] sm:$0xff]  ;;  %v18623_v53 = vld [vmem:[#allocation35_spill] sm:$0xff] }
 0x7bd   : > { %v7551_v41 = vadd.f32 %v18610_v3, %v7472_v59  ;;  %v7552_v6 = vadd.f32 %v18611_v0, %v7473_v36  ;;  %v7553_v9 = vadd.f32 %v18612_v33, %v7474_v62  ;;  %v7554_v39 = vadd.f32 %v18613_v27, %v7475_v63  ;;  %v18622_v11 = vld [vmem:[#allocation14_spill] sm:$0xff]  ;;  %v18624_v36 = vld [vmem:[#allocation36_spill] sm:$0xff]  ;;  %v18626_v63 = vld [vmem:[#allocation37_spill] sm:$0xff] }
 0x7be   : > { %v7627_v45 = vadd.f32 %v18614_v24, %v7548_v38  ;;  %v7628_v43 = vadd.f32 %v18615_v31, %v7549_v29  ;;  %v7629_v21 = vadd.f32 %v18616_v7, %v7550_v61  ;;  %v7781_v34 = vmul.f32 %v18599_v49, %v17022_v16  ;;  %v18625_v62 = vld [vmem:[#allocation26_spill] sm:$0xff]  ;;  %v18627_v38 = vld [vmem:[#allocation28_spill] sm:$0xff] }
 0x7bf   : > { %v7630_v20 = vadd.f32 %v18617_v46, %v7551_v41  ;;  %v7631_v13 = vadd.f32 %v18618_v55, %v7552_v6  ;;  %v7632_v25 = vadd.f32 %v18619_v42, %v7553_v9  ;;  %v7633_v17 = vadd.f32 %v18620_v2, %v7554_v39  ;;  %v18631_v41 = vld [vmem:[#allocation217_spill] sm:$0xff] }
 0x7c0   : > { %v7706_v1 = vadd.f32 %v18621_v35, %v7627_v45  ;;  %v7707_v12 = vadd.f32 %v18622_v11, %v7628_v43  ;;  %v7708_v59 = vadd.f32 %v18623_v53, %v7629_v21  ;;  %v7782_v51 = vmul.f32 %v18599_v49, %v17024_v37 }
 0x7c1   : > { %v7709_v19 = vadd.f32 %v18624_v36, %v7630_v20  ;;  %v7710_v54 = vadd.f32 %v18625_v62, %v7631_v13  ;;  %v7711_v30 = vadd.f32 %v18626_v63, %v7632_v25  ;;  %v7712_v28 = vadd.f32 %v18627_v38, %v7633_v17 }
 0x7c2   : > { %v7720_v29 = vcombine.low %v7706_v1, %v7707_v12  ;;  %v18628_v52 = vlaneseq  ;;  %v7783_v3 = vmul.f32 %v18599_v49, %v17098_v57  ;;  %v7786_v0 = vmul.f32 %v18631_v41, %v17006_v47 }
 0x7c3   : > { %v7787_v6 = vmul.f32 %v18631_v41, %v17008_v58  ;;  %v7721_v33 = vcombine.low %v7708_v59, %v7709_v19  ;;  %v7722_v9 = vcombine.low %v7710_v54, %v7711_v30  ;;  %v7750_v27 = vrot.slane %v7712_v28, %v18597_v44 }
 0x7c4   : > { %vm17223_vm0 = vcmp.lt.s32.totalorder %v18628_v52, 896  ;;  %v7788_v39 = vmul.f32 %v18631_v41, %v17010_v22  ;;  %v7729_v24 = vrot.slane %v7720_v29, %v18597_v44  ;;  %v7789_v45 = vmul.f32 %v18631_v41, %v17020_v60 }
 0x7c5   : > { %v7790_v49 = vmul.f32 %v18631_v41, %v17022_v16  ;;  %v7791_v31 = vmul.f32 %v18631_v41, %v17024_v37  ;;  %v7736_v43 = vrot.slane %v7721_v33, %v18597_v44  ;;  %v7743_v7 = vrot.slane %v7722_v9, %v18597_v44 }
 0x7c6   : > { %v7792_v21 = vmul.f32 %v18631_v41, %v17098_v57  ;;  %v7800_v46 = vrot.slane %v7786_v0, 1  ;;  %v7801_v20 = vrot.slane %v7787_v6, 1  ;;  %v7802_v55 = vrot.slane %v7788_v39, 1  ;;  %v18633_v6 = vld [vmem:[#allocation220_spill] sm:$0xff] }
 0x7c7   : > { %v7803_v13 = vrot.slane %v7789_v45, 1  ;;  %v7804_v42 = vrot.slane %v7790_v49, 1  ;;  %v7751_v25 = vcombine.low %v7729_v24, %v7736_v43  ;;  %v7752_v2 = vcombine.low %v7743_v7, %v7750_v27 }
 0x7c8   : > { %v7805_v17 = vrot.slane %v7791_v31, 1  ;;  %v7806_v35 = vrot.slane %v7792_v21, 1  ;;  %v7814_v1 = vadd.f32 %v7800_v46, %v17180_v10  ;;  %v7815_v11 = vadd.f32 %v7801_v20, %v17184_v15  ;;  %v18632_v10 = vld [vmem:[#allocation218_spill] sm:$0xff] }
 0x7c9   : > { %v7816_v12 = vadd.f32 %v7802_v55, %v7779_v56  ;;  %v7817_v53 = vadd.f32 %v7803_v13, %v7780_v26  ;;  %v7759_v59 = vrot.slane %v7751_v25, %v18597_v44  ;;  %v7766_v36 = vrot.slane %v7752_v2, %v18597_v44 }
 0x7ca   : > { %v7818_v19 = vadd.f32 %v7804_v42, %v7781_v34  ;;  %v7819_v62 = vadd.f32 %v7805_v17, %v7782_v51  ;;  %v7820_v54 = vadd.f32 %v7806_v35, %v7783_v3  ;;  %v7823_v63 = vmul.f32 %v18632_v10, %v17006_v47 }
 0x7cb   : > { %v7824_v15 = vmul.f32 %v18632_v10, %v17008_v58  ;;  %v7825_v56 = vmul.f32 %v18632_v10, %v17010_v22  ;;  %v7767_v26 = vcombine.low %v7759_v59, %v7766_v36  ;;  %v7826_v34 = vmul.f32 %v18632_v10, %v17020_v60 }
 0x7cc   : > { %v7827_v51 = vmul.f32 %v18632_v10, %v17022_v16  ;;  %v7828_v30 = vmul.f32 %v18632_v10, %v17024_v37  ;;  %v7829_v38 = vmul.f32 %v18632_v10, %v17098_v57  ;;  %v7837_v28 = vrot.slane %v7823_v63, 2 }
 0x7cd   : > { %v7838_v29 = vrot.slane %v7824_v15, 2  ;;  %v7839_v52 = vrot.slane %v7825_v56, 2  ;;  %7773 = vst.msk [vmem:[%s17255_s30] ss:$8 sm:$0xf] %vm17223_vm0, %v7767_v26  ;;  %v7840_v3 = vrot.slane %v7826_v34, 2  ;;  %v7860_v33 = vmul.f32 %v18633_v6, %v17006_v47 }
 0x7ce   : > { %7774 = vst.msk [vmem:[%s17255_s30] ss:$8 sm:$0x70] %vm17223_vm0, %v7767_v26  ;;  %v7841_v41 = vrot.slane %v7827_v51, 2  ;;  %v7842_v0 = vrot.slane %v7828_v30, 2  ;;  %v7843_v9 = vrot.slane %v7829_v38, 2  ;;  %v7851_v27 = vadd.f32 %v7837_v28, %v7814_v1 }
 0x7cf   : > { %v7852_v39 = vadd.f32 %v7838_v29, %v7815_v11  ;;  %v7853_v24 = vadd.f32 %v7839_v52, %v7816_v12  ;;  %v7854_v45 = vadd.f32 %v7840_v3, %v7817_v53  ;;  %v7861_v43 = vmul.f32 %v18633_v6, %v17008_v58  ;;  %v18634_v1 = vld [vmem:[#allocation221_spill] sm:$0xff]  ;;  %v18635_v56 = vld [vmem:[#allocation38_spill] sm:$0xff]  ;;  %v18637_v30 = vld [vmem:[#allocation39_spill] sm:$0xff] }
 0x7d0   : > { %v7855_v49 = vadd.f32 %v7841_v41, %v7818_v19  ;;  %v7856_v31 = vadd.f32 %v7842_v0, %v7819_v62  ;;  %v7857_v7 = vadd.f32 %v7843_v9, %v7820_v54  ;;  %v7862_v21 = vmul.f32 %v18633_v6, %v17010_v22  ;;  %v18636_v34 = vld [vmem:[#allocation10_spill] sm:$0xff]  ;;  %v18638_v28 = vld [vmem:[#allocation40_spill] sm:$0xff]  ;;  %v18640_v0 = vld [vmem:[#allocation41_spill] sm:$0xff] }
 0x7d1   : > { %v7863_v46 = vmul.f32 %v18633_v6, %v17020_v60  ;;  %v7864_v20 = vmul.f32 %v18633_v6, %v17022_v16  ;;  %v7865_v55 = vmul.f32 %v18633_v6, %v17024_v37  ;;  %v7866_v13 = vmul.f32 %v18633_v6, %v17098_v57  ;;  %v18639_v52 = vld [vmem:[#allocation42_spill] sm:$0xff] }
 0x7d2   : > { %v7874_v42 = vrot.slane %v7860_v33, 3  ;;  %v7875_v25 = vrot.slane %v7861_v43, 3  ;;  %v7876_v2 = vrot.slane %v7862_v21, 3  ;;  %v17293_v11 = vmul.f32 %v18634_v1, %v17006_v47  ;;  %v18641_v33 = vld [vmem:[#allocation44_spill] sm:$0xff]  ;;  %v18645_v43 = vld [vmem:[#allocation47_spill] sm:$0xff] }
 0x7d3   : > { %v7877_v17 = vrot.slane %v7863_v46, 3  ;;  %v7878_v35 = vrot.slane %v7864_v20, 3  ;;  %v7879_v12 = vrot.slane %v7865_v55, 3  ;;  %v7880_v53 = vrot.slane %v7866_v13, 3  ;;  %v18646_v21 = vld [vmem:[#allocation48_spill] sm:$0xff]  ;;  %v18647_v55 = vld [vmem:[#allocation50_spill] sm:$0xff] }
 0x7d4   : > { %v7888_v59 = vadd.f32 %v7874_v42, %v7851_v27  ;;  %v7889_v36 = vadd.f32 %v7875_v25, %v7852_v39  ;;  %v7890_v19 = vadd.f32 %v7876_v2, %v7853_v24  ;;  %v8273_v10 = vmul.f32 %v18634_v1, %v17008_v58  ;;  %v18642_v27 = vld [vmem:[#allocation43_spill] sm:$0xff]  ;;  %v18643_v24 = vld [vmem:[#allocation46_spill] sm:$0xff]  ;;  %v18648_v42 = vld [vmem:[#allocation49_spill] sm:$0xff] }
 0x7d5   : > { %v7891_v62 = vadd.f32 %v7877_v17, %v7854_v45  ;;  %v7892_v54 = vadd.f32 %v7878_v35, %v7855_v49  ;;  %v7893_v63 = vadd.f32 %v7879_v12, %v7856_v31  ;;  %v7894_v15 = vadd.f32 %v7880_v53, %v7857_v7  ;;  %v18644_v49 = vld [vmem:[#allocation45_spill] sm:$0xff]  ;;  %v18649_v2 = vld [vmem:[#allocation52_spill] sm:$0xff]  ;;  %v18650_v35 = vld [vmem:[#allocation51_spill] sm:$0xff] }
 0x7d6   : > { %v7967_v26 = vadd.f32 %v18635_v56, %v7888_v59  ;;  %v7968_v51 = vadd.f32 %v18636_v34, %v7889_v36  ;;  %v7969_v38 = vadd.f32 %v18637_v30, %v7890_v19  ;;  %v8274_v41 = vmul.f32 %v18634_v1, %v17010_v22  ;;  %v18651_v53 = vld [vmem:[#allocation54_spill] sm:$0xff]  ;;  %v18652_v36 = vld [vmem:[#allocation53_spill] sm:$0xff] }
 0x7d7   : > { %v7970_v29 = vadd.f32 %v18638_v28, %v7891_v62  ;;  %v7971_v3 = vadd.f32 %v18639_v52, %v7892_v54  ;;  %v7972_v6 = vadd.f32 %v18640_v0, %v7893_v63  ;;  %v7973_v9 = vadd.f32 %v18641_v33, %v7894_v15  ;;  %v18653_v62 = vld [vmem:[#allocation55_spill] sm:$0xff]  ;;  %v18654_v15 = vld [vmem:[#allocation56_spill] sm:$0xff] }
 0x7d8   : > { %v8046_v39 = vadd.f32 %v18642_v27, %v7967_v26  ;;  %v8047_v45 = vadd.f32 %v18643_v24, %v7968_v51  ;;  %v8048_v31 = vadd.f32 %v18644_v49, %v7969_v38  ;;  %v8275_v20 = vmul.f32 %v18634_v1, %v17020_v60  ;;  %v18655_v26 = vld [vmem:[#allocation58_spill] sm:$0xff]  ;;  %v18656_v51 = vld [vmem:[#allocation57_spill] sm:$0xff]  ;;  %v18657_v38 = vld [vmem:[#allocation60_spill] sm:$0xff] }
 0x7d9   : > { %v8049_v7 = vadd.f32 %v18645_v43, %v7970_v29  ;;  %v8050_v46 = vadd.f32 %v18646_v21, %v7971_v3  ;;  %v8051_v13 = vadd.f32 %v18647_v55, %v7972_v6  ;;  %v8052_v25 = vadd.f32 %v18648_v42, %v7973_v9  ;;  %v18658_v29 = vld [vmem:[#allocation59_spill] sm:$0xff]  ;;  %v18659_v3 = vld [vmem:[#allocation62_spill] sm:$0xff]  ;;  %v18660_v6 = vld [vmem:[#allocation61_spill] sm:$0xff] }
 0x7da   : > { %v8125_v17 = vadd.f32 %v18649_v2, %v8046_v39  ;;  %v8126_v12 = vadd.f32 %v18650_v35, %v8047_v45  ;;  %v8127_v59 = vadd.f32 %v18651_v53, %v8048_v31  ;;  %v8276_v63 = vmul.f32 %v18634_v1, %v17022_v16  ;;  %v18661_v27 = vld [vmem:[#allocation63_spill] sm:$0xff]  ;;  %v18662_v24 = vld [vmem:[#allocation64_spill] sm:$0xff] }
 0x7db   : > { %v8128_v19 = vadd.f32 %v18652_v36, %v8049_v7  ;;  %v8129_v54 = vadd.f32 %v18653_v62, %v8050_v46  ;;  %v8130_v56 = vadd.f32 %v18654_v15, %v8051_v13  ;;  %v8131_v34 = vadd.f32 %v18655_v26, %v8052_v25  ;;  %v18663_v7 = vld [vmem:[#allocation222_spill] sm:$0xff] }
 0x7dc   : > { %v8204_v30 = vadd.f32 %v18656_v51, %v8125_v17  ;;  %v8205_v28 = vadd.f32 %v18657_v38, %v8126_v12  ;;  %v8206_v52 = vadd.f32 %v18658_v29, %v8127_v59  ;;  %v8277_v9 = vmul.f32 %v18634_v1, %v17024_v37 }
 0x7dd   : > { %v8207_v0 = vadd.f32 %v18659_v3, %v8128_v19  ;;  %v8208_v33 = vadd.f32 %v18660_v6, %v8129_v54  ;;  %v8209_v39 = vadd.f32 %v18661_v27, %v8130_v56  ;;  %v8210_v45 = vadd.f32 %v18662_v24, %v8131_v34 }
 0x7de   : > { %v8218_v49 = vcombine.low %v8204_v30, %v8205_v28  ;;  %v8278_v31 = vmul.f32 %v18634_v1, %v17098_v57  ;;  %v8281_v21 = vmul.f32 %v18663_v7, %v17006_v47  ;;  %v8282_v46 = vmul.f32 %v18663_v7, %v17008_v58 }
 0x7df   : > { %v8219_v43 = vcombine.low %v8206_v52, %v8207_v0  ;;  %v8283_v55 = vmul.f32 %v18663_v7, %v17010_v22  ;;  %v8220_v13 = vcombine.low %v8208_v33, %v8209_v39  ;;  %v8248_v25 = vrot.slane %v8210_v45, %v18597_v44  ;;  %v18664_v33 = vld [vmem:[#allocation223_spill] sm:$0xff] }
 0x7e0   : > { %v8227_v42 = vrot.slane %v8218_v49, %v18597_v44  ;;  %v8284_v2 = vmul.f32 %v18663_v7, %v17020_v60  ;;  %v8285_v17 = vmul.f32 %v18663_v7, %v17022_v16  ;;  %v8286_v35 = vmul.f32 %v18663_v7, %v17024_v37 }
 0x7e1   : > { %v8234_v1 = vrot.slane %v8219_v43, %v18597_v44  ;;  %v8287_v12 = vmul.f32 %v18663_v7, %v17098_v57  ;;  %v8241_v53 = vrot.slane %v8220_v13, %v18597_v44  ;;  %v8295_v59 = vrot.slane %v8281_v21, 1 }
 0x7e2   : > { %v8296_v36 = vrot.slane %v8282_v46, 1  ;;  %v8297_v19 = vrot.slane %v8283_v55, 1  ;;  %v8298_v54 = vrot.slane %v8284_v2, 1  ;;  %v8299_v15 = vrot.slane %v8285_v17, 1  ;;  %v18665_v55 = vld [vmem:[#allocation224_spill] sm:$0xff] }
 0x7e3   : > { %v8249_v62 = vcombine.low %v8227_v42, %v8234_v1  ;;  %v8300_v56 = vrot.slane %v8286_v35, 1  ;;  %v8250_v26 = vcombine.low %v8241_v53, %v8248_v25  ;;  %v8301_v34 = vrot.slane %v8287_v12, 1 }
 0x7e4   : > { %v8309_v51 = vadd.f32 %v8295_v59, %v17293_v11  ;;  %v8310_v30 = vadd.f32 %v8296_v36, %v8273_v10  ;;  %v8311_v28 = vadd.f32 %v8297_v19, %v8274_v41  ;;  %v8312_v29 = vadd.f32 %v8298_v54, %v8275_v20 }
 0x7e5   : > { %v8257_v38 = vrot.slane %v8249_v62, %v18597_v44  ;;  %v8313_v52 = vadd.f32 %v8299_v15, %v8276_v63  ;;  %v8264_v3 = vrot.slane %v8250_v26, %v18597_v44  ;;  %v8314_v0 = vadd.f32 %v8300_v56, %v8277_v9  ;;  %v18666_v26 = vld [vmem:[#allocation225_spill] sm:$0xff] }
 0x7e6   : > { %v8315_v6 = vadd.f32 %v8301_v34, %v8278_v31  ;;  %v8318_v27 = vmul.f32 %v18664_v33, %v17006_v47  ;;  %v8319_v39 = vmul.f32 %v18664_v33, %v17008_v58  ;;  %v8320_v11 = vmul.f32 %v18664_v33, %v17010_v22 }
 0x7e7   : > { %v8321_v10 = vmul.f32 %v18664_v33, %v17020_v60  ;;  %v8322_v41 = vmul.f32 %v18664_v33, %v17022_v16  ;;  %v8265_v20 = vcombine.low %v8257_v38, %v8264_v3  ;;  %v8323_v63 = vmul.f32 %v18664_v33, %v17024_v37 }
 0x7e8   : > { %v8324_v9 = vmul.f32 %v18664_v33, %v17098_v57  ;;  %v8332_v24 = vrot.slane %v8318_v27, 2  ;;  %v8333_v45 = vrot.slane %v8319_v39, 2  ;;  %v8334_v49 = vrot.slane %v8320_v11, 2  ;;  %v18667_v11 = vld [vmem:[#allocation65_spill] sm:$0xff] }
 0x7e9   : > { %v8335_v31 = vrot.slane %v8321_v10, 2  ;;  %v8336_v43 = vrot.slane %v8322_v41, 2  ;;  %11644 = vst.msk [vmem:[%s17255_s30 + $0x1] ss:$8 sm:$0xf] %vm17223_vm0, %v8265_v20  ;;  %v8337_v7 = vrot.slane %v8323_v63, 2  ;;  %v8355_v13 = vmul.f32 %v18665_v55, %v17006_v47 }
 0x7ea   : > { %11645 = vst.msk [vmem:[%s17255_s30 + $0x1] ss:$8 sm:$0x70] %vm17223_vm0, %v8265_v20  ;;  %v8338_v21 = vrot.slane %v8324_v9, 2  ;;  %v8346_v46 = vadd.f32 %v8332_v24, %v8309_v51  ;;  %v8347_v42 = vadd.f32 %v8333_v45, %v8310_v30  ;;  %v8348_v25 = vadd.f32 %v8334_v49, %v8311_v28  ;;  %v18668_v41 = vld [vmem:[#allocation66_spill] sm:$0xff]  ;;  %v18669_v63 = vld [vmem:[#allocation67_spill] sm:$0xff] }
 0x7eb   : > { %v8349_v2 = vadd.f32 %v8335_v31, %v8312_v29  ;;  %v8350_v1 = vadd.f32 %v8336_v43, %v8313_v52  ;;  %v8351_v17 = vadd.f32 %v8337_v7, %v8314_v0  ;;  %v8356_v12 = vmul.f32 %v18665_v55, %v17008_v58  ;;  %v18670_v45 = vld [vmem:[#allocation69_spill] sm:$0xff]  ;;  %v18671_v31 = vld [vmem:[#allocation68_spill] sm:$0xff]  ;;  %v18672_v7 = vld [vmem:[#allocation71_spill] sm:$0xff] }
 0x7ec   : > { %v8352_v35 = vadd.f32 %v8338_v21, %v8315_v6  ;;  %v8357_v53 = vmul.f32 %v18665_v55, %v17010_v22  ;;  %v8358_v59 = vmul.f32 %v18665_v55, %v17020_v60  ;;  %v8359_v36 = vmul.f32 %v18665_v55, %v17022_v16 }
 0x7ed   : > { %v8360_v19 = vmul.f32 %v18665_v55, %v17024_v37  ;;  %v8361_v62 = vmul.f32 %v18665_v55, %v17098_v57  ;;  %v8369_v54 = vrot.slane %v8355_v13, 3  ;;  %v8370_v15 = vrot.slane %v8356_v12, 3  ;;  %v18674_v13 = vld [vmem:[#allocation70_spill] sm:$0xff]  ;;  %v18677_v12 = vld [vmem:[#allocation75_spill] sm:$0xff] }
 0x7ee   : > { %v8371_v56 = vrot.slane %v8357_v53, 3  ;;  %v17392_v34 = vmul.f32 %v18666_v26, %v17006_v47  ;;  %v8372_v51 = vrot.slane %v8358_v59, 3  ;;  %v8373_v30 = vrot.slane %v8359_v36, 3  ;;  %v18678_v59 = vld [vmem:[#allocation77_spill] sm:$0xff] }
 0x7ef   : > { %v8374_v38 = vrot.slane %v8360_v19, 3  ;;  %v8375_v28 = vrot.slane %v8361_v62, 3  ;;  %v8383_v29 = vadd.f32 %v8369_v54, %v8346_v46  ;;  %v8384_v52 = vadd.f32 %v8370_v15, %v8347_v42  ;;  %v18673_v46 = vld [vmem:[#allocation72_spill] sm:$0xff]  ;;  %v18680_v54 = vld [vmem:[#allocation79_spill] sm:$0xff] }
 0x7f0   : > { %v8385_v3 = vadd.f32 %v8371_v56, %v8348_v25  ;;  %v8768_v0 = vmul.f32 %v18666_v26, %v17008_v58  ;;  %v8386_v6 = vadd.f32 %v8372_v51, %v8349_v2  ;;  %v8387_v33 = vadd.f32 %v8373_v30, %v8350_v1  ;;  %v18675_v25 = vld [vmem:[#allocation73_spill] sm:$0xff]  ;;  %v18676_v1 = vld [vmem:[#allocation74_spill] sm:$0xff]  ;;  %v18679_v19 = vld [vmem:[#allocation76_spill] sm:$0xff] }
 0x7f1   : > { %v8388_v27 = vadd.f32 %v8374_v38, %v8351_v17  ;;  %v8389_v39 = vadd.f32 %v8375_v28, %v8352_v35  ;;  %v8462_v10 = vadd.f32 %v18667_v11, %v8383_v29  ;;  %v8463_v20 = vadd.f32 %v18668_v41, %v8384_v52  ;;  %v18681_v56 = vld [vmem:[#allocation81_spill] sm:$0xff]  ;;  %v18682_v30 = vld [vmem:[#allocation78_spill] sm:$0xff]  ;;  %v18683_v28 = vld [vmem:[#allocation80_spill] sm:$0xff] }
 0x7f2   : > { %v8464_v9 = vadd.f32 %v18669_v63, %v8385_v3  ;;  %v8769_v24 = vmul.f32 %v18666_v26, %v17010_v22  ;;  %v8465_v49 = vadd.f32 %v18670_v45, %v8386_v6  ;;  %v8466_v43 = vadd.f32 %v18671_v31, %v8387_v33  ;;  %v18684_v3 = vld [vmem:[#allocation83_spill] sm:$0xff]  ;;  %v18685_v33 = vld [vmem:[#allocation82_spill] sm:$0xff] }
 0x7f3   : > { %v8467_v21 = vadd.f32 %v18672_v7, %v8388_v27  ;;  %v8468_v55 = vadd.f32 %v18673_v46, %v8389_v39  ;;  %v8541_v42 = vadd.f32 %v18674_v13, %v8462_v10  ;;  %v8542_v2 = vadd.f32 %v18675_v25, %v8463_v20  ;;  %v18686_v39 = vld [vmem:[#allocation85_spill] sm:$0xff]  ;;  %v18687_v10 = vld [vmem:[#allocation84_spill] sm:$0xff]  ;;  %v18688_v20 = vld [vmem:[#allocation87_spill] sm:$0xff] }
 0x7f4   : > { %v8543_v17 = vadd.f32 %v18676_v1, %v8464_v9  ;;  %v8770_v35 = vmul.f32 %v18666_v26, %v17020_v60  ;;  %v8544_v53 = vadd.f32 %v18677_v12, %v8465_v49  ;;  %v8545_v36 = vadd.f32 %v18678_v59, %v8466_v43  ;;  %v18689_v9 = vld [vmem:[#allocation89_spill] sm:$0xff]  ;;  %v18690_v49 = vld [vmem:[#allocation86_spill] sm:$0xff]  ;;  %v18691_v7 = vld [vmem:[#allocation88_spill] sm:$0xff] }
 0x7f5   : > { %v8546_v62 = vadd.f32 %v18679_v19, %v8467_v21  ;;  %v8547_v15 = vadd.f32 %v18680_v54, %v8468_v55  ;;  %v8620_v51 = vadd.f32 %v18681_v56, %v8541_v42  ;;  %v8621_v38 = vadd.f32 %v18682_v30, %v8542_v2  ;;  %v18692_v46 = vld [vmem:[#allocation91_spill] sm:$0xff]  ;;  %v18693_v13 = vld [vmem:[#allocation90_spill] sm:$0xff]  ;;  %v18694_v25 = vld [vmem:[#allocation93_spill] sm:$0xff] }
 0x7f6   : > { %v8622_v29 = vadd.f32 %v18683_v28, %v8543_v17  ;;  %v8771_v52 = vmul.f32 %v18666_v26, %v17022_v16  ;;  %v8623_v6 = vadd.f32 %v18684_v3, %v8544_v53  ;;  %v8624_v27 = vadd.f32 %v18685_v33, %v8545_v36  ;;  %v18695_v12 = vld [vmem:[#allocation226_spill] sm:$0xff] }
 0x7f7   : > { %v8625_v11 = vadd.f32 %v18686_v39, %v8546_v62  ;;  %v8626_v41 = vadd.f32 %v18687_v10, %v8547_v15  ;;  %v8699_v63 = vadd.f32 %v18688_v20, %v8620_v51  ;;  %v8700_v45 = vadd.f32 %v18689_v9, %v8621_v38 }
 0x7f8   : > { %v8701_v31 = vadd.f32 %v18690_v49, %v8622_v29  ;;  %v8772_v43 = vmul.f32 %v18666_v26, %v17024_v37  ;;  %v8702_v21 = vadd.f32 %v18691_v7, %v8623_v6  ;;  %v8703_v55 = vadd.f32 %v18692_v46, %v8624_v27 }
 0x7f9   : > { %v8704_v42 = vadd.f32 %v18693_v13, %v8625_v11  ;;  %v8705_v2 = vadd.f32 %v18694_v25, %v8626_v41  ;;  %v8713_v1 = vcombine.low %v8699_v63, %v8700_v45  ;;  %v8773_v17 = vmul.f32 %v18666_v26, %v17098_v57 }
 0x7fa   : > { %v8776_v53 = vmul.f32 %v18695_v12, %v17006_v47  ;;  %v8777_v59 = vmul.f32 %v18695_v12, %v17008_v58  ;;  %v8714_v36 = vcombine.low %v8701_v31, %v8702_v21  ;;  %v8778_v54 = vmul.f32 %v18695_v12, %v17010_v22 }
 0x7fb   : > { %v8715_v19 = vcombine.low %v8703_v55, %v8704_v42  ;;  %v8743_v62 = vrot.slane %v8705_v2, %v18597_v44  ;;  %v8722_v15 = vrot.slane %v8713_v1, %v18597_v44  ;;  %v8779_v56 = vmul.f32 %v18695_v12, %v17020_v60  ;;  %v18696_v55 = vld [vmem:[#allocation227_spill] sm:$0xff] }
 0x7fc   : > { %v8780_v26 = vmul.f32 %v18695_v12, %v17022_v16  ;;  %v8781_v51 = vmul.f32 %v18695_v12, %v17024_v37  ;;  %v8729_v30 = vrot.slane %v8714_v36, %v18597_v44  ;;  %v8782_v28 = vmul.f32 %v18695_v12, %v17098_v57 }
 0x7fd   : > { %v8736_v38 = vrot.slane %v8715_v19, %v18597_v44  ;;  %v8790_v29 = vrot.slane %v8776_v53, 1  ;;  %v8791_v3 = vrot.slane %v8777_v59, 1  ;;  %v8792_v6 = vrot.slane %v8778_v54, 1  ;;  %v18697_v59 = vld [vmem:[#allocation228_spill] sm:$0xff] }
 0x7fe   : > { %v8793_v33 = vrot.slane %v8779_v56, 1  ;;  %v8794_v27 = vrot.slane %v8780_v26, 1  ;;  %v8744_v39 = vcombine.low %v8722_v15, %v8729_v30  ;;  %v8795_v10 = vrot.slane %v8781_v51, 1 }
 0x7ff   : > { %v8745_v11 = vcombine.low %v8736_v38, %v8743_v62  ;;  %v8796_v41 = vrot.slane %v8782_v28, 1  ;;  %v8804_v20 = vadd.f32 %v8790_v29, %v17392_v34  ;;  %v8805_v63 = vadd.f32 %v8791_v3, %v8768_v0 }
 0x800   : > { %v8806_v9 = vadd.f32 %v8792_v6, %v8769_v24  ;;  %v8807_v45 = vadd.f32 %v8793_v33, %v8770_v35  ;;  %v8752_v49 = vrot.slane %v8744_v39, %v18597_v44  ;;  %v8808_v7 = vadd.f32 %v8794_v27, %v8771_v52 }
 0x801   : > { %v8759_v31 = vrot.slane %v8745_v11, %v18597_v44  ;;  %v8809_v21 = vadd.f32 %v8795_v10, %v8772_v43  ;;  %v8810_v46 = vadd.f32 %v8796_v41, %v8773_v17  ;;  %v8813_v13 = vmul.f32 %v18696_v55, %v17006_v47 }
 0x802   : > { %v8814_v42 = vmul.f32 %v18696_v55, %v17008_v58  ;;  %v8815_v34 = vmul.f32 %v18696_v55, %v17010_v22  ;;  %v8816_v24 = vmul.f32 %v18696_v55, %v17020_v60  ;;  %v8817_v35 = vmul.f32 %v18696_v55, %v17022_v16 }
 0x803   : > { %v8760_v0 = vcombine.low %v8752_v49, %v8759_v31  ;;  %v8818_v52 = vmul.f32 %v18696_v55, %v17024_v37  ;;  %v8819_v43 = vmul.f32 %v18696_v55, %v17098_v57  ;;  %v8827_v25 = vrot.slane %v8813_v13, 2 }
 0x804   : > { %v8828_v2 = vrot.slane %v8814_v42, 2  ;;  %v8829_v1 = vrot.slane %v8815_v34, 2  ;;  %v8830_v17 = vrot.slane %v8816_v24, 2  ;;  %v8831_v12 = vrot.slane %v8817_v35, 2  ;;  %v18699_v34 = vld [vmem:[#allocation92_spill] sm:$0xff]  ;;  %v18700_v24 = vld [vmem:[#allocation95_spill] sm:$0xff] }
 0x805   : > { %11654 = vst.msk [vmem:[%s17255_s30 + $0x2] ss:$8 sm:$0xf] %vm17223_vm0, %v8760_v0  ;;  %11655 = vst.msk [vmem:[%s17255_s30 + $0x2] ss:$8 sm:$0x70] %vm17223_vm0, %v8760_v0  ;;  %v8850_v36 = vmul.f32 %v18697_v59, %v17006_v47  ;;  %v8841_v62 = vadd.f32 %v8827_v25, %v8804_v20  ;;  %v8851_v30 = vmul.f32 %v18697_v59, %v17008_v58 }
 0x806   : > { %v8832_v53 = vrot.slane %v8818_v52, 2  ;;  %v8833_v19 = vrot.slane %v8819_v43, 2  ;;  %v8842_v54 = vadd.f32 %v8828_v2, %v8805_v63  ;;  %v8843_v15 = vadd.f32 %v8829_v1, %v8806_v9  ;;  %v18698_v20 = vld [vmem:[#allocation198_spill] sm:$0xff]  ;;  %v18701_v52 = vld [vmem:[#allocation97_spill] sm:$0xff]  ;;  %v18703_v1 = vld [vmem:[#allocation96_spill] sm:$0xff] }
 0x807   : > { %v8844_v56 = vadd.f32 %v8830_v17, %v8807_v45  ;;  %v8845_v26 = vadd.f32 %v8831_v12, %v8808_v7  ;;  %v8852_v28 = vmul.f32 %v18697_v59, %v17010_v22  ;;  %v8853_v29 = vmul.f32 %v18697_v59, %v17020_v60  ;;  %v18702_v25 = vld [vmem:[#allocation94_spill] sm:$0xff] }
 0x808   : > { %v8846_v51 = vadd.f32 %v8832_v53, %v8809_v21  ;;  %v8847_v38 = vadd.f32 %v8833_v19, %v8810_v46  ;;  %v8854_v3 = vmul.f32 %v18697_v59, %v17022_v16  ;;  %v8855_v6 = vmul.f32 %v18697_v59, %v17024_v37  ;;  %v18704_v53 = vld [vmem:[#allocation99_spill] sm:$0xff] }
 0x809   : > { %v8856_v33 = vmul.f32 %v18697_v59, %v17098_v57  ;;  %v8864_v27 = vrot.slane %v8850_v36, 3  ;;  %v8865_v39 = vrot.slane %v8851_v30, 3  ;;  %v8866_v11 = vrot.slane %v8852_v28, 3  ;;  %v18705_v36 = vld [vmem:[#allocation98_spill] sm:$0xff]  ;;  %v18710_v28 = vld [vmem:[#allocation104_spill] sm:$0xff] }
 0x80a   : > { %v8867_v10 = vrot.slane %v8853_v29, 3  ;;  %v8868_v41 = vrot.slane %v8854_v3, 3  ;;  %v17491_v63 = vmul.f32 %v18698_v20, %v17006_v47  ;;  %v8869_v9 = vrot.slane %v8855_v6, 3  ;;  %v18709_v30 = vld [vmem:[#allocation102_spill] sm:$0xff]  ;;  %v18711_v6 = vld [vmem:[#allocation107_spill] sm:$0xff] }
 0x80b   : > { %v8870_v45 = vrot.slane %v8856_v33, 3  ;;  %v8878_v49 = vadd.f32 %v8864_v27, %v8841_v62  ;;  %v8879_v31 = vadd.f32 %v8865_v39, %v8842_v54  ;;  %v8880_v7 = vadd.f32 %v8866_v11, %v8843_v15  ;;  %v18706_v62 = vld [vmem:[#allocation101_spill] sm:$0xff]  ;;  %v18707_v15 = vld [vmem:[#allocation103_spill] sm:$0xff]  ;;  %v18712_v27 = vld [vmem:[#allocation106_spill] sm:$0xff] }
 0x80c   : > { %v8881_v21 = vadd.f32 %v8867_v10, %v8844_v56  ;;  %v8882_v46 = vadd.f32 %v8868_v41, %v8845_v26  ;;  %v17495_v55 = vmul.f32 %v18698_v20, %v17008_v58  ;;  %v8883_v13 = vadd.f32 %v8869_v9, %v8846_v51  ;;  %v18708_v26 = vld [vmem:[#allocation105_spill] sm:$0xff]  ;;  %v18714_v41 = vld [vmem:[#allocation108_spill] sm:$0xff] }
 0x80d   : > { %v8884_v42 = vadd.f32 %v8870_v45, %v8847_v38  ;;  %v8957_v0 = vadd.f32 %v18699_v34, %v8878_v49  ;;  %v8958_v35 = vadd.f32 %v18700_v24, %v8879_v31  ;;  %v8959_v43 = vadd.f32 %v18701_v52, %v8880_v7  ;;  %v18713_v11 = vld [vmem:[#allocation109_spill] sm:$0xff]  ;;  %v18715_v45 = vld [vmem:[#allocation111_spill] sm:$0xff] }
 0x80e   : > { %v8960_v2 = vadd.f32 %v18702_v25, %v8881_v21  ;;  %v8961_v17 = vadd.f32 %v18703_v1, %v8882_v46  ;;  %v9264_v12 = vmul.f32 %v18698_v20, %v17010_v22  ;;  %v8962_v59 = vadd.f32 %v18704_v53, %v8883_v13  ;;  %v18716_v31 = vld [vmem:[#allocation113_spill] sm:$0xff]  ;;  %v18717_v21 = vld [vmem:[#allocation110_spill] sm:$0xff] }
 0x80f   : > { %v8963_v19 = vadd.f32 %v18705_v36, %v8884_v42  ;;  %v9036_v54 = vadd.f32 %v18706_v62, %v8957_v0  ;;  %v9037_v56 = vadd.f32 %v18707_v15, %v8958_v35  ;;  %v9038_v51 = vadd.f32 %v18708_v26, %v8959_v43  ;;  %v18718_v42 = vld [vmem:[#allocation112_spill] sm:$0xff]  ;;  %v18719_v0 = vld [vmem:[#allocation115_spill] sm:$0xff]  ;;  %v18720_v35 = vld [vmem:[#allocation114_spill] sm:$0xff] }
 0x810   : > { %v9039_v38 = vadd.f32 %v18709_v30, %v8960_v2  ;;  %v9040_v29 = vadd.f32 %v18710_v28, %v8961_v17  ;;  %v9265_v3 = vmul.f32 %v18698_v20, %v17020_v60  ;;  %v9041_v33 = vadd.f32 %v18711_v6, %v8962_v59  ;;  %v18721_v43 = vld [vmem:[#allocation117_spill] sm:$0xff]  ;;  %v18722_v2 = vld [vmem:[#allocation116_spill] sm:$0xff]  ;;  %v18723_v17 = vld [vmem:[#allocation119_spill] sm:$0xff] }
 0x811   : > { %v9042_v39 = vadd.f32 %v18712_v27, %v8963_v19  ;;  %v9115_v10 = vadd.f32 %v18713_v11, %v9036_v54  ;;  %v9116_v9 = vadd.f32 %v18714_v41, %v9037_v56  ;;  %v9117_v49 = vadd.f32 %v18715_v45, %v9038_v51  ;;  %v18724_v59 = vld [vmem:[#allocation121_spill] sm:$0xff]  ;;  %v18725_v62 = vld [vmem:[#allocation118_spill] sm:$0xff]  ;;  %v18726_v15 = vld [vmem:[#allocation120_spill] sm:$0xff] }
 0x812   : > { %v9118_v7 = vadd.f32 %v18716_v31, %v9039_v38  ;;  %v9119_v46 = vadd.f32 %v18717_v21, %v9040_v29  ;;  %v9266_v13 = vmul.f32 %v18698_v20, %v17022_v16  ;;  %v9120_v34 = vadd.f32 %v18718_v42, %v9041_v33 }
 0x813   : > { %v9121_v24 = vadd.f32 %v18719_v0, %v9042_v39  ;;  %v9194_v52 = vadd.f32 %v18720_v35, %v9115_v10  ;;  %v9195_v25 = vadd.f32 %v18721_v43, %v9116_v9  ;;  %v9196_v1 = vadd.f32 %v18722_v2, %v9117_v49 }
 0x814   : > { %v9197_v53 = vadd.f32 %v18723_v17, %v9118_v7  ;;  %v9198_v36 = vadd.f32 %v18724_v59, %v9119_v46  ;;  %v9267_v19 = vmul.f32 %v18698_v20, %v17024_v37  ;;  %v9199_v54 = vadd.f32 %v18725_v62, %v9120_v34 }
 0x815   : > { %v9200_v56 = vadd.f32 %v18726_v15, %v9121_v24  ;;  %v9208_v26 = vcombine.low %v9194_v52, %v9195_v25  ;;  %v9268_v51 = vmul.f32 %v18698_v20, %v17098_v57  ;;  %v9270_v38 = vstv %s17499_s9 }
 0x816   : > { %v9209_v30 = vcombine.low %v9196_v1, %v9197_v53  ;;  %v9307_v28 = vstv %s17506_s10  ;;  %v9344_v29 = vstv %s17508_s11  ;;  %v9210_v6 = vcombine.low %v9198_v36, %v9199_v54 }
 0x817   : > { %v9217_v33 = vrot.slane %v9208_v26, %v18597_v44  ;;  %v9238_v27 = vrot.slane %v9200_v56, %v18597_v44  ;;  %v9271_v39 = vmul.f32 %v9270_v38, %v17006_v47  ;;  %v9272_v10 = vmul.f32 %v9270_v38, %v17008_v58 }
 0x818   : > { %v9224_v11 = vrot.slane %v9209_v30, %v18597_v44  ;;  %v9273_v41 = vmul.f32 %v9270_v38, %v17010_v22  ;;  %v9274_v9 = vmul.f32 %v9270_v38, %v17020_v60  ;;  %v9231_v20 = vrot.slane %v9210_v6, %v18597_v44 }
 0x819   : > { %v9275_v45 = vmul.f32 %v9270_v38, %v17022_v16  ;;  %v9276_v49 = vmul.f32 %v9270_v38, %v17024_v37  ;;  %v9277_v31 = vmul.f32 %v9270_v38, %v17098_v57  ;;  %v9285_v21 = vrot.slane %v9271_v39, 1 }
 0x81a   : > { %v9239_v7 = vcombine.low %v9217_v33, %v9224_v11  ;;  %v9286_v46 = vrot.slane %v9272_v10, 1  ;;  %v9287_v42 = vrot.slane %v9273_v41, 1  ;;  %v9240_v34 = vcombine.low %v9231_v20, %v9238_v27 }
 0x81b   : > { %v9288_v0 = vrot.slane %v9274_v9, 1  ;;  %v9289_v24 = vrot.slane %v9275_v45, 1  ;;  %v9290_v35 = vrot.slane %v9276_v49, 1  ;;  %v9291_v43 = vrot.slane %v9277_v31, 1 }
 0x81c   : > { %v9247_v52 = vrot.slane %v9239_v7, %v18597_v44  ;;  %v9299_v25 = vadd.f32 %v9285_v21, %v17491_v63  ;;  %v9300_v2 = vadd.f32 %v9286_v46, %v17495_v55  ;;  %v9254_v1 = vrot.slane %v9240_v34, %v18597_v44 }
 0x81d   : > { %v9301_v17 = vadd.f32 %v9287_v42, %v9264_v12  ;;  %v9302_v53 = vadd.f32 %v9288_v0, %v9265_v3  ;;  %v9303_v59 = vadd.f32 %v9289_v24, %v9266_v13  ;;  %v9304_v36 = vadd.f32 %v9290_v35, %v9267_v19 }
 0x81e   : > { %v9305_v62 = vadd.f32 %v9291_v43, %v9268_v51  ;;  %v9308_v54 = vmul.f32 %v9307_v28, %v17006_v47  ;;  %v9309_v15 = vmul.f32 %v9307_v28, %v17008_v58  ;;  %v9255_v56 = vcombine.low %v9247_v52, %v9254_v1 }
 0x81f   : > { %v9310_v63 = vmul.f32 %v9307_v28, %v17010_v22  ;;  %v9311_v55 = vmul.f32 %v9307_v28, %v17020_v60  ;;  %v9312_v26 = vmul.f32 %v9307_v28, %v17022_v16  ;;  %v9313_v12 = vmul.f32 %v9307_v28, %v17024_v37 }
 0x820   : > { %v9314_v3 = vmul.f32 %v9307_v28, %v17098_v57  ;;  %v9322_v13 = vrot.slane %v9308_v54, 2  ;;  %v9323_v19 = vrot.slane %v9309_v15, 2  ;;  %11664 = vst.msk [vmem:[%s17255_s30 + $0x3] ss:$8 sm:$0xf] %vm17223_vm0, %v9255_v56  ;;  %v9345_v6 = vmul.f32 %v9344_v29, %v17006_v47  ;;  %v18727_v15 = vld [vmem:[#allocation123_spill] sm:$0xff] }
 0x821   : > { %11665 = vst.msk [vmem:[%s17255_s30 + $0x3] ss:$8 sm:$0x70] %vm17223_vm0, %v9255_v56  ;;  %v9324_v51 = vrot.slane %v9310_v63, 2  ;;  %v9325_v30 = vrot.slane %v9311_v55, 2  ;;  %v9326_v38 = vrot.slane %v9312_v26, 2  ;;  %v9346_v9 = vmul.f32 %v9344_v29, %v17008_v58 }
 0x822   : > { %v9327_v33 = vrot.slane %v9313_v12, 2  ;;  %v9328_v27 = vrot.slane %v9314_v3, 2  ;;  %v9336_v39 = vadd.f32 %v9322_v13, %v9299_v25  ;;  %v9337_v11 = vadd.f32 %v9323_v19, %v9300_v2  ;;  %v18728_v56 = vld [vmem:[#allocation122_spill] sm:$0xff]  ;;  %v18729_v55 = vld [vmem:[#allocation125_spill] sm:$0xff]  ;;  %v18730_v12 = vld [vmem:[#allocation124_spill] sm:$0xff] }
 0x823   : > { %v9338_v10 = vadd.f32 %v9324_v51, %v9301_v17  ;;  %v9339_v28 = vadd.f32 %v9325_v30, %v9302_v53  ;;  %v9340_v41 = vadd.f32 %v9326_v38, %v9303_v59  ;;  %v9347_v49 = vmul.f32 %v9344_v29, %v17010_v22  ;;  %v18731_v19 = vld [vmem:[#allocation127_spill] sm:$0xff]  ;;  %v18732_v30 = vld [vmem:[#allocation129_spill] sm:$0xff] }
 0x824   : > { %v9341_v20 = vadd.f32 %v9327_v33, %v9304_v36  ;;  %v9342_v45 = vadd.f32 %v9328_v27, %v9305_v62  ;;  %v9348_v31 = vmul.f32 %v9344_v29, %v17020_v60  ;;  %v9349_v7 = vmul.f32 %v9344_v29, %v17022_v16  ;;  %v18734_v27 = vld [vmem:[#allocation128_spill] sm:$0xff] }
 0x825   : > { %v9350_v21 = vmul.f32 %v9344_v29, %v17024_v37  ;;  %v9351_v46 = vmul.f32 %v9344_v29, %v17098_v57  ;;  %v9359_v42 = vrot.slane %v9345_v6, 3  ;;  %v9360_v34 = vrot.slane %v9346_v9, 3  ;;  %v18733_v6 = vld [vmem:[#allocation126_spill] sm:$0xff]  ;;  %v18737_v9 = vld [vmem:[#allocation133_spill] sm:$0xff] }
 0x826   : > { %v9361_v0 = vrot.slane %v9347_v49, 3  ;;  %v9362_v24 = vrot.slane %v9348_v31, 3  ;;  %v9756_v35 = vstv %s17561_s12  ;;  %v9363_v52 = vrot.slane %v9349_v7, 3  ;;  %v18738_v49 = vld [vmem:[#allocation132_spill] sm:$0xff]  ;;  %v18739_v7 = vld [vmem:[#allocation135_spill] sm:$0xff] }
 0x827   : > { %v9364_v43 = vrot.slane %v9350_v21, 3  ;;  %v9365_v25 = vrot.slane %v9351_v46, 3  ;;  %v9373_v2 = vadd.f32 %v9359_v42, %v9336_v39  ;;  %v9374_v1 = vadd.f32 %v9360_v34, %v9337_v11  ;;  %v18735_v11 = vld [vmem:[#allocation131_spill] sm:$0xff]  ;;  %v18740_v46 = vld [vmem:[#allocation137_spill] sm:$0xff]  ;;  %v18741_v34 = vld [vmem:[#allocation134_spill] sm:$0xff] }
 0x828   : > { %v9375_v17 = vadd.f32 %v9361_v0, %v9338_v10  ;;  %v9376_v53 = vadd.f32 %v9362_v24, %v9339_v28  ;;  %v17583_v59 = vmul.f32 %v9756_v35, %v17006_v47  ;;  %v9377_v36 = vadd.f32 %v9363_v52, %v9340_v41  ;;  %v18736_v28 = vld [vmem:[#allocation130_spill] sm:$0xff]  ;;  %v18742_v24 = vld [vmem:[#allocation136_spill] sm:$0xff] }
 0x829   : > { %v9378_v62 = vadd.f32 %v9364_v43, %v9341_v20  ;;  %v9379_v54 = vadd.f32 %v9365_v25, %v9342_v45  ;;  %v9452_v29 = vadd.f32 %v18727_v15, %v9373_v2  ;;  %v9453_v63 = vadd.f32 %v18728_v56, %v9374_v1  ;;  %v18743_v43 = vld [vmem:[#allocation139_spill] sm:$0xff]  ;;  %v18744_v2 = vld [vmem:[#allocation138_spill] sm:$0xff]  ;;  %v18748_v56 = vld [vmem:[#allocation145_spill] sm:$0xff] }
 0x82a   : > { %v9454_v26 = vadd.f32 %v18729_v55, %v9375_v17  ;;  %v9455_v3 = vadd.f32 %v18730_v12, %v9376_v53  ;;  %v9758_v13 = vmul.f32 %v9756_v35, %v17008_v58  ;;  %v9456_v51 = vadd.f32 %v18731_v19, %v9377_v36  ;;  %v18745_v53 = vld [vmem:[#allocation141_spill] sm:$0xff]  ;;  %v18747_v15 = vld [vmem:[#allocation143_spill] sm:$0xff]  ;;  %v18749_v55 = vld [vmem:[#allocation142_spill] sm:$0xff] }
 0x82b   : > { %v9457_v38 = vadd.f32 %v18732_v30, %v9378_v62  ;;  %v9458_v33 = vadd.f32 %v18733_v6, %v9379_v54  ;;  %v9531_v39 = vadd.f32 %v18734_v27, %v9452_v29  ;;  %v9532_v10 = vadd.f32 %v18735_v11, %v9453_v63  ;;  %v18746_v62 = vld [vmem:[#allocation140_spill] sm:$0xff]  ;;  %v18751_v19 = vld [vmem:[#allocation147_spill] sm:$0xff] }
 0x82c   : > { %v9533_v41 = vadd.f32 %v18736_v28, %v9454_v26  ;;  %v9534_v20 = vadd.f32 %v18737_v9, %v9455_v3  ;;  %v9759_v45 = vmul.f32 %v9756_v35, %v17010_v22  ;;  %v9535_v31 = vadd.f32 %v18738_v49, %v9456_v51  ;;  %v18750_v12 = vld [vmem:[#allocation144_spill] sm:$0xff] }
 0x82d   : > { %v9536_v21 = vadd.f32 %v18739_v7, %v9457_v38  ;;  %v9537_v42 = vadd.f32 %v18740_v46, %v9458_v33  ;;  %v9610_v0 = vadd.f32 %v18741_v34, %v9531_v39  ;;  %v9611_v52 = vadd.f32 %v18742_v24, %v9532_v10  ;;  %v18752_v38 = vld [vmem:[#allocation146_spill] sm:$0xff]  ;;  %v18753_v33 = vld [vmem:[#allocation149_spill] sm:$0xff]  ;;  %v18754_v39 = vld [vmem:[#allocation148_spill] sm:$0xff] }
 0x82e   : > { %v9612_v25 = vadd.f32 %v18743_v43, %v9533_v41  ;;  %v9613_v1 = vadd.f32 %v18744_v2, %v9534_v20  ;;  %v9760_v17 = vmul.f32 %v9756_v35, %v17020_v60  ;;  %v9614_v36 = vadd.f32 %v18745_v53, %v9535_v31 }
 0x82f   : > { %v9615_v54 = vadd.f32 %v18746_v62, %v9536_v21  ;;  %v9616_v29 = vadd.f32 %v18747_v15, %v9537_v42  ;;  %v9689_v63 = vadd.f32 %v18748_v56, %v9610_v0  ;;  %v9690_v26 = vadd.f32 %v18749_v55, %v9611_v52 }
 0x830   : > { %v9691_v3 = vadd.f32 %v18750_v12, %v9612_v25  ;;  %v9692_v51 = vadd.f32 %v18751_v19, %v9613_v1  ;;  %v9761_v30 = vmul.f32 %v9756_v35, %v17022_v16  ;;  %v9693_v6 = vadd.f32 %v18752_v38, %v9614_v36 }
 0x831   : > { %v9694_v27 = vadd.f32 %v18753_v33, %v9615_v54  ;;  %v9695_v11 = vadd.f32 %v18754_v39, %v9616_v29  ;;  %v9762_v10 = vmul.f32 %v9756_v35, %v17024_v37  ;;  %v9703_v28 = vcombine.low %v9689_v63, %v9690_v26 }
 0x832   : > { %v9704_v41 = vcombine.low %v9691_v3, %v9692_v51  ;;  %v9763_v9 = vmul.f32 %v9756_v35, %v17098_v57  ;;  %v9765_v20 = vstv %s17590_s13  ;;  %v9839_v33 = vstv %s17624_s15 }
 0x833   : > { %v9705_v49 = vcombine.low %v9693_v6, %v9694_v27  ;;  %v9733_v31 = vrot.slane %v9695_v11, %v18597_v44  ;;  %v9766_v7 = vmul.f32 %v9765_v20, %v17006_v47  ;;  %v9767_v21 = vmul.f32 %v9765_v20, %v17008_v58 }
 0x834   : > { %v9712_v46 = vrot.slane %v9703_v28, %v18597_v44  ;;  %v9719_v42 = vrot.slane %v9704_v41, %v18597_v44  ;;  %v9768_v34 = vmul.f32 %v9765_v20, %v17010_v22  ;;  %v9769_v35 = vmul.f32 %v9765_v20, %v17020_v60 }
 0x835   : > { %v9726_v0 = vrot.slane %v9705_v49, %v18597_v44  ;;  %v9770_v24 = vmul.f32 %v9765_v20, %v17022_v16  ;;  %v9771_v52 = vmul.f32 %v9765_v20, %v17024_v37  ;;  %v9772_v43 = vmul.f32 %v9765_v20, %v17098_v57 }
 0x836   : > { %v9734_v25 = vcombine.low %v9712_v46, %v9719_v42  ;;  %v9780_v2 = vrot.slane %v9766_v7, 1  ;;  %v9781_v1 = vrot.slane %v9767_v21, 1  ;;  %v9782_v53 = vrot.slane %v9768_v34, 1 }
 0x837   : > { %v9735_v36 = vcombine.low %v9726_v0, %v9733_v31  ;;  %v9783_v62 = vrot.slane %v9769_v35, 1  ;;  %v9784_v54 = vrot.slane %v9770_v24, 1  ;;  %v9785_v15 = vrot.slane %v9771_v52, 1 }
 0x838   : > { %v9742_v29 = vrot.slane %v9734_v25, %v18597_v44  ;;  %v9786_v56 = vrot.slane %v9772_v43, 1  ;;  %v9794_v63 = vadd.f32 %v9780_v2, %v17583_v59  ;;  %v9795_v55 = vadd.f32 %v9781_v1, %v9758_v13 }
 0x839   : > { %v9749_v26 = vrot.slane %v9735_v36, %v18597_v44  ;;  %v9796_v12 = vadd.f32 %v9782_v53, %v9759_v45  ;;  %v9797_v3 = vadd.f32 %v9783_v62, %v9760_v17  ;;  %v9798_v19 = vadd.f32 %v9784_v54, %v9761_v30 }
 0x83a   : > { %v9799_v51 = vadd.f32 %v9785_v15, %v9762_v10  ;;  %v9800_v38 = vadd.f32 %v9786_v56, %v9763_v9  ;;  %v9802_v6 = vstv %s17622_s14  ;;  %v9840_v9 = vmul.f32 %v9839_v33, %v17006_v47 }
 0x83b   : > { %v9750_v27 = vcombine.low %v9742_v29, %v9749_v26  ;;  %v9803_v39 = vmul.f32 %v9802_v6, %v17006_v47  ;;  %v9804_v11 = vmul.f32 %v9802_v6, %v17008_v58  ;;  %v9805_v59 = vmul.f32 %v9802_v6, %v17010_v22 }
 0x83c   : > { %v9806_v13 = vmul.f32 %v9802_v6, %v17020_v60  ;;  %v9807_v45 = vmul.f32 %v9802_v6, %v17022_v16  ;;  %v9808_v17 = vmul.f32 %v9802_v6, %v17024_v37  ;;  %v9809_v30 = vmul.f32 %v9802_v6, %v17098_v57 }
 0x83d   : > { %11674 = vst.msk [vmem:[%s17255_s30 + $0x4] ss:$8 sm:$0xf] %vm17223_vm0, %v9750_v27  ;;  %11675 = vst.msk [vmem:[%s17255_s30 + $0x4] ss:$8 sm:$0x70] %vm17223_vm0, %v9750_v27  ;;  %v9841_v34 = vmul.f32 %v9839_v33, %v17008_v58  ;;  %v9842_v43 = vmul.f32 %v9839_v33, %v17010_v22  ;;  %v9843_v25 = vmul.f32 %v9839_v33, %v17020_v60  ;;  %v10251_v54 = vstv %s17642_s16 }
 0x83e   : > { %v9817_v10 = vrot.slane %v9803_v39, 2  ;;  %v9818_v28 = vrot.slane %v9804_v11, 2  ;;  %v9819_v41 = vrot.slane %v9805_v59, 2  ;;  %v9820_v20 = vrot.slane %v9806_v13, 2  ;;  %v18755_v39 = vld [vmem:[#allocation167_spill] sm:$0xff]  ;;  %v18756_v11 = vld [vmem:[#allocation168_spill] sm:$0xff] }
 0x83f   : > { %v9821_v49 = vrot.slane %v9807_v45, 2  ;;  %v9822_v31 = vrot.slane %v9808_v17, 2  ;;  %v9823_v7 = vrot.slane %v9809_v30, 2  ;;  %v9844_v2 = vmul.f32 %v9839_v33, %v17022_v16  ;;  %v18757_v45 = vld [vmem:[#allocation169_spill] sm:$0xff]  ;;  %v18758_v30 = vld [vmem:[#allocation170_spill] sm:$0xff] }
 0x840   : > { %v9831_v21 = vadd.f32 %v9817_v10, %v9794_v63  ;;  %v9832_v46 = vadd.f32 %v9818_v28, %v9795_v55  ;;  %v9833_v42 = vadd.f32 %v9819_v41, %v9796_v12  ;;  %v9834_v35 = vadd.f32 %v9820_v20, %v9797_v3  ;;  %v18759_v28 = vld [vmem:[#allocation171_spill] sm:$0xff] }
 0x841   : > { %v9835_v0 = vadd.f32 %v9821_v49, %v9798_v19  ;;  %v9836_v24 = vadd.f32 %v9822_v31, %v9799_v51  ;;  %v9837_v52 = vadd.f32 %v9823_v7, %v9800_v38  ;;  %v9845_v1 = vmul.f32 %v9839_v33, %v17024_v37  ;;  %v18761_v49 = vld [vmem:[#allocation173_spill] sm:$0xff]  ;;  %v18762_v7 = vld [vmem:[#allocation174_spill] sm:$0xff] }
 0x842   : > { %v9846_v53 = vmul.f32 %v9839_v33, %v17098_v57  ;;  %v9854_v36 = vrot.slane %v9840_v9, 3  ;;  %v9855_v62 = vrot.slane %v9841_v34, 3  ;;  %v9856_v15 = vrot.slane %v9842_v43, 3  ;;  %v18760_v9 = vld [vmem:[#allocation172_spill] sm:$0xff]  ;;  %v18766_v43 = vld [vmem:[#allocation178_spill] sm:$0xff] }
 0x843   : > { %v9857_v29 = vrot.slane %v9843_v25, 3  ;;  %v9858_v56 = vrot.slane %v9844_v2, 3  ;;  %v9859_v63 = vrot.slane %v9845_v1, 3  ;;  %v17666_v3 = vmul.f32 %v10251_v54, %v17006_v47  ;;  %v18767_v2 = vld [vmem:[#allocation179_spill] sm:$0xff] }
 0x844   : > { %v9860_v55 = vrot.slane %v9846_v53, 3  ;;  %v9868_v26 = vadd.f32 %v9854_v36, %v9831_v21  ;;  %v9869_v12 = vadd.f32 %v9855_v62, %v9832_v46  ;;  %v9870_v19 = vadd.f32 %v9856_v15, %v9833_v42  ;;  %v18763_v46 = vld [vmem:[#allocation175_spill] sm:$0xff]  ;;  %v18768_v53 = vld [vmem:[#allocation180_spill] sm:$0xff]  ;;  %v18769_v62 = vld [vmem:[#allocation181_spill] sm:$0xff] }
 0x845   : > { %v9871_v51 = vadd.f32 %v9857_v29, %v9834_v35  ;;  %v9872_v38 = vadd.f32 %v9858_v56, %v9835_v0  ;;  %v9873_v6 = vadd.f32 %v9859_v63, %v9836_v24  ;;  %v17671_v13 = vmul.f32 %v10251_v54, %v17008_v58  ;;  %v18764_v35 = vld [vmem:[#allocation176_spill] sm:$0xff]  ;;  %v18765_v24 = vld [vmem:[#allocation177_spill] sm:$0xff]  ;;  %v18770_v29 = vld [vmem:[#allocation182_spill] sm:$0xff] }
 0x846   : > { %v9874_v27 = vadd.f32 %v9860_v55, %v9837_v52  ;;  %v9947_v33 = vadd.f32 %v18755_v39, %v9868_v26  ;;  %v9948_v59 = vadd.f32 %v18756_v11, %v9869_v12  ;;  %v9949_v17 = vadd.f32 %v18757_v45, %v9870_v19  ;;  %v18771_v55 = vld [vmem:[#allocation183_spill] sm:$0xff]  ;;  %v18772_v12 = vld [vmem:[#allocation184_spill] sm:$0xff]  ;;  %v18777_v45 = vld [vmem:[#allocation189_spill] sm:$0xff] }
 0x847   : > { %v9950_v10 = vadd.f32 %v18758_v30, %v9871_v51  ;;  %v9951_v41 = vadd.f32 %v18759_v28, %v9872_v38  ;;  %v9952_v20 = vadd.f32 %v18760_v9, %v9873_v6  ;;  %v10254_v34 = vmul.f32 %v10251_v54, %v17010_v22  ;;  %v18773_v51 = vld [vmem:[#allocation185_spill] sm:$0xff]  ;;  %v18774_v6 = vld [vmem:[#allocation186_spill] sm:$0xff]  ;;  %v18775_v39 = vld [vmem:[#allocation187_spill] sm:$0xff] }
 0x848   : > { %v9953_v31 = vadd.f32 %v18761_v49, %v9874_v27  ;;  %v10026_v21 = vadd.f32 %v18762_v7, %v9947_v33  ;;  %v10027_v42 = vadd.f32 %v18763_v46, %v9948_v59  ;;  %v10028_v0 = vadd.f32 %v18764_v35, %v9949_v17  ;;  %v18776_v11 = vld [vmem:[#allocation188_spill] sm:$0xff] }
 0x849   : > { %v10029_v52 = vadd.f32 %v18765_v24, %v9950_v10  ;;  %v10030_v25 = vadd.f32 %v18766_v43, %v9951_v41  ;;  %v10031_v1 = vadd.f32 %v18767_v2, %v9952_v20  ;;  %v10255_v63 = vmul.f32 %v10251_v54, %v17020_v60  ;;  %v18778_v10 = vld [vmem:[#allocation190_spill] sm:$0xff]  ;;  %v18779_v41 = vld [vmem:[#allocation191_spill] sm:$0xff]  ;;  %v18780_v20 = vld [vmem:[#allocation192_spill] sm:$0xff] }
 0x84a   : > { %v10032_v36 = vadd.f32 %v18768_v53, %v9953_v31  ;;  %v10105_v15 = vadd.f32 %v18769_v62, %v10026_v21  ;;  %v10106_v56 = vadd.f32 %v18770_v29, %v10027_v42  ;;  %v10107_v26 = vadd.f32 %v18771_v55, %v10028_v0  ;;  %v18781_v31 = vld [vmem:[#allocation193_spill] sm:$0xff]  ;;  %v18782_v21 = vld [vmem:[#allocation194_spill] sm:$0xff] }
 0x84b   : > { %v10108_v19 = vadd.f32 %v18772_v12, %v10029_v52  ;;  %v10109_v38 = vadd.f32 %v18773_v51, %v10030_v25  ;;  %v10110_v27 = vadd.f32 %v18774_v6, %v10031_v1  ;;  %v10256_v30 = vmul.f32 %v10251_v54, %v17022_v16 }
 0x84c   : > { %v10111_v33 = vadd.f32 %v18775_v39, %v10032_v36  ;;  %v10184_v59 = vadd.f32 %v18776_v11, %v10105_v15  ;;  %v10185_v17 = vadd.f32 %v18777_v45, %v10106_v56  ;;  %v10186_v28 = vadd.f32 %v18778_v10, %v10107_v26 }
 0x84d   : > { %v10187_v9 = vadd.f32 %v18779_v41, %v10108_v19  ;;  %v10188_v49 = vadd.f32 %v18780_v20, %v10109_v38  ;;  %v10189_v7 = vadd.f32 %v18781_v31, %v10110_v27  ;;  %v10257_v35 = vmul.f32 %v10251_v54, %v17024_v37 }
 0x84e   : > { %v10190_v46 = vadd.f32 %v18782_v21, %v10111_v33  ;;  %v10198_v42 = vcombine.low %v10184_v59, %v10185_v17  ;;  %v10258_v0 = vmul.f32 %v10251_v54, %v17098_v57  ;;  %v10260_v43 = vstv %s17677_s17 }
 0x84f   : > { %v10199_v24 = vcombine.low %v10186_v28, %v10187_v9  ;;  %v10200_v52 = vcombine.low %v10188_v49, %v10189_v7  ;;  %v10297_v25 = vstv %s17679_s18  ;;  %v10261_v53 = vmul.f32 %v10260_v43, %v17006_v47 }
 0x850   : > { %v10207_v2 = vrot.slane %v10198_v42, %v18597_v44  ;;  %v10228_v1 = vrot.slane %v10190_v46, %v18597_v44  ;;  %v10262_v36 = vmul.f32 %v10260_v43, %v17008_v58  ;;  %v10263_v29 = vmul.f32 %v10260_v43, %v17010_v22 }
 0x851   : > { %v10214_v62 = vrot.slane %v10199_v24, %v18597_v44  ;;  %v10221_v15 = vrot.slane %v10200_v52, %v18597_v44  ;;  %v10264_v54 = vmul.f32 %v10260_v43, %v17020_v60  ;;  %v10265_v56 = vmul.f32 %v10260_v43, %v17022_v16 }
 0x852   : > { %v10266_v55 = vmul.f32 %v10260_v43, %v17024_v37  ;;  %v10267_v26 = vmul.f32 %v10260_v43, %v17098_v57  ;;  %v10275_v12 = vrot.slane %v10261_v53, 1  ;;  %v10276_v38 = vrot.slane %v10262_v36, 1 }
 0x853   : > { %v10229_v19 = vcombine.low %v10207_v2, %v10214_v62  ;;  %v10230_v51 = vcombine.low %v10221_v15, %v10228_v1  ;;  %v10277_v6 = vrot.slane %v10263_v29, 1  ;;  %v10278_v27 = vrot.slane %v10264_v54, 1 }
 0x854   : > { %v10279_v39 = vrot.slane %v10265_v56, 1  ;;  %v10280_v33 = vrot.slane %v10266_v55, 1  ;;  %v10281_v11 = vrot.slane %v10267_v26, 1  ;;  %v10289_v17 = vadd.f32 %v10275_v12, %v17666_v3 }
 0x855   : > { %v10237_v59 = vrot.slane %v10229_v19, %v18597_v44  ;;  %v10244_v45 = vrot.slane %v10230_v51, %v18597_v44  ;;  %v10290_v10 = vadd.f32 %v10276_v38, %v17671_v13  ;;  %v10291_v28 = vadd.f32 %v10277_v6, %v10254_v34 }
 0x856   : > { %v10292_v41 = vadd.f32 %v10278_v27, %v10255_v63  ;;  %v10293_v9 = vadd.f32 %v10279_v39, %v10256_v30  ;;  %v10294_v20 = vadd.f32 %v10280_v33, %v10257_v35  ;;  %v10295_v31 = vadd.f32 %v10281_v11, %v10258_v0 }
 0x857   : > { %v10245_v49 = vcombine.low %v10237_v59, %v10244_v45  ;;  %v10298_v7 = vmul.f32 %v10297_v25, %v17006_v47  ;;  %v10299_v21 = vmul.f32 %v10297_v25, %v17008_v58  ;;  %v10300_v46 = vmul.f32 %v10297_v25, %v17010_v22 }
 0x858   : > { %v10301_v42 = vmul.f32 %v10297_v25, %v17020_v60  ;;  %v10302_v24 = vmul.f32 %v10297_v25, %v17022_v16  ;;  %v10303_v3 = vmul.f32 %v10297_v25, %v17024_v37  ;;  %v10304_v13 = vmul.f32 %v10297_v25, %v17098_v57 }
 0x859   : > { %11684 = vst.msk [vmem:[%s17255_s30 + $0x5] ss:$8 sm:$0xf] %vm17223_vm0, %v10245_v49  ;;  %11685 = vst.msk [vmem:[%s17255_s30 + $0x5] ss:$8 sm:$0x70] %vm17223_vm0, %v10245_v49  ;;  %v10334_v30 = vstv %s17718_s19  ;;  %v10753_v39 = vmul.f32 %v16835_v32, %v17098_v57 }
 0x85a   : > { %v10312_v34 = vrot.slane %v10298_v7, 2  ;;  %v10313_v63 = vrot.slane %v10299_v21, 2  ;;  %v10314_v35 = vrot.slane %v10300_v46, 2  ;;  %v10315_v0 = vrot.slane %v10301_v42, 2  ;;  %v18785_v49 = vld [vmem:[#allocation197_spill] sm:$0xff]  ;;  %v18786_v32 = vld [vmem:[#allocation151_spill] sm:$0xff] }
 0x85b   : > { %v10316_v52 = vrot.slane %v10302_v24, 2  ;;  %v10317_v43 = vrot.slane %v10303_v3, 2  ;;  %v10318_v2 = vrot.slane %v10304_v13, 2  ;;  %v10335_v36 = vmul.f32 %v10334_v30, %v17006_v47  ;;  %v18787_v46 = vld [vmem:[#allocation153_spill] sm:$0xff]  ;;  %v18788_v3 = vld [vmem:[#allocation150_spill] sm:$0xff] }
 0x85c   : > { %v10326_v1 = vadd.f32 %v10312_v34, %v10289_v17  ;;  %v10327_v53 = vadd.f32 %v10313_v63, %v10290_v10  ;;  %v10328_v62 = vadd.f32 %v10314_v35, %v10291_v28  ;;  %v10329_v15 = vadd.f32 %v10315_v0, %v10292_v41  ;;  %v18783_v28 = vld [vmem:[#allocation195_spill] sm:$0xff]  ;;  %v18790_v35 = vld [vmem:[#allocation154_spill] sm:$0xff] }
 0x85d   : > { %v10330_v29 = vadd.f32 %v10316_v52, %v10293_v9  ;;  %v10331_v54 = vadd.f32 %v10317_v43, %v10294_v20  ;;  %v10332_v56 = vadd.f32 %v10318_v2, %v10295_v31  ;;  %v10336_v55 = vmul.f32 %v10334_v30, %v17008_v58  ;;  %v18784_v9 = vld [vmem:[#allocation196_spill] sm:$0xff]  ;;  %v18789_v63 = vld [vmem:[#allocation155_spill] sm:$0xff]  ;;  %v18791_v52 = vld [vmem:[#allocation157_spill] sm:$0xff] }
 0x85e   : > { %v10337_v25 = vmul.f32 %v10334_v30, %v17010_v22  ;;  %v10338_v26 = vmul.f32 %v10334_v30, %v17020_v60  ;;  %v10339_v12 = vmul.f32 %v10334_v30, %v17022_v16  ;;  %v10340_v19 = vmul.f32 %v10334_v30, %v17024_v37 }
 0x85f   : > { %v10341_v51 = vmul.f32 %v10334_v30, %v17098_v57  ;;  %v10349_v38 = vrot.slane %v10335_v36, 3  ;;  %v10350_v6 = vrot.slane %v10336_v55, 3  ;;  %v10762_v16 = vmul.f32 %v16838_v48, %v17098_v57  ;;  %v18797_v55 = vld [vmem:[#allocation163_spill] sm:$0xff] }
 0x860   : > { %v10351_v47 = vrot.slane %v10337_v25, 3  ;;  %v10352_v27 = vrot.slane %v10338_v26, 3  ;;  %v10353_v33 = vrot.slane %v10339_v12, 3  ;;  %v10354_v11 = vrot.slane %v10340_v19, 3  ;;  %v18798_v12 = vld [vmem:[#allocation162_spill] sm:$0xff] }
 0x861   : > { %v10355_v58 = vrot.slane %v10341_v51, 3  ;;  %v10363_v59 = vadd.f32 %v10349_v38, %v10326_v1  ;;  %v10364_v22 = vadd.f32 %v10350_v6, %v10327_v53  ;;  %v10776_v21 = vrot.slane %v10762_v16, 1  ;;  %v18792_v53 = vld [vmem:[#allocation156_spill] sm:$0xff]  ;;  %v18799_v51 = vld [vmem:[#allocation165_spill] sm:$0xff] }
 0x862   : > { %v10365_v45 = vadd.f32 %v10351_v47, %v10328_v62  ;;  %v10366_v60 = vadd.f32 %v10352_v27, %v10329_v15  ;;  %v10367_v37 = vadd.f32 %v10353_v33, %v10330_v29  ;;  %v10368_v17 = vadd.f32 %v10354_v11, %v10331_v54  ;;  %v18793_v62 = vld [vmem:[#allocation159_spill] sm:$0xff]  ;;  %v18794_v29 = vld [vmem:[#allocation161_spill] sm:$0xff]  ;;  %v18795_v54 = vld [vmem:[#allocation158_spill] sm:$0xff] }
 0x863   : > { %v10369_v10 = vadd.f32 %v10355_v58, %v10332_v56  ;;  %v10442_v41 = vadd.f32 %v18783_v28, %v10363_v59  ;;  %v10443_v20 = vadd.f32 %v18784_v9, %v10364_v22  ;;  %v10799_v24 = vmul.f32 %v16855_v5, %v17098_v57  ;;  %v18800_v6 = vld [vmem:[#allocation164_spill] sm:$0xff]  ;;  %v18801_v27 = vld [vmem:[#allocation166_spill] sm:$0xff]  ;;  %v18803_v58 = vld [vmem:[#allocation209_spill] sm:$0xff] }
 0x864   : > { %v10444_v31 = vadd.f32 %v18785_v49, %v10365_v45  ;;  %v10445_v7 = vadd.f32 %v18786_v32, %v10366_v60  ;;  %v10446_v42 = vadd.f32 %v18787_v46, %v10367_v37  ;;  %v10836_v48 = vmul.f32 %v16858_v40, %v17098_v57  ;;  %v18796_v40 = vld [vmem:[#allocation160_spill] sm:$0xff]  ;;  %v18804_v22 = vld [vmem:[#allocation210_spill] sm:$0xff]  ;;  %v18807_v28 = vld [vmem:[#allocation213_spill] sm:$0xff] }
 0x865   : > { %v10447_v13 = vadd.f32 %v18788_v3, %v10368_v17  ;;  %v10790_v34 = vadd.f32 %v10776_v21, %v10753_v39  ;;  %v10448_v30 = vadd.f32 %v18789_v63, %v10369_v10  ;;  %v10521_v0 = vadd.f32 %v18790_v35, %v10442_v41  ;;  %v18802_v33 = vld [vmem:[#allocation208_spill] sm:$0xff]  ;;  %v18808_v9 = vld [vmem:[#allocation203_spill] sm:$0xff] }
 0x866   : > { %v10522_v43 = vadd.f32 %v18791_v52, %v10443_v20  ;;  %v10813_v2 = vrot.slane %v10799_v24, 2  ;;  %v10850_v1 = vrot.slane %v10836_v48, 3  ;;  %v10523_v36 = vadd.f32 %v18792_v53, %v10444_v31  ;;  %v18805_v16 = vld [vmem:[#allocation152_spill] sm:$0xff]  ;;  %v18809_v20 = vld [vmem:[#allocation202_spill] sm:$0xff]  ;;  %v18810_v31 = vld [vmem:[#allocation215_spill] sm:$0xff] }
 0x867   : > { %v10524_v15 = vadd.f32 %v18793_v62, %v10445_v7  ;;  %v10525_v5 = vadd.f32 %v18794_v29, %v10446_v42  ;;  %v10526_v56 = vadd.f32 %v18795_v54, %v10447_v13  ;;  %v10527_v57 = vadd.f32 %v18796_v40, %v10448_v30  ;;  %v18806_v17 = vld [vmem:[#allocation212_spill] sm:$0xff]  ;;  %v18812_v46 = vld [vmem:[#allocation219_spill] sm:$0xff]  ;;  %v18813_v13 = vld [vmem:[#allocation205_spill] sm:$0xff] }
 0x868   : > { %v10600_v25 = vadd.f32 %v18797_v55, %v10521_v0  ;;  %v10827_v26 = vadd.f32 %v10813_v2, %v10790_v34  ;;  %v10601_v19 = vadd.f32 %v18798_v12, %v10522_v43  ;;  %v10602_v38 = vadd.f32 %v18799_v51, %v10523_v36  ;;  %v18811_v7 = vld [vmem:[#allocation216_spill] sm:$0xff]  ;;  %v11159_v0 = vpop.permute.xlu1 %11158  ;;  %v18816_v53 = vld [vmem:[#allocation23_spill] sm:$0xff] }
 0x869   : > { %v10603_v47 = vadd.f32 %v18800_v6, %v10524_v15  ;;  %v10604_v39 = vadd.f32 %v18801_v27, %v10525_v5  ;;  %v10605_v11 = vadd.f32 %v18802_v33, %v10526_v56  ;;  %v10606_v59 = vadd.f32 %v18803_v58, %v10527_v57  ;;  %v18814_v34 = vld [vmem:[#allocation204_spill] sm:$0xff] }
 0x86a   : > { %v10679_v45 = vadd.f32 %v18804_v22, %v10600_v25  ;;  %v10864_v60 = vadd.f32 %v10850_v1, %v10827_v26  ;;  %v10680_v37 = vadd.f32 %v18805_v16, %v10601_v19  ;;  %v10681_v10 = vadd.f32 %v18806_v17, %v10602_v38  ;;  %v18815_v1 = vld [vmem:[#allocation100_spill] sm:$0xff] }
 0x86b   : > { %v10682_v41 = vadd.f32 %v18807_v28, %v10603_v47  ;;  %v10929_v49 = vsel %vm4100_vm4, %v18809_v20, %v18808_v9  ;;  %v10683_v32 = vadd.f32 %v18810_v31, %v10604_v39  ;;  %v10684_v21 = vadd.f32 %v18811_v7, %v10605_v11 }
 0x86c   : > { %v10685_v42 = vadd.f32 %v18812_v46, %v10606_v59  ;;  %v10693_v24 = vcombine.low %v10679_v45, %v10680_v37  ;;  %v10943_v3 = vadd.f32 %v10929_v49, %v10864_v60  ;;  %v11008_v63 = vsel %vm4100_vm4, %v18814_v34, %v18813_v13 }
 0x86d   : > { %v10694_v48 = vcombine.low %v10681_v10, %v10682_v41  ;;  %v10695_v30 = vcombine.low %v10683_v32, %v10684_v21  ;;  %v11190_v35 = vcombine.low %v17142_v8, %v17162_v50  ;;  %v11087_v36 = vsel %vm4100_vm4, %v18816_v53, %v18815_v1 }
 0x86e   : > { %v10702_v52 = vrot.slane %v10693_v24, %v18597_v44  ;;  %v11022_v2 = vadd.f32 %v11008_v63, %v10943_v3  ;;  %v10723_v15 = vrot.slane %v10685_v42, %v18597_v44  ;;  %v11166_v50 = vsel %vm4100_vm4, %v17083_v23, %v11159_v0 }
 0x86f   : > { %v10709_v43 = vrot.slane %v10694_v48, %v18597_v44  ;;  %v10716_v62 = vrot.slane %v10695_v30, %v18597_v44  ;;  %v11211_v54 = vrot.slane %v11190_v35, %v18597_v44  ;;  %v11227_v26 = vrot.slane %v11219_v18, %v18597_v44 }
 0x870   : > { %v11101_v5 = vadd.f32 %v11087_v36, %v11022_v2 }
 0x871   : > { %v10724_v29 = vcombine.low %v10702_v52, %v10709_v43  ;;  %v10725_v8 = vcombine.low %v10716_v62, %v10723_v15 }
 0x872   : > { %v11180_v40 = vadd.f32 %v11166_v50, %v11101_v5 }
 0x873   : > { %v10732_v56 = vrot.slane %v10724_v29, %v18597_v44  ;;  %v10739_v57 = vrot.slane %v10725_v8, %v18597_v44 }
 0x874   : > { %v11218_v55 = vrot.slane %v11180_v40, %v18597_v44 }
 0x875   : > { %v10740_v25 = vcombine.low %v10732_v56, %v10739_v57 }
 0x876   : > { %v11220_v12 = vcombine.low %v11211_v54, %v11218_v55 }
 0x877   : > { %11694 = vst.msk [vmem:[%s17255_s30 + $0x6] ss:$8 sm:$0xf] %vm17223_vm0, %v10740_v25  ;;  %11695 = vst.msk [vmem:[%s17255_s30 + $0x6] ss:$8 sm:$0x70] %vm17223_vm0, %v10740_v25 }
 0x878   : > { %v11234_v23 = vrot.slane %v11220_v12, %v18597_v44 }
 0x87a   : > { %v11235_v19 = vcombine.low %v11227_v26, %v11234_v23 }
 0x87c   : > { %11704 = vst.msk [vmem:[%s17255_s30 + $0x7] ss:$8 sm:$0xf] %vm17223_vm0, %v11235_v19  ;;  %11705 = vst.msk [vmem:[%s17255_s30 + $0x7] ss:$8 sm:$0x70] %vm17223_vm0, %v11235_v19 }
 0x87d PF: > { %s19_s24 = sadd.s32 1, %s12492_s24  }
 0x87e   : > { %p16_p5 = scmp.ge.s32.totalorder %s19_s24, 4  }
 0x880   :  { %18 = sbr.rel (!%p16_p5) target bundleno = 2 (0x2), region = 124 }
 0x887   :  { %11261 = vsyncpa [#allocation3], 1 }
 0x888   :  { %11263 = vsyncpa [#allocation3 + $0x1], 1 }
 0x889   :  { %11264 = vsyncpa [#allocation5], 1 }

</bundles_post_ra>
